<compile_context>
chip_gen: v6e
topology: v6e:2x2x1
jax: 0.10.0
libtpu: 0.0.40
codegen_flags: <defaults>
</compile_context>

<pallas_src>
import math
from functools import partial

import jax
import jax.numpy as jnp
from jax.experimental import pallas as pl
from jax.experimental.pallas import tpu as pltpu


_WEIGHT_NAMES = [
    "sa_wq", "sa_bq", "sa_wk", "sa_bk", "sa_wv", "sa_bv", "sa_wo", "sa_bo",
    "ca_wq", "ca_bq", "ca_wk", "ca_bk", "ca_wv", "ca_bv", "ca_wo", "ca_bo",
    "ff_w1", "ff_b1", "ff_w2", "ff_b2",
    "n1_g", "n1_b", "n2_g", "n2_b", "n3_g", "n3_b",
]
# 2-D matmul weights are cast to bf16 in the wrapper; biases / LN params stay f32.
_MATMUL_WEIGHTS = frozenset([
    "sa_wq", "sa_wk", "sa_wv", "sa_wo",
    "ca_wq", "ca_wk", "ca_wv", "ca_wo",
    "ff_w1", "ff_w2",
])


# ----------------------------- kernel math helpers -----------------------------

def _layer_norm(x, gamma, beta, eps=1e-5):
    mu = jnp.mean(x, axis=-1, keepdims=True)
    xc = x - mu
    var = jnp.mean(xc * xc, axis=-1, keepdims=True)
    return xc * jax.lax.rsqrt(var + eps) * gamma + beta


def _split_heads(t_rows, batch, seq, num_heads, head_dim, impl):
    """(batch*seq, H*dh) -> (H*batch, seq, dh) with heads as a leading batch dim."""
    if impl == "einshape":
        t3 = t_rows.reshape(batch * seq, num_heads, head_dim)
        th = pltpu.einshape("rhd->hrd", t3)               # (H, rows, dh)
        return th.reshape(num_heads * batch, seq, head_dim)
    # Fallback: per-head lane slices + stack (known-good lowering).
    t3 = t_rows.reshape(batch, seq, num_heads * head_dim)
    parts = [t3[:, :, h * head_dim:(h + 1) * head_dim] for h in range(num_heads)]
    stacked = jnp.stack(parts, axis=0)                     # (H, B, S, dh)
    return stacked.reshape(num_heads * batch, seq, head_dim)


def _merge_heads(o, num_heads, batch, seq, head_dim, impl):
    """(H*batch, seq, dh) -> (batch*seq, H*dh)."""
    if impl == "einshape":
        o3 = o.reshape(num_heads, batch * seq, head_dim)
        o3 = pltpu.einshape("hrd->rhd", o3)                # (rows, H, dh)
        return o3.reshape(batch * seq, num_heads * head_dim)
    o4 = o.reshape(num_heads, batch, seq, head_dim)
    rows = jnp.concatenate([o4[h] for h in range(num_heads)], axis=-1)  # (B,S,D)
    return rows.reshape(batch * seq, num_heads * head_dim)


def _online_softmax_attn(qh, kh, vh, bias, scale, kv_block):
    """Flash-style online softmax over KV chunks.

    qh: (N, Sq, dh) bf16; kh/vh: (N, Skv, dh) bf16; bias: (Sq, Skv) f32 additive.
    Bounds the f32 score tensor at (N, Sq, kv_block) regardless of Skv.
    """
    n, sq, dh = qh.shape
    skv = kh.shape[1]
    m = jnp.full((n, sq, 1), -jnp.inf, dtype=jnp.float32)
    l = jnp.zeros((n, sq, 1), dtype=jnp.float32)
    acc = jnp.zeros((n, sq, dh), dtype=jnp.float32)
    for start in range(0, skv, kv_block):
        stop = min(start + kv_block, skv)
        kc = kh[:, start:stop, :]
        vc = vh[:, start:stop, :]
        bc = bias[:, start:stop]
        s = jnp.einsum('nqd,nkd->nqk', qh, kc,
                       preferred_element_type=jnp.float32)
        s = s * scale + bc[None, :, :]
        m_new = jnp.maximum(m, jnp.max(s, axis=-1, keepdims=True))
        alpha = jnp.exp(m - m_new)
        p = jnp.exp(s - m_new)
        l = alpha * l + jnp.sum(p, axis=-1, keepdims=True)
        acc = alpha * acc + jnp.einsum('nqk,nkd->nqd', p.astype(vh.dtype), vc,
                                       preferred_element_type=jnp.float32)
        m = m_new
    # EUP reciprocal (separate bundle slot) for the final normalization.
    return acc * pl.reciprocal(l, approx=True)


def _mha(q_rows, kv_rows, batch, s_q, s_kv, bias,
         wq, bq, wk, bk, wv, bv, wo, bo, num_heads, kv_block, head_impl):
    d_model = q_rows.shape[-1]
    dh = d_model // num_heads
    scale = 1.0 / math.sqrt(dh)
    bf16 = jnp.bfloat16

    # Cast the row slab(s) to bf16 once and reuse for Q/K/V projections.
    q_bf = q_rows.astype(bf16)
    kv_bf = q_bf if kv_rows is q_rows else kv_rows.astype(bf16)

    # Single large projections over all Bt*S rows (bf16 operands, f32 accum).
    q = jnp.dot(q_bf, wq[...], preferred_element_type=jnp.float32) + bq[...]
    k = jnp.dot(kv_bf, wk[...], preferred_element_type=jnp.float32) + bk[...]
    v = jnp.dot(kv_bf, wv[...], preferred_element_type=jnp.float32) + bv[...]

    qh = _split_heads(q, batch, s_q, num_heads, dh, head_impl).astype(bf16)
    kh = _split_heads(k, batch, s_kv, num_heads, dh, head_impl).astype(bf16)
    vh = _split_heads(v, batch, s_kv, num_heads, dh, head_impl).astype(bf16)

    o = _online_softmax_attn(qh, kh, vh, bias, scale, kv_block)
    o_rows = _merge_heads(o, num_heads, batch, s_q, dh, head_impl)
    return jnp.dot(o_rows.astype(bf16), wo[...],
                   preferred_element_type=jnp.float32) + bo[...]


# ----------------------------------- kernel ------------------------------------

def decoder_layer_kernel(
    x_ref, enc_ref, tgt_bias_ref, src_bias_ref,
    sa_wq, sa_bq, sa_wk, sa_bk, sa_wv, sa_bv, sa_wo, sa_bo,
    ca_wq, ca_bq, ca_wk, ca_bk, ca_wv, ca_bv, ca_wo, ca_bo,
    ff_w1, ff_b1, ff_w2, ff_b2,
    n1_g, n1_b, n2_g, n2_b, n3_g, n3_b,
    out_ref, *, num_heads, kv_block, head_impl):
    bt, s, d = x_ref.shape
    se = enc_ref.shape[1]
    bf16 = jnp.bfloat16

    # Fold the batch block into the row dim -> projections / FFN are single
    # (Bt*S, D) @ (D, ...) MXU matmuls; residual stream stays f32.
    x = x_ref[...].reshape(bt * s, d)
    enc = enc_ref[...].reshape(bt * se, d)
    tgt_bias = tgt_bias_ref[...]
    src_bias = src_bias_ref[...]

    # TODO(synk): nn.Dropout(0.1) is treated as identity (inference/eval mode).

    # 1) masked self-attention + residual + LayerNorm
    attn = _mha(x, x, bt, s, s, tgt_bias,
                sa_wq, sa_bq, sa_wk, sa_bk, sa_wv, sa_bv, sa_wo, sa_bo,
                num_heads, kv_block, head_impl)
    x = _layer_norm(x + attn, n1_g[...], n1_b[...])

    # 2) cross-attention over encoder output + residual + LayerNorm
    attn = _mha(x, enc, bt, s, se, src_bias,
                ca_wq, ca_bq, ca_wk, ca_bk, ca_wv, ca_bv, ca_wo, ca_bo,
                num_heads, kv_block, head_impl)
    x = _layer_norm(x + attn, n2_g[...], n2_b[...])

    # 3) position-wise feed-forward + residual + LayerNorm
    h = jnp.maximum(
        jnp.dot(x.astype(bf16), ff_w1[...],
                preferred_element_type=jnp.float32) + ff_b1[...], 0.0)
    ffn = jnp.dot(h.astype(bf16), ff_w2[...],
                  preferred_element_type=jnp.float32) + ff_b2[...]
    x = _layer_norm(x + ffn, n3_g[...], n3_b[...])

    out_ref[...] = x.reshape(bt, s, d)


# ----------------------------------- wrapper ------------------------------------

def decoder_layer(x, enc_output, tgt_mask, src_mask, params, num_heads,
                  *, batch_block=None, kv_block=None):
    B, S, D = x.shape
    Se = enc_output.shape[1]
    assert D % num_heads == 0

    if batch_block is None:
        # Grid extent >= 2 whenever B >= 2 so both v7x TensorCores get work.
        batch_block = 1 if B == 1 else max(
            d for d in range(1, B // 2 + 1) if B % d == 0)
    Bt = batch_block
    assert B % Bt == 0, "batch must be divisible by batch_block"

    if kv_block is None:
        kv_block = 512
    kv_block = max(1, min(kv_block, max(S, Se)))

    # Additive mask biases precomputed once (mask==0 -> -1e9), shared across
    # batch and heads; removes the per-head compare+select from the kernel.
    tgt_bias = jnp.where(tgt_mask == 0.0, -1e9, 0.0).astype(jnp.float32)
    src_bias = jnp.where(src_mask == 0.0, -1e9, 0.0).astype(jnp.float32)

    # Matmul weights in bf16 (f32 accumulation on the MXU); biases / LN in f32.
    weights = [params[n].astype(jnp.bfloat16) if n in _MATMUL_WEIGHTS else params[n]
               for n in _WEIGHT_NAMES]

    # Weights / mask biases never change across grid steps: keep them fully
    # VMEM-resident (single copy, no double-buffering).
    resident = pl.BlockSpec(memory_space=pltpu.MemorySpace.VMEM)
    in_specs = [
        pl.BlockSpec((Bt, S, D), lambda b: (b, 0, 0)),    # x   : Bt batch rows
        pl.BlockSpec((Bt, Se, D), lambda b: (b, 0, 0)),   # enc : Bt batch rows
        resident,                                         # tgt mask bias
        resident,                                         # src mask bias
    ] + [resident] * len(weights)
    out_spec = pl.BlockSpec((Bt, S, D), lambda b: (b, 0, 0))

    # Advisory cost estimate for the fused layer.
    d_ff = params["ff_w1"].shape[1]
    dh = D // num_heads
    rows, rows_e = B * S, B * Se
    flops = (2 * D * D * 4 * rows                        # self-attn projections
             + 2 * D * D * (2 * rows + 2 * rows_e)       # cross-attn projections
             + 4 * B * num_heads * S * S * dh            # self scores + PV
             + 4 * B * num_heads * S * Se * dh           # cross scores + PV
             + 4 * rows * D * d_ff)                      # FFN
    transcendentals = B * num_heads * (S * S + S * Se)   # softmax exps
    bytes_accessed = int(
        sum(int(a.size) * a.dtype.itemsize
            for a in [x, enc_output, tgt_bias, src_bias] + weights)
        + rows * D * 4)

    # Generation-aware VMEM budget: resident weights + double-buffered blocks
    # + bounded intermediates, clamped to (physical capacity - headroom).
    def nbytes(a):
        return int(a.size) * a.dtype.itemsize
    resident_bytes = sum(nbytes(w) for w in weights)
    resident_bytes += nbytes(tgt_bias) + nbytes(src_bias)
    block_bytes = 2 * 4 * (Bt * S * D + Bt * Se * D + Bt * S * D)  # 2x buffered
    brows, brows_e = Bt * S, Bt * Se
    interm_bytes = 4 * (3 * brows * D + 3 * brows_e * D          # q/k/v f32
                        + num_heads * Bt * S * kv_block          # score chunk
                        + brows * d_ff                           # FFN hidden
                        + 4 * brows * D)                         # residual/LN slack
    needed = resident_bytes + block_bytes + interm_bytes

    vmem_cap = 64 * 1024 * 1024
    try:
        info = pltpu.get_tpu_info()
        cap = int(getattr(info, "vmem_capacity_bytes", 0) or 0)
        if cap > 0:
            vmem_cap = cap
    except Exception:
        pass
    headroom = 12 * 1024 * 1024
    vmem_limit = max(2 * needed, 32 * 1024 * 1024)
    vmem_limit = int(max(min(vmem_limit, vmem_cap - headroom), 16 * 1024 * 1024))

    def build(head_impl):
        kernel = partial(decoder_layer_kernel, num_heads=num_heads,
                         kv_block=kv_block, head_impl=head_impl)
        return pl.pallas_call(
            kernel,
            out_shape=jax.ShapeDtypeStruct((B, S, D), jnp.float32),
            grid=(B // Bt,),
            in_specs=in_specs,
            out_specs=out_spec,
            compiler_params=pltpu.CompilerParams(
                dimension_semantics=("parallel",),
                vmem_limit_bytes=vmem_limit),
            cost_estimate=pl.CostEstimate(
                flops=int(flops),
                transcendentals=int(transcendentals),
                bytes_accessed=bytes_accessed),
        )

    args = (x, enc_output, tgt_bias, src_bias, *weights)
    try:
        # Preferred: single layout-aware transpose per tensor for head split/merge.
        return build("einshape")(*args)
    except Exception:
        # Fallback: per-head slice + stack (always lowers); same numerics.
        return build("stack")(*args)


# ------------------------------ parameter creation ------------------------------

def init_params(key, d_model, num_heads, d_ff):
    ks = jax.random.split(key, 20)
    scale = 0.02

    def w(k, shape):
        return (scale * jax.random.normal(k, shape)).astype(jnp.float32)

    p = {}
    p["sa_wq"], p["sa_wk"], p["sa_wv"], p["sa_wo"] = (
        w(ks[0], (d_model, d_model)), w(ks[1], (d_model, d_model)),
        w(ks[2], (d_model, d_model)), w(ks[3], (d_model, d_model)))
    p["sa_bq"], p["sa_bk"], p["sa_bv"], p["sa_bo"] = (
        w(ks[4], (1, d_model)), w(ks[5], (1, d_model)),
        w(ks[6], (1, d_model)), w(ks[7], (1, d_model)))
    p["ca_wq"], p["ca_wk"], p["ca_wv"], p["ca_wo"] = (
        w(ks[8], (d_model, d_model)), w(ks[9], (d_model, d_model)),
        w(ks[10], (d_model, d_model)), w(ks[11], (d_model, d_model)))
    p["ca_bq"], p["ca_bk"], p["ca_bv"], p["ca_bo"] = (
        w(ks[12], (1, d_model)), w(ks[13], (1, d_model)),
        w(ks[14], (1, d_model)), w(ks[15], (1, d_model)))
    p["ff_w1"], p["ff_b1"] = w(ks[16], (d_model, d_ff)), w(ks[17], (1, d_ff))
    p["ff_w2"], p["ff_b2"] = w(ks[18], (d_ff, d_model)), w(ks[19], (1, d_model))
    for n in ("n1", "n2", "n3"):
        p[f"{n}_g"] = jnp.ones((1, d_model), jnp.float32)
        p[f"{n}_b"] = jnp.zeros((1, d_model), jnp.float32)
    return p


# ----------------------------- pure-JAX f32 reference ---------------------------

def decoder_layer_ref(x, enc, tgt_mask, src_mask, p, num_heads):
    def ln(v, g, b, eps=1e-5):
        mu = jnp.mean(v, axis=-1, keepdims=True)
        var = jnp.mean((v - mu) ** 2, axis=-1, keepdims=True)
        return (v - mu) * jax.lax.rsqrt(var + eps) * g + b

    def mha(q_in, kv_in, mask, pre):
        d = q_in.shape[-1]
        dh = d // num_heads
        q = q_in @ p[pre + "_wq"] + p[pre + "_bq"]
        k = kv_in @ p[pre + "_wk"] + p[pre + "_bk"]
        v = kv_in @ p[pre + "_wv"] + p[pre + "_bv"]
        outs = []
        for h in range(num_heads):
            sl = slice(h * dh, (h + 1) * dh)
            s = (q[:, sl] @ k[:, sl].T) / math.sqrt(dh)
            s = jnp.where(mask == 0.0, -1e9, s)
            a = jax.nn.softmax(s, axis=-1)
            outs.append(a @ v[:, sl])
        o = jnp.concatenate(outs, axis=-1)
        return o @ p[pre + "_wo"] + p[pre + "_bo"]

    def one(xb, eb):
        a = mha(xb, xb, tgt_mask, "sa")
        h1 = ln(xb + a, p["n1_g"], p["n1_b"])
        a = mha(h1, eb, src_mask, "ca")
        h2 = ln(h1 + a, p["n2_g"], p["n2_b"])
        f = jnp.maximum(h2 @ p["ff_w1"] + p["ff_b1"], 0.0) @ p["ff_w2"] + p["ff_b2"]
        return ln(h2 + f, p["n3_g"], p["n3_b"])

    return jax.vmap(one)(x, enc)


# ------------------------------------ main --------------------------------------

if __name__ == "__main__":
    B, S, Se = 4, 8, 8
    d_model, num_heads, d_ff = 32, 4, 64

    key = jax.random.PRNGKey(0)
    kx, ke, kp = jax.random.split(key, 3)
    x = jax.random.normal(kx, (B, S, d_model), dtype=jnp.float32)
    enc_output = jax.random.normal(ke, (B, Se, d_model), dtype=jnp.float32)
    tgt_mask = jnp.tril(jnp.ones((S, S), jnp.float32))   # causal mask
    src_mask = jnp.ones((S, Se), jnp.float32)            # no masking on encoder

    params = init_params(kp, d_model, num_heads, d_ff)

    # kv_block=4 -> 2 KV chunks so the online-softmax path is exercised.
    out = decoder_layer(x, enc_output, tgt_mask, src_mask, params, num_heads,
                        batch_block=2, kv_block=4)
    out = jax.block_until_ready(out)

    ref = decoder_layer_ref(x, enc_output, tgt_mask, src_mask, params, num_heads)
    assert out.shape == (B, S, d_model)
    max_err = float(jnp.max(jnp.abs(out - ref)))
    assert jnp.allclose(out, ref, atol=1e-2, rtol=1e-2), (
        f"mismatch vs reference (max abs err {max_err:.3e})")

    print("KERNEL_OK")
</pallas_src>

<mosaic_0001>
module attributes {stable_mosaic.version = 11 : i64} {
  func.func @decoder_layer_kernel(%arg0: i32, %arg1: memref<2x8x32xf32, #tpu.memory_space<vmem>>, %arg2: memref<2x8x32xf32, #tpu.memory_space<vmem>>, %arg3: memref<8x8xf32, #tpu.memory_space<vmem>>, %arg4: memref<8x8xf32, #tpu.memory_space<vmem>>, %arg5: memref<32x32xbf16, #tpu.memory_space<vmem>>, %arg6: memref<1x32xf32, #tpu.memory_space<vmem>>, %arg7: memref<32x32xbf16, #tpu.memory_space<vmem>>, %arg8: memref<1x32xf32, #tpu.memory_space<vmem>>, %arg9: memref<32x32xbf16, #tpu.memory_space<vmem>>, %arg10: memref<1x32xf32, #tpu.memory_space<vmem>>, %arg11: memref<32x32xbf16, #tpu.memory_space<vmem>>, %arg12: memref<1x32xf32, #tpu.memory_space<vmem>>, %arg13: memref<32x32xbf16, #tpu.memory_space<vmem>>, %arg14: memref<1x32xf32, #tpu.memory_space<vmem>>, %arg15: memref<32x32xbf16, #tpu.memory_space<vmem>>, %arg16: memref<1x32xf32, #tpu.memory_space<vmem>>, %arg17: memref<32x32xbf16, #tpu.memory_space<vmem>>, %arg18: memref<1x32xf32, #tpu.memory_space<vmem>>, %arg19: memref<32x32xbf16, #tpu.memory_space<vmem>>, %arg20: memref<1x32xf32, #tpu.memory_space<vmem>>, %arg21: memref<32x64xbf16, #tpu.memory_space<vmem>>, %arg22: memref<1x64xf32, #tpu.memory_space<vmem>>, %arg23: memref<64x32xbf16, #tpu.memory_space<vmem>>, %arg24: memref<1x32xf32, #tpu.memory_space<vmem>>, %arg25: memref<1x32xf32, #tpu.memory_space<vmem>>, %arg26: memref<1x32xf32, #tpu.memory_space<vmem>>, %arg27: memref<1x32xf32, #tpu.memory_space<vmem>>, %arg28: memref<1x32xf32, #tpu.memory_space<vmem>>, %arg29: memref<1x32xf32, #tpu.memory_space<vmem>>, %arg30: memref<1x32xf32, #tpu.memory_space<vmem>>, %arg31: memref<2x8x32xf32, #tpu.memory_space<vmem>>) attributes {dimension_semantics = [#tpu.dimension_semantics<parallel>], iteration_bounds = array<i64: 2>, scalar_prefetch = 0 : i64, scratch_operands = 0 : i64, tpu.core_type = #tpu.core_type<tc>, window_params = [{transform_indices = @transform_0, window_bounds = array<i64: 2, 8, 32>}, {transform_indices = @transform_1, window_bounds = array<i64: 2, 8, 32>}, {pipeline_mode = #tpu.pipeline_mode<synchronous>, transform_indices = @transform_2, window_bounds = array<i64: 8, 8>}, {pipeline_mode = #tpu.pipeline_mode<synchronous>, transform_indices = @transform_3, window_bounds = array<i64: 8, 8>}, {pipeline_mode = #tpu.pipeline_mode<synchronous>, transform_indices = @transform_4, window_bounds = array<i64: 32, 32>}, {pipeline_mode = #tpu.pipeline_mode<synchronous>, transform_indices = @transform_5, window_bounds = array<i64: 1, 32>}, {pipeline_mode = #tpu.pipeline_mode<synchronous>, transform_indices = @transform_6, window_bounds = array<i64: 32, 32>}, {pipeline_mode = #tpu.pipeline_mode<synchronous>, transform_indices = @transform_7, window_bounds = array<i64: 1, 32>}, {pipeline_mode = #tpu.pipeline_mode<synchronous>, transform_indices = @transform_8, window_bounds = array<i64: 32, 32>}, {pipeline_mode = #tpu.pipeline_mode<synchronous>, transform_indices = @transform_9, window_bounds = array<i64: 1, 32>}, {pipeline_mode = #tpu.pipeline_mode<synchronous>, transform_indices = @transform_10, window_bounds = array<i64: 32, 32>}, {pipeline_mode = #tpu.pipeline_mode<synchronous>, transform_indices = @transform_11, window_bounds = array<i64: 1, 32>}, {pipeline_mode = #tpu.pipeline_mode<synchronous>, transform_indices = @transform_12, window_bounds = array<i64: 32, 32>}, {pipeline_mode = #tpu.pipeline_mode<synchronous>, transform_indices = @transform_13, window_bounds = array<i64: 1, 32>}, {pipeline_mode = #tpu.pipeline_mode<synchronous>, transform_indices = @transform_14, window_bounds = array<i64: 32, 32>}, {pipeline_mode = #tpu.pipeline_mode<synchronous>, transform_indices = @transform_15, window_bounds = array<i64: 1, 32>}, {pipeline_mode = #tpu.pipeline_mode<synchronous>, transform_indices = @transform_16, window_bounds = array<i64: 32, 32>}, {pipeline_mode = #tpu.pipeline_mode<synchronous>, transform_indices = @transform_17, window_bounds = array<i64: 1, 32>}, {pipeline_mode = #tpu.pipeline_mode<synchronous>, transform_indices = @transform_18, window_bounds = array<i64: 32, 32>}, {pipeline_mode = #tpu.pipeline_mode<synchronous>, transform_indices = @transform_19, window_bounds = array<i64: 1, 32>}, {pipeline_mode = #tpu.pipeline_mode<synchronous>, transform_indices = @transform_20, window_bounds = array<i64: 32, 64>}, {pipeline_mode = #tpu.pipeline_mode<synchronous>, transform_indices = @transform_21, window_bounds = array<i64: 1, 64>}, {pipeline_mode = #tpu.pipeline_mode<synchronous>, transform_indices = @transform_22, window_bounds = array<i64: 64, 32>}, {pipeline_mode = #tpu.pipeline_mode<synchronous>, transform_indices = @transform_23, window_bounds = array<i64: 1, 32>}, {pipeline_mode = #tpu.pipeline_mode<synchronous>, transform_indices = @transform_24, window_bounds = array<i64: 1, 32>}, {pipeline_mode = #tpu.pipeline_mode<synchronous>, transform_indices = @transform_25, window_bounds = array<i64: 1, 32>}, {pipeline_mode = #tpu.pipeline_mode<synchronous>, transform_indices = @transform_26, window_bounds = array<i64: 1, 32>}, {pipeline_mode = #tpu.pipeline_mode<synchronous>, transform_indices = @transform_27, window_bounds = array<i64: 1, 32>}, {pipeline_mode = #tpu.pipeline_mode<synchronous>, transform_indices = @transform_28, window_bounds = array<i64: 1, 32>}, {pipeline_mode = #tpu.pipeline_mode<synchronous>, transform_indices = @transform_29, window_bounds = array<i64: 1, 32>}, {transform_indices = @transform_30, window_bounds = array<i64: 2, 8, 32>}]} {
    %c0 = arith.constant 0 : index
    %c0_0 = arith.constant 0 : index
    %c0_1 = arith.constant 0 : index
    %0 = vector.load %arg1[%c0, %c0_0, %c0_1] : memref<2x8x32xf32, #tpu.memory_space<vmem>>, vector<2x8x32xf32>
    %1 = vector.shape_cast %0 : vector<2x8x32xf32> to vector<16x32xf32>
    %c0_2 = arith.constant 0 : index
    %c0_3 = arith.constant 0 : index
    %c0_4 = arith.constant 0 : index
    %2 = vector.load %arg2[%c0_2, %c0_3, %c0_4] : memref<2x8x32xf32, #tpu.memory_space<vmem>>, vector<2x8x32xf32>
    %3 = vector.shape_cast %2 : vector<2x8x32xf32> to vector<16x32xf32>
    %c0_5 = arith.constant 0 : index
    %c0_6 = arith.constant 0 : index
    %4 = vector.load %arg3[%c0_5, %c0_6] : memref<8x8xf32, #tpu.memory_space<vmem>>, vector<8x8xf32>
    %c0_7 = arith.constant 0 : index
    %c0_8 = arith.constant 0 : index
    %5 = vector.load %arg4[%c0_7, %c0_8] : memref<8x8xf32, #tpu.memory_space<vmem>>, vector<8x8xf32>
    %6 = arith.truncf %1 : vector<16x32xf32> to vector<16x32xbf16>
    %c0_9 = arith.constant 0 : index
    %c0_10 = arith.constant 0 : index
    %7 = vector.load %arg5[%c0_9, %c0_10] : memref<32x32xbf16, #tpu.memory_space<vmem>>, vector<32x32xbf16>
    %cst = arith.constant dense<0.000000e+00> : vector<16x32xf32>
    %8 = tpu.matmul %6, %7, %cst {dimension_numbers = #tpu.dot_dimension_numbers<[1], [0], [0], [1], [0, 0, 1, 1], [], []>} : vector<16x32xbf16>, vector<32x32xbf16>, vector<16x32xf32> -> vector<16x32xf32>
    %c0_11 = arith.constant 0 : index
    %c0_12 = arith.constant 0 : index
    %9 = vector.load %arg6[%c0_11, %c0_12] : memref<1x32xf32, #tpu.memory_space<vmem>>, vector<1x32xf32>
    %10 = vector.broadcast %9 : vector<1x32xf32> to vector<16x32xf32>
    %11 = arith.addf %8, %10 : vector<16x32xf32>
    %c0_13 = arith.constant 0 : index
    %c0_14 = arith.constant 0 : index
    %12 = vector.load %arg7[%c0_13, %c0_14] : memref<32x32xbf16, #tpu.memory_space<vmem>>, vector<32x32xbf16>
    %cst_15 = arith.constant dense<0.000000e+00> : vector<16x32xf32>
    %13 = tpu.matmul %6, %12, %cst_15 {dimension_numbers = #tpu.dot_dimension_numbers<[1], [0], [0], [1], [0, 0, 1, 1], [], []>} : vector<16x32xbf16>, vector<32x32xbf16>, vector<16x32xf32> -> vector<16x32xf32>
    %c0_16 = arith.constant 0 : index
    %c0_17 = arith.constant 0 : index
    %14 = vector.load %arg8[%c0_16, %c0_17] : memref<1x32xf32, #tpu.memory_space<vmem>>, vector<1x32xf32>
    %15 = vector.broadcast %14 : vector<1x32xf32> to vector<16x32xf32>
    %16 = arith.addf %13, %15 : vector<16x32xf32>
    %c0_18 = arith.constant 0 : index
    %c0_19 = arith.constant 0 : index
    %17 = vector.load %arg9[%c0_18, %c0_19] : memref<32x32xbf16, #tpu.memory_space<vmem>>, vector<32x32xbf16>
    %cst_20 = arith.constant dense<0.000000e+00> : vector<16x32xf32>
    %18 = tpu.matmul %6, %17, %cst_20 {dimension_numbers = #tpu.dot_dimension_numbers<[1], [0], [0], [1], [0, 0, 1, 1], [], []>} : vector<16x32xbf16>, vector<32x32xbf16>, vector<16x32xf32> -> vector<16x32xf32>
    %c0_21 = arith.constant 0 : index
    %c0_22 = arith.constant 0 : index
    %19 = vector.load %arg10[%c0_21, %c0_22] : memref<1x32xf32, #tpu.memory_space<vmem>>, vector<1x32xf32>
    %20 = vector.broadcast %19 : vector<1x32xf32> to vector<16x32xf32>
    %21 = arith.addf %18, %20 : vector<16x32xf32>
    %22 = vector.shape_cast %11 : vector<16x32xf32> to vector<16x4x8xf32>
    %23 = tpu.transpose %22, [1, 0, 2] : vector<16x4x8xf32> -> vector<4x16x8xf32>
    %24 = vector.shape_cast %23 : vector<4x16x8xf32> to vector<8x8x8xf32>
    %25 = arith.truncf %24 : vector<8x8x8xf32> to vector<8x8x8xbf16>
    %26 = vector.shape_cast %16 : vector<16x32xf32> to vector<16x4x8xf32>
    %27 = tpu.transpose %26, [1, 0, 2] : vector<16x4x8xf32> -> vector<4x16x8xf32>
    %28 = vector.shape_cast %27 : vector<4x16x8xf32> to vector<8x8x8xf32>
    %29 = arith.truncf %28 : vector<8x8x8xf32> to vector<8x8x8xbf16>
    %30 = vector.shape_cast %21 : vector<16x32xf32> to vector<16x4x8xf32>
    %31 = tpu.transpose %30, [1, 0, 2] : vector<16x4x8xf32> -> vector<4x16x8xf32>
    %32 = vector.shape_cast %31 : vector<4x16x8xf32> to vector<8x8x8xf32>
    %33 = arith.truncf %32 : vector<8x8x8xf32> to vector<8x8x8xbf16>
    %cst_23 = arith.constant 0xFF800000 : f32
    %34 = vector.broadcast %cst_23 : f32 to vector<8x8x1xf32>
    %cst_24 = arith.constant 0.000000e+00 : f32
    %35 = vector.broadcast %cst_24 : f32 to vector<8x8x1xf32>
    %cst_25 = arith.constant 0.000000e+00 : f32
    %36 = vector.broadcast %cst_25 : f32 to vector<8x8x8xf32>
    %37 = vector.extract_strided_slice %29 {offsets = [0, 0, 0], sizes = [8, 4, 8], strides = [1, 1, 1]} : vector<8x8x8xbf16> to vector<8x4x8xbf16>
    %38 = vector.extract_strided_slice %33 {offsets = [0, 0, 0], sizes = [8, 4, 8], strides = [1, 1, 1]} : vector<8x8x8xbf16> to vector<8x4x8xbf16>
    %39 = vector.extract_strided_slice %4 {offsets = [0, 0], sizes = [8, 4], strides = [1, 1]} : vector<8x8xf32> to vector<8x4xf32>
    "tpu.trace_start"() <{level = 10 : i32, message = "nqd,nkd->nqk"}> : () -> ()
    %cst_26 = arith.constant dense<0.000000e+00> : vector<8x8x4xf32>
    %40 = tpu.matmul %25, %37, %cst_26 {dimension_numbers = #tpu.dot_dimension_numbers<[2], [2], [1], [1], [0, 0, 0, 1, 1, 1], [0], [0]>} : vector<8x8x8xbf16>, vector<8x4x8xbf16>, vector<8x8x4xf32> -> vector<8x8x4xf32>
    "tpu.trace_stop"() : () -> ()
    %cst_27 = arith.constant 0.353553385 : f32
    %41 = vector.broadcast %cst_27 : f32 to vector<8x8x4xf32>
    %42 = arith.mulf %40, %41 : vector<8x8x4xf32>
    %43 = vector.shape_cast %39 : vector<8x4xf32> to vector<1x8x4xf32>
    %44 = vector.broadcast %43 : vector<1x8x4xf32> to vector<8x8x4xf32>
    %45 = arith.addf %42, %44 : vector<8x8x4xf32>
    %cst_28 = arith.constant dense<0xFF800000> : vector<8x8xf32>
    %46 = vector.multi_reduction <maximumf>, %45, %cst_28 [2] : vector<8x8x4xf32> to vector<8x8xf32>
    %47 = vector.shape_cast %46 : vector<8x8xf32> to vector<8x8x1xf32>
    %48 = arith.maximumf %34, %47 : vector<8x8x1xf32>
    %49 = arith.subf %34, %48 : vector<8x8x1xf32>
    %50 = math.exp %49 : vector<8x8x1xf32>
    %51 = vector.broadcast %48 : vector<8x8x1xf32> to vector<8x8x4xf32>
    %52 = arith.subf %45, %51 : vector<8x8x4xf32>
    %53 = math.exp %52 : vector<8x8x4xf32>
    %54 = arith.mulf %50, %35 : vector<8x8x1xf32>
    %cst_29 = arith.constant dense<0.000000e+00> : vector<8x8xf32>
    %55 = vector.multi_reduction <add>, %53, %cst_29 [2] : vector<8x8x4xf32> to vector<8x8xf32>
    %56 = vector.shape_cast %55 : vector<8x8xf32> to vector<8x8x1xf32>
    %57 = arith.addf %54, %56 : vector<8x8x1xf32>
    %58 = vector.broadcast %50 : vector<8x8x1xf32> to vector<8x8x8xf32>
    %59 = arith.mulf %58, %36 : vector<8x8x8xf32>
    %60 = arith.truncf %53 : vector<8x8x4xf32> to vector<8x8x4xbf16>
    "tpu.trace_start"() <{level = 10 : i32, message = "nqk,nkd->nqd"}> : () -> ()
    %cst_30 = arith.constant dense<0.000000e+00> : vector<8x8x8xf32>
    %61 = tpu.matmul %60, %38, %cst_30 {dimension_numbers = #tpu.dot_dimension_numbers<[2], [1], [1], [2], [0, 0, 0, 1, 1, 2], [0], [0]>} : vector<8x8x4xbf16>, vector<8x4x8xbf16>, vector<8x8x8xf32> -> vector<8x8x8xf32>
    "tpu.trace_stop"() : () -> ()
    %62 = arith.addf %59, %61 : vector<8x8x8xf32>
    %63 = vector.extract_strided_slice %29 {offsets = [0, 4, 0], sizes = [8, 4, 8], strides = [1, 1, 1]} : vector<8x8x8xbf16> to vector<8x4x8xbf16>
    %64 = vector.extract_strided_slice %33 {offsets = [0, 4, 0], sizes = [8, 4, 8], strides = [1, 1, 1]} : vector<8x8x8xbf16> to vector<8x4x8xbf16>
    %65 = vector.extract_strided_slice %4 {offsets = [0, 4], sizes = [8, 4], strides = [1, 1]} : vector<8x8xf32> to vector<8x4xf32>
    "tpu.trace_start"() <{level = 10 : i32, message = "nqd,nkd->nqk"}> : () -> ()
    %cst_31 = arith.constant dense<0.000000e+00> : vector<8x8x4xf32>
    %66 = tpu.matmul %25, %63, %cst_31 {dimension_numbers = #tpu.dot_dimension_numbers<[2], [2], [1], [1], [0, 0, 0, 1, 1, 1], [0], [0]>} : vector<8x8x8xbf16>, vector<8x4x8xbf16>, vector<8x8x4xf32> -> vector<8x8x4xf32>
    "tpu.trace_stop"() : () -> ()
    %cst_32 = arith.constant 0.353553385 : f32
    %67 = vector.broadcast %cst_32 : f32 to vector<8x8x4xf32>
    %68 = arith.mulf %66, %67 : vector<8x8x4xf32>
    %69 = vector.shape_cast %65 : vector<8x4xf32> to vector<1x8x4xf32>
    %70 = vector.broadcast %69 : vector<1x8x4xf32> to vector<8x8x4xf32>
    %71 = arith.addf %68, %70 : vector<8x8x4xf32>
    %cst_33 = arith.constant dense<0xFF800000> : vector<8x8xf32>
    %72 = vector.multi_reduction <maximumf>, %71, %cst_33 [2] : vector<8x8x4xf32> to vector<8x8xf32>
    %73 = vector.shape_cast %72 : vector<8x8xf32> to vector<8x8x1xf32>
    %74 = arith.maximumf %48, %73 : vector<8x8x1xf32>
    %75 = arith.subf %48, %74 : vector<8x8x1xf32>
    %76 = math.exp %75 : vector<8x8x1xf32>
    %77 = vector.broadcast %74 : vector<8x8x1xf32> to vector<8x8x4xf32>
    %78 = arith.subf %71, %77 : vector<8x8x4xf32>
    %79 = math.exp %78 : vector<8x8x4xf32>
    %80 = arith.mulf %76, %57 : vector<8x8x1xf32>
    %cst_34 = arith.constant dense<0.000000e+00> : vector<8x8xf32>
    %81 = vector.multi_reduction <add>, %79, %cst_34 [2] : vector<8x8x4xf32> to vector<8x8xf32>
    %82 = vector.shape_cast %81 : vector<8x8xf32> to vector<8x8x1xf32>
    %83 = arith.addf %80, %82 : vector<8x8x1xf32>
    %84 = vector.broadcast %76 : vector<8x8x1xf32> to vector<8x8x8xf32>
    %85 = arith.mulf %84, %62 : vector<8x8x8xf32>
    %86 = arith.truncf %79 : vector<8x8x4xf32> to vector<8x8x4xbf16>
    "tpu.trace_start"() <{level = 10 : i32, message = "nqk,nkd->nqd"}> : () -> ()
    %cst_35 = arith.constant dense<0.000000e+00> : vector<8x8x8xf32>
    %87 = tpu.matmul %86, %64, %cst_35 {dimension_numbers = #tpu.dot_dimension_numbers<[2], [1], [1], [2], [0, 0, 0, 1, 1, 2], [0], [0]>} : vector<8x8x4xbf16>, vector<8x4x8xbf16>, vector<8x8x8xf32> -> vector<8x8x8xf32>
    "tpu.trace_stop"() : () -> ()
    %88 = arith.addf %85, %87 : vector<8x8x8xf32>
    %89 = tpu.reciprocal %83 {approx = true} : vector<8x8x1xf32> -> vector<8x8x1xf32>
    %90 = vector.broadcast %89 : vector<8x8x1xf32> to vector<8x8x8xf32>
    %91 = arith.mulf %88, %90 : vector<8x8x8xf32>
    %92 = vector.shape_cast %91 : vector<8x8x8xf32> to vector<4x16x8xf32>
    %93 = tpu.transpose %92, [1, 0, 2] : vector<4x16x8xf32> -> vector<16x4x8xf32>
    %94 = vector.shape_cast %93 : vector<16x4x8xf32> to vector<16x32xf32>
    %95 = arith.truncf %94 : vector<16x32xf32> to vector<16x32xbf16>
    %c0_36 = arith.constant 0 : index
    %c0_37 = arith.constant 0 : index
    %96 = vector.load %arg11[%c0_36, %c0_37] : memref<32x32xbf16, #tpu.memory_space<vmem>>, vector<32x32xbf16>
    %cst_38 = arith.constant dense<0.000000e+00> : vector<16x32xf32>
    %97 = tpu.matmul %95, %96, %cst_38 {dimension_numbers = #tpu.dot_dimension_numbers<[1], [0], [0], [1], [0, 0, 1, 1], [], []>} : vector<16x32xbf16>, vector<32x32xbf16>, vector<16x32xf32> -> vector<16x32xf32>
    %c0_39 = arith.constant 0 : index
    %c0_40 = arith.constant 0 : index
    %98 = vector.load %arg12[%c0_39, %c0_40] : memref<1x32xf32, #tpu.memory_space<vmem>>, vector<1x32xf32>
    %99 = vector.broadcast %98 : vector<1x32xf32> to vector<16x32xf32>
    %100 = arith.addf %97, %99 : vector<16x32xf32>
    %101 = arith.addf %1, %100 : vector<16x32xf32>
    %c0_41 = arith.constant 0 : index
    %c0_42 = arith.constant 0 : index
    %102 = vector.load %arg25[%c0_41, %c0_42] : memref<1x32xf32, #tpu.memory_space<vmem>>, vector<1x32xf32>
    %c0_43 = arith.constant 0 : index
    %c0_44 = arith.constant 0 : index
    %103 = vector.load %arg26[%c0_43, %c0_44] : memref<1x32xf32, #tpu.memory_space<vmem>>, vector<1x32xf32>
    %cst_45 = arith.constant dense<0.000000e+00> : vector<16xf32>
    %104 = vector.multi_reduction <add>, %101, %cst_45 [1] : vector<16x32xf32> to vector<16xf32>
    %105 = vector.shape_cast %104 : vector<16xf32> to vector<16x1xf32>
    %cst_46 = arith.constant 3.200000e+01 : f32
    %106 = vector.broadcast %cst_46 : f32 to vector<16x1xf32>
    %107 = arith.divf %105, %106 : vector<16x1xf32>
    %108 = vector.broadcast %107 : vector<16x1xf32> to vector<16x32xf32>
    %109 = arith.subf %101, %108 : vector<16x32xf32>
    %110 = arith.mulf %109, %109 : vector<16x32xf32>
    %cst_47 = arith.constant dense<0.000000e+00> : vector<16xf32>
    %111 = vector.multi_reduction <add>, %110, %cst_47 [1] : vector<16x32xf32> to vector<16xf32>
    %112 = vector.shape_cast %111 : vector<16xf32> to vector<16x1xf32>
    %cst_48 = arith.constant 3.200000e+01 : f32
    %113 = vector.broadcast %cst_48 : f32 to vector<16x1xf32>
    %114 = arith.divf %112, %113 : vector<16x1xf32>
    %cst_49 = arith.constant 9.99999974E-6 : f32
    %115 = vector.broadcast %cst_49 : f32 to vector<16x1xf32>
    %116 = arith.addf %114, %115 : vector<16x1xf32>
    %117 = math.rsqrt %116 : vector<16x1xf32>
    %118 = vector.broadcast %117 : vector<16x1xf32> to vector<16x32xf32>
    %119 = arith.mulf %109, %118 : vector<16x32xf32>
    %120 = vector.broadcast %102 : vector<1x32xf32> to vector<16x32xf32>
    %121 = arith.mulf %119, %120 : vector<16x32xf32>
    %122 = vector.broadcast %103 : vector<1x32xf32> to vector<16x32xf32>
    %123 = arith.addf %121, %122 : vector<16x32xf32>
    %124 = arith.truncf %123 : vector<16x32xf32> to vector<16x32xbf16>
    %125 = arith.truncf %3 : vector<16x32xf32> to vector<16x32xbf16>
    %c0_50 = arith.constant 0 : index
    %c0_51 = arith.constant 0 : index
    %126 = vector.load %arg13[%c0_50, %c0_51] : memref<32x32xbf16, #tpu.memory_space<vmem>>, vector<32x32xbf16>
    %cst_52 = arith.constant dense<0.000000e+00> : vector<16x32xf32>
    %127 = tpu.matmul %124, %126, %cst_52 {dimension_numbers = #tpu.dot_dimension_numbers<[1], [0], [0], [1], [0, 0, 1, 1], [], []>} : vector<16x32xbf16>, vector<32x32xbf16>, vector<16x32xf32> -> vector<16x32xf32>
    %c0_53 = arith.constant 0 : index
    %c0_54 = arith.constant 0 : index
    %128 = vector.load %arg14[%c0_53, %c0_54] : memref<1x32xf32, #tpu.memory_space<vmem>>, vector<1x32xf32>
    %129 = vector.broadcast %128 : vector<1x32xf32> to vector<16x32xf32>
    %130 = arith.addf %127, %129 : vector<16x32xf32>
    %c0_55 = arith.constant 0 : index
    %c0_56 = arith.constant 0 : index
    %131 = vector.load %arg15[%c0_55, %c0_56] : memref<32x32xbf16, #tpu.memory_space<vmem>>, vector<32x32xbf16>
    %cst_57 = arith.constant dense<0.000000e+00> : vector<16x32xf32>
    %132 = tpu.matmul %125, %131, %cst_57 {dimension_numbers = #tpu.dot_dimension_numbers<[1], [0], [0], [1], [0, 0, 1, 1], [], []>} : vector<16x32xbf16>, vector<32x32xbf16>, vector<16x32xf32> -> vector<16x32xf32>
    %c0_58 = arith.constant 0 : index
    %c0_59 = arith.constant 0 : index
    %133 = vector.load %arg16[%c0_58, %c0_59] : memref<1x32xf32, #tpu.memory_space<vmem>>, vector<1x32xf32>
    %134 = vector.broadcast %133 : vector<1x32xf32> to vector<16x32xf32>
    %135 = arith.addf %132, %134 : vector<16x32xf32>
    %c0_60 = arith.constant 0 : index
    %c0_61 = arith.constant 0 : index
    %136 = vector.load %arg17[%c0_60, %c0_61] : memref<32x32xbf16, #tpu.memory_space<vmem>>, vector<32x32xbf16>
    %cst_62 = arith.constant dense<0.000000e+00> : vector<16x32xf32>
    %137 = tpu.matmul %125, %136, %cst_62 {dimension_numbers = #tpu.dot_dimension_numbers<[1], [0], [0], [1], [0, 0, 1, 1], [], []>} : vector<16x32xbf16>, vector<32x32xbf16>, vector<16x32xf32> -> vector<16x32xf32>
    %c0_63 = arith.constant 0 : index
    %c0_64 = arith.constant 0 : index
    %138 = vector.load %arg18[%c0_63, %c0_64] : memref<1x32xf32, #tpu.memory_space<vmem>>, vector<1x32xf32>
    %139 = vector.broadcast %138 : vector<1x32xf32> to vector<16x32xf32>
    %140 = arith.addf %137, %139 : vector<16x32xf32>
    %141 = vector.shape_cast %130 : vector<16x32xf32> to vector<16x4x8xf32>
    %142 = tpu.transpose %141, [1, 0, 2] : vector<16x4x8xf32> -> vector<4x16x8xf32>
    %143 = vector.shape_cast %142 : vector<4x16x8xf32> to vector<8x8x8xf32>
    %144 = arith.truncf %143 : vector<8x8x8xf32> to vector<8x8x8xbf16>
    %145 = vector.shape_cast %135 : vector<16x32xf32> to vector<16x4x8xf32>
    %146 = tpu.transpose %145, [1, 0, 2] : vector<16x4x8xf32> -> vector<4x16x8xf32>
    %147 = vector.shape_cast %146 : vector<4x16x8xf32> to vector<8x8x8xf32>
    %148 = arith.truncf %147 : vector<8x8x8xf32> to vector<8x8x8xbf16>
    %149 = vector.shape_cast %140 : vector<16x32xf32> to vector<16x4x8xf32>
    %150 = tpu.transpose %149, [1, 0, 2] : vector<16x4x8xf32> -> vector<4x16x8xf32>
    %151 = vector.shape_cast %150 : vector<4x16x8xf32> to vector<8x8x8xf32>
    %152 = arith.truncf %151 : vector<8x8x8xf32> to vector<8x8x8xbf16>
    %cst_65 = arith.constant 0xFF800000 : f32
    %153 = vector.broadcast %cst_65 : f32 to vector<8x8x1xf32>
    %cst_66 = arith.constant 0.000000e+00 : f32
    %154 = vector.broadcast %cst_66 : f32 to vector<8x8x1xf32>
    %cst_67 = arith.constant 0.000000e+00 : f32
    %155 = vector.broadcast %cst_67 : f32 to vector<8x8x8xf32>
    %156 = vector.extract_strided_slice %148 {offsets = [0, 0, 0], sizes = [8, 4, 8], strides = [1, 1, 1]} : vector<8x8x8xbf16> to vector<8x4x8xbf16>
    %157 = vector.extract_strided_slice %152 {offsets = [0, 0, 0], sizes = [8, 4, 8], strides = [1, 1, 1]} : vector<8x8x8xbf16> to vector<8x4x8xbf16>
    %158 = vector.extract_strided_slice %5 {offsets = [0, 0], sizes = [8, 4], strides = [1, 1]} : vector<8x8xf32> to vector<8x4xf32>
    "tpu.trace_start"() <{level = 10 : i32, message = "nqd,nkd->nqk"}> : () -> ()
    %cst_68 = arith.constant dense<0.000000e+00> : vector<8x8x4xf32>
    %159 = tpu.matmul %144, %156, %cst_68 {dimension_numbers = #tpu.dot_dimension_numbers<[2], [2], [1], [1], [0, 0, 0, 1, 1, 1], [0], [0]>} : vector<8x8x8xbf16>, vector<8x4x8xbf16>, vector<8x8x4xf32> -> vector<8x8x4xf32>
    "tpu.trace_stop"() : () -> ()
    %cst_69 = arith.constant 0.353553385 : f32
    %160 = vector.broadcast %cst_69 : f32 to vector<8x8x4xf32>
    %161 = arith.mulf %159, %160 : vector<8x8x4xf32>
    %162 = vector.shape_cast %158 : vector<8x4xf32> to vector<1x8x4xf32>
    %163 = vector.broadcast %162 : vector<1x8x4xf32> to vector<8x8x4xf32>
    %164 = arith.addf %161, %163 : vector<8x8x4xf32>
    %cst_70 = arith.constant dense<0xFF800000> : vector<8x8xf32>
    %165 = vector.multi_reduction <maximumf>, %164, %cst_70 [2] : vector<8x8x4xf32> to vector<8x8xf32>
    %166 = vector.shape_cast %165 : vector<8x8xf32> to vector<8x8x1xf32>
    %167 = arith.maximumf %153, %166 : vector<8x8x1xf32>
    %168 = arith.subf %153, %167 : vector<8x8x1xf32>
    %169 = math.exp %168 : vector<8x8x1xf32>
    %170 = vector.broadcast %167 : vector<8x8x1xf32> to vector<8x8x4xf32>
    %171 = arith.subf %164, %170 : vector<8x8x4xf32>
    %172 = math.exp %171 : vector<8x8x4xf32>
    %173 = arith.mulf %169, %154 : vector<8x8x1xf32>
    %cst_71 = arith.constant dense<0.000000e+00> : vector<8x8xf32>
    %174 = vector.multi_reduction <add>, %172, %cst_71 [2] : vector<8x8x4xf32> to vector<8x8xf32>
    %175 = vector.shape_cast %174 : vector<8x8xf32> to vector<8x8x1xf32>
    %176 = arith.addf %173, %175 : vector<8x8x1xf32>
    %177 = vector.broadcast %169 : vector<8x8x1xf32> to vector<8x8x8xf32>
    %178 = arith.mulf %177, %155 : vector<8x8x8xf32>
    %179 = arith.truncf %172 : vector<8x8x4xf32> to vector<8x8x4xbf16>
    "tpu.trace_start"() <{level = 10 : i32, message = "nqk,nkd->nqd"}> : () -> ()
    %cst_72 = arith.constant dense<0.000000e+00> : vector<8x8x8xf32>
    %180 = tpu.matmul %179, %157, %cst_72 {dimension_numbers = #tpu.dot_dimension_numbers<[2], [1], [1], [2], [0, 0, 0, 1, 1, 2], [0], [0]>} : vector<8x8x4xbf16>, vector<8x4x8xbf16>, vector<8x8x8xf32> -> vector<8x8x8xf32>
    "tpu.trace_stop"() : () -> ()
    %181 = arith.addf %178, %180 : vector<8x8x8xf32>
    %182 = vector.extract_strided_slice %148 {offsets = [0, 4, 0], sizes = [8, 4, 8], strides = [1, 1, 1]} : vector<8x8x8xbf16> to vector<8x4x8xbf16>
    %183 = vector.extract_strided_slice %152 {offsets = [0, 4, 0], sizes = [8, 4, 8], strides = [1, 1, 1]} : vector<8x8x8xbf16> to vector<8x4x8xbf16>
    %184 = vector.extract_strided_slice %5 {offsets = [0, 4], sizes = [8, 4], strides = [1, 1]} : vector<8x8xf32> to vector<8x4xf32>
    "tpu.trace_start"() <{level = 10 : i32, message = "nqd,nkd->nqk"}> : () -> ()
    %cst_73 = arith.constant dense<0.000000e+00> : vector<8x8x4xf32>
    %185 = tpu.matmul %144, %182, %cst_73 {dimension_numbers = #tpu.dot_dimension_numbers<[2], [2], [1], [1], [0, 0, 0, 1, 1, 1], [0], [0]>} : vector<8x8x8xbf16>, vector<8x4x8xbf16>, vector<8x8x4xf32> -> vector<8x8x4xf32>
    "tpu.trace_stop"() : () -> ()
    %cst_74 = arith.constant 0.353553385 : f32
    %186 = vector.broadcast %cst_74 : f32 to vector<8x8x4xf32>
    %187 = arith.mulf %185, %186 : vector<8x8x4xf32>
    %188 = vector.shape_cast %184 : vector<8x4xf32> to vector<1x8x4xf32>
    %189 = vector.broadcast %188 : vector<1x8x4xf32> to vector<8x8x4xf32>
    %190 = arith.addf %187, %189 : vector<8x8x4xf32>
    %cst_75 = arith.constant dense<0xFF800000> : vector<8x8xf32>
    %191 = vector.multi_reduction <maximumf>, %190, %cst_75 [2] : vector<8x8x4xf32> to vector<8x8xf32>
    %192 = vector.shape_cast %191 : vector<8x8xf32> to vector<8x8x1xf32>
    %193 = arith.maximumf %167, %192 : vector<8x8x1xf32>
    %194 = arith.subf %167, %193 : vector<8x8x1xf32>
    %195 = math.exp %194 : vector<8x8x1xf32>
    %196 = vector.broadcast %193 : vector<8x8x1xf32> to vector<8x8x4xf32>
    %197 = arith.subf %190, %196 : vector<8x8x4xf32>
    %198 = math.exp %197 : vector<8x8x4xf32>
    %199 = arith.mulf %195, %176 : vector<8x8x1xf32>
    %cst_76 = arith.constant dense<0.000000e+00> : vector<8x8xf32>
    %200 = vector.multi_reduction <add>, %198, %cst_76 [2] : vector<8x8x4xf32> to vector<8x8xf32>
    %201 = vector.shape_cast %200 : vector<8x8xf32> to vector<8x8x1xf32>
    %202 = arith.addf %199, %201 : vector<8x8x1xf32>
    %203 = vector.broadcast %195 : vector<8x8x1xf32> to vector<8x8x8xf32>
    %204 = arith.mulf %203, %181 : vector<8x8x8xf32>
    %205 = arith.truncf %198 : vector<8x8x4xf32> to vector<8x8x4xbf16>
    "tpu.trace_start"() <{level = 10 : i32, message = "nqk,nkd->nqd"}> : () -> ()
    %cst_77 = arith.constant dense<0.000000e+00> : vector<8x8x8xf32>
    %206 = tpu.matmul %205, %183, %cst_77 {dimension_numbers = #tpu.dot_dimension_numbers<[2], [1], [1], [2], [0, 0, 0, 1, 1, 2], [0], [0]>} : vector<8x8x4xbf16>, vector<8x4x8xbf16>, vector<8x8x8xf32> -> vector<8x8x8xf32>
    "tpu.trace_stop"() : () -> ()
    %207 = arith.addf %204, %206 : vector<8x8x8xf32>
    %208 = tpu.reciprocal %202 {approx = true} : vector<8x8x1xf32> -> vector<8x8x1xf32>
    %209 = vector.broadcast %208 : vector<8x8x1xf32> to vector<8x8x8xf32>
    %210 = arith.mulf %207, %209 : vector<8x8x8xf32>
    %211 = vector.shape_cast %210 : vector<8x8x8xf32> to vector<4x16x8xf32>
    %212 = tpu.transpose %211, [1, 0, 2] : vector<4x16x8xf32> -> vector<16x4x8xf32>
    %213 = vector.shape_cast %212 : vector<16x4x8xf32> to vector<16x32xf32>
    %214 = arith.truncf %213 : vector<16x32xf32> to vector<16x32xbf16>
    %c0_78 = arith.constant 0 : index
    %c0_79 = arith.constant 0 : index
    %215 = vector.load %arg19[%c0_78, %c0_79] : memref<32x32xbf16, #tpu.memory_space<vmem>>, vector<32x32xbf16>
    %cst_80 = arith.constant dense<0.000000e+00> : vector<16x32xf32>
    %216 = tpu.matmul %214, %215, %cst_80 {dimension_numbers = #tpu.dot_dimension_numbers<[1], [0], [0], [1], [0, 0, 1, 1], [], []>} : vector<16x32xbf16>, vector<32x32xbf16>, vector<16x32xf32> -> vector<16x32xf32>
    %c0_81 = arith.constant 0 : index
    %c0_82 = arith.constant 0 : index
    %217 = vector.load %arg20[%c0_81, %c0_82] : memref<1x32xf32, #tpu.memory_space<vmem>>, vector<1x32xf32>
    %218 = vector.broadcast %217 : vector<1x32xf32> to vector<16x32xf32>
    %219 = arith.addf %216, %218 : vector<16x32xf32>
    %220 = arith.addf %123, %219 : vector<16x32xf32>
    %c0_83 = arith.constant 0 : index
    %c0_84 = arith.constant 0 : index
    %221 = vector.load %arg27[%c0_83, %c0_84] : memref<1x32xf32, #tpu.memory_space<vmem>>, vector<1x32xf32>
    %c0_85 = arith.constant 0 : index
    %c0_86 = arith.constant 0 : index
    %222 = vector.load %arg28[%c0_85, %c0_86] : memref<1x32xf32, #tpu.memory_space<vmem>>, vector<1x32xf32>
    %cst_87 = arith.constant dense<0.000000e+00> : vector<16xf32>
    %223 = vector.multi_reduction <add>, %220, %cst_87 [1] : vector<16x32xf32> to vector<16xf32>
    %224 = vector.shape_cast %223 : vector<16xf32> to vector<16x1xf32>
    %cst_88 = arith.constant 3.200000e+01 : f32
    %225 = vector.broadcast %cst_88 : f32 to vector<16x1xf32>
    %226 = arith.divf %224, %225 : vector<16x1xf32>
    %227 = vector.broadcast %226 : vector<16x1xf32> to vector<16x32xf32>
    %228 = arith.subf %220, %227 : vector<16x32xf32>
    %229 = arith.mulf %228, %228 : vector<16x32xf32>
    %cst_89 = arith.constant dense<0.000000e+00> : vector<16xf32>
    %230 = vector.multi_reduction <add>, %229, %cst_89 [1] : vector<16x32xf32> to vector<16xf32>
    %231 = vector.shape_cast %230 : vector<16xf32> to vector<16x1xf32>
    %cst_90 = arith.constant 3.200000e+01 : f32
    %232 = vector.broadcast %cst_90 : f32 to vector<16x1xf32>
    %233 = arith.divf %231, %232 : vector<16x1xf32>
    %cst_91 = arith.constant 9.99999974E-6 : f32
    %234 = vector.broadcast %cst_91 : f32 to vector<16x1xf32>
    %235 = arith.addf %233, %234 : vector<16x1xf32>
    %236 = math.rsqrt %235 : vector<16x1xf32>
    %237 = vector.broadcast %236 : vector<16x1xf32> to vector<16x32xf32>
    %238 = arith.mulf %228, %237 : vector<16x32xf32>
    %239 = vector.broadcast %221 : vector<1x32xf32> to vector<16x32xf32>
    %240 = arith.mulf %238, %239 : vector<16x32xf32>
    %241 = vector.broadcast %222 : vector<1x32xf32> to vector<16x32xf32>
    %242 = arith.addf %240, %241 : vector<16x32xf32>
    %243 = arith.truncf %242 : vector<16x32xf32> to vector<16x32xbf16>
    %c0_92 = arith.constant 0 : index
    %c0_93 = arith.constant 0 : index
    %244 = vector.load %arg21[%c0_92, %c0_93] : memref<32x64xbf16, #tpu.memory_space<vmem>>, vector<32x64xbf16>
    %cst_94 = arith.constant dense<0.000000e+00> : vector<16x64xf32>
    %245 = tpu.matmul %243, %244, %cst_94 {dimension_numbers = #tpu.dot_dimension_numbers<[1], [0], [0], [1], [0, 0, 1, 1], [], []>} : vector<16x32xbf16>, vector<32x64xbf16>, vector<16x64xf32> -> vector<16x64xf32>
    %c0_95 = arith.constant 0 : index
    %c0_96 = arith.constant 0 : index
    %246 = vector.load %arg22[%c0_95, %c0_96] : memref<1x64xf32, #tpu.memory_space<vmem>>, vector<1x64xf32>
    %247 = vector.broadcast %246 : vector<1x64xf32> to vector<16x64xf32>
    %248 = arith.addf %245, %247 : vector<16x64xf32>
    %cst_97 = arith.constant 0.000000e+00 : f32
    %249 = vector.broadcast %cst_97 : f32 to vector<16x64xf32>
    %250 = arith.maximumf %248, %249 : vector<16x64xf32>
    %251 = arith.truncf %250 : vector<16x64xf32> to vector<16x64xbf16>
    %c0_98 = arith.constant 0 : index
    %c0_99 = arith.constant 0 : index
    %252 = vector.load %arg23[%c0_98, %c0_99] : memref<64x32xbf16, #tpu.memory_space<vmem>>, vector<64x32xbf16>
    %cst_100 = arith.constant dense<0.000000e+00> : vector<16x32xf32>
    %253 = tpu.matmul %251, %252, %cst_100 {dimension_numbers = #tpu.dot_dimension_numbers<[1], [0], [0], [1], [0, 0, 1, 1], [], []>} : vector<16x64xbf16>, vector<64x32xbf16>, vector<16x32xf32> -> vector<16x32xf32>
    %c0_101 = arith.constant 0 : index
    %c0_102 = arith.constant 0 : index
    %254 = vector.load %arg24[%c0_101, %c0_102] : memref<1x32xf32, #tpu.memory_space<vmem>>, vector<1x32xf32>
    %255 = vector.broadcast %254 : vector<1x32xf32> to vector<16x32xf32>
    %256 = arith.addf %253, %255 : vector<16x32xf32>
    %257 = arith.addf %242, %256 : vector<16x32xf32>
    %c0_103 = arith.constant 0 : index
    %c0_104 = arith.constant 0 : index
    %258 = vector.load %arg29[%c0_103, %c0_104] : memref<1x32xf32, #tpu.memory_space<vmem>>, vector<1x32xf32>
    %c0_105 = arith.constant 0 : index
    %c0_106 = arith.constant 0 : index
    %259 = vector.load %arg30[%c0_105, %c0_106] : memref<1x32xf32, #tpu.memory_space<vmem>>, vector<1x32xf32>
    %cst_107 = arith.constant dense<0.000000e+00> : vector<16xf32>
    %260 = vector.multi_reduction <add>, %257, %cst_107 [1] : vector<16x32xf32> to vector<16xf32>
    %261 = vector.shape_cast %260 : vector<16xf32> to vector<16x1xf32>
    %cst_108 = arith.constant 3.200000e+01 : f32
    %262 = vector.broadcast %cst_108 : f32 to vector<16x1xf32>
    %263 = arith.divf %261, %262 : vector<16x1xf32>
    %264 = vector.broadcast %263 : vector<16x1xf32> to vector<16x32xf32>
    %265 = arith.subf %257, %264 : vector<16x32xf32>
    %266 = arith.mulf %265, %265 : vector<16x32xf32>
    %cst_109 = arith.constant dense<0.000000e+00> : vector<16xf32>
    %267 = vector.multi_reduction <add>, %266, %cst_109 [1] : vector<16x32xf32> to vector<16xf32>
    %268 = vector.shape_cast %267 : vector<16xf32> to vector<16x1xf32>
    %cst_110 = arith.constant 3.200000e+01 : f32
    %269 = vector.broadcast %cst_110 : f32 to vector<16x1xf32>
    %270 = arith.divf %268, %269 : vector<16x1xf32>
    %cst_111 = arith.constant 9.99999974E-6 : f32
    %271 = vector.broadcast %cst_111 : f32 to vector<16x1xf32>
    %272 = arith.addf %270, %271 : vector<16x1xf32>
    %273 = math.rsqrt %272 : vector<16x1xf32>
    %274 = vector.broadcast %273 : vector<16x1xf32> to vector<16x32xf32>
    %275 = arith.mulf %265, %274 : vector<16x32xf32>
    %276 = vector.broadcast %258 : vector<1x32xf32> to vector<16x32xf32>
    %277 = arith.mulf %275, %276 : vector<16x32xf32>
    %278 = vector.broadcast %259 : vector<1x32xf32> to vector<16x32xf32>
    %279 = arith.addf %277, %278 : vector<16x32xf32>
    %280 = vector.shape_cast %279 : vector<16x32xf32> to vector<2x8x32xf32>
    %c0_112 = arith.constant 0 : index
    %c0_113 = arith.constant 0 : index
    %c0_114 = arith.constant 0 : index
    %281 = vector.load %arg31[%c0_112, %c0_113, %c0_114] : memref<2x8x32xf32, #tpu.memory_space<vmem>>, vector<2x8x32xf32>
    tpu.vector_store %arg31[%c0_112, %c0_113, %c0_114], %280 {strides = array<i32>} : memref<2x8x32xf32, #tpu.memory_space<vmem>>, vector<2x8x32xf32>,
    return
  }
  func.func @transform_0(%arg0: i32) -> (i32, i32, i32) {
    %c0_i32 = arith.constant 0 : i32
    %c0_i32_0 = arith.constant 0 : i32
    %c0_i32_1 = arith.constant 0 : i32
    return %arg0, %c0_i32, %c0_i32_0 : i32, i32, i32
  }
  func.func @transform_1(%arg0: i32) -> (i32, i32, i32) {
    %c0_i32 = arith.constant 0 : i32
    %c0_i32_0 = arith.constant 0 : i32
    %c0_i32_1 = arith.constant 0 : i32
    return %arg0, %c0_i32, %c0_i32_0 : i32, i32, i32
  }
  func.func @transform_2(%arg0: i32) -> (i32, i32) {
    %c0_i32 = arith.constant 0 : i32
    %c0_i32_0 = arith.constant 0 : i32
    %c0_i32_1 = arith.constant 0 : i32
    return %c0_i32, %c0_i32_0 : i32, i32
  }
  func.func @transform_3(%arg0: i32) -> (i32, i32) {
    %c0_i32 = arith.constant 0 : i32
    %c0_i32_0 = arith.constant 0 : i32
    %c0_i32_1 = arith.constant 0 : i32
    return %c0_i32, %c0_i32_0 : i32, i32
  }
  func.func @transform_4(%arg0: i32) -> (i32, i32) {
    %c0_i32 = arith.constant 0 : i32
    %c0_i32_0 = arith.constant 0 : i32
    %c0_i32_1 = arith.constant 0 : i32
    return %c0_i32, %c0_i32_0 : i32, i32
  }
  func.func @transform_5(%arg0: i32) -> (i32, i32) {
    %c0_i32 = arith.constant 0 : i32
    %c0_i32_0 = arith.constant 0 : i32
    %c0_i32_1 = arith.constant 0 : i32
    return %c0_i32, %c0_i32_0 : i32, i32
  }
  func.func @transform_6(%arg0: i32) -> (i32, i32) {
    %c0_i32 = arith.constant 0 : i32
    %c0_i32_0 = arith.constant 0 : i32
    %c0_i32_1 = arith.constant 0 : i32
    return %c0_i32, %c0_i32_0 : i32, i32
  }
  func.func @transform_7(%arg0: i32) -> (i32, i32) {
    %c0_i32 = arith.constant 0 : i32
    %c0_i32_0 = arith.constant 0 : i32
    %c0_i32_1 = arith.constant 0 : i32
    return %c0_i32, %c0_i32_0 : i32, i32
  }
  func.func @transform_8(%arg0: i32) -> (i32, i32) {
    %c0_i32 = arith.constant 0 : i32
    %c0_i32_0 = arith.constant 0 : i32
    %c0_i32_1 = arith.constant 0 : i32
    return %c0_i32, %c0_i32_0 : i32, i32
  }
  func.func @transform_9(%arg0: i32) -> (i32, i32) {
    %c0_i32 = arith.constant 0 : i32
    %c0_i32_0 = arith.constant 0 : i32
    %c0_i32_1 = arith.constant 0 : i32
    return %c0_i32, %c0_i32_0 : i32, i32
  }
  func.func @transform_10(%arg0: i32) -> (i32, i32) {
    %c0_i32 = arith.constant 0 : i32
    %c0_i32_0 = arith.constant 0 : i32
    %c0_i32_1 = arith.constant 0 : i32
    return %c0_i32, %c0_i32_0 : i32, i32
  }
  func.func @transform_11(%arg0: i32) -> (i32, i32) {
    %c0_i32 = arith.constant 0 : i32
    %c0_i32_0 = arith.constant 0 : i32
    %c0_i32_1 = arith.constant 0 : i32
    return %c0_i32, %c0_i32_0 : i32, i32
  }
  func.func @transform_12(%arg0: i32) -> (i32, i32) {
    %c0_i32 = arith.constant 0 : i32
    %c0_i32_0 = arith.constant 0 : i32
    %c0_i32_1 = arith.constant 0 : i32
    return %c0_i32, %c0_i32_0 : i32, i32
  }
  func.func @transform_13(%arg0: i32) -> (i32, i32) {
    %c0_i32 = arith.constant 0 : i32
    %c0_i32_0 = arith.constant 0 : i32
    %c0_i32_1 = arith.constant 0 : i32
    return %c0_i32, %c0_i32_0 : i32, i32
  }
  func.func @transform_14(%arg0: i32) -> (i32, i32) {
    %c0_i32 = arith.constant 0 : i32
    %c0_i32_0 = arith.constant 0 : i32
    %c0_i32_1 = arith.constant 0 : i32
    return %c0_i32, %c0_i32_0 : i32, i32
  }
  func.func @transform_15(%arg0: i32) -> (i32, i32) {
    %c0_i32 = arith.constant 0 : i32
    %c0_i32_0 = arith.constant 0 : i32
    %c0_i32_1 = arith.constant 0 : i32
    return %c0_i32, %c0_i32_0 : i32, i32
  }
  func.func @transform_16(%arg0: i32) -> (i32, i32) {
    %c0_i32 = arith.constant 0 : i32
    %c0_i32_0 = arith.constant 0 : i32
    %c0_i32_1 = arith.constant 0 : i32
    return %c0_i32, %c0_i32_0 : i32, i32
  }
  func.func @transform_17(%arg0: i32) -> (i32, i32) {
    %c0_i32 = arith.constant 0 : i32
    %c0_i32_0 = arith.constant 0 : i32
    %c0_i32_1 = arith.constant 0 : i32
    return %c0_i32, %c0_i32_0 : i32, i32
  }
  func.func @transform_18(%arg0: i32) -> (i32, i32) {
    %c0_i32 = arith.constant 0 : i32
    %c0_i32_0 = arith.constant 0 : i32
    %c0_i32_1 = arith.constant 0 : i32
    return %c0_i32, %c0_i32_0 : i32, i32
  }
  func.func @transform_19(%arg0: i32) -> (i32, i32) {
    %c0_i32 = arith.constant 0 : i32
    %c0_i32_0 = arith.constant 0 : i32
    %c0_i32_1 = arith.constant 0 : i32
    return %c0_i32, %c0_i32_0 : i32, i32
  }
  func.func @transform_20(%arg0: i32) -> (i32, i32) {
    %c0_i32 = arith.constant 0 : i32
    %c0_i32_0 = arith.constant 0 : i32
    %c0_i32_1 = arith.constant 0 : i32
    return %c0_i32, %c0_i32_0 : i32, i32
  }
  func.func @transform_21(%arg0: i32) -> (i32, i32) {
    %c0_i32 = arith.constant 0 : i32
    %c0_i32_0 = arith.constant 0 : i32
    %c0_i32_1 = arith.constant 0 : i32
    return %c0_i32, %c0_i32_0 : i32, i32
  }
  func.func @transform_22(%arg0: i32) -> (i32, i32) {
    %c0_i32 = arith.constant 0 : i32
    %c0_i32_0 = arith.constant 0 : i32
    %c0_i32_1 = arith.constant 0 : i32
    return %c0_i32, %c0_i32_0 : i32, i32
  }
  func.func @transform_23(%arg0: i32) -> (i32, i32) {
    %c0_i32 = arith.constant 0 : i32
    %c0_i32_0 = arith.constant 0 : i32
    %c0_i32_1 = arith.constant 0 : i32
    return %c0_i32, %c0_i32_0 : i32, i32
  }
  func.func @transform_24(%arg0: i32) -> (i32, i32) {
    %c0_i32 = arith.constant 0 : i32
    %c0_i32_0 = arith.constant 0 : i32
    %c0_i32_1 = arith.constant 0 : i32
    return %c0_i32, %c0_i32_0 : i32, i32
  }
  func.func @transform_25(%arg0: i32) -> (i32, i32) {
    %c0_i32 = arith.constant 0 : i32
    %c0_i32_0 = arith.constant 0 : i32
    %c0_i32_1 = arith.constant 0 : i32
    return %c0_i32, %c0_i32_0 : i32, i32
  }
  func.func @transform_26(%arg0: i32) -> (i32, i32) {
    %c0_i32 = arith.constant 0 : i32
    %c0_i32_0 = arith.constant 0 : i32
    %c0_i32_1 = arith.constant 0 : i32
    return %c0_i32, %c0_i32_0 : i32, i32
  }
  func.func @transform_27(%arg0: i32) -> (i32, i32) {
    %c0_i32 = arith.constant 0 : i32
    %c0_i32_0 = arith.constant 0 : i32
    %c0_i32_1 = arith.constant 0 : i32
    return %c0_i32, %c0_i32_0 : i32, i32
  }
  func.func @transform_28(%arg0: i32) -> (i32, i32) {
    %c0_i32 = arith.constant 0 : i32
    %c0_i32_0 = arith.constant 0 : i32
    %c0_i32_1 = arith.constant 0 : i32
    return %c0_i32, %c0_i32_0 : i32, i32
  }
  func.func @transform_29(%arg0: i32) -> (i32, i32) {
    %c0_i32 = arith.constant 0 : i32
    %c0_i32_0 = arith.constant 0 : i32
    %c0_i32_1 = arith.constant 0 : i32
    return %c0_i32, %c0_i32_0 : i32, i32
  }
  func.func @transform_30(%arg0: i32) -> (i32, i32, i32) {
    %c0_i32 = arith.constant 0 : i32
    %c0_i32_0 = arith.constant 0 : i32
    %c0_i32_1 = arith.constant 0 : i32
    return %arg0, %c0_i32, %c0_i32_0 : i32, i32, i32
  }
}

module attributes {stable_mosaic.version = 11 : i64} {
  func.func @decoder_layer_kernel(%arg0: i32, %arg1: memref<2x8x32xf32, #tpu.memory_space<vmem>>, %arg2: memref<2x8x32xf32, #tpu.memory_space<vmem>>, %arg3: memref<8x8xf32, #tpu.memory_space<vmem>>, %arg4: memref<8x8xf32, #tpu.memory_space<vmem>>, %arg5: memref<32x32xbf16, #tpu.memory_space<vmem>>, %arg6: memref<1x32xf32, #tpu.memory_space<vmem>>, %arg7: memref<32x32xbf16, #tpu.memory_space<vmem>>, %arg8: memref<1x32xf32, #tpu.memory_space<vmem>>, %arg9: memref<32x32xbf16, #tpu.memory_space<vmem>>, %arg10: memref<1x32xf32, #tpu.memory_space<vmem>>, %arg11: memref<32x32xbf16, #tpu.memory_space<vmem>>, %arg12: memref<1x32xf32, #tpu.memory_space<vmem>>, %arg13: memref<32x32xbf16, #tpu.memory_space<vmem>>, %arg14: memref<1x32xf32, #tpu.memory_space<vmem>>, %arg15: memref<32x32xbf16, #tpu.memory_space<vmem>>, %arg16: memref<1x32xf32, #tpu.memory_space<vmem>>, %arg17: memref<32x32xbf16, #tpu.memory_space<vmem>>, %arg18: memref<1x32xf32, #tpu.memory_space<vmem>>, %arg19: memref<32x32xbf16, #tpu.memory_space<vmem>>, %arg20: memref<1x32xf32, #tpu.memory_space<vmem>>, %arg21: memref<32x64xbf16, #tpu.memory_space<vmem>>, %arg22: memref<1x64xf32, #tpu.memory_space<vmem>>, %arg23: memref<64x32xbf16, #tpu.memory_space<vmem>>, %arg24: memref<1x32xf32, #tpu.memory_space<vmem>>, %arg25: memref<1x32xf32, #tpu.memory_space<vmem>>, %arg26: memref<1x32xf32, #tpu.memory_space<vmem>>, %arg27: memref<1x32xf32, #tpu.memory_space<vmem>>, %arg28: memref<1x32xf32, #tpu.memory_space<vmem>>, %arg29: memref<1x32xf32, #tpu.memory_space<vmem>>, %arg30: memref<1x32xf32, #tpu.memory_space<vmem>>, %arg31: memref<2x8x32xf32, #tpu.memory_space<vmem>>) attributes {dimension_semantics = [#tpu.dimension_semantics<parallel>], iteration_bounds = array<i64: 2>, scalar_prefetch = 0 : i64, scratch_operands = 0 : i64, tpu.core_type = #tpu.core_type<tc>, window_params = [{transform_indices = @transform_0, window_bounds = array<i64: 2, 8, 32>}, {transform_indices = @transform_1, window_bounds = array<i64: 2, 8, 32>}, {pipeline_mode = #tpu.pipeline_mode<synchronous>, transform_indices = @transform_2, window_bounds = array<i64: 8, 8>}, {pipeline_mode = #tpu.pipeline_mode<synchronous>, transform_indices = @transform_3, window_bounds = array<i64: 8, 8>}, {pipeline_mode = #tpu.pipeline_mode<synchronous>, transform_indices = @transform_4, window_bounds = array<i64: 32, 32>}, {pipeline_mode = #tpu.pipeline_mode<synchronous>, transform_indices = @transform_5, window_bounds = array<i64: 1, 32>}, {pipeline_mode = #tpu.pipeline_mode<synchronous>, transform_indices = @transform_6, window_bounds = array<i64: 32, 32>}, {pipeline_mode = #tpu.pipeline_mode<synchronous>, transform_indices = @transform_7, window_bounds = array<i64: 1, 32>}, {pipeline_mode = #tpu.pipeline_mode<synchronous>, transform_indices = @transform_8, window_bounds = array<i64: 32, 32>}, {pipeline_mode = #tpu.pipeline_mode<synchronous>, transform_indices = @transform_9, window_bounds = array<i64: 1, 32>}, {pipeline_mode = #tpu.pipeline_mode<synchronous>, transform_indices = @transform_10, window_bounds = array<i64: 32, 32>}, {pipeline_mode = #tpu.pipeline_mode<synchronous>, transform_indices = @transform_11, window_bounds = array<i64: 1, 32>}, {pipeline_mode = #tpu.pipeline_mode<synchronous>, transform_indices = @transform_12, window_bounds = array<i64: 32, 32>}, {pipeline_mode = #tpu.pipeline_mode<synchronous>, transform_indices = @transform_13, window_bounds = array<i64: 1, 32>}, {pipeline_mode = #tpu.pipeline_mode<synchronous>, transform_indices = @transform_14, window_bounds = array<i64: 32, 32>}, {pipeline_mode = #tpu.pipeline_mode<synchronous>, transform_indices = @transform_15, window_bounds = array<i64: 1, 32>}, {pipeline_mode = #tpu.pipeline_mode<synchronous>, transform_indices = @transform_16, window_bounds = array<i64: 32, 32>}, {pipeline_mode = #tpu.pipeline_mode<synchronous>, transform_indices = @transform_17, window_bounds = array<i64: 1, 32>}, {pipeline_mode = #tpu.pipeline_mode<synchronous>, transform_indices = @transform_18, window_bounds = array<i64: 32, 32>}, {pipeline_mode = #tpu.pipeline_mode<synchronous>, transform_indices = @transform_19, window_bounds = array<i64: 1, 32>}, {pipeline_mode = #tpu.pipeline_mode<synchronous>, transform_indices = @transform_20, window_bounds = array<i64: 32, 64>}, {pipeline_mode = #tpu.pipeline_mode<synchronous>, transform_indices = @transform_21, window_bounds = array<i64: 1, 64>}, {pipeline_mode = #tpu.pipeline_mode<synchronous>, transform_indices = @transform_22, window_bounds = array<i64: 64, 32>}, {pipeline_mode = #tpu.pipeline_mode<synchronous>, transform_indices = @transform_23, window_bounds = array<i64: 1, 32>}, {pipeline_mode = #tpu.pipeline_mode<synchronous>, transform_indices = @transform_24, window_bounds = array<i64: 1, 32>}, {pipeline_mode = #tpu.pipeline_mode<synchronous>, transform_indices = @transform_25, window_bounds = array<i64: 1, 32>}, {pipeline_mode = #tpu.pipeline_mode<synchronous>, transform_indices = @transform_26, window_bounds = array<i64: 1, 32>}, {pipeline_mode = #tpu.pipeline_mode<synchronous>, transform_indices = @transform_27, window_bounds = array<i64: 1, 32>}, {pipeline_mode = #tpu.pipeline_mode<synchronous>, transform_indices = @transform_28, window_bounds = array<i64: 1, 32>}, {pipeline_mode = #tpu.pipeline_mode<synchronous>, transform_indices = @transform_29, window_bounds = array<i64: 1, 32>}, {transform_indices = @transform_30, window_bounds = array<i64: 2, 8, 32>}]} {
    %c0 = arith.constant 0 : index
    %c0_0 = arith.constant 0 : index
    %c0_1 = arith.constant 0 : index
    %0 = vector.load %arg1[%c0, %c0_0, %c0_1] : memref<2x8x32xf32, #tpu.memory_space<vmem>>, vector<2x8x32xf32>
    %1 = vector.shape_cast %0 : vector<2x8x32xf32> to vector<16x32xf32>
    %c0_2 = arith.constant 0 : index
    %c0_3 = arith.constant 0 : index
    %c0_4 = arith.constant 0 : index
    %2 = vector.load %arg2[%c0_2, %c0_3, %c0_4] : memref<2x8x32xf32, #tpu.memory_space<vmem>>, vector<2x8x32xf32>
    %3 = vector.shape_cast %2 : vector<2x8x32xf32> to vector<16x32xf32>
    %c0_5 = arith.constant 0 : index
    %c0_6 = arith.constant 0 : index
    %4 = vector.load %arg3[%c0_5, %c0_6] : memref<8x8xf32, #tpu.memory_space<vmem>>, vector<8x8xf32>
    %c0_7 = arith.constant 0 : index
    %c0_8 = arith.constant 0 : index
    %5 = vector.load %arg4[%c0_7, %c0_8] : memref<8x8xf32, #tpu.memory_space<vmem>>, vector<8x8xf32>
    %6 = arith.truncf %1 : vector<16x32xf32> to vector<16x32xbf16>
    %c0_9 = arith.constant 0 : index
    %c0_10 = arith.constant 0 : index
    %7 = vector.load %arg5[%c0_9, %c0_10] : memref<32x32xbf16, #tpu.memory_space<vmem>>, vector<32x32xbf16>
    %cst = arith.constant dense<0.000000e+00> : vector<16x32xf32>
    %8 = tpu.matmul %6, %7, %cst {dimension_numbers = #tpu.dot_dimension_numbers<[1], [0], [0], [1], [0, 0, 1, 1], [], []>} : vector<16x32xbf16>, vector<32x32xbf16>, vector<16x32xf32> -> vector<16x32xf32>
    %c0_11 = arith.constant 0 : index
    %c0_12 = arith.constant 0 : index
    %9 = vector.load %arg6[%c0_11, %c0_12] : memref<1x32xf32, #tpu.memory_space<vmem>>, vector<1x32xf32>
    %10 = vector.broadcast %9 : vector<1x32xf32> to vector<16x32xf32>
    %11 = arith.addf %8, %10 : vector<16x32xf32>
    %c0_13 = arith.constant 0 : index
    %c0_14 = arith.constant 0 : index
    %12 = vector.load %arg7[%c0_13, %c0_14] : memref<32x32xbf16, #tpu.memory_space<vmem>>, vector<32x32xbf16>
    %cst_15 = arith.constant dense<0.000000e+00> : vector<16x32xf32>
    %13 = tpu.matmul %6, %12, %cst_15 {dimension_numbers = #tpu.dot_dimension_numbers<[1], [0], [0], [1], [0, 0, 1, 1], [], []>} : vector<16x32xbf16>, vector<32x32xbf16>, vector<16x32xf32> -> vector<16x32xf32>
    %c0_16 = arith.constant 0 : index
    %c0_17 = arith.constant 0 : index
    %14 = vector.load %arg8[%c0_16, %c0_17] : memref<1x32xf32, #tpu.memory_space<vmem>>, vector<1x32xf32>
    %15 = vector.broadcast %14 : vector<1x32xf32> to vector<16x32xf32>
    %16 = arith.addf %13, %15 : vector<16x32xf32>
    %c0_18 = arith.constant 0 : index
    %c0_19 = arith.constant 0 : index
    %17 = vector.load %arg9[%c0_18, %c0_19] : memref<32x32xbf16, #tpu.memory_space<vmem>>, vector<32x32xbf16>
    %cst_20 = arith.constant dense<0.000000e+00> : vector<16x32xf32>
    %18 = tpu.matmul %6, %17, %cst_20 {dimension_numbers = #tpu.dot_dimension_numbers<[1], [0], [0], [1], [0, 0, 1, 1], [], []>} : vector<16x32xbf16>, vector<32x32xbf16>, vector<16x32xf32> -> vector<16x32xf32>
    %c0_21 = arith.constant 0 : index
    %c0_22 = arith.constant 0 : index
    %19 = vector.load %arg10[%c0_21, %c0_22] : memref<1x32xf32, #tpu.memory_space<vmem>>, vector<1x32xf32>
    %20 = vector.broadcast %19 : vector<1x32xf32> to vector<16x32xf32>
    %21 = arith.addf %18, %20 : vector<16x32xf32>
    %22 = vector.shape_cast %11 : vector<16x32xf32> to vector<2x8x32xf32>
    %23 = vector.extract_strided_slice %22 {offsets = [0, 0, 0], sizes = [2, 8, 8], strides = [1, 1, 1]} : vector<2x8x32xf32> to vector<2x8x8xf32>
    %24 = vector.extract_strided_slice %22 {offsets = [0, 0, 8], sizes = [2, 8, 8], strides = [1, 1, 1]} : vector<2x8x32xf32> to vector<2x8x8xf32>
    %25 = vector.extract_strided_slice %22 {offsets = [0, 0, 16], sizes = [2, 8, 8], strides = [1, 1, 1]} : vector<2x8x32xf32> to vector<2x8x8xf32>
    %26 = vector.extract_strided_slice %22 {offsets = [0, 0, 24], sizes = [2, 8, 8], strides = [1, 1, 1]} : vector<2x8x32xf32> to vector<2x8x8xf32>
    %27 = vector.shape_cast %23 : vector<2x8x8xf32> to vector<1x2x8x8xf32>
    %28 = vector.shape_cast %24 : vector<2x8x8xf32> to vector<1x2x8x8xf32>
    %29 = vector.shape_cast %25 : vector<2x8x8xf32> to vector<1x2x8x8xf32>
    %30 = vector.shape_cast %26 : vector<2x8x8xf32> to vector<1x2x8x8xf32>
    %31 = tpu.concatenate %27, %28, %29, %30 in 0 : vector<1x2x8x8xf32>, vector<1x2x8x8xf32>, vector<1x2x8x8xf32>, vector<1x2x8x8xf32> -> vector<4x2x8x8xf32>
    %32 = vector.shape_cast %31 : vector<4x2x8x8xf32> to vector<8x8x8xf32>
    %33 = arith.truncf %32 : vector<8x8x8xf32> to vector<8x8x8xbf16>
    %34 = vector.shape_cast %16 : vector<16x32xf32> to vector<2x8x32xf32>
    %35 = vector.extract_strided_slice %34 {offsets = [0, 0, 0], sizes = [2, 8, 8], strides = [1, 1, 1]} : vector<2x8x32xf32> to vector<2x8x8xf32>
    %36 = vector.extract_strided_slice %34 {offsets = [0, 0, 8], sizes = [2, 8, 8], strides = [1, 1, 1]} : vector<2x8x32xf32> to vector<2x8x8xf32>
    %37 = vector.extract_strided_slice %34 {offsets = [0, 0, 16], sizes = [2, 8, 8], strides = [1, 1, 1]} : vector<2x8x32xf32> to vector<2x8x8xf32>
    %38 = vector.extract_strided_slice %34 {offsets = [0, 0, 24], sizes = [2, 8, 8], strides = [1, 1, 1]} : vector<2x8x32xf32> to vector<2x8x8xf32>
    %39 = vector.shape_cast %35 : vector<2x8x8xf32> to vector<1x2x8x8xf32>
    %40 = vector.shape_cast %36 : vector<2x8x8xf32> to vector<1x2x8x8xf32>
    %41 = vector.shape_cast %37 : vector<2x8x8xf32> to vector<1x2x8x8xf32>
    %42 = vector.shape_cast %38 : vector<2x8x8xf32> to vector<1x2x8x8xf32>
    %43 = tpu.concatenate %39, %40, %41, %42 in 0 : vector<1x2x8x8xf32>, vector<1x2x8x8xf32>, vector<1x2x8x8xf32>, vector<1x2x8x8xf32> -> vector<4x2x8x8xf32>
    %44 = vector.shape_cast %43 : vector<4x2x8x8xf32> to vector<8x8x8xf32>
    %45 = arith.truncf %44 : vector<8x8x8xf32> to vector<8x8x8xbf16>
    %46 = vector.shape_cast %21 : vector<16x32xf32> to vector<2x8x32xf32>
    %47 = vector.extract_strided_slice %46 {offsets = [0, 0, 0], sizes = [2, 8, 8], strides = [1, 1, 1]} : vector<2x8x32xf32> to vector<2x8x8xf32>
    %48 = vector.extract_strided_slice %46 {offsets = [0, 0, 8], sizes = [2, 8, 8], strides = [1, 1, 1]} : vector<2x8x32xf32> to vector<2x8x8xf32>
    %49 = vector.extract_strided_slice %46 {offsets = [0, 0, 16], sizes = [2, 8, 8], strides = [1, 1, 1]} : vector<2x8x32xf32> to vector<2x8x8xf32>
    %50 = vector.extract_strided_slice %46 {offsets = [0, 0, 24], sizes = [2, 8, 8], strides = [1, 1, 1]} : vector<2x8x32xf32> to vector<2x8x8xf32>
    %51 = vector.shape_cast %47 : vector<2x8x8xf32> to vector<1x2x8x8xf32>
    %52 = vector.shape_cast %48 : vector<2x8x8xf32> to vector<1x2x8x8xf32>
    %53 = vector.shape_cast %49 : vector<2x8x8xf32> to vector<1x2x8x8xf32>
    %54 = vector.shape_cast %50 : vector<2x8x8xf32> to vector<1x2x8x8xf32>
    %55 = tpu.concatenate %51, %52, %53, %54 in 0 : vector<1x2x8x8xf32>, vector<1x2x8x8xf32>, vector<1x2x8x8xf32>, vector<1x2x8x8xf32> -> vector<4x2x8x8xf32>
    %56 = vector.shape_cast %55 : vector<4x2x8x8xf32> to vector<8x8x8xf32>
    %57 = arith.truncf %56 : vector<8x8x8xf32> to vector<8x8x8xbf16>
    %cst_23 = arith.constant 0xFF800000 : f32
    %58 = vector.broadcast %cst_23 : f32 to vector<8x8x1xf32>
    %cst_24 = arith.constant 0.000000e+00 : f32
    %59 = vector.broadcast %cst_24 : f32 to vector<8x8x1xf32>
    %cst_25 = arith.constant 0.000000e+00 : f32
    %60 = vector.broadcast %cst_25 : f32 to vector<8x8x8xf32>
    %61 = vector.extract_strided_slice %45 {offsets = [0, 0, 0], sizes = [8, 4, 8], strides = [1, 1, 1]} : vector<8x8x8xbf16> to vector<8x4x8xbf16>
    %62 = vector.extract_strided_slice %57 {offsets = [0, 0, 0], sizes = [8, 4, 8], strides = [1, 1, 1]} : vector<8x8x8xbf16> to vector<8x4x8xbf16>
    %63 = vector.extract_strided_slice %4 {offsets = [0, 0], sizes = [8, 4], strides = [1, 1]} : vector<8x8xf32> to vector<8x4xf32>
    "tpu.trace_start"() <{level = 10 : i32, message = "nqd,nkd->nqk"}> : () -> ()
    %cst_26 = arith.constant dense<0.000000e+00> : vector<8x8x4xf32>
    %64 = tpu.matmul %33, %61, %cst_26 {dimension_numbers = #tpu.dot_dimension_numbers<[2], [2], [1], [1], [0, 0, 0, 1, 1, 1], [0], [0]>} : vector<8x8x8xbf16>, vector<8x4x8xbf16>, vector<8x8x4xf32> -> vector<8x8x4xf32>
    "tpu.trace_stop"() : () -> ()
    %cst_27 = arith.constant 0.353553385 : f32
    %65 = vector.broadcast %cst_27 : f32 to vector<8x8x4xf32>
    %66 = arith.mulf %64, %65 : vector<8x8x4xf32>
    %67 = vector.shape_cast %63 : vector<8x4xf32> to vector<1x8x4xf32>
    %68 = vector.broadcast %67 : vector<1x8x4xf32> to vector<8x8x4xf32>
    %69 = arith.addf %66, %68 : vector<8x8x4xf32>
    %cst_28 = arith.constant dense<0xFF800000> : vector<8x8xf32>
    %70 = vector.multi_reduction <maximumf>, %69, %cst_28 [2] : vector<8x8x4xf32> to vector<8x8xf32>
    %71 = vector.shape_cast %70 : vector<8x8xf32> to vector<8x8x1xf32>
    %72 = arith.maximumf %58, %71 : vector<8x8x1xf32>
    %73 = arith.subf %58, %72 : vector<8x8x1xf32>
    %74 = math.exp %73 : vector<8x8x1xf32>
    %75 = vector.broadcast %72 : vector<8x8x1xf32> to vector<8x8x4xf32>
    %76 = arith.subf %69, %75 : vector<8x8x4xf32>
    %77 = math.exp %76 : vector<8x8x4xf32>
    %78 = arith.mulf %74, %59 : vector<8x8x1xf32>
    %cst_29 = arith.constant dense<0.000000e+00> : vector<8x8xf32>
    %79 = vector.multi_reduction <add>, %77, %cst_29 [2] : vector<8x8x4xf32> to vector<8x8xf32>
    %80 = vector.shape_cast %79 : vector<8x8xf32> to vector<8x8x1xf32>
    %81 = arith.addf %78, %80 : vector<8x8x1xf32>
    %82 = vector.broadcast %74 : vector<8x8x1xf32> to vector<8x8x8xf32>
    %83 = arith.mulf %82, %60 : vector<8x8x8xf32>
    %84 = arith.truncf %77 : vector<8x8x4xf32> to vector<8x8x4xbf16>
    "tpu.trace_start"() <{level = 10 : i32, message = "nqk,nkd->nqd"}> : () -> ()
    %cst_30 = arith.constant dense<0.000000e+00> : vector<8x8x8xf32>
    %85 = tpu.matmul %84, %62, %cst_30 {dimension_numbers = #tpu.dot_dimension_numbers<[2], [1], [1], [2], [0, 0, 0, 1, 1, 2], [0], [0]>} : vector<8x8x4xbf16>, vector<8x4x8xbf16>, vector<8x8x8xf32> -> vector<8x8x8xf32>
    "tpu.trace_stop"() : () -> ()
    %86 = arith.addf %83, %85 : vector<8x8x8xf32>
    %87 = vector.extract_strided_slice %45 {offsets = [0, 4, 0], sizes = [8, 4, 8], strides = [1, 1, 1]} : vector<8x8x8xbf16> to vector<8x4x8xbf16>
    %88 = vector.extract_strided_slice %57 {offsets = [0, 4, 0], sizes = [8, 4, 8], strides = [1, 1, 1]} : vector<8x8x8xbf16> to vector<8x4x8xbf16>
    %89 = vector.extract_strided_slice %4 {offsets = [0, 4], sizes = [8, 4], strides = [1, 1]} : vector<8x8xf32> to vector<8x4xf32>
    "tpu.trace_start"() <{level = 10 : i32, message = "nqd,nkd->nqk"}> : () -> ()
    %cst_31 = arith.constant dense<0.000000e+00> : vector<8x8x4xf32>
    %90 = tpu.matmul %33, %87, %cst_31 {dimension_numbers = #tpu.dot_dimension_numbers<[2], [2], [1], [1], [0, 0, 0, 1, 1, 1], [0], [0]>} : vector<8x8x8xbf16>, vector<8x4x8xbf16>, vector<8x8x4xf32> -> vector<8x8x4xf32>
    "tpu.trace_stop"() : () -> ()
    %cst_32 = arith.constant 0.353553385 : f32
    %91 = vector.broadcast %cst_32 : f32 to vector<8x8x4xf32>
    %92 = arith.mulf %90, %91 : vector<8x8x4xf32>
    %93 = vector.shape_cast %89 : vector<8x4xf32> to vector<1x8x4xf32>
    %94 = vector.broadcast %93 : vector<1x8x4xf32> to vector<8x8x4xf32>
    %95 = arith.addf %92, %94 : vector<8x8x4xf32>
    %cst_33 = arith.constant dense<0xFF800000> : vector<8x8xf32>
    %96 = vector.multi_reduction <maximumf>, %95, %cst_33 [2] : vector<8x8x4xf32> to vector<8x8xf32>
    %97 = vector.shape_cast %96 : vector<8x8xf32> to vector<8x8x1xf32>
    %98 = arith.maximumf %72, %97 : vector<8x8x1xf32>
    %99 = arith.subf %72, %98 : vector<8x8x1xf32>
    %100 = math.exp %99 : vector<8x8x1xf32>
    %101 = vector.broadcast %98 : vector<8x8x1xf32> to vector<8x8x4xf32>
    %102 = arith.subf %95, %101 : vector<8x8x4xf32>
    %103 = math.exp %102 : vector<8x8x4xf32>
    %104 = arith.mulf %100, %81 : vector<8x8x1xf32>
    %cst_34 = arith.constant dense<0.000000e+00> : vector<8x8xf32>
    %105 = vector.multi_reduction <add>, %103, %cst_34 [2] : vector<8x8x4xf32> to vector<8x8xf32>
    %106 = vector.shape_cast %105 : vector<8x8xf32> to vector<8x8x1xf32>
    %107 = arith.addf %104, %106 : vector<8x8x1xf32>
    %108 = vector.broadcast %100 : vector<8x8x1xf32> to vector<8x8x8xf32>
    %109 = arith.mulf %108, %86 : vector<8x8x8xf32>
    %110 = arith.truncf %103 : vector<8x8x4xf32> to vector<8x8x4xbf16>
    "tpu.trace_start"() <{level = 10 : i32, message = "nqk,nkd->nqd"}> : () -> ()
    %cst_35 = arith.constant dense<0.000000e+00> : vector<8x8x8xf32>
    %111 = tpu.matmul %110, %88, %cst_35 {dimension_numbers = #tpu.dot_dimension_numbers<[2], [1], [1], [2], [0, 0, 0, 1, 1, 2], [0], [0]>} : vector<8x8x4xbf16>, vector<8x4x8xbf16>, vector<8x8x8xf32> -> vector<8x8x8xf32>
    "tpu.trace_stop"() : () -> ()
    %112 = arith.addf %109, %111 : vector<8x8x8xf32>
    %113 = tpu.reciprocal %107 {approx = true} : vector<8x8x1xf32> -> vector<8x8x1xf32>
    %114 = vector.broadcast %113 : vector<8x8x1xf32> to vector<8x8x8xf32>
    %115 = arith.mulf %112, %114 : vector<8x8x8xf32>
    %116 = vector.shape_cast %115 : vector<8x8x8xf32> to vector<4x2x8x8xf32>
    %117 = vector.extract_strided_slice %116 {offsets = [0, 0, 0, 0], sizes = [1, 2, 8, 8], strides = [1, 1, 1, 1]} : vector<4x2x8x8xf32> to vector<1x2x8x8xf32>
    %118 = vector.shape_cast %117 : vector<1x2x8x8xf32> to vector<2x8x8xf32>
    %119 = vector.extract_strided_slice %116 {offsets = [1, 0, 0, 0], sizes = [1, 2, 8, 8], strides = [1, 1, 1, 1]} : vector<4x2x8x8xf32> to vector<1x2x8x8xf32>
    %120 = vector.shape_cast %119 : vector<1x2x8x8xf32> to vector<2x8x8xf32>
    %121 = vector.extract_strided_slice %116 {offsets = [2, 0, 0, 0], sizes = [1, 2, 8, 8], strides = [1, 1, 1, 1]} : vector<4x2x8x8xf32> to vector<1x2x8x8xf32>
    %122 = vector.shape_cast %121 : vector<1x2x8x8xf32> to vector<2x8x8xf32>
    %123 = vector.extract_strided_slice %116 {offsets = [3, 0, 0, 0], sizes = [1, 2, 8, 8], strides = [1, 1, 1, 1]} : vector<4x2x8x8xf32> to vector<1x2x8x8xf32>
    %124 = vector.shape_cast %123 : vector<1x2x8x8xf32> to vector<2x8x8xf32>
    %125 = tpu.concatenate %118, %120, %122, %124 in 2 : vector<2x8x8xf32>, vector<2x8x8xf32>, vector<2x8x8xf32>, vector<2x8x8xf32> -> vector<2x8x32xf32>
    %126 = vector.shape_cast %125 : vector<2x8x32xf32> to vector<16x32xf32>
    %127 = arith.truncf %126 : vector<16x32xf32> to vector<16x32xbf16>
    %c0_36 = arith.constant 0 : index
    %c0_37 = arith.constant 0 : index
    %128 = vector.load %arg11[%c0_36, %c0_37] : memref<32x32xbf16, #tpu.memory_space<vmem>>, vector<32x32xbf16>
    %cst_38 = arith.constant dense<0.000000e+00> : vector<16x32xf32>
    %129 = tpu.matmul %127, %128, %cst_38 {dimension_numbers = #tpu.dot_dimension_numbers<[1], [0], [0], [1], [0, 0, 1, 1], [], []>} : vector<16x32xbf16>, vector<32x32xbf16>, vector<16x32xf32> -> vector<16x32xf32>
    %c0_39 = arith.constant 0 : index
    %c0_40 = arith.constant 0 : index
    %130 = vector.load %arg12[%c0_39, %c0_40] : memref<1x32xf32, #tpu.memory_space<vmem>>, vector<1x32xf32>
    %131 = vector.broadcast %130 : vector<1x32xf32> to vector<16x32xf32>
    %132 = arith.addf %129, %131 : vector<16x32xf32>
    %133 = arith.addf %1, %132 : vector<16x32xf32>
    %c0_41 = arith.constant 0 : index
    %c0_42 = arith.constant 0 : index
    %134 = vector.load %arg25[%c0_41, %c0_42] : memref<1x32xf32, #tpu.memory_space<vmem>>, vector<1x32xf32>
    %c0_43 = arith.constant 0 : index
    %c0_44 = arith.constant 0 : index
    %135 = vector.load %arg26[%c0_43, %c0_44] : memref<1x32xf32, #tpu.memory_space<vmem>>, vector<1x32xf32>
    %cst_45 = arith.constant dense<0.000000e+00> : vector<16xf32>
    %136 = vector.multi_reduction <add>, %133, %cst_45 [1] : vector<16x32xf32> to vector<16xf32>
    %137 = vector.shape_cast %136 : vector<16xf32> to vector<16x1xf32>
    %cst_46 = arith.constant 3.200000e+01 : f32
    %138 = vector.broadcast %cst_46 : f32 to vector<16x1xf32>
    %139 = arith.divf %137, %138 : vector<16x1xf32>
    %140 = vector.broadcast %139 : vector<16x1xf32> to vector<16x32xf32>
    %141 = arith.subf %133, %140 : vector<16x32xf32>
    %142 = arith.mulf %141, %141 : vector<16x32xf32>
    %cst_47 = arith.constant dense<0.000000e+00> : vector<16xf32>
    %143 = vector.multi_reduction <add>, %142, %cst_47 [1] : vector<16x32xf32> to vector<16xf32>
    %144 = vector.shape_cast %143 : vector<16xf32> to vector<16x1xf32>
    %cst_48 = arith.constant 3.200000e+01 : f32
    %145 = vector.broadcast %cst_48 : f32 to vector<16x1xf32>
    %146 = arith.divf %144, %145 : vector<16x1xf32>
    %cst_49 = arith.constant 9.99999974E-6 : f32
    %147 = vector.broadcast %cst_49 : f32 to vector<16x1xf32>
    %148 = arith.addf %146, %147 : vector<16x1xf32>
    %149 = math.rsqrt %148 : vector<16x1xf32>
    %150 = vector.broadcast %149 : vector<16x1xf32> to vector<16x32xf32>
    %151 = arith.mulf %141, %150 : vector<16x32xf32>
    %152 = vector.broadcast %134 : vector<1x32xf32> to vector<16x32xf32>
    %153 = arith.mulf %151, %152 : vector<16x32xf32>
    %154 = vector.broadcast %135 : vector<1x32xf32> to vector<16x32xf32>
    %155 = arith.addf %153, %154 : vector<16x32xf32>
    %156 = arith.truncf %155 : vector<16x32xf32> to vector<16x32xbf16>
    %157 = arith.truncf %3 : vector<16x32xf32> to vector<16x32xbf16>
    %c0_50 = arith.constant 0 : index
    %c0_51 = arith.constant 0 : index
    %158 = vector.load %arg13[%c0_50, %c0_51] : memref<32x32xbf16, #tpu.memory_space<vmem>>, vector<32x32xbf16>
    %cst_52 = arith.constant dense<0.000000e+00> : vector<16x32xf32>
    %159 = tpu.matmul %156, %158, %cst_52 {dimension_numbers = #tpu.dot_dimension_numbers<[1], [0], [0], [1], [0, 0, 1, 1], [], []>} : vector<16x32xbf16>, vector<32x32xbf16>, vector<16x32xf32> -> vector<16x32xf32>
    %c0_53 = arith.constant 0 : index
    %c0_54 = arith.constant 0 : index
    %160 = vector.load %arg14[%c0_53, %c0_54] : memref<1x32xf32, #tpu.memory_space<vmem>>, vector<1x32xf32>
    %161 = vector.broadcast %160 : vector<1x32xf32> to vector<16x32xf32>
    %162 = arith.addf %159, %161 : vector<16x32xf32>
    %c0_55 = arith.constant 0 : index
    %c0_56 = arith.constant 0 : index
    %163 = vector.load %arg15[%c0_55, %c0_56] : memref<32x32xbf16, #tpu.memory_space<vmem>>, vector<32x32xbf16>
    %cst_57 = arith.constant dense<0.000000e+00> : vector<16x32xf32>
    %164 = tpu.matmul %157, %163, %cst_57 {dimension_numbers = #tpu.dot_dimension_numbers<[1], [0], [0], [1], [0, 0, 1, 1], [], []>} : vector<16x32xbf16>, vector<32x32xbf16>, vector<16x32xf32> -> vector<16x32xf32>
    %c0_58 = arith.constant 0 : index
    %c0_59 = arith.constant 0 : index
    %165 = vector.load %arg16[%c0_58, %c0_59] : memref<1x32xf32, #tpu.memory_space<vmem>>, vector<1x32xf32>
    %166 = vector.broadcast %165 : vector<1x32xf32> to vector<16x32xf32>
    %167 = arith.addf %164, %166 : vector<16x32xf32>
    %c0_60 = arith.constant 0 : index
    %c0_61 = arith.constant 0 : index
    %168 = vector.load %arg17[%c0_60, %c0_61] : memref<32x32xbf16, #tpu.memory_space<vmem>>, vector<32x32xbf16>
    %cst_62 = arith.constant dense<0.000000e+00> : vector<16x32xf32>
    %169 = tpu.matmul %157, %168, %cst_62 {dimension_numbers = #tpu.dot_dimension_numbers<[1], [0], [0], [1], [0, 0, 1, 1], [], []>} : vector<16x32xbf16>, vector<32x32xbf16>, vector<16x32xf32> -> vector<16x32xf32>
    %c0_63 = arith.constant 0 : index
    %c0_64 = arith.constant 0 : index
    %170 = vector.load %arg18[%c0_63, %c0_64] : memref<1x32xf32, #tpu.memory_space<vmem>>, vector<1x32xf32>
    %171 = vector.broadcast %170 : vector<1x32xf32> to vector<16x32xf32>
    %172 = arith.addf %169, %171 : vector<16x32xf32>
    %173 = vector.shape_cast %162 : vector<16x32xf32> to vector<2x8x32xf32>
    %174 = vector.extract_strided_slice %173 {offsets = [0, 0, 0], sizes = [2, 8, 8], strides = [1, 1, 1]} : vector<2x8x32xf32> to vector<2x8x8xf32>
    %175 = vector.extract_strided_slice %173 {offsets = [0, 0, 8], sizes = [2, 8, 8], strides = [1, 1, 1]} : vector<2x8x32xf32> to vector<2x8x8xf32>
    %176 = vector.extract_strided_slice %173 {offsets = [0, 0, 16], sizes = [2, 8, 8], strides = [1, 1, 1]} : vector<2x8x32xf32> to vector<2x8x8xf32>
    %177 = vector.extract_strided_slice %173 {offsets = [0, 0, 24], sizes = [2, 8, 8], strides = [1, 1, 1]} : vector<2x8x32xf32> to vector<2x8x8xf32>
    %178 = vector.shape_cast %174 : vector<2x8x8xf32> to vector<1x2x8x8xf32>
    %179 = vector.shape_cast %175 : vector<2x8x8xf32> to vector<1x2x8x8xf32>
    %180 = vector.shape_cast %176 : vector<2x8x8xf32> to vector<1x2x8x8xf32>
    %181 = vector.shape_cast %177 : vector<2x8x8xf32> to vector<1x2x8x8xf32>
    %182 = tpu.concatenate %178, %179, %180, %181 in 0 : vector<1x2x8x8xf32>, vector<1x2x8x8xf32>, vector<1x2x8x8xf32>, vector<1x2x8x8xf32> -> vector<4x2x8x8xf32>
    %183 = vector.shape_cast %182 : vector<4x2x8x8xf32> to vector<8x8x8xf32>
    %184 = arith.truncf %183 : vector<8x8x8xf32> to vector<8x8x8xbf16>
    %185 = vector.shape_cast %167 : vector<16x32xf32> to vector<2x8x32xf32>
    %186 = vector.extract_strided_slice %185 {offsets = [0, 0, 0], sizes = [2, 8, 8], strides = [1, 1, 1]} : vector<2x8x32xf32> to vector<2x8x8xf32>
    %187 = vector.extract_strided_slice %185 {offsets = [0, 0, 8], sizes = [2, 8, 8], strides = [1, 1, 1]} : vector<2x8x32xf32> to vector<2x8x8xf32>
    %188 = vector.extract_strided_slice %185 {offsets = [0, 0, 16], sizes = [2, 8, 8], strides = [1, 1, 1]} : vector<2x8x32xf32> to vector<2x8x8xf32>
    %189 = vector.extract_strided_slice %185 {offsets = [0, 0, 24], sizes = [2, 8, 8], strides = [1, 1, 1]} : vector<2x8x32xf32> to vector<2x8x8xf32>
    %190 = vector.shape_cast %186 : vector<2x8x8xf32> to vector<1x2x8x8xf32>
    %191 = vector.shape_cast %187 : vector<2x8x8xf32> to vector<1x2x8x8xf32>
    %192 = vector.shape_cast %188 : vector<2x8x8xf32> to vector<1x2x8x8xf32>
    %193 = vector.shape_cast %189 : vector<2x8x8xf32> to vector<1x2x8x8xf32>
    %194 = tpu.concatenate %190, %191, %192, %193 in 0 : vector<1x2x8x8xf32>, vector<1x2x8x8xf32>, vector<1x2x8x8xf32>, vector<1x2x8x8xf32> -> vector<4x2x8x8xf32>
    %195 = vector.shape_cast %194 : vector<4x2x8x8xf32> to vector<8x8x8xf32>
    %196 = arith.truncf %195 : vector<8x8x8xf32> to vector<8x8x8xbf16>
    %197 = vector.shape_cast %172 : vector<16x32xf32> to vector<2x8x32xf32>
    %198 = vector.extract_strided_slice %197 {offsets = [0, 0, 0], sizes = [2, 8, 8], strides = [1, 1, 1]} : vector<2x8x32xf32> to vector<2x8x8xf32>
    %199 = vector.extract_strided_slice %197 {offsets = [0, 0, 8], sizes = [2, 8, 8], strides = [1, 1, 1]} : vector<2x8x32xf32> to vector<2x8x8xf32>
    %200 = vector.extract_strided_slice %197 {offsets = [0, 0, 16], sizes = [2, 8, 8], strides = [1, 1, 1]} : vector<2x8x32xf32> to vector<2x8x8xf32>
    %201 = vector.extract_strided_slice %197 {offsets = [0, 0, 24], sizes = [2, 8, 8], strides = [1, 1, 1]} : vector<2x8x32xf32> to vector<2x8x8xf32>
    %202 = vector.shape_cast %198 : vector<2x8x8xf32> to vector<1x2x8x8xf32>
    %203 = vector.shape_cast %199 : vector<2x8x8xf32> to vector<1x2x8x8xf32>
    %204 = vector.shape_cast %200 : vector<2x8x8xf32> to vector<1x2x8x8xf32>
    %205 = vector.shape_cast %201 : vector<2x8x8xf32> to vector<1x2x8x8xf32>
    %206 = tpu.concatenate %202, %203, %204, %205 in 0 : vector<1x2x8x8xf32>, vector<1x2x8x8xf32>, vector<1x2x8x8xf32>, vector<1x2x8x8xf32> -> vector<4x2x8x8xf32>
    %207 = vector.shape_cast %206 : vector<4x2x8x8xf32> to vector<8x8x8xf32>
    %208 = arith.truncf %207 : vector<8x8x8xf32> to vector<8x8x8xbf16>
    %cst_65 = arith.constant 0xFF800000 : f32
    %209 = vector.broadcast %cst_65 : f32 to vector<8x8x1xf32>
    %cst_66 = arith.constant 0.000000e+00 : f32
    %210 = vector.broadcast %cst_66 : f32 to vector<8x8x1xf32>
    %cst_67 = arith.constant 0.000000e+00 : f32
    %211 = vector.broadcast %cst_67 : f32 to vector<8x8x8xf32>
    %212 = vector.extract_strided_slice %196 {offsets = [0, 0, 0], sizes = [8, 4, 8], strides = [1, 1, 1]} : vector<8x8x8xbf16> to vector<8x4x8xbf16>
    %213 = vector.extract_strided_slice %208 {offsets = [0, 0, 0], sizes = [8, 4, 8], strides = [1, 1, 1]} : vector<8x8x8xbf16> to vector<8x4x8xbf16>
    %214 = vector.extract_strided_slice %5 {offsets = [0, 0], sizes = [8, 4], strides = [1, 1]} : vector<8x8xf32> to vector<8x4xf32>
    "tpu.trace_start"() <{level = 10 : i32, message = "nqd,nkd->nqk"}> : () -> ()
    %cst_68 = arith.constant dense<0.000000e+00> : vector<8x8x4xf32>
    %215 = tpu.matmul %184, %212, %cst_68 {dimension_numbers = #tpu.dot_dimension_numbers<[2], [2], [1], [1], [0, 0, 0, 1, 1, 1], [0], [0]>} : vector<8x8x8xbf16>, vector<8x4x8xbf16>, vector<8x8x4xf32> -> vector<8x8x4xf32>
    "tpu.trace_stop"() : () -> ()
    %cst_69 = arith.constant 0.353553385 : f32
    %216 = vector.broadcast %cst_69 : f32 to vector<8x8x4xf32>
    %217 = arith.mulf %215, %216 : vector<8x8x4xf32>
    %218 = vector.shape_cast %214 : vector<8x4xf32> to vector<1x8x4xf32>
    %219 = vector.broadcast %218 : vector<1x8x4xf32> to vector<8x8x4xf32>
    %220 = arith.addf %217, %219 : vector<8x8x4xf32>
    %cst_70 = arith.constant dense<0xFF800000> : vector<8x8xf32>
    %221 = vector.multi_reduction <maximumf>, %220, %cst_70 [2] : vector<8x8x4xf32> to vector<8x8xf32>
    %222 = vector.shape_cast %221 : vector<8x8xf32> to vector<8x8x1xf32>
    %223 = arith.maximumf %209, %222 : vector<8x8x1xf32>
    %224 = arith.subf %209, %223 : vector<8x8x1xf32>
    %225 = math.exp %224 : vector<8x8x1xf32>
    %226 = vector.broadcast %223 : vector<8x8x1xf32> to vector<8x8x4xf32>
    %227 = arith.subf %220, %226 : vector<8x8x4xf32>
    %228 = math.exp %227 : vector<8x8x4xf32>
    %229 = arith.mulf %225, %210 : vector<8x8x1xf32>
    %cst_71 = arith.constant dense<0.000000e+00> : vector<8x8xf32>
    %230 = vector.multi_reduction <add>, %228, %cst_71 [2] : vector<8x8x4xf32> to vector<8x8xf32>
    %231 = vector.shape_cast %230 : vector<8x8xf32> to vector<8x8x1xf32>
    %232 = arith.addf %229, %231 : vector<8x8x1xf32>
    %233 = vector.broadcast %225 : vector<8x8x1xf32> to vector<8x8x8xf32>
    %234 = arith.mulf %233, %211 : vector<8x8x8xf32>
    %235 = arith.truncf %228 : vector<8x8x4xf32> to vector<8x8x4xbf16>
    "tpu.trace_start"() <{level = 10 : i32, message = "nqk,nkd->nqd"}> : () -> ()
    %cst_72 = arith.constant dense<0.000000e+00> : vector<8x8x8xf32>
    %236 = tpu.matmul %235, %213, %cst_72 {dimension_numbers = #tpu.dot_dimension_numbers<[2], [1], [1], [2], [0, 0, 0, 1, 1, 2], [0], [0]>} : vector<8x8x4xbf16>, vector<8x4x8xbf16>, vector<8x8x8xf32> -> vector<8x8x8xf32>
    "tpu.trace_stop"() : () -> ()
    %237 = arith.addf %234, %236 : vector<8x8x8xf32>
    %238 = vector.extract_strided_slice %196 {offsets = [0, 4, 0], sizes = [8, 4, 8], strides = [1, 1, 1]} : vector<8x8x8xbf16> to vector<8x4x8xbf16>
    %239 = vector.extract_strided_slice %208 {offsets = [0, 4, 0], sizes = [8, 4, 8], strides = [1, 1, 1]} : vector<8x8x8xbf16> to vector<8x4x8xbf16>
    %240 = vector.extract_strided_slice %5 {offsets = [0, 4], sizes = [8, 4], strides = [1, 1]} : vector<8x8xf32> to vector<8x4xf32>
    "tpu.trace_start"() <{level = 10 : i32, message = "nqd,nkd->nqk"}> : () -> ()
    %cst_73 = arith.constant dense<0.000000e+00> : vector<8x8x4xf32>
    %241 = tpu.matmul %184, %238, %cst_73 {dimension_numbers = #tpu.dot_dimension_numbers<[2], [2], [1], [1], [0, 0, 0, 1, 1, 1], [0], [0]>} : vector<8x8x8xbf16>, vector<8x4x8xbf16>, vector<8x8x4xf32> -> vector<8x8x4xf32>
    "tpu.trace_stop"() : () -> ()
    %cst_74 = arith.constant 0.353553385 : f32
    %242 = vector.broadcast %cst_74 : f32 to vector<8x8x4xf32>
    %243 = arith.mulf %241, %242 : vector<8x8x4xf32>
    %244 = vector.shape_cast %240 : vector<8x4xf32> to vector<1x8x4xf32>
    %245 = vector.broadcast %244 : vector<1x8x4xf32> to vector<8x8x4xf32>
    %246 = arith.addf %243, %245 : vector<8x8x4xf32>
    %cst_75 = arith.constant dense<0xFF800000> : vector<8x8xf32>
    %247 = vector.multi_reduction <maximumf>, %246, %cst_75 [2] : vector<8x8x4xf32> to vector<8x8xf32>
    %248 = vector.shape_cast %247 : vector<8x8xf32> to vector<8x8x1xf32>
    %249 = arith.maximumf %223, %248 : vector<8x8x1xf32>
    %250 = arith.subf %223, %249 : vector<8x8x1xf32>
    %251 = math.exp %250 : vector<8x8x1xf32>
    %252 = vector.broadcast %249 : vector<8x8x1xf32> to vector<8x8x4xf32>
    %253 = arith.subf %246, %252 : vector<8x8x4xf32>
    %254 = math.exp %253 : vector<8x8x4xf32>
    %255 = arith.mulf %251, %232 : vector<8x8x1xf32>
    %cst_76 = arith.constant dense<0.000000e+00> : vector<8x8xf32>
    %256 = vector.multi_reduction <add>, %254, %cst_76 [2] : vector<8x8x4xf32> to vector<8x8xf32>
    %257 = vector.shape_cast %256 : vector<8x8xf32> to vector<8x8x1xf32>
    %258 = arith.addf %255, %257 : vector<8x8x1xf32>
    %259 = vector.broadcast %251 : vector<8x8x1xf32> to vector<8x8x8xf32>
    %260 = arith.mulf %259, %237 : vector<8x8x8xf32>
    %261 = arith.truncf %254 : vector<8x8x4xf32> to vector<8x8x4xbf16>
    "tpu.trace_start"() <{level = 10 : i32, message = "nqk,nkd->nqd"}> : () -> ()
    %cst_77 = arith.constant dense<0.000000e+00> : vector<8x8x8xf32>
    %262 = tpu.matmul %261, %239, %cst_77 {dimension_numbers = #tpu.dot_dimension_numbers<[2], [1], [1], [2], [0, 0, 0, 1, 1, 2], [0], [0]>} : vector<8x8x4xbf16>, vector<8x4x8xbf16>, vector<8x8x8xf32> -> vector<8x8x8xf32>
    "tpu.trace_stop"() : () -> ()
    %263 = arith.addf %260, %262 : vector<8x8x8xf32>
    %264 = tpu.reciprocal %258 {approx = true} : vector<8x8x1xf32> -> vector<8x8x1xf32>
    %265 = vector.broadcast %264 : vector<8x8x1xf32> to vector<8x8x8xf32>
    %266 = arith.mulf %263, %265 : vector<8x8x8xf32>
    %267 = vector.shape_cast %266 : vector<8x8x8xf32> to vector<4x2x8x8xf32>
    %268 = vector.extract_strided_slice %267 {offsets = [0, 0, 0, 0], sizes = [1, 2, 8, 8], strides = [1, 1, 1, 1]} : vector<4x2x8x8xf32> to vector<1x2x8x8xf32>
    %269 = vector.shape_cast %268 : vector<1x2x8x8xf32> to vector<2x8x8xf32>
    %270 = vector.extract_strided_slice %267 {offsets = [1, 0, 0, 0], sizes = [1, 2, 8, 8], strides = [1, 1, 1, 1]} : vector<4x2x8x8xf32> to vector<1x2x8x8xf32>
    %271 = vector.shape_cast %270 : vector<1x2x8x8xf32> to vector<2x8x8xf32>
    %272 = vector.extract_strided_slice %267 {offsets = [2, 0, 0, 0], sizes = [1, 2, 8, 8], strides = [1, 1, 1, 1]} : vector<4x2x8x8xf32> to vector<1x2x8x8xf32>
    %273 = vector.shape_cast %272 : vector<1x2x8x8xf32> to vector<2x8x8xf32>
    %274 = vector.extract_strided_slice %267 {offsets = [3, 0, 0, 0], sizes = [1, 2, 8, 8], strides = [1, 1, 1, 1]} : vector<4x2x8x8xf32> to vector<1x2x8x8xf32>
    %275 = vector.shape_cast %274 : vector<1x2x8x8xf32> to vector<2x8x8xf32>
    %276 = tpu.concatenate %269, %271, %273, %275 in 2 : vector<2x8x8xf32>, vector<2x8x8xf32>, vector<2x8x8xf32>, vector<2x8x8xf32> -> vector<2x8x32xf32>
    %277 = vector.shape_cast %276 : vector<2x8x32xf32> to vector<16x32xf32>
    %278 = arith.truncf %277 : vector<16x32xf32> to vector<16x32xbf16>
    %c0_78 = arith.constant 0 : index
    %c0_79 = arith.constant 0 : index
    %279 = vector.load %arg19[%c0_78, %c0_79] : memref<32x32xbf16, #tpu.memory_space<vmem>>, vector<32x32xbf16>
    %cst_80 = arith.constant dense<0.000000e+00> : vector<16x32xf32>
    %280 = tpu.matmul %278, %279, %cst_80 {dimension_numbers = #tpu.dot_dimension_numbers<[1], [0], [0], [1], [0, 0, 1, 1], [], []>} : vector<16x32xbf16>, vector<32x32xbf16>, vector<16x32xf32> -> vector<16x32xf32>
    %c0_81 = arith.constant 0 : index
    %c0_82 = arith.constant 0 : index
    %281 = vector.load %arg20[%c0_81, %c0_82] : memref<1x32xf32, #tpu.memory_space<vmem>>, vector<1x32xf32>
    %282 = vector.broadcast %281 : vector<1x32xf32> to vector<16x32xf32>
    %283 = arith.addf %280, %282 : vector<16x32xf32>
    %284 = arith.addf %155, %283 : vector<16x32xf32>
    %c0_83 = arith.constant 0 : index
    %c0_84 = arith.constant 0 : index
    %285 = vector.load %arg27[%c0_83, %c0_84] : memref<1x32xf32, #tpu.memory_space<vmem>>, vector<1x32xf32>
    %c0_85 = arith.constant 0 : index
    %c0_86 = arith.constant 0 : index
    %286 = vector.load %arg28[%c0_85, %c0_86] : memref<1x32xf32, #tpu.memory_space<vmem>>, vector<1x32xf32>
    %cst_87 = arith.constant dense<0.000000e+00> : vector<16xf32>
    %287 = vector.multi_reduction <add>, %284, %cst_87 [1] : vector<16x32xf32> to vector<16xf32>
    %288 = vector.shape_cast %287 : vector<16xf32> to vector<16x1xf32>
    %cst_88 = arith.constant 3.200000e+01 : f32
    %289 = vector.broadcast %cst_88 : f32 to vector<16x1xf32>
    %290 = arith.divf %288, %289 : vector<16x1xf32>
    %291 = vector.broadcast %290 : vector<16x1xf32> to vector<16x32xf32>
    %292 = arith.subf %284, %291 : vector<16x32xf32>
    %293 = arith.mulf %292, %292 : vector<16x32xf32>
    %cst_89 = arith.constant dense<0.000000e+00> : vector<16xf32>
    %294 = vector.multi_reduction <add>, %293, %cst_89 [1] : vector<16x32xf32> to vector<16xf32>
    %295 = vector.shape_cast %294 : vector<16xf32> to vector<16x1xf32>
    %cst_90 = arith.constant 3.200000e+01 : f32
    %296 = vector.broadcast %cst_90 : f32 to vector<16x1xf32>
    %297 = arith.divf %295, %296 : vector<16x1xf32>
    %cst_91 = arith.constant 9.99999974E-6 : f32
    %298 = vector.broadcast %cst_91 : f32 to vector<16x1xf32>
    %299 = arith.addf %297, %298 : vector<16x1xf32>
    %300 = math.rsqrt %299 : vector<16x1xf32>
    %301 = vector.broadcast %300 : vector<16x1xf32> to vector<16x32xf32>
    %302 = arith.mulf %292, %301 : vector<16x32xf32>
    %303 = vector.broadcast %285 : vector<1x32xf32> to vector<16x32xf32>
    %304 = arith.mulf %302, %303 : vector<16x32xf32>
    %305 = vector.broadcast %286 : vector<1x32xf32> to vector<16x32xf32>
    %306 = arith.addf %304, %305 : vector<16x32xf32>
    %307 = arith.truncf %306 : vector<16x32xf32> to vector<16x32xbf16>
    %c0_92 = arith.constant 0 : index
    %c0_93 = arith.constant 0 : index
    %308 = vector.load %arg21[%c0_92, %c0_93] : memref<32x64xbf16, #tpu.memory_space<vmem>>, vector<32x64xbf16>
    %cst_94 = arith.constant dense<0.000000e+00> : vector<16x64xf32>
    %309 = tpu.matmul %307, %308, %cst_94 {dimension_numbers = #tpu.dot_dimension_numbers<[1], [0], [0], [1], [0, 0, 1, 1], [], []>} : vector<16x32xbf16>, vector<32x64xbf16>, vector<16x64xf32> -> vector<16x64xf32>
    %c0_95 = arith.constant 0 : index
    %c0_96 = arith.constant 0 : index
    %310 = vector.load %arg22[%c0_95, %c0_96] : memref<1x64xf32, #tpu.memory_space<vmem>>, vector<1x64xf32>
    %311 = vector.broadcast %310 : vector<1x64xf32> to vector<16x64xf32>
    %312 = arith.addf %309, %311 : vector<16x64xf32>
    %cst_97 = arith.constant 0.000000e+00 : f32
    %313 = vector.broadcast %cst_97 : f32 to vector<16x64xf32>
    %314 = arith.maximumf %312, %313 : vector<16x64xf32>
    %315 = arith.truncf %314 : vector<16x64xf32> to vector<16x64xbf16>
    %c0_98 = arith.constant 0 : index
    %c0_99 = arith.constant 0 : index
    %316 = vector.load %arg23[%c0_98, %c0_99] : memref<64x32xbf16, #tpu.memory_space<vmem>>, vector<64x32xbf16>
    %cst_100 = arith.constant dense<0.000000e+00> : vector<16x32xf32>
    %317 = tpu.matmul %315, %316, %cst_100 {dimension_numbers = #tpu.dot_dimension_numbers<[1], [0], [0], [1], [0, 0, 1, 1], [], []>} : vector<16x64xbf16>, vector<64x32xbf16>, vector<16x32xf32> -> vector<16x32xf32>
    %c0_101 = arith.constant 0 : index
    %c0_102 = arith.constant 0 : index
    %318 = vector.load %arg24[%c0_101, %c0_102] : memref<1x32xf32, #tpu.memory_space<vmem>>, vector<1x32xf32>
    %319 = vector.broadcast %318 : vector<1x32xf32> to vector<16x32xf32>
    %320 = arith.addf %317, %319 : vector<16x32xf32>
    %321 = arith.addf %306, %320 : vector<16x32xf32>
    %c0_103 = arith.constant 0 : index
    %c0_104 = arith.constant 0 : index
    %322 = vector.load %arg29[%c0_103, %c0_104] : memref<1x32xf32, #tpu.memory_space<vmem>>, vector<1x32xf32>
    %c0_105 = arith.constant 0 : index
    %c0_106 = arith.constant 0 : index
    %323 = vector.load %arg30[%c0_105, %c0_106] : memref<1x32xf32, #tpu.memory_space<vmem>>, vector<1x32xf32>
    %cst_107 = arith.constant dense<0.000000e+00> : vector<16xf32>
    %324 = vector.multi_reduction <add>, %321, %cst_107 [1] : vector<16x32xf32> to vector<16xf32>
    %325 = vector.shape_cast %324 : vector<16xf32> to vector<16x1xf32>
    %cst_108 = arith.constant 3.200000e+01 : f32
    %326 = vector.broadcast %cst_108 : f32 to vector<16x1xf32>
    %327 = arith.divf %325, %326 : vector<16x1xf32>
    %328 = vector.broadcast %327 : vector<16x1xf32> to vector<16x32xf32>
    %329 = arith.subf %321, %328 : vector<16x32xf32>
    %330 = arith.mulf %329, %329 : vector<16x32xf32>
    %cst_109 = arith.constant dense<0.000000e+00> : vector<16xf32>
    %331 = vector.multi_reduction <add>, %330, %cst_109 [1] : vector<16x32xf32> to vector<16xf32>
    %332 = vector.shape_cast %331 : vector<16xf32> to vector<16x1xf32>
    %cst_110 = arith.constant 3.200000e+01 : f32
    %333 = vector.broadcast %cst_110 : f32 to vector<16x1xf32>
    %334 = arith.divf %332, %333 : vector<16x1xf32>
    %cst_111 = arith.constant 9.99999974E-6 : f32
    %335 = vector.broadcast %cst_111 : f32 to vector<16x1xf32>
    %336 = arith.addf %334, %335 : vector<16x1xf32>
    %337 = math.rsqrt %336 : vector<16x1xf32>
    %338 = vector.broadcast %337 : vector<16x1xf32> to vector<16x32xf32>
    %339 = arith.mulf %329, %338 : vector<16x32xf32>
    %340 = vector.broadcast %322 : vector<1x32xf32> to vector<16x32xf32>
    %341 = arith.mulf %339, %340 : vector<16x32xf32>
    %342 = vector.broadcast %323 : vector<1x32xf32> to vector<16x32xf32>
    %343 = arith.addf %341, %342 : vector<16x32xf32>
    %344 = vector.shape_cast %343 : vector<16x32xf32> to vector<2x8x32xf32>
    %c0_112 = arith.constant 0 : index
    %c0_113 = arith.constant 0 : index
    %c0_114 = arith.constant 0 : index
    %345 = vector.load %arg31[%c0_112, %c0_113, %c0_114] : memref<2x8x32xf32, #tpu.memory_space<vmem>>, vector<2x8x32xf32>
    tpu.vector_store %arg31[%c0_112, %c0_113, %c0_114], %344 {strides = array<i32>} : memref<2x8x32xf32, #tpu.memory_space<vmem>>, vector<2x8x32xf32>,
    return
  }
  func.func @transform_0(%arg0: i32) -> (i32, i32, i32) {
    %c0_i32 = arith.constant 0 : i32
    %c0_i32_0 = arith.constant 0 : i32
    %c0_i32_1 = arith.constant 0 : i32
    return %arg0, %c0_i32, %c0_i32_0 : i32, i32, i32
  }
  func.func @transform_1(%arg0: i32) -> (i32, i32, i32) {
    %c0_i32 = arith.constant 0 : i32
    %c0_i32_0 = arith.constant 0 : i32
    %c0_i32_1 = arith.constant 0 : i32
    return %arg0, %c0_i32, %c0_i32_0 : i32, i32, i32
  }
  func.func @transform_2(%arg0: i32) -> (i32, i32) {
    %c0_i32 = arith.constant 0 : i32
    %c0_i32_0 = arith.constant 0 : i32
    %c0_i32_1 = arith.constant 0 : i32
    return %c0_i32, %c0_i32_0 : i32, i32
  }
  func.func @transform_3(%arg0: i32) -> (i32, i32) {
    %c0_i32 = arith.constant 0 : i32
    %c0_i32_0 = arith.constant 0 : i32
    %c0_i32_1 = arith.constant 0 : i32
    return %c0_i32, %c0_i32_0 : i32, i32
  }
  func.func @transform_4(%arg0: i32) -> (i32, i32) {
    %c0_i32 = arith.constant 0 : i32
    %c0_i32_0 = arith.constant 0 : i32
    %c0_i32_1 = arith.constant 0 : i32
    return %c0_i32, %c0_i32_0 : i32, i32
  }
  func.func @transform_5(%arg0: i32) -> (i32, i32) {
    %c0_i32 = arith.constant 0 : i32
    %c0_i32_0 = arith.constant 0 : i32
    %c0_i32_1 = arith.constant 0 : i32
    return %c0_i32, %c0_i32_0 : i32, i32
  }
  func.func @transform_6(%arg0: i32) -> (i32, i32) {
    %c0_i32 = arith.constant 0 : i32
    %c0_i32_0 = arith.constant 0 : i32
    %c0_i32_1 = arith.constant 0 : i32
    return %c0_i32, %c0_i32_0 : i32, i32
  }
  func.func @transform_7(%arg0: i32) -> (i32, i32) {
    %c0_i32 = arith.constant 0 : i32
    %c0_i32_0 = arith.constant 0 : i32
    %c0_i32_1 = arith.constant 0 : i32
    return %c0_i32, %c0_i32_0 : i32, i32
  }
  func.func @transform_8(%arg0: i32) -> (i32, i32) {
    %c0_i32 = arith.constant 0 : i32
    %c0_i32_0 = arith.constant 0 : i32
    %c0_i32_1 = arith.constant 0 : i32
    return %c0_i32, %c0_i32_0 : i32, i32
  }
  func.func @transform_9(%arg0: i32) -> (i32, i32) {
    %c0_i32 = arith.constant 0 : i32
    %c0_i32_0 = arith.constant 0 : i32
    %c0_i32_1 = arith.constant 0 : i32
    return %c0_i32, %c0_i32_0 : i32, i32
  }
  func.func @transform_10(%arg0: i32) -> (i32, i32) {
    %c0_i32 = arith.constant 0 : i32
    %c0_i32_0 = arith.constant 0 : i32
    %c0_i32_1 = arith.constant 0 : i32
    return %c0_i32, %c0_i32_0 : i32, i32
  }
  func.func @transform_11(%arg0: i32) -> (i32, i32) {
    %c0_i32 = arith.constant 0 : i32
    %c0_i32_0 = arith.constant 0 : i32
    %c0_i32_1 = arith.constant 0 : i32
    return %c0_i32, %c0_i32_0 : i32, i32
  }
  func.func @transform_12(%arg0: i32) -> (i32, i32) {
    %c0_i32 = arith.constant 0 : i32
    %c0_i32_0 = arith.constant 0 : i32
    %c0_i32_1 = arith.constant 0 : i32
    return %c0_i32, %c0_i32_0 : i32, i32
  }
  func.func @transform_13(%arg0: i32) -> (i32, i32) {
    %c0_i32 = arith.constant 0 : i32
    %c0_i32_0 = arith.constant 0 : i32
    %c0_i32_1 = arith.constant 0 : i32
    return %c0_i32, %c0_i32_0 : i32, i32
  }
  func.func @transform_14(%arg0: i32) -> (i32, i32) {
    %c0_i32 = arith.constant 0 : i32
    %c0_i32_0 = arith.constant 0 : i32
    %c0_i32_1 = arith.constant 0 : i32
    return %c0_i32, %c0_i32_0 : i32, i32
  }
  func.func @transform_15(%arg0: i32) -> (i32, i32) {
    %c0_i32 = arith.constant 0 : i32
    %c0_i32_0 = arith.constant 0 : i32
    %c0_i32_1 = arith.constant 0 : i32
    return %c0_i32, %c0_i32_0 : i32, i32
  }
  func.func @transform_16(%arg0: i32) -> (i32, i32) {
    %c0_i32 = arith.constant 0 : i32
    %c0_i32_0 = arith.constant 0 : i32
    %c0_i32_1 = arith.constant 0 : i32
    return %c0_i32, %c0_i32_0 : i32, i32
  }
  func.func @transform_17(%arg0: i32) -> (i32, i32) {
    %c0_i32 = arith.constant 0 : i32
    %c0_i32_0 = arith.constant 0 : i32
    %c0_i32_1 = arith.constant 0 : i32
    return %c0_i32, %c0_i32_0 : i32, i32
  }
  func.func @transform_18(%arg0: i32) -> (i32, i32) {
    %c0_i32 = arith.constant 0 : i32
    %c0_i32_0 = arith.constant 0 : i32
    %c0_i32_1 = arith.constant 0 : i32
    return %c0_i32, %c0_i32_0 : i32, i32
  }
  func.func @transform_19(%arg0: i32) -> (i32, i32) {
    %c0_i32 = arith.constant 0 : i32
    %c0_i32_0 = arith.constant 0 : i32
    %c0_i32_1 = arith.constant 0 : i32
    return %c0_i32, %c0_i32_0 : i32, i32
  }
  func.func @transform_20(%arg0: i32) -> (i32, i32) {
    %c0_i32 = arith.constant 0 : i32
    %c0_i32_0 = arith.constant 0 : i32
    %c0_i32_1 = arith.constant 0 : i32
    return %c0_i32, %c0_i32_0 : i32, i32
  }
  func.func @transform_21(%arg0: i32) -> (i32, i32) {
    %c0_i32 = arith.constant 0 : i32
    %c0_i32_0 = arith.constant 0 : i32
    %c0_i32_1 = arith.constant 0 : i32
    return %c0_i32, %c0_i32_0 : i32, i32
  }
  func.func @transform_22(%arg0: i32) -> (i32, i32) {
    %c0_i32 = arith.constant 0 : i32
    %c0_i32_0 = arith.constant 0 : i32
    %c0_i32_1 = arith.constant 0 : i32
    return %c0_i32, %c0_i32_0 : i32, i32
  }
  func.func @transform_23(%arg0: i32) -> (i32, i32) {
    %c0_i32 = arith.constant 0 : i32
    %c0_i32_0 = arith.constant 0 : i32
    %c0_i32_1 = arith.constant 0 : i32
    return %c0_i32, %c0_i32_0 : i32, i32
  }
  func.func @transform_24(%arg0: i32) -> (i32, i32) {
    %c0_i32 = arith.constant 0 : i32
    %c0_i32_0 = arith.constant 0 : i32
    %c0_i32_1 = arith.constant 0 : i32
    return %c0_i32, %c0_i32_0 : i32, i32
  }
  func.func @transform_25(%arg0: i32) -> (i32, i32) {
    %c0_i32 = arith.constant 0 : i32
    %c0_i32_0 = arith.constant 0 : i32
    %c0_i32_1 = arith.constant 0 : i32
    return %c0_i32, %c0_i32_0 : i32, i32
  }
  func.func @transform_26(%arg0: i32) -> (i32, i32) {
    %c0_i32 = arith.constant 0 : i32
    %c0_i32_0 = arith.constant 0 : i32
    %c0_i32_1 = arith.constant 0 : i32
    return %c0_i32, %c0_i32_0 : i32, i32
  }
  func.func @transform_27(%arg0: i32) -> (i32, i32) {
    %c0_i32 = arith.constant 0 : i32
    %c0_i32_0 = arith.constant 0 : i32
    %c0_i32_1 = arith.constant 0 : i32
    return %c0_i32, %c0_i32_0 : i32, i32
  }
  func.func @transform_28(%arg0: i32) -> (i32, i32) {
    %c0_i32 = arith.constant 0 : i32
    %c0_i32_0 = arith.constant 0 : i32
    %c0_i32_1 = arith.constant 0 : i32
    return %c0_i32, %c0_i32_0 : i32, i32
  }
  func.func @transform_29(%arg0: i32) -> (i32, i32) {
    %c0_i32 = arith.constant 0 : i32
    %c0_i32_0 = arith.constant 0 : i32
    %c0_i32_1 = arith.constant 0 : i32
    return %c0_i32, %c0_i32_0 : i32, i32
  }
  func.func @transform_30(%arg0: i32) -> (i32, i32, i32) {
    %c0_i32 = arith.constant 0 : i32
    %c0_i32_0 = arith.constant 0 : i32
    %c0_i32_1 = arith.constant 0 : i32
    return %arg0, %c0_i32, %c0_i32_0 : i32, i32, i32
  }
}

</mosaic_0001>

<bundles_post_ra>
// kernel: tpu_custom_call.1
= control target key start
LH: loop header
LB: loop body
LE: loop exit
PB: predicated region body
PF: predicated region fallthrough
CT: control target
= control target key end

     0   :  { %s10164_s6 = smov 1   ;;  %s10165_s10 = smov 2   ;;  %s12450_s0 = inlined_call_operand.smem [shape: u32[31], index: -1, kind: input, shape index: {}] }
   0x1   :  { %s10236_s5 = sld [smem:[%s12450_s0]]   ;;  %s10166_s14 = smov 3  }
   0x2   :  { %s10241_s9 = sld [smem:[%s12450_s0 + %s10164_s6]]   ;;  %s10167_s18 = smov 4  }
   0x3   :  { %s10246_s13 = sld [smem:[%s12450_s0 + %s10165_s10]]   ;;  %s10168_s22 = smov 5  }
   0x4   :  { %s10251_s17 = sld [smem:[%s12450_s0 + %s10166_s14]]   ;;  %s10169_s26 = smov 6  }
   0x5   :  { %s10256_s21 = sld [smem:[%s12450_s0 + %s10167_s18]]   ;;  %s10170_s30 = smov 7  }
   0x6   :  { %s10261_s25 = sld [smem:[%s12450_s0 + %s10168_s22]]   ;;  %s10171_s4 = smov 8  }
   0x7   :  { %12464 = sst [smem:[#allocation40_spill]] %s10236_s5  ;;  %s10172_s10 = smov 9  }
   0x8   :  { %12465 = sst [smem:[#allocation41_spill]] %s10241_s9  ;;  %s10173_s15 = smov 10  }
   0x9   :  { %12466 = sst [smem:[#allocation42_spill]] %s10246_s13  ;;  %s10174_s20 = smov 11  }
   0xa   :  { %12467 = sst [smem:[#allocation43_spill]] %s10251_s17  ;;  %s10176_s1 = smov 13  }
   0xb   :  { %12468 = sst [smem:[#allocation44_spill]] %s10256_s21  ;;  %s10177_s7 = smov 14  }
   0xc   :  { %s10266_s29 = sld [smem:[%s12450_s0 + %s10169_s26]]   ;;  %s10175_s26 = smov 12  }
   0xd   :  { %s10271_s3 = sld [smem:[%s12450_s0 + %s10170_s30]]   ;;  %s10179_s22 = smov 16  }
   0xe   :  { %s10276_s8 = sld [smem:[%s12450_s0 + %s10171_s4]]   ;;  %s10180_s28 = smov 17  }
   0xf   :  { %s10281_s14 = sld [smem:[%s12450_s0 + %s10172_s10]]  }
  0x10   :  { %s10286_s19 = sld [smem:[%s12450_s0 + %s10173_s15]]   ;;  %s10178_s15 = smov 15  }
  0x11   :  { %s10291_s24 = sld [smem:[%s12450_s0 + %s10174_s20]]  }
  0x12   :  { %s10296_s30 = sld [smem:[%s12450_s0 + %s10175_s26]]  }
  0x13   :  { %12469 = sst [smem:[#allocation45_spill]] %s10271_s3 }
  0x14   :  { %12470 = sst [smem:[#allocation46_spill]] %s10276_s8 }
  0x15   :  { %12471 = sst [smem:[#allocation47_spill]] %s10281_s14 }
  0x16   :  { %12472 = sst [smem:[#allocation48_spill]] %s10286_s19 }
  0x17   :  { %s10301_s6 = sld [smem:[%s12450_s0 + %s10176_s1]]  }
  0x18   :  { %s10306_s12 = sld [smem:[%s12450_s0 + %s10177_s7]]   ;;  %s10181_s7 = smov 18  }
  0x19   :  { %s10311_s20 = sld [smem:[%s12450_s0 + %s10178_s15]]   ;;  %s10182_s15 = smov 19  }
  0x1a   :  { %s10316_s27 = sld [smem:[%s12450_s0 + %s10179_s22]]   ;;  %s10183_s22 = smov 20  }
  0x1b   :  { %s10321_s4 = sld [smem:[%s12450_s0 + %s10180_s28]]   ;;  %s10184_s28 = smov 21  }
  0x1c   :  { %s10326_s19 = sld [smem:[%s12450_s0 + %s10181_s7]]   ;;  %s10185_s7 = smov 22  }
  0x1d   :  { %12473 = sst [smem:[#allocation49_spill]] %s10301_s6 }
  0x1e   :  { %12474 = sst [smem:[#allocation50_spill]] %s10306_s12 }
  0x1f   :  { %s10331_s5 = sld [smem:[%s12450_s0 + %s10182_s15]]   ;;  %s10186_s15 = smov 23  }
  0x20   :  { %s10336_s21 = sld [smem:[%s12450_s0 + %s10183_s22]]   ;;  %s10187_s22 = smov 24  }
  0x21   :  { %12475 = sst [smem:[#allocation51_spill]] %s10321_s4 }
  0x22   :  { %s10341_s9 = sld [smem:[%s12450_s0 + %s10184_s28]]   ;;  %s10188_s28 = smov 25  }
  0x23   :  { %s10346_s4 = sld [smem:[%s12450_s0 + %s10185_s7]]   ;;  %s10189_s7 = smov 26  }
  0x25   :  { %12476 = sst [smem:[#allocation52_spill]] %s10331_s5 }
  0x26   :  { %12477 = sst [smem:[#allocation53_spill]] %s10336_s21 }
  0x27   :  { %s10351_s5 = sld [smem:[%s12450_s0 + %s10186_s15]]   ;;  %s10190_s15 = smov 27  }
  0x28   :  { %12478 = sst [smem:[#allocation54_spill]] %s10341_s9 }
  0x29   :  { %12479 = sst [smem:[#allocation55_spill]] %s10346_s4 }
  0x2a   :  { %s10356_s21 = sld [smem:[%s12450_s0 + %s10187_s22]]   ;;  %s10191_s22 = smov 28  }
  0x2b   :  { %s10361_s9 = sld [smem:[%s12450_s0 + %s10188_s28]]   ;;  %s10192_s28 = smov 29  }
  0x2c   :  { %s10366_s4 = sld [smem:[%s12450_s0 + %s10189_s7]]   ;;  %s10193_s7 = smov 30  }
  0x2d   :  { %12480 = sst [smem:[#allocation56_spill]] %s10351_s5 }
  0x2e   :  { %s10371_s5 = sld [smem:[%s12450_s0 + %s10190_s15]]  }
  0x30   :  { %12481 = sst [smem:[#allocation57_spill]] %s10356_s21 }
  0x31   :  { %12482 = sst [smem:[#allocation58_spill]] %s10361_s9 }
  0x32   :  { %12483 = sst [smem:[#allocation59_spill]] %s10366_s4 }
  0x33   :  { %s10376_s21 = sld [smem:[%s12450_s0 + %s10191_s22]]  }
  0x34   :  { %s10381_s9 = sld [smem:[%s12450_s0 + %s10192_s28]]  }
  0x35   :  { %s10386_s4 = sld [smem:[%s12450_s0 + %s10193_s7]]  }
  0x3a   :  { %12484 = sst [smem:[#allocation60_spill]] %s10381_s9 }
  0x3b   :  { %12485 = sst [smem:[#allocation61_spill]] %s10386_s4 }
  0x3c   :  { %66 = vsyncpa [#allocation3], 0 }
  0x3d   :  { %68 = vsyncpa [#allocation3 + $0x1], 0 }
  0x3e   :  { %69 = vsyncpa [#allocation6], 0 }
  0x3f   :  { %70 = vsyncpa [#allocation9], 0 }
  0x40   :  { %71 = vsyncpa [#allocation12], 0 }
  0x41   :  { %72 = vsyncpa [#allocation15], 0 }
  0x42   :  { %73 = vsyncpa [#allocation18], 0 }
  0x43   :  { %74 = vsyncpa [#allocation21], 0 }
  0x44   :  { %75 = vsyncpa [#allocation24], 0 }
  0x45   :  { %76 = vsyncpa [#allocation27], 0 }
  0x46   :  { %77 = vsyncpa [#allocation4], 0 }
  0x47   :  { %79 = vsyncpa [#allocation4 + $0x1], 0  ;;  %s10388_s15 = smov 0   ;;  %s10390_s16 = smov 0  }
  0x48   :  { %s10392_s18 = smov 0   ;;  %s10394_s0 = smov 0  }
  0x49 LB: > { %s10194_s22 = smov [#allocation5]   ;;  %s10409_s26 = sadd.s32 4294967295, %s10162_s0   ;;  %s10162_s0 = sphi %s10394_s0, %s12544_s0   ;;  %s10158_s18 = sphi %s10392_s18, %s12543_s18   ;;  %s10154_s16 = sphi %s10390_s16, %s12542_s16   ;;  %s10150_s15 = sphi %s10388_s15, %s12541_s15  }
  0x4a   : > { %s769_s23 = sshll.u32 %s10194_s22, 4  ;;  %p8322_p0 = scmp.ge.s32.totalorder %s10162_s0, 1  ;;  %s770_s23 = int_to_ptr.vmem [resolvable:$true] %s769_s23 }
  0x4b   : > { %p12456_p1 = scmp.eq.s32.totalorder %s10409_s26, 0  ;;  %p756_p2 = scmp.lt.s32.totalorder %s10162_s0, 3 }
  0x4c   : > { %s10195_s1 = smov [#allocation8]   ;;  %s10196_s7 = smov [#allocation11]  }
  0x4d   : > { %p10414_p3 = pnand %p8322_p0, %p756_p2  ;;  %s794_s2 = sshll.u32 %s10195_s1, 4  ;;  %s795_s2 = int_to_ptr.vmem [resolvable:$true] %s794_s2 }
  0x4e   : > { %s818_s10 = sshll.u32 %s10196_s7, 4  ;;  %s10197_s22 = smov [#allocation14]   ;;  %s10427_s10 = int_to_ptr.vmem [resolvable:$true] %s818_s10 }
  0x4f   : > { %s12486_s28 = scalar_select %p10414_p3, 1, 0 }
  0x50   : > { %p9211_p5 = pneg %p10414_p3  ;;  %s10429_s4 = sshll.u32 %s10197_s22, 4  ;;  %s843_s4 = int_to_ptr.vmem [resolvable:$true] %s10429_s4 }
  0x51   : > { %s9633_s1 = scalar_lea.vmem %s770_s23, 128  ;;  %p9641_p11 = scmp.lt.s32.totalorder %s770_s23, %s770_s23 }
  0x52   : > { %p10423_p6 = pnand %p9211_p5, %p12456_p1  ;;  %p9634_p8 = scmp.ne.s32.totalorder %s770_s23, %s9633_s1 }
  0x53   : > { %p9642_p12 = scmp.lt.s32.totalorder %s9633_s1, %s9633_s1 }
  0x54   : > { %p10433_p7 = pneg %p10423_p6 }
  0x55   : > { %p9643_p13 = por %p9642_p12, %p9641_p11 }
  0x56   : > { %p9636_p9 = pnand %p9634_p8, %p10433_p7 }
  0x58   : > { %p9637_p10 = pneg %p9636_p9 }
  0x5a   : > { %p9644_p0 = pnand %p9643_p13, %p9637_p10 }
  0x5c   : > { %9647 = shalt.err (!%p9644_p0)
}
  0x5d   : > { %s12489_s13 = sld [smem:[#allocation42_spill]]  ;;  %s9659_s7 = scalar_lea.vmem %s795_s2, 16 }
  0x5e   : > { %p9660_p2 = scmp.ne.s32.totalorder %s795_s2, %s9659_s7  ;;  %s9666_s22 = scalar_lea.vmem %s795_s2, 32 }
  0x5f   : > { %p9667_p1 = scmp.lt.s32.totalorder %s795_s2, %s795_s2  ;;  %p9668_p3 = scmp.lt.s32.totalorder %s9666_s22, %s9659_s7 }
  0x60   : > { %p9662_p5 = pnand %p9660_p2, %p10433_p7 }
  0x61   : > { %p9669_p8 = por %p9668_p3, %p9667_p1 }
  0x62   : > { %p9663_p4 = pneg %p9662_p5 }
  0x63   : > { %9214 = dma.hbm_to_vmem [thread:$0]  (!%p10423_p6), %s12489_s13, 128, %s770_s23, [#allocation6]  }
  0x64   : > { %p9670_p9 = pnand %p9669_p8, %p9663_p4 }
  0x66   : > { %9673 = shalt.err (!%p9670_p9)
}
  0x67   : > { %9220 = dma.hbm_to_vmem [thread:$0]  (!%p10423_p6), %s10261_s25, 16, %s795_s2, [#allocation9]  }
  0x68   : > { %s9685_s23 = scalar_lea.vmem %s10427_s10, 16  ;;  %s9692_s1 = scalar_lea.vmem %s10427_s10, 32 }
  0x69   : > { %p9686_p10 = scmp.ne.s32.totalorder %s10427_s10, %s9685_s23  ;;  %p9693_p13 = scmp.lt.s32.totalorder %s10427_s10, %s10427_s10 }
  0x6a   : > { %p9694_p1 = scmp.lt.s32.totalorder %s9692_s1, %s9685_s23 }
  0x6b   : > { %p9688_p11 = pnand %p9686_p10, %p10433_p7 }
  0x6c   : > { %p9695_p3 = por %p9694_p1, %p9693_p13 }
  0x6d   : > { %p9689_p12 = pneg %p9688_p11 }
  0x6f   : > { %p9696_p4 = pnand %p9695_p3, %p9689_p12 }
  0x71   : > { %9699 = shalt.err (!%p9696_p4)
}
  0x72   : > { %s12490_s3 = sld [smem:[#allocation45_spill]]  ;;  %s9711_s2 = scalar_lea.vmem %s843_s4, 16 }
  0x73   : > { %p9712_p0 = scmp.ne.s32.totalorder %s843_s4, %s9711_s2  ;;  %s9718_s7 = scalar_lea.vmem %s843_s4, 32 }
  0x74   : > { %p9719_p8 = scmp.lt.s32.totalorder %s843_s4, %s843_s4  ;;  %p9720_p9 = scmp.lt.s32.totalorder %s9718_s7, %s9711_s2 }
  0x75   : > { %p9714_p2 = pnand %p9712_p0, %p10433_p7 }
  0x76   : > { %p9721_p10 = por %p9720_p9, %p9719_p8 }
  0x77   : > { %p9715_p5 = pneg %p9714_p2 }
  0x78   : > { %9226 = dma.hbm_to_vmem [thread:$0]  (!%p10423_p6), %s12490_s3, 16, %s10427_s10, [#allocation12]  }
  0x79   : > { %p9722_p11 = pnand %p9721_p10, %p9715_p5 }
  0x7b   : > { %9725 = shalt.err (!%p9722_p11)
}
  0x7c   : > { %s12491_s14 = sld [smem:[#allocation47_spill]]  ;;  %s10198_s22 = smov [#allocation17]  }
  0x7d   : > { %s866_s23 = sshll.u32 %s10198_s22, 4  ;;  %s10199_s10 = smov [#allocation20]   ;;  %s867_s23 = int_to_ptr.vmem [resolvable:$true] %s866_s23 }
  0x7e   : > { %s890_s1 = sshll.u32 %s10199_s10, 4  ;;  %s9737_s3 = scalar_lea.vmem %s867_s23, 256  ;;  %s891_s1 = int_to_ptr.vmem [resolvable:$true] %s890_s1 }
  0x7f   : > { %p9738_p12 = scmp.ne.s32.totalorder %s867_s23, %s9737_s3  ;;  %p9745_p3 = scmp.lt.s32.totalorder %s867_s23, %s867_s23 }
  0x80   : > { %p9746_p4 = scmp.lt.s32.totalorder %s9737_s3, %s9737_s3 }
  0x81   : > { %p9740_p13 = pnand %p9738_p12, %p10433_p7 }
  0x82   : > { %9232 = dma.hbm_to_vmem [thread:$0]  (!%p10423_p6), %s12491_s14, 16, %s843_s4, [#allocation15]  }
  0x83   : > { %p9741_p1 = pneg %p9740_p13  ;;  %p9747_p0 = por %p9746_p4, %p9745_p3 }
  0x85   : > { %p9748_p2 = pnand %p9747_p0, %p9741_p1 }
  0x87   : > { %9751 = shalt.err (!%p9748_p2)
}
  0x88   : > { %s12458_s2 = smov 64   ;;  %s10201_s4 = smov 4  }
  0x89   : > { %9238 = dma.hbm_to_vmem [thread:$0]  (!%p10423_p6), %s10296_s30, 256, %s867_s23, [#allocation18], %s12458_s2, %s12458_s2, %s10201_s4  }
  0x8a   : > { %s9763_s7 = scalar_lea.vmem %s891_s1, 256  ;;  %p9771_p10 = scmp.lt.s32.totalorder %s891_s1, %s891_s1 }
  0x8b   : > { %p9764_p5 = scmp.ne.s32.totalorder %s891_s1, %s9763_s7  ;;  %p9772_p11 = scmp.lt.s32.totalorder %s9763_s7, %s9763_s7 }
  0x8d   : > { %p9766_p8 = pnand %p9764_p5, %p10433_p7  ;;  %p9773_p12 = por %p9772_p11, %p9771_p10 }
  0x8f   : > { %p9767_p9 = pneg %p9766_p8 }
  0x91   : > { %p9774_p13 = pnand %p9773_p12, %p9767_p9 }
  0x93   : > { %9777 = shalt.err (!%p9774_p13)
}
  0x94   : > { %s12492_s12 = sld [smem:[#allocation50_spill]]  ;;  %s10202_s3 = smov [#allocation23]  }
  0x95   : > { %s914_s22 = sshll.u32 %s10202_s3, 4  ;;  %s10203_s23 = smov [#allocation26]   ;;  %s915_s22 = int_to_ptr.vmem [resolvable:$true] %s914_s22 }
  0x96   : > { %s938_s10 = sshll.u32 %s10203_s23, 4  ;;  %s9789_s13 = scalar_lea.vmem %s915_s22, 256  ;;  %s939_s10 = int_to_ptr.vmem [resolvable:$true] %s938_s10 }
  0x97   : > { %p9790_p1 = scmp.ne.s32.totalorder %s915_s22, %s9789_s13  ;;  %p9797_p0 = scmp.lt.s32.totalorder %s915_s22, %s915_s22 }
  0x98   : > { %p9798_p2 = scmp.lt.s32.totalorder %s9789_s13, %s9789_s13 }
  0x99   : > { %p9792_p3 = pnand %p9790_p1, %p10433_p7 }
  0x9a   : > { %9244 = dma.hbm_to_vmem [thread:$0]  (!%p10423_p6), %s12492_s12, 256, %s891_s1, [#allocation21], %s12458_s2, %s12458_s2, %s10201_s4  }
  0x9b   : > { %p9793_p4 = pneg %p9792_p3  ;;  %p9799_p5 = por %p9798_p2, %p9797_p0 }
  0x9d   : > { %p9800_p8 = pnand %p9799_p5, %p9793_p4 }
  0x9f   : > { %9803 = shalt.err (!%p9800_p8)
}
  0xa0   : > { %9250 = dma.hbm_to_vmem [thread:$0]  (!%p10423_p6), %s10316_s27, 256, %s915_s22, [#allocation24], %s12458_s2, %s12458_s2, %s10201_s4  }
  0xa1   : > { %s9815_s1 = scalar_lea.vmem %s939_s10, 256  ;;  %p9823_p12 = scmp.lt.s32.totalorder %s939_s10, %s939_s10 }
  0xa2   : > { %p9816_p9 = scmp.ne.s32.totalorder %s939_s10, %s9815_s1  ;;  %p9824_p13 = scmp.lt.s32.totalorder %s9815_s1, %s9815_s1 }
  0xa4   : > { %p9818_p10 = pnand %p9816_p9, %p10433_p7  ;;  %p9825_p1 = por %p9824_p13, %p9823_p12 }
  0xa6   : > { %p9819_p11 = pneg %p9818_p10 }
  0xa8   : > { %p9826_p3 = pnand %p9825_p1, %p9819_p11 }
  0xaa   : > { %9829 = shalt.err (!%p9826_p3)
}
  0xab   : > { %9256 = dma.hbm_to_vmem [thread:$0]  (!%p10423_p6), %s10326_s19, 256, %s939_s10, [#allocation27], %s12458_s2, %s12458_s2, %s10201_s4  }
  0xac   : > { %s10204_s13 = smov [#allocation7]   ;;  %s10205_s3 = smov [#allocation10]  }
  0xad   : > { %s780_s7 = sshll.u32 %s10204_s13, 4  ;;  %s804_s22 = sshll.u32 %s10205_s3, 4  ;;  %s781_s7 = int_to_ptr.vmem [resolvable:$true] %s780_s7  ;;  %s805_s22 = int_to_ptr.vmem [resolvable:$true] %s804_s22 }
  0xae   : > { %s9841_s23 = scalar_lea.vmem %s781_s7, 128  ;;  %p9849_p5 = scmp.lt.s32.totalorder %s781_s7, %s781_s7 }
  0xaf   : > { %p9842_p4 = scmp.ne.s32.totalorder %s781_s7, %s9841_s23  ;;  %p9850_p8 = scmp.lt.s32.totalorder %s9841_s23, %s9841_s23 }
  0xb1   : > { %p9844_p0 = pnand %p9842_p4, %p10433_p7  ;;  %p9851_p9 = por %p9850_p8, %p9849_p5 }
  0xb3   : > { %p9845_p2 = pneg %p9844_p0 }
  0xb5   : > { %p9852_p10 = pnand %p9851_p9, %p9845_p2 }
  0xb7   : > { %9855 = shalt.err (!%p9852_p10)
}
  0xb8   : > { %s12493_s17 = sld [smem:[#allocation43_spill]]  ;;  %s9867_s10 = scalar_lea.vmem %s805_s22, 256 }
  0xb9   : > { %p9868_p11 = scmp.ne.s32.totalorder %s805_s22, %s9867_s10  ;;  %p9875_p1 = scmp.lt.s32.totalorder %s805_s22, %s805_s22 }
  0xba   : > { %p9876_p3 = scmp.lt.s32.totalorder %s9867_s10, %s9867_s10 }
  0xbb   : > { %p9870_p12 = pnand %p9868_p11, %p10433_p7 }
  0xbc   : > { %p9877_p4 = por %p9876_p3, %p9875_p1 }
  0xbd   : > { %p9871_p13 = pneg %p9870_p12 }
  0xbe   : > { %9217 = dma.hbm_to_vmem [thread:$0]  (!%p10423_p6), %s12493_s17, 128, %s781_s7, [#allocation6]  }
  0xbf   : > { %p9878_p0 = pnand %p9877_p4, %p9871_p13 }
  0xc1   : > { %9881 = shalt.err (!%p9878_p0)
}
  0xc2   : > { %9223 = dma.hbm_to_vmem [thread:$0]  (!%p10423_p6), %s10266_s29, 256, %s805_s22, [#allocation9], %s12458_s2, %s12458_s2, %s10201_s4  }
  0xc3   : > { %s10206_s1 = smov [#allocation13]   ;;  %s10207_s7 = smov [#allocation16]  }
  0xc4   : > { %s828_s13 = sshll.u32 %s10206_s1, 4  ;;  %s856_s3 = sshll.u32 %s10207_s7, 4  ;;  %s829_s13 = int_to_ptr.vmem [resolvable:$true] %s828_s13  ;;  %s857_s3 = int_to_ptr.vmem [resolvable:$true] %s856_s3 }
  0xc5   : > { %s9893_s23 = scalar_lea.vmem %s829_s13, 256  ;;  %p9901_p9 = scmp.lt.s32.totalorder %s829_s13, %s829_s13 }
  0xc6   : > { %p9894_p2 = scmp.ne.s32.totalorder %s829_s13, %s9893_s23  ;;  %p9902_p10 = scmp.lt.s32.totalorder %s9893_s23, %s9893_s23 }
  0xc8   : > { %p9896_p5 = pnand %p9894_p2, %p10433_p7  ;;  %p9903_p11 = por %p9902_p10, %p9901_p9 }
  0xca   : > { %p9897_p8 = pneg %p9896_p5 }
  0xcc   : > { %p9904_p12 = pnand %p9903_p11, %p9897_p8 }
  0xce   : > { %9907 = shalt.err (!%p9904_p12)
}
  0xcf   : > { %s12494_s8 = sld [smem:[#allocation46_spill]]  ;;  %s9919_s22 = scalar_lea.vmem %s857_s3, 16 }
  0xd0   : > { %p9920_p13 = scmp.ne.s32.totalorder %s857_s3, %s9919_s22  ;;  %s9926_s10 = scalar_lea.vmem %s857_s3, 32 }
  0xd1   : > { %p9927_p4 = scmp.lt.s32.totalorder %s857_s3, %s857_s3  ;;  %p9928_p0 = scmp.lt.s32.totalorder %s9926_s10, %s9919_s22 }
  0xd2   : > { %p9922_p1 = pnand %p9920_p13, %p10433_p7 }
  0xd3   : > { %p9929_p2 = por %p9928_p0, %p9927_p4 }
  0xd4   : > { %p9923_p3 = pneg %p9922_p1 }
  0xd5   : > { %9229 = dma.hbm_to_vmem [thread:$0]  (!%p10423_p6), %s12494_s8, 256, %s829_s13, [#allocation12], %s12458_s2, %s12458_s2, %s10201_s4  }
  0xd6   : > { %p9930_p5 = pnand %p9929_p2, %p9923_p3 }
  0xd8   : > { %9933 = shalt.err (!%p9930_p5)
}
  0xd9   : > { %9235 = dma.hbm_to_vmem [thread:$0]  (!%p10423_p6), %s10291_s24, 16, %s857_s3, [#allocation15]  }
  0xda   : > { %s10208_s1 = smov [#allocation19]   ;;  %s10209_s23 = smov [#allocation22]  }
  0xdb   : > { %s880_s7 = sshll.u32 %s10208_s1, 4  ;;  %s904_s13 = sshll.u32 %s10209_s23, 4  ;;  %s881_s7 = int_to_ptr.vmem [resolvable:$true] %s880_s7  ;;  %s905_s13 = int_to_ptr.vmem [resolvable:$true] %s904_s13 }
  0xdc   : > { %s9945_s2 = scalar_lea.vmem %s881_s7, 16  ;;  %s9952_s22 = scalar_lea.vmem %s881_s7, 32 }
  0xdd   : > { %p9946_p8 = scmp.ne.s32.totalorder %s881_s7, %s9945_s2  ;;  %p9953_p11 = scmp.lt.s32.totalorder %s881_s7, %s881_s7 }
  0xde   : > { %p9954_p12 = scmp.lt.s32.totalorder %s9952_s22, %s9945_s2 }
  0xdf   : > { %p9948_p9 = pnand %p9946_p8, %p10433_p7 }
  0xe0   : > { %p9955_p13 = por %p9954_p12, %p9953_p11 }
  0xe1   : > { %p9949_p10 = pneg %p9948_p9 }
  0xe3   : > { %p9956_p1 = pnand %p9955_p13, %p9949_p10 }
  0xe5   : > { %9959 = shalt.err (!%p9956_p1)
}
  0xe6   : > { %s12495_s6 = sld [smem:[#allocation49_spill]]  ;;  %s9971_s3 = scalar_lea.vmem %s905_s13, 16 }
  0xe7   : > { %p9972_p3 = scmp.ne.s32.totalorder %s905_s13, %s9971_s3  ;;  %s9978_s10 = scalar_lea.vmem %s905_s13, 32 }
  0xe8   : > { %p9979_p2 = scmp.lt.s32.totalorder %s905_s13, %s905_s13  ;;  %p9980_p5 = scmp.lt.s32.totalorder %s9978_s10, %s9971_s3 }
  0xe9   : > { %p9974_p4 = pnand %p9972_p3, %p10433_p7 }
  0xea   : > { %p9981_p8 = por %p9980_p5, %p9979_p2 }
  0xeb   : > { %p9975_p0 = pneg %p9974_p4 }
  0xec   : > { %9241 = dma.hbm_to_vmem [thread:$0]  (!%p10423_p6), %s12495_s6, 16, %s881_s7, [#allocation18]  }
  0xed   : > { %p9982_p9 = pnand %p9981_p8, %p9975_p0 }
  0xef   : > { %9985 = shalt.err (!%p9982_p9)
}
  0xf0   : > { %9247 = dma.hbm_to_vmem [thread:$0]  (!%p10423_p6), %s10311_s20, 16, %s905_s13, [#allocation21]  }
  0xf1   : > { %s10210_s2 = smov [#allocation25]   ;;  %s10211_s23 = smov [#allocation28]  }
  0xf2   : > { %s928_s1 = sshll.u32 %s10210_s2, 4  ;;  %s954_s7 = sshll.u32 %s10211_s23, 4  ;;  %s929_s1 = int_to_ptr.vmem [resolvable:$true] %s928_s1  ;;  %s955_s7 = int_to_ptr.vmem [resolvable:$true] %s954_s7 }
  0xf3   : > { %s9997_s22 = scalar_lea.vmem %s929_s1, 16  ;;  %s10004_s3 = scalar_lea.vmem %s929_s1, 32 }
  0xf4   : > { %p9998_p10 = scmp.ne.s32.totalorder %s929_s1, %s9997_s22  ;;  %p10005_p13 = scmp.lt.s32.totalorder %s929_s1, %s929_s1 }
  0xf5   : > { %p10006_p1 = scmp.lt.s32.totalorder %s10004_s3, %s9997_s22 }
  0xf6   : > { %p10000_p11 = pnand %p9998_p10, %p10433_p7 }
  0xf7   : > { %p10007_p3 = por %p10006_p1, %p10005_p13 }
  0xf8   : > { %p10001_p12 = pneg %p10000_p11 }
  0xfa   : > { %p10008_p4 = pnand %p10007_p3, %p10001_p12 }
  0xfc   : > { %10011 = shalt.err (!%p10008_p4)
}
  0xfd   : > { %s12496_s13 = sld [smem:[#allocation51_spill]]  ;;  %s10023_s10 = scalar_lea.vmem %s955_s7, 256 }
  0xfe   : > { %p10024_p0 = scmp.ne.s32.totalorder %s955_s7, %s10023_s10  ;;  %p10031_p8 = scmp.lt.s32.totalorder %s955_s7, %s955_s7 }
  0xff   : > { %p10032_p9 = scmp.lt.s32.totalorder %s10023_s10, %s10023_s10 }
 0x100   : > { %p10026_p2 = pnand %p10024_p0, %p10433_p7 }
 0x101   : > { %p10033_p10 = por %p10032_p9, %p10031_p8 }
 0x102   : > { %p10027_p5 = pneg %p10026_p2 }
 0x103   : > { %9253 = dma.hbm_to_vmem [thread:$0]  (!%p10423_p6), %s12496_s13, 16, %s929_s1, [#allocation24]  }
 0x104   : > { %p10034_p11 = pnand %p10033_p10, %p10027_p5 }
 0x106   : > { %10037 = shalt.err (!%p10034_p11)
}
 0x107   : > { %s12497_s2 = smov 64   ;;  %s12498_s23 = sld [smem:[#allocation53_spill]] }
 0x108   : > { %s8321_s9 = sadd.s32 4294967294, %s10162_s0   ;;  %s10547_s11 = sadd.s32 1, %s10162_s0  }
 0x109   : > { %s115_s1 = ssub.s32 %s10162_s0, %s10547_s11  ;;  %s118_s22 = sadd.s32 1, %s10158_s18 }
 0x10a   : > { %s12499_s3 = sld [smem:[#allocation41_spill]]  ;;  %p116_p7 = scmp.eq.s32.totalorder %s115_s1, 0 }
 0x10b   : > { %p125_p12 = scmp.ne.s32.totalorder %s10158_s18, %s10154_s16  ;;  %p126_p13 = scmp.eq.s32.totalorder %s10162_s0, 0 }
 0x10c   : > { %p131_p1 = scmp.ne.s32.totalorder %s10154_s16, %s10150_s15  ;;  %p12501_p4 = scmp.eq.s32.totalorder %s10409_s26, 0 }
 0x10d   : > { %9259 = dma.hbm_to_vmem [thread:$0]  (!%p10423_p6), %s12498_s23, 256, %s955_s7, [#allocation27], %s12497_s2, %s12497_s2, %s10201_s4  }
 0x10e   : > { %s10558_s13 = scalar_select %p116_p7, %s10158_s18, %s118_s22  }
 0x10f   : > { %p10560_p3 = por %p126_p13, %p125_p12  ;;  %p10566_p6 = por %p12501_p4, %p131_p1 }
 0x110   : > { %p743_p0 = scmp.eq.s32.totalorder %s10409_s26, 1  ;;  %p749_p2 = scmp.eq.s32.totalorder %s8321_s9, 1 }
 0x111   : > { %s12502_s4 = scalar_select %p10566_p6, 1, 0 }
 0x112   : > { %p9284_p5 = scmp.lt.s32.totalorder %s10162_s0, 2  ;;  %s1004_s7 = sand.u32 1, %s10158_s18  }
 0x113   : > { %p10573_p8 = por %p743_p0, %p125_p12  ;;  %p10577_p9 = por %p749_p2, %p131_p1 }
 0x114   : > { %s8340_s1 = sshll.u32 %s1004_s7, 4  ;;  %s8513_s22 = sshll.u32 %s10162_s0, 8 }
 0x115   : > { %s12503_s2 = scalar_select %p10573_p8, 1, 0 }
 0x116   : > { %s12504_s23 = scalar_select %p10577_p9, 1, 0 }
 0x117   : > { %s10583_s6 = scalar_lea.hbm %s12499_s3, %s8513_s22  ;;  %s1008_s9 = scalar_lea.vmem [#allocation2], %s8340_s1 }
 0x118   : > { %s1015_s8 = sshll.u32 %s1008_s9, 4  ;;  %p10589_p10 = pnand %p9284_p5, %p10560_p3  ;;  %s10585_s8 = int_to_ptr.vmem [resolvable:$true] %s1015_s8 }
 0x119   : > { %s10593_s14 = scalar_lea.sflag [#allocation3], %s1004_s7  ;;  %s10038_s17 = scalar_lea.hbm %s10583_s6, 256 }
 0x11a   : > { %p10039_p11 = scmp.ne.s32.totalorder %s10583_s6, %s10038_s17  ;;  %p10040_p7 = pneg %p10589_p10 }
 0x11b   : > { %s10043_s22 = scalar_lea.hbm %s12499_s3, 512  ;;  %p10044_p1 = scmp.lt.s32.totalorder %s10583_s6, %s12499_s3 }
 0x11c   : > { %p10041_p12 = pnand %p10040_p7, %p10039_p11  ;;  %p10045_p4 = scmp.lt.s32.totalorder %s10043_s22, %s10038_s17 }
 0x11e   : > { %p10042_p13 = pneg %p10041_p12  ;;  %p10046_p0 = por %p10045_p4, %p10044_p1 }
 0x120   : > { %p10047_p2 = pnand %p10046_p0, %p10042_p13 }
 0x122   : > { %10050 = shalt.err (!%p10047_p2)
}
 0x123   : > { %s10051_s10 = scalar_lea.vmem %s10585_s8, 256  ;;  %s10212_s7 = smov [#allocation2]  }
 0x124   : > { %p10052_p3 = scmp.ne.s32.totalorder %s10585_s8, %s10051_s10  ;;  %s10056_s1 = sshll.u32 %s10212_s7, 4  ;;  %s10057_s1 = int_to_ptr.vmem [resolvable:$false] %s10056_s1 }
 0x125   : > { %s10058_s9 = scalar_lea.vmem %s10057_s1, 512  ;;  %p10059_p8 = scmp.lt.s32.totalorder %s10585_s8, %s10057_s1 }
 0x126   : > { %p10054_p5 = pnand %p10052_p3, %p10040_p7  ;;  %p10060_p11 = scmp.lt.s32.totalorder %s10058_s9, %s10051_s10 }
 0x128   : > { %p10055_p9 = pneg %p10054_p5  ;;  %p10061_p12 = por %p10060_p11, %p10059_p8 }
 0x12a   : > { %p10062_p6 = pnand %p10061_p12, %p10055_p9 }
 0x12c   : > { %10065 = shalt.err (!%p10062_p6)
}
 0x12d   : > { %s10213_s17 = smov 128   ;;  %s10214_s22 = smov 8  }
 0x12e   : > { %9263 = dma.hbm_to_vmem [thread:$0]  (!%p10589_p10), %s10583_s6, 256, %s10585_s8, %s10593_s14, %s10213_s17, %s10213_s17, %s10214_s22  }
 0x12f   : > { %p12506_p7 = scmp.ne.s32.totalorder %s12486_s28, 0 }
 0x130   : > { %s10613_s7 = sand.u32 (!%p12506_p7), 1, %s10154_s16   ;;  %p12507_p6 = scmp.ne.s32.totalorder (!%p12506_p7), %s12502_s4, 0 }
 0x131   : > { %1027 = sbr.rel (%p12506_p7) target bundleno = 5114 (0x13fa), region = 140  ;;  %s12461_s10 = sshll.u32 (!%p12506_p7), %s10613_s7, 4 }
 0x132   : > { %s1030_s1 = scalar_lea.sflag (!%p12506_p7), [#allocation3], %s10613_s7  ;;  %s10619_s9 = scalar_lea.vmem (!%p12506_p7), [#allocation2], %s12461_s10 }
 0x136   : > { %10109 = dma.done.wait (%p12507_p6), %s1030_s1, 256  }
 0x137   : > { %10111 = vsyncadd (%p12507_p6), %s1030_s1, 4294967040  ;;  %p12508_p8 = scmp.eq.s32.totalorder %s10409_s26, 0 }
 0x139   : > { %10113 = dma.done.wait (%p12508_p8), [#allocation6], 256   ;;  %p12509_p9 = pmov %p12508_p8 }
 0x13a   : > { %p12510_p10 = pmov %p12508_p8 }
 0x13b   : > { %10115 = vsyncadd (%p12509_p9), [#allocation6], 4294967040 }
 0x13c   : > { %10117 = dma.done.wait (%p12510_p10), [#allocation9], 272   ;;  %p12511_p13 = pmov %p12508_p8 }
 0x13d   : > { %p12512_p1 = pmov %p12508_p8 }
 0x13e   : > { %10119 = vsyncadd (%p12511_p13), [#allocation9], 4294967024 }
 0x13f   : > { %10121 = dma.done.wait (%p12512_p1), [#allocation12], 272   ;;  %p12513_p4 = pmov %p12512_p1 }
 0x140   : > { %p12514_p0 = pmov %p12512_p1 }
 0x141   : > { %10123 = vsyncadd (%p12513_p4), [#allocation12], 4294967024 }
 0x142   : > { %10125 = dma.done.wait (%p12514_p0), [#allocation15], 32   ;;  %p12515_p2 = pmov %p12514_p0 }
 0x143   : > { %p12516_p3 = pmov %p12514_p0 }
 0x144   : > { %10127 = vsyncadd (%p12515_p2), [#allocation15], 4294967264 }
 0x145   : > { %10129 = dma.done.wait (%p12516_p3), [#allocation18], 272   ;;  %p12517_p5 = pmov %p12514_p0 }
 0x146   : > { %p12518_p11 = pmov %p12514_p0 }
 0x147   : > { %10131 = vsyncadd (%p12517_p5), [#allocation18], 4294967024 }
 0x148   : > { %10133 = dma.done.wait (%p12518_p11), [#allocation21], 272   ;;  %p12519_p12 = pmov %p12514_p0 }
 0x149   : > { %p12520_p7 = pmov %p12514_p0 }
 0x14a   : > { %10135 = vsyncadd (%p12519_p12), [#allocation21], 4294967024 }
 0x14b   : > { %10137 = dma.done.wait (%p12520_p7), [#allocation24], 272   ;;  %p12521_p6 = pmov %p12514_p0 }
 0x14c   : > { %p12522_p8 = pmov %p12514_p0 }
 0x14d   : > { %10139 = vsyncadd (%p12521_p6), [#allocation24], 4294967024 }
 0x14e   : > { %10141 = dma.done.wait (%p12522_p8), [#allocation27], 512   ;;  %p12523_p9 = pmov %p12514_p0 }
 0x14f   : > { %s12524_s8 = sld [smem:[#allocation44_spill]]  ;;  %s8362_s6 = sshll.u32 %s10409_s26, 1  ;;  %v10215_v0 = vmov 0.0   ;;  %vm10216_vm0 = vmmov 0   ;;  %v9426_v1 = vld [vmem:[#allocation10 + $0x8] sm:$0xff]   ;;  %v9428_v3 = vld [vmem:[#allocation10] sm:$0xff]   ;;  %v1416_v33 = vlaneseq }
 0x150   : > { %10143 = vsyncadd (%p12523_p9), [#allocation27], 4294966784  ;;  %s12525_s14 = sld [smem:[#allocation40_spill]]  ;;  %8683 = vmatprep.subr.bf16.mxu1 %v10215_v0  ;;  %8675 = vmatprep.subr.bf16.mxu0 %v10215_v0  ;;  %p1180_p10 = scmp.lt.s32.totalorder %s8362_s6, 3  ;;  %vm1218_vm1 = vcmask 261120   ;;  %v9430_v8 = vld [vmem:[#allocation13 + $0x8] sm:$0xff]  }
 0x151   : > { %8687 = vmatprep.mubr.msk.bf16.mxu1 %vm10216_vm0, %v10215_v0  ;;  %8679 = vmatprep.mubr.msk.bf16.mxu0 %vm10216_vm0, %v10215_v0  ;;  %v9431_v9 = vld [vmem:[#allocation13] sm:$0xff]   ;;  %v8368_v10 = vld [vmem:[#allocation11] ss:$0 sm:$0xff]  ;;  %s10217_s4 = smov 112   ;;  %s10218_s17 = smov 120   ;;  %v1417_v37 = vshrl.u32 %v1416_v33, 7 }
 0x152   : > { %s12546_s6 = smov (!%p1180_p10, %s8362_s6), 3  ;;  %8684 = vmatpush3.bf16.msra.mxu1 %v9426_v1  ;;  %v8364_v16 = vld [vmem:[#allocation8] ss:$0 sm:$0xff]  ;;  %s10219_s22 = smov 104   ;;  %v8372_v24 = vld [vmem:[#allocation14] ss:$0 sm:$0xff] }
 0x153   : > { %s8363_s12 = sshll.u32 %s12546_s6, 3  ;;  %8685 = vmatprep.subr.bf16.mxu1 %v10215_v0  ;;  %v10220_v31 = vmov 1983009808   ;;  %v10221_v34 = vmov 1934713408   ;;  %vm2291_vm2 = vcmask 64512  }
 0x154   : > { %v1414_v32 = vunpack.c.l.s4 %v10220_v31  ;;  %v1446_v35 = vunpack.c.l.s4 %v10221_v34  ;;  %vm2676_vm3 = vcmask 31744   ;;  %s10222_s1 = smov 124   ;;  %vm2800_vm4 = vcmask 1041408   ;;  %s10223_s6 = smov 16  }
 0x155   : > { %v9427_v2 = vld [vmem:[%s12524_s8 + $0x8] sm:$0xff]   ;;  %v9429_v4 = vld [vmem:[%s12524_s8] sm:$0xff]   ;;  %s10225_s10 = smov 24   ;;  %vm4396_vm5 = vcmask 130048   ;;  %vm4399_vm6 = vcmask 195584   ;;  %vm7947_vm7 = vcmask 523264  }
 0x156   : > { %s10666_s28 = scalar_lea.vmem %s12525_s14, %s8363_s12  ;;  %8676 = vmatpush3.bf16.msra.mxu0 %v9427_v2  ;;  %8686 = vmatpush3.bf16.msra.mxu1 %v9428_v3  ;;  %v1415_v36 = vunpack.c.0.s8 %v1414_v32  ;;  %v1447_v40 = vunpack.c.0.s8 %v1446_v35  ;;  %s12526_s14 = sld [smem:[#allocation48_spill]] }
 0x157   : > { %8677 = vmatprep.subr.bf16.mxu0 %v10215_v0  ;;  %v1188_v5 = vld [vmem:[%s10666_s28] sm:$0xff]  ;;  %v1189_v6 = vld [vmem:[%s10666_s28 + $0x8] sm:$0xff]  ;;  %8699 = vmatprep.subr.bf16.mxu1 %v10215_v0  ;;  %s12462_s12 = smov 8   ;;  %p12537_p1 = scmp.ne.s32.totalorder %s12503_s2, 0 }
 0x158   : > { %v1194_v7 = vpack.c.bf16 %v1189_v6, %v1188_v5  ;;  %v10725_v41 = vsub.s32 %v1415_v36, %v1417_v37  ;;  %v10727_v48 = vsub.s32 %v1447_v40, %v1417_v37 }
 0x15a   : > { %8678 = vmatpush3.bf16.msra.mxu0 %v9429_v4  ;;  %8688 = vmatmul.mubr.msk.bf16.vlgmr.msra.gmra.mxu1 %vm1218_vm1, %v1194_v7 }
 0x15b   : > { %8691 = vmatprep.subr.bf16.mxu0 %v10215_v0  ;;  %8701 = vmatprep.mubr.msk.bf16.mxu1 %vm10216_vm0, %v10215_v0 }
 0x15d   : > { %8680 = vmatmul.mubr.msk.bf16.vlgmr.msra.gmra.mxu0 %vm1218_vm1, %v1194_v7 }
 0x15e   : > { %8692 = vmatpush3.bf16.msra.mxu0 %v9430_v8  ;;  %8695 = vmatprep.mubr.msk.bf16.mxu0 %vm10216_vm0, %v10215_v0 }
 0x15f   : > { %8693 = vmatprep.subr.bf16.mxu0 %v10215_v0 }
 0x162   : > { %8694 = vmatpush3.bf16.msra.mxu0 %v9431_v9 }
 0x163   : > { %8705 = vmatprep.subr.bf16.mxu0 %v10215_v0 }
 0x165   : > { %8696 = vmatmul.mubr.msk.bf16.vlgmr.msra.gmra.mxu0 %vm1218_vm1, %v1194_v7 }
 0x166   : > { %8707 = vmatprep.mubr.msk.bf16.mxu0 %vm10216_vm0, %v10215_v0 }
 0x21a   : > { %v1320_v11 = vpop.f32.mrf.mxu1 }
 0x21b   : > { %v1321_v12 = vadd.f32 %v8368_v10, %v1320_v11 }
 0x21c   : > { %v8689_v14 = vpop.f32.mrf.mxu1 }
 0x21d   : > { %v1256_v13 = vpop.f32.mrf.mxu0  ;;  %1699 = vrot.lane.b32.xlu1 %v1321_v12, %s10217_s4  ;;  %1693 = vrot.lane.b32.xlu0 %v1321_v12, %s10218_s17 }
 0x21e   : > { %v1323_v17 = vpop.f32.mrf.mxu1  ;;  %v10690_v21 = vadd.f32 %v8364_v16, %v1256_v13 }
 0x21f   : > { %v8681_v15 = vpop.f32.mrf.mxu0  ;;  %v10688_v18 = vadd.f32 %v8368_v10, %v1323_v17 }
 0x220   : > { %v8690_v20 = vpop.f32.mrf.mxu1 }
 0x221   : > { %v1259_v19 = vpop.f32.mrf.mxu0  ;;  %1705 = vrot.lane.b32.xlu0 %v1321_v12, %s10219_s22  ;;  %1701 = vrot.lane.b32.xlu1 %v10688_v18, %s10217_s4 }
 0x222   : > { %v10699_v23 = vadd.f32 %v8364_v16, %v1259_v19 }
 0x223   : > { %v8682_v22 = vpop.f32.mrf.mxu0 }
 0x225   : > { %1707 = vrot.lane.b32.xlu1 %v10688_v18, %s10219_s22  ;;  %1393 = vrot.lane.b32.xlu0 %v10690_v21, %s10218_s17  ;;  %v1384_v25 = vpop.f32.mrf.mxu0 }
 0x226   : > { %v10713_v26 = vadd.f32 %v8372_v24, %v1384_v25 }
 0x227   : > { %v8697_v27 = vpop.f32.mrf.mxu0 }
 0x229   : > { %1695 = vrot.lane.b32.xlu0 %v10688_v18, %s10218_s17  ;;  %1395 = vrot.lane.b32.xlu1 %v10699_v23, %s10218_s17  ;;  %v1387_v28 = vpop.f32.mrf.mxu0 }
 0x22a   : > { %v10717_v29 = vadd.f32 %v8372_v24, %v1387_v28 }
 0x22b   : > { %v8698_v30 = vpop.f32.mrf.mxu0 }
 0x22d   : > { %1399 = vrot.lane.b32.xlu0 %v10690_v21, %s10217_s4  ;;  %1401 = vrot.lane.b32.xlu1 %v10699_v23, %s10217_s4 }
 0x231   : > { %1405 = vrot.lane.b32.xlu0 %v10690_v21, %s10219_s22  ;;  %1407 = vrot.lane.b32.xlu1 %v10699_v23, %s10219_s22 }
 0x235   : > { %1993 = vrot.lane.b32.xlu0 %v10713_v26, %s10218_s17  ;;  %1995 = vrot.lane.b32.xlu1 %v10717_v29, %s10218_s17 }
 0x239   : > { %1999 = vrot.lane.b32.xlu0 %v10713_v26, %s10217_s4  ;;  %2001 = vrot.lane.b32.xlu1 %v10717_v29, %s10217_s4 }
 0x28f   : > { %v1700_v38 = vpop.permute.xlu1 %1699  ;;  %v1694_v39 = vpop.permute.xlu0 %1693 }
 0x290   : > { %v1711_v42 = vcombine.low %v1321_v12, %v1700_v38  ;;  %v1712_v43 = vcombine.high %v1321_v12, %v1700_v38 }
 0x292   : > { %v1719_v49 = vrot.slane %v1711_v42, %v10725_v41  ;;  %v1726_v50 = vrot.slane %v1712_v43, %v10725_v41 }
 0x293   : > { %v1706_v44 = vpop.permute.xlu0 %1705  ;;  %v1702_v45 = vpop.permute.xlu1 %1701 }
 0x294   : > { %v1727_v46 = vcombine.low %v1694_v39, %v1706_v44  ;;  %v1728_v47 = vcombine.high %v1694_v39, %v1706_v44  ;;  %v1779_v59 = vcombine.low %v10688_v18, %v1702_v45  ;;  %v1780_v60 = vcombine.high %v10688_v18, %v1702_v45 }
 0x296   : > { %v1735_v51 = vrot.slane %v1727_v46, %v10725_v41  ;;  %v1742_v52 = vrot.slane %v1728_v47, %v10725_v41  ;;  %v1787_v10 = vrot.slane %v1779_v59, %v10725_v41  ;;  %v1794_v11 = vrot.slane %v1780_v60, %v10725_v41 }
 0x297   : > { %v1708_v53 = vpop.permute.xlu1 %1707  ;;  %v1394_v54 = vpop.permute.xlu0 %1393 }
 0x298   : > { %v1743_v55 = vcombine.low %v1719_v49, %v1735_v51  ;;  %v1744_v56 = vcombine.high %v1719_v49, %v1735_v51  ;;  %v1759_v57 = vcombine.low %v1726_v50, %v1742_v52  ;;  %v1760_v58 = vcombine.high %v1726_v50, %v1742_v52 }
 0x29a   : > { %v1751_v61 = vrot.slane %v1743_v55, %v10727_v48  ;;  %v1758_v62 = vrot.slane %v1744_v56, %v10727_v48  ;;  %v1767_v63 = vrot.slane %v1759_v57, %v10727_v48  ;;  %v1774_v1 = vrot.slane %v1760_v58, %v10727_v48 }
 0x29b   : > { %v1696_v2 = vpop.permute.xlu0 %1695  ;;  %v1396_v3 = vpop.permute.xlu1 %1395 }
 0x29c   : > { %v1847_v4 = vcombine.low %v1751_v61, %v1758_v62  ;;  %v8380_v5 = vcombine.high %v1751_v61, %v1758_v62  ;;  %v1863_v6 = vcombine.low %v1767_v63, %v1774_v1  ;;  %v8381_v7 = vcombine.high %v1767_v63, %v1774_v1 }
 0x29d   : > { %v1795_v8 = vcombine.low %v1696_v2, %v1708_v53  ;;  %v1796_v9 = vcombine.high %v1696_v2, %v1708_v53 }
 0x29e   : > { %v10742_v12 = vrot.slane %v1847_v4, %v10725_v41  ;;  %v10745_v13 = vrot.slane %v8380_v5, %v10725_v41  ;;  %v10750_v18 = vrot.slane %v1863_v6, %v10725_v41  ;;  %v10753_v19 = vrot.slane %v8381_v7, %v10725_v41 }
 0x29f   : > { %v1803_v14 = vrot.slane %v1795_v8, %v10725_v41  ;;  %v1810_v15 = vrot.slane %v1796_v9, %v10725_v41  ;;  %v1400_v16 = vpop.permute.xlu0 %1399  ;;  %v1402_v17 = vpop.permute.xlu1 %1401 }
 0x2a0   : > { %v1411_v20 = vcombine.low %v10690_v21, %v1400_v16  ;;  %v1412_v22 = vcombine.high %v10690_v21, %v1400_v16  ;;  %v1479_v24 = vcombine.low %v10699_v23, %v1402_v17  ;;  %v1480_v25 = vcombine.high %v10699_v23, %v1402_v17 }
 0x2a1   : > { %v1811_v27 = vcombine.low %v1787_v10, %v1803_v14  ;;  %v1812_v28 = vcombine.high %v1787_v10, %v1803_v14  ;;  %v1827_v30 = vcombine.low %v1794_v11, %v1810_v15  ;;  %v1828_v31 = vcombine.high %v1794_v11, %v1810_v15 }
 0x2a2   : > { %v1419_v32 = vrot.slane %v1411_v20, %v10725_v41  ;;  %v1426_v33 = vrot.slane %v1412_v22, %v10725_v41  ;;  %v1487_v34 = vrot.slane %v1479_v24, %v10725_v41  ;;  %v1494_v35 = vrot.slane %v1480_v25, %v10725_v41 }
 0x2a3   : > { %v1819_v36 = vrot.slane %v1811_v27, %v10727_v48  ;;  %v1826_v21 = vrot.slane %v1812_v28, %v10727_v48  ;;  %v1835_v37 = vrot.slane %v1827_v30, %v10727_v48  ;;  %v1842_v23 = vrot.slane %v1828_v31, %v10727_v48  ;;  %v1406_v38 = vpop.permute.xlu0 %1405  ;;  %v1408_v39 = vpop.permute.xlu1 %1407 }
 0x2a4   : > { %v1427_v40 = vcombine.low %v1394_v54, %v1406_v38  ;;  %v1428_v42 = vcombine.high %v1394_v54, %v1406_v38  ;;  %v1495_v43 = vcombine.low %v1396_v3, %v1408_v39  ;;  %v1496_v44 = vcombine.high %v1396_v3, %v1408_v39 }
 0x2a5   : > { %v1915_v45 = vcombine.low %v1819_v36, %v1826_v21  ;;  %v8382_v46 = vcombine.high %v1819_v36, %v1826_v21  ;;  %v1931_v47 = vcombine.low %v1835_v37, %v1842_v23  ;;  %v8383_v49 = vcombine.high %v1835_v37, %v1842_v23 }
 0x2a6   : > { %v1435_v50 = vrot.slane %v1427_v40, %v10725_v41  ;;  %v1442_v51 = vrot.slane %v1428_v42, %v10725_v41  ;;  %v1503_v52 = vrot.slane %v1495_v43, %v10725_v41  ;;  %v1510_v53 = vrot.slane %v1496_v44, %v10725_v41 }
 0x2a7   : > { %v1879_v55 = vcombine.low %v10742_v12, %v10745_v13  ;;  %v1895_v54 = vcombine.low %v10750_v18, %v10753_v19  ;;  %v10776_v56 = vrot.slane %v1915_v45, %v10725_v41  ;;  %v10779_v57 = vrot.slane %v8382_v46, %v10725_v41 }
 0x2a8   : > { %v1443_v58 = vcombine.low %v1419_v32, %v1435_v50  ;;  %v1444_v59 = vcombine.high %v1419_v32, %v1435_v50  ;;  %v1459_v60 = vcombine.low %v1426_v33, %v1442_v51  ;;  %v1460_v61 = vcombine.high %v1426_v33, %v1442_v51 }
 0x2a9   : > { %v1511_v62 = vcombine.low %v1487_v34, %v1503_v52  ;;  %v1512_v63 = vcombine.high %v1487_v34, %v1503_v52  ;;  %v1527_v1 = vcombine.low %v1494_v35, %v1510_v53  ;;  %v1528_v2 = vcombine.high %v1494_v35, %v1510_v53 }
 0x2aa   : > { %v1451_v3 = vrot.slane %v1443_v58, %v10727_v48  ;;  %v1458_v4 = vrot.slane %v1444_v59, %v10727_v48  ;;  %v1467_v5 = vrot.slane %v1459_v60, %v10727_v48  ;;  %v1474_v6 = vrot.slane %v1460_v61, %v10727_v48 }
 0x2ab   : > { %v1519_v7 = vrot.slane %v1511_v62, %v10727_v48  ;;  %v1526_v8 = vrot.slane %v1512_v63, %v10727_v48  ;;  %v1535_v9 = vrot.slane %v1527_v1, %v10727_v48  ;;  %v1542_v10 = vrot.slane %v1528_v2, %v10727_v48 }
 0x2ac   : > { %v1547_v11 = vcombine.low %v1451_v3, %v1458_v4  ;;  %v8376_v14 = vcombine.high %v1451_v3, %v1458_v4  ;;  %v1563_v15 = vcombine.low %v1467_v5, %v1474_v6  ;;  %v8377_v16 = vcombine.high %v1467_v5, %v1474_v6 }
 0x2ad   : > { %v1615_v17 = vcombine.low %v1519_v7, %v1526_v8  ;;  %v8378_v20 = vcombine.high %v1519_v7, %v1526_v8  ;;  %v1631_v22 = vcombine.low %v1535_v9, %v1542_v10  ;;  %v8379_v24 = vcombine.high %v1535_v9, %v1542_v10 }
 0x2ae   : > { %v10790_v25 = vrot.slane %v1547_v11, %v10725_v41  ;;  %v10793_v27 = vrot.slane %v8376_v14, %v10725_v41  ;;  %v10796_v28 = vrot.slane %v1563_v15, %v10725_v41  ;;  %v10799_v30 = vrot.slane %v8377_v16, %v10725_v41 }
 0x2af   : > { %v10802_v31 = vrot.slane %v1615_v17, %v10725_v41  ;;  %v10805_v32 = vrot.slane %v8378_v20, %v10725_v41  ;;  %v10808_v33 = vrot.slane %v1631_v22, %v10725_v41  ;;  %v10811_v34 = vrot.slane %v8379_v24, %v10725_v41 }
 0x2b0   : > { %v1579_v35 = vcombine.low %v10790_v25, %v10793_v27  ;;  %v1595_v36 = vcombine.low %v10796_v28, %v10799_v30  ;;  %v1887_v23 = vrot.slane %v1879_v55, %v10727_v48  ;;  %v1903_v38 = vrot.slane %v1895_v54, %v10727_v48 }
 0x2b1   : > { %v1647_v21 = vcombine.low %v10802_v31, %v10805_v32  ;;  %v1663_v37 = vcombine.low %v10808_v33, %v10811_v34  ;;  %v1938_v39 = vrot.slane %v1931_v47, %v10725_v41  ;;  %v1946_v40 = vrot.slane %v8383_v49, %v10725_v41 }
 0x2b2   : > { %v1947_v42 = vcombine.low %v10776_v56, %v10779_v57  ;;  %v1587_v43 = vrot.slane %v1579_v35, %v10727_v48  ;;  %v1603_v44 = vrot.slane %v1595_v36, %v10727_v48  ;;  %v1911_v45 = vcombine.low %v1887_v23, %v1903_v38 }
 0x2b3   : > { %v1963_v46 = vcombine.low %v1938_v39, %v1946_v40  ;;  %v1655_v47 = vrot.slane %v1647_v21, %v10727_v48  ;;  %v1671_v49 = vrot.slane %v1663_v37, %v10727_v48  ;;  %v1912_v55 = vcombine.high %v1887_v23, %v1903_v38 }
 0x2b4   : > { %v1955_v50 = vrot.slane %v1947_v42, %v10727_v48  ;;  %v10830_v51 = vpack.c.bf16 %v1911_v45, %v1911_v45  ;;  %v1611_v53 = vcombine.low %v1587_v43, %v1603_v44  ;;  %v1880_v54 = vcombine.high %v10742_v12, %v10745_v13 }
 0x2b5   : > { %v1971_v52 = vrot.slane %v1963_v46, %v10727_v48  ;;  %v1896_v60 = vcombine.high %v10750_v18, %v10753_v19  ;;  %v1679_v62 = vcombine.low %v1655_v47, %v1671_v49  ;;  %v10846_v1 = vpack.c.bf16 %v1912_v55, %v1912_v55 }
 0x2b6   : > { %v2296_v58 = vsel %vm2291_vm2, %v10830_v51, 0  ;;  %v10844_v63 = vpack.c.bf16 %v1611_v53, %v1611_v53  ;;  %v1894_v12 = vrot.slane %v1880_v54, %v10727_v48  ;;  %v1948_v18 = vcombine.high %v10776_v56, %v10779_v57 }
 0x2b7   : > { %v1979_v59 = vcombine.low %v1955_v50, %v1971_v52  ;;  %8700 = vmatpush3.bf16.xpose.msra.mxu1 %v2296_v58  ;;  %v1980_v2 = vcombine.high %v1955_v50, %v1971_v52  ;;  %v1910_v3 = vrot.slane %v1896_v60, %v10727_v48  ;;  %v1964_v19 = vcombine.high %v1938_v39, %v1946_v40  ;;  %v10943_v52 = vld [vmem:[#allocation5] sm:$0xff] }
 0x2b8   : > { %8711 = vmatprep.subr.bf16.mxu1 %v10215_v0  ;;  %v10855_v4 = vpack.c.bf16 %v1679_v62, %v1679_v62  ;;  %v2388_v5 = vsel %vm2291_vm2, %v10846_v1, 0  ;;  %v1962_v8 = vrot.slane %v1948_v18, %v10727_v48  ;;  %v1580_v56 = vcombine.high %v10790_v25, %v10793_v27 }
 0x2b9   : > { %v10841_v61 = vpack.c.bf16 %v1979_v59, %v1979_v59  ;;  %v10861_v6 = vpack.c.bf16 %v1980_v2, %v1980_v2  ;;  %v1913_v7 = vcombine.low %v1894_v12, %v1910_v3  ;;  %v1978_v9 = vrot.slane %v1964_v19, %v10727_v48 }
 0x2ba   : > { %v1596_v57 = vcombine.high %v10796_v28, %v10799_v30  ;;  %v1612_v10 = vcombine.high %v1587_v43, %v1603_v44  ;;  %v1648_v16 = vcombine.high %v10802_v31, %v10805_v32  ;;  %v1664_v17 = vcombine.high %v10808_v33, %v10811_v34 }
 0x2bb   : > { %v2342_v13 = vsel %vm2291_vm2, %v10841_v61, 0  ;;  %v2434_v11 = vsel %vm2291_vm2, %v10861_v6, 0  ;;  %v10876_v14 = vpack.c.bf16 %v1913_v7, %v1913_v7  ;;  %v1981_v15 = vcombine.low %v1962_v8, %v1978_v9 }
 0x2bc   : > { %8706 = vmatpush3.bf16.xpose.msra.mxu0 %v2342_v13  ;;  %v10884_v20 = vpack.c.bf16 %v1612_v10, %v1612_v10  ;;  %v1680_v22 = vcombine.high %v1655_v47, %v1671_v49  ;;  %v1594_v24 = vrot.slane %v1580_v56, %v10727_v48  ;;  %v1610_v25 = vrot.slane %v1596_v57, %v10727_v48 }
 0x2bd   : > { %8717 = vmatprep.subr.bf16.mxu0 %v10215_v0  ;;  %v2480_v27 = vsel %vm2291_vm2, %v10876_v14, 0  ;;  %v10893_v28 = vpack.c.bf16 %v1981_v15, %v1981_v15  ;;  %v1914_v30 = vcombine.high %v1894_v12, %v1910_v3  ;;  %v1662_v33 = vrot.slane %v1648_v16, %v10727_v48 }
 0x2be   : > { %8702 = vmatmul.mubr.msk.bf16.vlgmr.msra.gmra.mxu1 %vm2291_vm2, %v10844_v63  ;;  %v10897_v31 = vpack.c.bf16 %v1680_v22, %v1680_v22  ;;  %v1613_v32 = vcombine.low %v1594_v24, %v1610_v25  ;;  %v1678_v34 = vrot.slane %v1664_v17, %v10727_v48  ;;  %v1982_v21 = vcombine.high %v1962_v8, %v1978_v9 }
 0x2bf   : > { %8712 = vmatpush3.bf16.xpose.msra.mxu1 %v2388_v5  ;;  %8713 = vmatprep.mubr.msk.bf16.mxu1 %vm10216_vm0, %v10215_v0  ;;  %v2526_v35 = vsel %vm2291_vm2, %v10893_v28, 0  ;;  %v10906_v36 = vpack.c.bf16 %v1914_v30, %v1914_v30  ;;  %v1614_v42 = vcombine.high %v1594_v24, %v1610_v25 }
 0x2c0   : > { %8723 = vmatprep.subr.bf16.mxu1 %v10215_v0  ;;  %v10910_v37 = vpack.c.bf16 %v1613_v32, %v1613_v32  ;;  %v1681_v23 = vcombine.low %v1662_v33, %v1678_v34  ;;  %v10917_v39 = vpack.c.bf16 %v1982_v21, %v1982_v21  ;;  %v1682_v45 = vcombine.high %v1662_v33, %v1678_v34 }
 0x2c1   : > { %v2572_v38 = vsel %vm2291_vm2, %v10906_v36, 0  ;;  %v10930_v44 = vpack.c.bf16 %v1614_v42, %v1614_v42 }
 0x2c2   : > { %v10921_v40 = vpack.c.bf16 %v1681_v23, %v1681_v23  ;;  %v2618_v43 = vsel %vm2291_vm2, %v10917_v39, 0  ;;  %v10937_v46 = vpack.c.bf16 %v1682_v45, %v1682_v45 }
 0x2c3   : > { %8708 = vmatmul.mubr.msk.bf16.vlgmr.msra.gmra.mxu0 %vm2291_vm2, %v10855_v4 }
 0x2c4   : > { %8718 = vmatpush3.bf16.xpose.msra.mxu0 %v2434_v11  ;;  %8719 = vmatprep.mubr.msk.bf16.mxu0 %vm10216_vm0, %v10215_v0 }
 0x2c5   : > { %8729 = vmatprep.subr.bf16.mxu0 %v10215_v0 }
 0x2c6   : > { %8714 = vmatmul.mubr.msk.bf16.vlgmr.msra.gmra.mxu1 %vm2291_vm2, %v10884_v20 }
 0x2c7   : > { %8724 = vmatpush3.bf16.xpose.msra.mxu1 %v2480_v27  ;;  %8725 = vmatprep.mubr.msk.bf16.mxu1 %vm10216_vm0, %v10215_v0 }
 0x2c8   : > { %8735 = vmatprep.subr.bf16.mxu1 %v10215_v0 }
 0x2cb   : > { %8720 = vmatmul.mubr.msk.bf16.vlgmr.msra.gmra.mxu0 %vm2291_vm2, %v10897_v31 }
 0x2cc   : > { %8730 = vmatpush3.bf16.xpose.msra.mxu0 %v2526_v35  ;;  %8731 = vmatprep.mubr.msk.bf16.mxu0 %vm10216_vm0, %v10215_v0 }
 0x2cd   : > { %8741 = vmatprep.subr.bf16.mxu0 %v10215_v0 }
 0x2ce   : > { %8726 = vmatmul.mubr.msk.bf16.vlgmr.msra.gmra.mxu1 %vm2291_vm2, %v10910_v37 }
 0x2cf   : > { %8736 = vmatpush3.bf16.xpose.msra.mxu1 %v2572_v38  ;;  %8737 = vmatprep.mubr.msk.bf16.mxu1 %vm10216_vm0, %v10215_v0 }
 0x2d0   : > { %8747 = vmatprep.subr.bf16.mxu1 %v10215_v0 }
 0x2d3   : > { %8732 = vmatmul.mubr.msk.bf16.vlgmr.msra.gmra.mxu0 %vm2291_vm2, %v10921_v40 }
 0x2d4   : > { %8742 = vmatpush3.bf16.xpose.msra.mxu0 %v2618_v43  ;;  %8743 = vmatprep.mubr.msk.bf16.mxu0 %vm10216_vm0, %v10215_v0 }
 0x2d5   : > { %8753 = vmatprep.subr.bf16.mxu0 %v10215_v0 }
 0x2d6   : > { %8738 = vmatmul.mubr.msk.bf16.vlgmr.msra.gmra.mxu1 %vm2291_vm2, %v10930_v44 }
 0x2d7   : > { %8749 = vmatprep.mubr.msk.bf16.mxu1 %vm10216_vm0, %v10215_v0 }
 0x2db   : > { %8744 = vmatmul.mubr.msk.bf16.vlgmr.msra.gmra.mxu0 %vm2291_vm2, %v10937_v46 }
 0x2dc   : > { %8755 = vmatprep.mubr.msk.bf16.mxu0 %vm10216_vm0, %v10215_v0 }
 0x37e   : > { %v2332_v50 = vpop.f32.mrf.mxu1 }
 0x37f   : > { %v2660_v47 = vmul.f32 0.35355338, %v2332_v50 }
 0x380   : > { %v8703_v49 = vpop.f32.mrf.mxu1 }
 0x381   : > { %v10946_v53 = vadd.f32 %v2660_v47, %v10943_v52 }
 0x382   : > { %v2335_v54 = vpop.f32.mrf.mxu1 }
 0x383   : > { %v2378_v55 = vpop.f32.mrf.mxu0  ;;  %v2677_v59 = vsel %vm2676_vm3, %v10946_v53, -inf }
 0x384   : > { %v2661_v58 = vmul.f32 0.35355338, %v2378_v55  ;;  %v8704_v62 = vpop.f32.mrf.mxu1  ;;  %2678 = vmax.xlane.f32.xlu0 %v2677_v59 }
 0x385   : > { %v8709_v60 = vpop.f32.mrf.mxu0 }
 0x386   : > { %v10951_v2 = vadd.f32 %v2661_v58, %v10943_v52  ;;  %v2424_v13 = vpop.f32.mrf.mxu1 }
 0x387   : > { %v2381_v12 = vpop.f32.mrf.mxu0  ;;  %v2662_v38 = vmul.f32 0.35355338, %v2424_v13 }
 0x388   : > { %v2680_v3 = vsel %vm2676_vm3, %v10951_v2, -inf  ;;  %v8715_v19 = vpop.f32.mrf.mxu1 }
 0x389   : > { %2681 = vmax.xlane.f32.xlu1 %v2680_v3  ;;  %v8710_v18 = vpop.f32.mrf.mxu0  ;;  %v10960_v45 = vadd.f32 %v2662_v38, %v10943_v52 }
 0x38a   : > { %v2427_v7 = vpop.f32.mrf.mxu1 }
 0x38b   : > { %v2470_v5 = vpop.f32.mrf.mxu0  ;;  %v2683_v55 = vsel %vm2676_vm3, %v10960_v45, -inf  ;;  %v1996_v7 = vpop.permute.xlu1 %1995 }
 0x38c   : > { %v8716_v9 = vpop.f32.mrf.mxu1  ;;  %v2663_v42 = vmul.f32 0.35355338, %v2470_v5  ;;  %v1994_v5 = vpop.permute.xlu0 %1993 }
 0x38d   : > { %v8721_v8 = vpop.f32.mrf.mxu0 }
 0x38e   : > { %v2516_v57 = vpop.f32.mrf.mxu1  ;;  %v10963_v50 = vadd.f32 %v2663_v42, %v10943_v52 }
 0x38f   : > { %v2473_v56 = vpop.f32.mrf.mxu0  ;;  %v2664_v43 = vmul.f32 0.35355338, %v2516_v57  ;;  %v2002_v9 = vpop.permute.xlu1 %2001 }
 0x390   : > { %v8727_v11 = vpop.f32.mrf.mxu1  ;;  %v2686_v58 = vsel %vm2676_vm3, %v10963_v50, -inf  ;;  %v2000_v8 = vpop.permute.xlu0 %1999 }
 0x391   : > { %v8722_v10 = vpop.f32.mrf.mxu0  ;;  %v10968_v54 = vadd.f32 %v2664_v43, %v10943_v52  ;;  %v2011_v57 = vcombine.low %v10713_v26, %v2000_v8 }
 0x392   : > { %v2519_v16 = vpop.f32.mrf.mxu1  ;;  %v2012_v10 = vcombine.high %v10713_v26, %v2000_v8 }
 0x393   : > { %v2562_v15 = vpop.f32.mrf.mxu0  ;;  %v2689_v60 = vsel %vm2676_vm3, %v10968_v54, -inf }
 0x394   : > { %v8728_v22 = vpop.f32.mrf.mxu1  ;;  %v2665_v47 = vmul.f32 0.35355338, %v2562_v15 }
 0x395   : > { %v8733_v17 = vpop.f32.mrf.mxu0 }
 0x396   : > { %v2608_v25 = vpop.f32.mrf.mxu1  ;;  %v10978_v12 = vadd.f32 %v2665_v47, %v10943_v52 }
 0x397   : > { %v2565_v24 = vpop.f32.mrf.mxu0  ;;  %v2666_v49 = vmul.f32 0.35355338, %v2608_v25  ;;  %v2026_v25 = vrot.slane %v2012_v10, %v10725_v41 }
 0x398   : > { %v8739_v30 = vpop.f32.mrf.mxu1  ;;  %v2692_v3 = vsel %vm2676_vm3, %v10978_v12, -inf  ;;  %v2019_v24 = vrot.slane %v2011_v57, %v10725_v41 }
 0x399   : > { %v8734_v27 = vpop.f32.mrf.mxu0  ;;  %v10975_v62 = vadd.f32 %v2666_v49, %v10943_v52 }
 0x39a   : > { %2007 = vrot.lane.b32.xlu1 %v10717_v29, %s10219_s22  ;;  %v2611_v33 = vpop.f32.mrf.mxu1  ;;  %2005 = vrot.lane.b32.xlu0 %v10713_v26, %s10219_s22  ;;  %v2079_v27 = vcombine.low %v10717_v29, %v2002_v9  ;;  %v2080_v26 = vcombine.high %v10717_v29, %v2002_v9 }
 0x39b   : > { %v2654_v32 = vpop.f32.mrf.mxu0  ;;  %v2695_v13 = vsel %vm2676_vm3, %v10975_v62, -inf }
 0x39c   : > { %v8740_v35 = vpop.f32.mrf.mxu1  ;;  %v2667_v59 = vmul.f32 0.35355338, %v2654_v32  ;;  %v2087_v43 = vrot.slane %v2079_v27, %v10725_v41 }
 0x39d   : > { %v8745_v34 = vpop.f32.mrf.mxu0 }
 0x39e   : > { %v10985_v18 = vadd.f32 %v2667_v59, %v10943_v52  ;;  %v2094_v59 = vrot.slane %v2080_v26, %v10725_v41 }
 0x39f   : > { %v2657_v21 = vpop.f32.mrf.mxu0 }
 0x3a0   : > { %v2698_v19 = vsel %vm2676_vm3, %v10985_v18, -inf }
 0x3a1   : > { %v8746_v23 = vpop.f32.mrf.mxu0 }
 0x3b9   : > { %2684 = vmax.xlane.f32.xlu0 %v2683_v55 }
 0x3bd   : > { %2690 = vmax.xlane.f32.xlu0 %v2689_v60 }
 0x3be   : > { %2687 = vmax.xlane.f32.xlu1 %v2686_v58 }
 0x3c1   : > { %2693 = vmax.xlane.f32.xlu0 %v2692_v3 }
 0x3c2   : > { %2696 = vmax.xlane.f32.xlu1 %v2695_v13 }
 0x3c5   : > { %2699 = vmax.xlane.f32.xlu0 %v2698_v19 }
 0x3d3   : > { %3543 = vrot.lane.b32.xlu1 %v10943_v52, %s10222_s1 }
 0x40d   : > { %v10989_v56 = vpop.xlane.xlu0 %2678 }
 0x40e   : > { %v2725_v11 = vsub.f32 %v10946_v53, %v10989_v56 }
 0x410   : > { %v2733_v32 = vmul.f32 1.442695, %v2725_v11 }
 0x411   : > { %v2006_v16 = vpop.permute.xlu0 %2005 }
 0x412   : > { %v10997_v15 = vpop.xlane.xlu1 %2681  ;;  %v2027_v17 = vcombine.low %v1994_v5, %v2006_v16  ;;  %v2028_v22 = vcombine.high %v1994_v5, %v2006_v16  ;;  %9448 = vpow2.f32 %v2733_v32 }
 0x413   : > { %v2726_v53 = vsub.f32 %v10951_v2, %v10997_v15 }
 0x414   : > { %v2035_v52 = vrot.slane %v2027_v17, %v10725_v41  ;;  %v2042_v30 = vrot.slane %v2028_v22, %v10725_v41 }
 0x415   : > { %v2735_v60 = vmul.f32 1.442695, %v2726_v53 }
 0x416   : > { %v2008_v33 = vpop.permute.xlu1 %2007  ;;  %v2043_v34 = vcombine.low %v2019_v24, %v2035_v52  ;;  %v2044_v35 = vcombine.high %v2019_v24, %v2035_v52  ;;  %v2059_v21 = vcombine.low %v2026_v25, %v2042_v30  ;;  %v2060_v23 = vcombine.high %v2026_v25, %v2042_v30 }
 0x417   : > { %v2095_v38 = vcombine.low %v1996_v7, %v2008_v33  ;;  %v2096_v42 = vcombine.high %v1996_v7, %v2008_v33  ;;  %9450 = vpow2.f32 %v2735_v60 }
 0x418   : > { %v2051_v47 = vrot.slane %v2043_v34, %v10727_v48  ;;  %v2058_v49 = vrot.slane %v2044_v35, %v10727_v48  ;;  %v2067_v55 = vrot.slane %v2059_v21, %v10727_v48  ;;  %v2074_v29 = vrot.slane %v2060_v23, %v10727_v48 }
 0x419   : > { %v2103_v58 = vrot.slane %v2095_v38, %v10725_v41  ;;  %v2110_v2 = vrot.slane %v2096_v42, %v10725_v41 }
 0x41a   : > { %v2147_v13 = vcombine.low %v2051_v47, %v2058_v49  ;;  %v8384_v3 = vcombine.high %v2051_v47, %v2058_v49  ;;  %v2163_v19 = vcombine.low %v2067_v55, %v2074_v29  ;;  %v8385_v5 = vcombine.high %v2067_v55, %v2074_v29 }
 0x41b   : > { %v2111_v7 = vcombine.low %v2087_v43, %v2103_v58  ;;  %v2112_v8 = vcombine.high %v2087_v43, %v2103_v58  ;;  %v2127_v9 = vcombine.low %v2094_v59, %v2110_v2  ;;  %v2128_v57 = vcombine.high %v2094_v59, %v2110_v2 }
 0x41c   : > { %v11016_v10 = vrot.slane %v2147_v13, %v10725_v41  ;;  %v11019_v11 = vrot.slane %v8384_v3, %v10725_v41  ;;  %v11024_v22 = vrot.slane %v2163_v19, %v10725_v41  ;;  %v11027_v24 = vrot.slane %v8385_v5, %v10725_v41 }
 0x41d   : > { %v2119_v16 = vrot.slane %v2111_v7, %v10727_v48  ;;  %v2126_v17 = vrot.slane %v2112_v8, %v10727_v48  ;;  %v2135_v25 = vrot.slane %v2127_v9, %v10727_v48  ;;  %v2142_v27 = vrot.slane %v2128_v57, %v10727_v48 }
 0x41e   : > { %v2179_v52 = vcombine.low %v11016_v10, %v11019_v11  ;;  %v2195_v32 = vcombine.low %v11024_v22, %v11027_v24 }
 0x41f   : > { %v2215_v30 = vcombine.low %v2119_v16, %v2126_v17  ;;  %v8386_v26 = vcombine.high %v2119_v16, %v2126_v17  ;;  %v2231_v33 = vcombine.low %v2135_v25, %v2142_v27  ;;  %v8387_v53 = vcombine.high %v2135_v25, %v2142_v27  ;;  %v11047_v2 = vpop.eup %9448 }
 0x420   : > { %v2187_v34 = vrot.slane %v2179_v52, %v10727_v48  ;;  %v2203_v35 = vrot.slane %v2195_v32, %v10727_v48  ;;  %v2789_v5 = vpack.c.bf16 %v11047_v2, %v11047_v2 }
 0x421   : > { %v11038_v21 = vrot.slane %v2215_v30, %v10725_v41  ;;  %v2230_v23 = vrot.slane %v8386_v26, %v10725_v41  ;;  %v2238_v38 = vrot.slane %v2231_v33, %v10725_v41  ;;  %v2246_v42 = vrot.slane %v8387_v53, %v10725_v41 }
 0x422   : > { %v2211_v43 = vcombine.low %v2187_v34, %v2203_v35  ;;  %v2212_v49 = vcombine.high %v2187_v34, %v2203_v35  ;;  %v2180_v33 = vcombine.high %v11016_v10, %v11019_v11  ;;  %v2196_v35 = vcombine.high %v11024_v22, %v11027_v24 }
 0x423   : > { %v2247_v47 = vcombine.low %v11038_v21, %v2230_v23  ;;  %v2263_v55 = vcombine.low %v2238_v38, %v2246_v42  ;;  %v2248_v11 = vcombine.high %v11038_v21, %v2230_v23 }
 0x424   : > { %v11044_v29 = vpack.c.bf16 %v2211_v43, %v2211_v43  ;;  %v11052_v13 = vpack.c.bf16 %v2212_v49, %v2212_v49  ;;  %v11059_v8 = vpop.eup %9450  ;;  %v2210_v10 = vrot.slane %v2196_v35, %v10727_v48 }
 0x425   : > { %v2255_v58 = vrot.slane %v2247_v47, %v10727_v48  ;;  %v2271_v59 = vrot.slane %v2263_v55, %v10727_v48  ;;  %v2790_v17 = vpack.c.bf16 %v11059_v8, %v11059_v8  ;;  %v2194_v55 = vrot.slane %v2180_v33, %v10727_v48 }
 0x426   : > { %v2802_v60 = vsel %vm2800_vm4, %v11044_v29, 0  ;;  %v2894_v9 = vsel %vm2800_vm4, %v11052_v13, 0 }
 0x427   : > { %8748 = vmatpush3.bf16.msra.mxu1 %v2802_v60  ;;  %v2279_v3 = vcombine.low %v2255_v58, %v2271_v59  ;;  %v2280_v19 = vcombine.high %v2255_v58, %v2271_v59  ;;  %v2213_v59 = vcombine.low %v2194_v55, %v2210_v10  ;;  %v2262_v60 = vrot.slane %v2248_v11, %v10727_v48 }
 0x428   : > { %8759 = vmatprep.subr.bf16.mxu1 %v10215_v0  ;;  %v3175_v11 = vrot.slane %v10830_v51, 2 }
 0x429   : > { %v11057_v7 = vpack.c.bf16 %v2279_v3, %v2279_v3  ;;  %v11066_v16 = vpack.c.bf16 %v2280_v19, %v2280_v19  ;;  %v11113_v23 = vpack.c.bf16 %v2213_v59, %v2213_v59 }
 0x42a   : > { %8750 = vmatmul.mubr.msk.bf16.vlgmr.msra.gmra.mxu1 %vm2676_vm3, %v2789_v5 }
 0x42b   : > { %v2848_v57 = vsel %vm2800_vm4, %v11057_v7, 0  ;;  %8760 = vmatpush3.bf16.msra.mxu1 %v2894_v9  ;;  %8761 = vmatprep.mubr.msk.bf16.mxu1 %vm10216_vm0, %v10215_v0  ;;  %v2940_v25 = vsel %vm2800_vm4, %v11066_v16, 0  ;;  %v2986_v5 = vsel %vm2800_vm4, %v11113_v23, 0 }
 0x42c   : > { %8754 = vmatpush3.bf16.msra.mxu0 %v2848_v57  ;;  %8771 = vmatprep.subr.bf16.mxu1 %v10215_v0  ;;  %v2214_v57 = vcombine.high %v2194_v55, %v2210_v10 }
 0x42d   : > { %8765 = vmatprep.subr.bf16.mxu0 %v10215_v0 }
 0x42f   : > { %8756 = vmatmul.mubr.msk.bf16.vlgmr.msra.gmra.mxu0 %vm2676_vm3, %v2790_v17 }
 0x430   : > { %8766 = vmatpush3.bf16.msra.mxu0 %v2940_v25  ;;  %8767 = vmatprep.mubr.msk.bf16.mxu0 %vm10216_vm0, %v10215_v0 }
 0x431   : > { %8777 = vmatprep.subr.bf16.mxu0 %v10215_v0 }
 0x442   : > { %v11080_v27 = vpop.xlane.xlu0 %2684 }
 0x443   : > { %v2727_v52 = vsub.f32 %v10960_v45, %v11080_v27 }
 0x445   : > { %v2737_v30 = vmul.f32 1.442695, %v2727_v52 }
 0x446   : > { %v11086_v32 = vpop.xlane.xlu0 %2690 }
 0x447   : > { %v11084_v26 = vpop.xlane.xlu1 %2687  ;;  %9452 = vpow2.f32 %v2737_v30  ;;  %v2729_v34 = vsub.f32 %v10968_v54, %v11086_v32  ;;  %v11136_v30 = vpack.c.bf16 %v2214_v57, %v2214_v57 }
 0x448   : > { %v2728_v53 = vsub.f32 %v10963_v50, %v11084_v26  ;;  %v2264_v50 = vcombine.high %v2238_v38, %v2246_v42 }
 0x449   : > { %v2741_v45 = vmul.f32 1.442695, %v2729_v34 }
 0x44a   : > { %v2739_v43 = vmul.f32 1.442695, %v2728_v53  ;;  %v11098_v49 = vpop.xlane.xlu0 %2693  ;;  %v2278_v3 = vrot.slane %v2264_v50, %v10727_v48 }
 0x44b   : > { %v11096_v47 = vpop.xlane.xlu1 %2696  ;;  %v2730_v54 = vsub.f32 %v10978_v12, %v11098_v49 }
 0x44c   : > { %9454 = vpow2.f32 %v2739_v43  ;;  %v2731_v22 = vsub.f32 %v10975_v62, %v11096_v47  ;;  %v2281_v12 = vcombine.low %v2262_v60, %v2278_v3  ;;  %v2282_v33 = vcombine.high %v2262_v60, %v2278_v3 }
 0x44d   : > { %9456 = vpow2.f32 %v2741_v45  ;;  %v2743_v24 = vmul.f32 1.442695, %v2730_v54  ;;  %v3078_v43 = vsel %vm2800_vm4, %v11136_v30, 0  ;;  %v3265_v60 = vrot.slane %v10846_v1, 2 }
 0x44e   : > { %v11107_v58 = vpop.xlane.xlu0 %2699  ;;  %v2745_v19 = vmul.f32 1.442695, %v2731_v22  ;;  %v11122_v9 = vpack.c.bf16 %v2281_v12, %v2281_v12  ;;  %v11150_v45 = vpack.c.bf16 %v2282_v33, %v2282_v33  ;;  %v3177_v22 = vsel %vm2291_vm2, %v3175_v11, 0 }
 0x44f   : > { %9458 = vpow2.f32 %v2743_v24  ;;  %v2732_v21 = vsub.f32 %v10985_v18, %v11107_v58  ;;  %v3220_v24 = vrot.slane %v10841_v61, 2  ;;  %v3267_v61 = vsel %vm2291_vm2, %v3265_v60, 0 }
 0x450   : > { %9460 = vpow2.f32 %v2745_v19  ;;  %v3032_v52 = vsel %vm2800_vm4, %v11122_v9, 0  ;;  %v3124_v10 = vsel %vm2800_vm4, %v11150_v45, 0  ;;  %v3310_v3 = vrot.slane %v10861_v6, 2 }
 0x451   : > { %v2747_v62 = vmul.f32 1.442695, %v2732_v21  ;;  %v3222_v59 = vsel %vm2291_vm2, %v3220_v24, 0  ;;  %v3355_v19 = vrot.slane %v10876_v14, 2  ;;  %v3400_v6 = vrot.slane %v10893_v28, 2 }
 0x452   : > { %v3312_v1 = vsel %vm2291_vm2, %v3310_v3, 0  ;;  %v3445_v14 = vrot.slane %v10906_v36, 2  ;;  %v3490_v28 = vrot.slane %v10917_v39, 2  ;;  %v3691_v36 = vrot.slane %v11044_v29, 2 }
 0x453   : > { %9462 = vpow2.f32 %v2747_v62  ;;  %v3739_v39 = vrot.slane %v11057_v7, 2 }
 0x454   : > { %v11115_v38 = vpop.eup %9452 }
 0x455   : > { %v2791_v42 = vpack.c.bf16 %v11115_v38, %v11115_v38 }
 0x457   : > { %8762 = vmatmul.mubr.msk.bf16.vlgmr.msra.gmra.mxu1 %vm2676_vm3, %v2791_v42 }
 0x458   : > { %8772 = vmatpush3.bf16.msra.mxu1 %v2986_v5  ;;  %8773 = vmatprep.mubr.msk.bf16.mxu1 %vm10216_vm0, %v10215_v0 }
 0x459   : > { %v11124_v17 = vpop.eup %9454  ;;  %8783 = vmatprep.subr.bf16.mxu1 %v10215_v0 }
 0x45a   : > { %v2792_v18 = vpack.c.bf16 %v11124_v17, %v11124_v17  ;;  %v11131_v25 = vpop.eup %9456 }
 0x45b   : > { %v2793_v34 = vpack.c.bf16 %v11131_v25, %v11131_v25 }
 0x45c   : > { %8768 = vmatmul.mubr.msk.bf16.vlgmr.msra.gmra.mxu0 %vm2676_vm3, %v2792_v18  ;;  %v11140_v53 = vpop.eup %9458 }
 0x45d   : > { %8778 = vmatpush3.bf16.msra.mxu0 %v3032_v52  ;;  %8779 = vmatprep.mubr.msk.bf16.mxu0 %vm10216_vm0, %v10215_v0  ;;  %v2794_v35 = vpack.c.bf16 %v11140_v53, %v11140_v53  ;;  %v11155_v55 = vpop.eup %9460 }
 0x45e   : > { %8789 = vmatprep.subr.bf16.mxu0 %v10215_v0  ;;  %v2795_v50 = vpack.c.bf16 %v11155_v55, %v11155_v55 }
 0x45f   : > { %8774 = vmatmul.mubr.msk.bf16.vlgmr.msra.gmra.mxu1 %vm2676_vm3, %v2793_v34 }
 0x460   : > { %8784 = vmatpush3.bf16.msra.mxu1 %v3078_v43  ;;  %8785 = vmatprep.mubr.msk.bf16.mxu1 %vm10216_vm0, %v10215_v0  ;;  %v11166_v54 = vpop.eup %9462 }
 0x461   : > { %8795 = vmatprep.subr.bf16.mxu1 %v10215_v0  ;;  %v2796_v51 = vpack.c.bf16 %v11166_v54, %v11166_v54 }
 0x464   : > { %8780 = vmatmul.mubr.msk.bf16.vlgmr.msra.gmra.mxu0 %vm2676_vm3, %v2794_v35 }
 0x465   : > { %8790 = vmatpush3.bf16.msra.mxu0 %v3124_v10  ;;  %8791 = vmatprep.mubr.msk.bf16.mxu0 %vm10216_vm0, %v10215_v0 }
 0x466   : > { %8801 = vmatprep.subr.bf16.mxu0 %v10215_v0 }
 0x467   : > { %8786 = vmatmul.mubr.msk.bf16.vlgmr.msra.gmra.mxu1 %vm2676_vm3, %v2795_v50 }
 0x468   : > { %8796 = vmatpush3.bf16.xpose.msra.mxu1 %v3177_v22  ;;  %8797 = vmatprep.mubr.msk.bf16.mxu1 %vm10216_vm0, %v10215_v0 }
 0x469   : > { %8807 = vmatprep.subr.bf16.mxu1 %v10215_v0 }
 0x46c   : > { %8792 = vmatmul.mubr.msk.bf16.vlgmr.msra.gmra.mxu0 %vm2676_vm3, %v2796_v51 }
 0x46d   : > { %8802 = vmatpush3.bf16.xpose.msra.mxu0 %v3222_v59  ;;  %8803 = vmatprep.mubr.msk.bf16.mxu0 %vm10216_vm0, %v10215_v0 }
 0x46e   : > { %8813 = vmatprep.subr.bf16.mxu0 %v10215_v0 }
 0x46f   : > { %8798 = vmatmul.mubr.msk.bf16.vlgmr.msra.gmra.mxu1 %vm2291_vm2, %v10844_v63  ;;  %v3357_v63 = vsel %vm2291_vm2, %v3355_v19, 0 }
 0x470   : > { %8808 = vmatpush3.bf16.xpose.msra.mxu1 %v3267_v61  ;;  %8809 = vmatprep.mubr.msk.bf16.mxu1 %vm10216_vm0, %v10215_v0 }
 0x471   : > { %8819 = vmatprep.subr.bf16.mxu1 %v10215_v0 }
 0x474   : > { %8804 = vmatmul.mubr.msk.bf16.vlgmr.msra.gmra.mxu0 %vm2291_vm2, %v10855_v4  ;;  %v3402_v4 = vsel %vm2291_vm2, %v3400_v6, 0 }
 0x475   : > { %8814 = vmatpush3.bf16.xpose.msra.mxu0 %v3312_v1  ;;  %8815 = vmatprep.mubr.msk.bf16.mxu0 %vm10216_vm0, %v10215_v0 }
 0x476   : > { %8825 = vmatprep.subr.bf16.mxu0 %v10215_v0 }
 0x477   : > { %8810 = vmatmul.mubr.msk.bf16.vlgmr.msra.gmra.mxu1 %vm2291_vm2, %v10884_v20  ;;  %v3447_v20 = vsel %vm2291_vm2, %v3445_v14, 0 }
 0x478   : > { %8820 = vmatpush3.bf16.xpose.msra.mxu1 %v3357_v63  ;;  %8821 = vmatprep.mubr.msk.bf16.mxu1 %vm10216_vm0, %v10215_v0 }
 0x479   : > { %8831 = vmatprep.subr.bf16.mxu1 %v10215_v0 }
 0x47c   : > { %8816 = vmatmul.mubr.msk.bf16.vlgmr.msra.gmra.mxu0 %vm2291_vm2, %v10897_v31  ;;  %v3492_v31 = vsel %vm2291_vm2, %v3490_v28, 0 }
 0x47d   : > { %8826 = vmatpush3.bf16.xpose.msra.mxu0 %v3402_v4  ;;  %8827 = vmatprep.mubr.msk.bf16.mxu0 %vm10216_vm0, %v10215_v0  ;;  %v11253_v4 = vpop.permute.xlu1 %3543 }
 0x47e   : > { %8837 = vmatprep.subr.bf16.mxu0 %v10215_v0 }
 0x47f   : > { %8822 = vmatmul.mubr.msk.bf16.vlgmr.msra.gmra.mxu1 %vm2291_vm2, %v10910_v37  ;;  %v3696_v37 = vsel %vm2800_vm4, %v3691_v36, 0 }
 0x480   : > { %8832 = vmatpush3.bf16.xpose.msra.mxu1 %v3447_v20  ;;  %8833 = vmatprep.mubr.msk.bf16.mxu1 %vm10216_vm0, %v10215_v0 }
 0x481   : > { %8843 = vmatprep.subr.bf16.mxu1 %v10215_v0 }
 0x484   : > { %8828 = vmatmul.mubr.msk.bf16.vlgmr.msra.gmra.mxu0 %vm2291_vm2, %v10921_v40  ;;  %v3744_v40 = vsel %vm2800_vm4, %v3739_v39, 0 }
 0x485   : > { %8838 = vmatpush3.bf16.xpose.msra.mxu0 %v3492_v31  ;;  %8839 = vmatprep.mubr.msk.bf16.mxu0 %vm10216_vm0, %v10215_v0 }
 0x486   : > { %8849 = vmatprep.subr.bf16.mxu0 %v10215_v0 }
 0x487   : > { %8834 = vmatmul.mubr.msk.bf16.vlgmr.msra.gmra.mxu1 %vm2291_vm2, %v10930_v44 }
 0x488   : > { %8844 = vmatpush3.bf16.msra.mxu1 %v3696_v37  ;;  %8845 = vmatprep.mubr.msk.bf16.mxu1 %vm10216_vm0, %v10215_v0 }
 0x489   : > { %8855 = vmatprep.subr.bf16.mxu1 %v10215_v0 }
 0x48c   : > { %8840 = vmatmul.mubr.msk.bf16.vlgmr.msra.gmra.mxu0 %vm2291_vm2, %v10937_v46 }
 0x48d   : > { %8850 = vmatpush3.bf16.msra.mxu0 %v3744_v40  ;;  %8851 = vmatprep.mubr.msk.bf16.mxu0 %vm10216_vm0, %v10215_v0 }
 0x48e   : > { %8861 = vmatprep.subr.bf16.mxu0 %v10215_v0 }
 0x4ea   : > { %v11237_v44 = vpop.f32.mrf.mxu1 }
 0x4ec   : > { %v8751_v29 = vpop.f32.mrf.mxu1 }
 0x4ee   : > { %v2841_v7 = vpop.f32.mrf.mxu1 }
 0x4ef   : > { %v11239_v21 = vpop.f32.mrf.mxu0 }
 0x4f0   : > { %v8752_v12 = vpop.f32.mrf.mxu1 }
 0x4f1   : > { %v8757_v62 = vpop.f32.mrf.mxu0 }
 0x4f3   : > { %v2887_v42 = vpop.f32.mrf.mxu0 }
 0x4f5   : > { %v8758_v5 = vpop.f32.mrf.mxu0 }
 0x517   : > { %v11241_v57 = vpop.f32.mrf.mxu1 }
 0x519   : > { %v8763_v46 = vpop.f32.mrf.mxu1 }
 0x51b   : > { %v2933_v52 = vpop.f32.mrf.mxu1 }
 0x51c   : > { %v11243_v18 = vpop.f32.mrf.mxu0 }
 0x51d   : > { %v8764_v34 = vpop.f32.mrf.mxu1 }
 0x51e   : > { %v8769_v33 = vpop.f32.mrf.mxu0 }
 0x51f   : > { %v11245_v43 = vpop.f32.mrf.mxu1 }
 0x520   : > { %v2979_v35 = vpop.f32.mrf.mxu0 }
 0x521   : > { %v8775_v11 = vpop.f32.mrf.mxu1 }
 0x522   : > { %v8770_v10 = vpop.f32.mrf.mxu0 }
 0x523   : > { %v3025_v22 = vpop.f32.mrf.mxu1 }
 0x524   : > { %v11247_v50 = vpop.f32.mrf.mxu0 }
 0x525   : > { %v8776_v51 = vpop.f32.mrf.mxu1 }
 0x526   : > { %v8781_v24 = vpop.f32.mrf.mxu0 }
 0x527   : > { %v11249_v60 = vpop.f32.mrf.mxu1 }
 0x528   : > { %v3071_v59 = vpop.f32.mrf.mxu0 }
 0x529   : > { %v8787_v3 = vpop.f32.mrf.mxu1 }
 0x52a   : > { %v8782_v61 = vpop.f32.mrf.mxu0 }
 0x52b   : > { %v3117_v19 = vpop.f32.mrf.mxu1 }
 0x52c   : > { %v11251_v1 = vpop.f32.mrf.mxu0 }
 0x52d   : > { %v8788_v6 = vpop.f32.mrf.mxu1 }
 0x52e   : > { %v8793_v63 = vpop.f32.mrf.mxu0 }
 0x52f   : > { %v3213_v20 = vpop.f32.mrf.mxu1 }
 0x530   : > { %v3163_v14 = vpop.f32.mrf.mxu0  ;;  %v3534_v28 = vmul.f32 0.35355338, %v3213_v20 }
 0x531   : > { %v8799_v36 = vpop.f32.mrf.mxu1 }
 0x532   : > { %v8794_v31 = vpop.f32.mrf.mxu0  ;;  %v11256_v37 = vadd.f32 %v11253_v4, %v3534_v28 }
 0x533   : > { %v3216_v40 = vpop.f32.mrf.mxu1 }
 0x534   : > { %v3258_v39 = vpop.f32.mrf.mxu0  ;;  %v3554_v7 = vsel %vm2676_vm3, %v11256_v37, -inf }
 0x535   : > { %v3535_v29 = vmul.f32 0.35355338, %v3258_v39  ;;  %v8800_v62 = vpop.f32.mrf.mxu1  ;;  %3555 = vmax.xlane.f32.xlu0 %v3554_v7 }
 0x536   : > { %v8805_v12 = vpop.f32.mrf.mxu0 }
 0x537   : > { %v11261_v42 = vadd.f32 %v11253_v4, %v3535_v29  ;;  %v3303_v46 = vpop.f32.mrf.mxu1 }
 0x538   : > { %v3261_v5 = vpop.f32.mrf.mxu0  ;;  %v3536_v52 = vmul.f32 0.35355338, %v3303_v46 }
 0x539   : > { %v3557_v33 = vsel %vm2676_vm3, %v11261_v42, -inf  ;;  %v8811_v35 = vpop.f32.mrf.mxu1 }
 0x53a   : > { %v8806_v34 = vpop.f32.mrf.mxu0  ;;  %3558 = vmax.xlane.f32.xlu0 %v3557_v33  ;;  %v11266_v10 = vadd.f32 %v11253_v4, %v3536_v52 }
 0x53b   : > { %v3306_v22 = vpop.f32.mrf.mxu1  ;;  %v2775_v34 = vsel %vm2676_vm3, %v11155_v55, 0.0 }
 0x53c   : > { %v3348_v11 = vpop.f32.mrf.mxu0  ;;  %v3560_v51 = vsel %vm2676_vm3, %v11266_v10, -inf }
 0x53d   : > { %v3537_v24 = vmul.f32 0.35355338, %v3348_v11  ;;  %v8812_v61 = vpop.f32.mrf.mxu1 }
 0x53e   : > { %v8817_v59 = vpop.f32.mrf.mxu0  ;;  %3561 = vmax.xlane.f32.xlu0 %v3560_v51 }
 0x53f   : > { %v11271_v3 = vadd.f32 %v11253_v4, %v3537_v24  ;;  %v3393_v63 = vpop.f32.mrf.mxu1 }
 0x540   : > { %v3351_v19 = vpop.f32.mrf.mxu0  ;;  %v3538_v6 = vmul.f32 0.35355338, %v3393_v63 }
 0x541   : > { %v3563_v14 = vsel %vm2676_vm3, %v11271_v3, -inf  ;;  %v8823_v28 = vpop.f32.mrf.mxu1 }
 0x542   : > { %v8818_v20 = vpop.f32.mrf.mxu0  ;;  %3564 = vmax.xlane.f32.xlu0 %v3563_v14  ;;  %v11276_v31 = vadd.f32 %v11253_v4, %v3538_v6  ;;  %v2757_v28 = vsel %vm2676_vm3, %v11047_v2, 0.0  ;;  %v2772_v2 = vsel %vm2676_vm3, %v11140_v53, 0.0 }
 0x543   : > { %v3396_v39 = vpop.f32.mrf.mxu1 }
 0x544   : > { %v3438_v36 = vpop.f32.mrf.mxu0  ;;  %v3566_v29 = vsel %vm2676_vm3, %v11276_v31, -inf  ;;  %v2763_v39 = vsel %vm2676_vm3, %v11115_v38, 0.0  ;;  %v2702_v38 = vsub.f32 -inf, %v10997_v15 }
 0x545   : > { %v3539_v40 = vmul.f32 0.35355338, %v3438_v36  ;;  %v8824_v12 = vpop.f32.mrf.mxu1  ;;  %3567 = vmax.xlane.f32.xlu1 %v3566_v29  ;;  %v2760_v36 = vsel %vm2676_vm3, %v11059_v8, 0.0  ;;  %v2778_v8 = vsel %vm2676_vm3, %v11166_v54, 0.0  ;;  %v2701_v29 = vsub.f32 -inf, %v10989_v56 }
 0x546   : > { %v8829_v7 = vpop.f32.mrf.mxu0  ;;  %v2711_v12 = vmul.f32 1.442695, %v2702_v38 }
 0x547   : > { %v11281_v62 = vadd.f32 %v11253_v4, %v3539_v40  ;;  %v3483_v46 = vpop.f32.mrf.mxu1  ;;  %v2769_v40 = vsel %vm2676_vm3, %v11131_v25, 0.0  ;;  %v2709_v7 = vmul.f32 1.442695, %v2701_v29 }
 0x548   : > { %v3441_v5 = vpop.f32.mrf.mxu0  ;;  %v3540_v33 = vmul.f32 0.35355338, %v3483_v46  ;;  %v2704_v46 = vsub.f32 -inf, %v11084_v26 }
 0x549   : > { %v3569_v52 = vsel %vm2676_vm3, %v11281_v62, -inf  ;;  %v8835_v11 = vpop.f32.mrf.mxu1  ;;  %2776 = vadd.xlane.f32.xlu1 %v2775_v34  ;;  %9464 = vpow2.f32 %v2709_v7 }
 0x54a   : > { %3570 = vmax.xlane.f32.xlu0 %v3569_v52  ;;  %v8830_v35 = vpop.f32.mrf.mxu0  ;;  %v11288_v22 = vadd.f32 %v11253_v4, %v3540_v33  ;;  %9466 = vpow2.f32 %v2711_v12 }
 0x54b   : > { %v3486_v51 = vpop.f32.mrf.mxu1 }
 0x54c   : > { %v3528_v24 = vpop.f32.mrf.mxu0  ;;  %v3572_v61 = vsel %vm2676_vm3, %v11288_v22, -inf }
 0x54d   : > { %v3541_v59 = vmul.f32 0.35355338, %v3528_v24  ;;  %v8836_v63 = vpop.f32.mrf.mxu1  ;;  %v2715_v24 = vmul.f32 1.442695, %v2704_v46 }
 0x54e   : > { %v8841_v19 = vpop.f32.mrf.mxu0  ;;  %3573 = vmax.xlane.f32.xlu0 %v3572_v61 }
 0x54f   : > { %v11293_v6 = vadd.f32 %v11253_v4, %v3541_v59  ;;  %v2766_v4 = vsel %vm2676_vm3, %v11124_v17, 0.0  ;;  %v2703_v17 = vsub.f32 -inf, %v11080_v27  ;;  %v2705_v19 = vsub.f32 -inf, %v11086_v32 }
 0x550   : > { %v3531_v55 = vpop.f32.mrf.mxu0 }
 0x551   : > { %v3575_v14 = vsel %vm2676_vm3, %v11293_v6, -inf  ;;  %v2713_v53 = vmul.f32 1.442695, %v2703_v17 }
 0x552   : > { %v8842_v20 = vpop.f32.mrf.mxu0  ;;  %3576 = vmax.xlane.f32.xlu0 %v3575_v14 }
 0x553   : > { %9468 = vpow2.f32 %v2713_v53  ;;  %v2706_v20 = vsub.f32 -inf, %v11098_v49 }
 0x555   : > { %v2719_v29 = vmul.f32 1.442695, %v2706_v20  ;;  %v3835_v20 = vrot.slane %v11066_v16, 2 }
 0x556   : > { %2758 = vadd.xlane.f32.xlu0 %v2757_v28  ;;  %v2717_v28 = vmul.f32 1.442695, %v2705_v19 }
 0x55a   : > { %2761 = vadd.xlane.f32.xlu0 %v2760_v36 }
 0x55e   : > { %2764 = vadd.xlane.f32.xlu0 %v2763_v39 }
 0x562   : > { %2767 = vadd.xlane.f32.xlu0 %v2766_v4  ;;  %v2707_v4 = vsub.f32 -inf, %v11096_v47 }
 0x566   : > { %2770 = vadd.xlane.f32.xlu0 %v2769_v40  ;;  %v9465_v40 = vpop.eup %9464 }
 0x56a   : > { %2773 = vadd.xlane.f32.xlu0 %v2772_v2 }
 0x56e   : > { %2779 = vadd.xlane.f32.xlu0 %v2778_v8 }
 0x5be   : > { %v3556_v5 = vpop.xlane.xlu0 %3555 }
 0x5bf   : > { %v3578_v25 = vmax.f32 %v10989_v56, %v3556_v5  ;;  %v2721_v5 = vmul.f32 1.442695, %v2707_v4 }
 0x5c1   : > { %v3586_v52 = vsub.f32 %v10989_v56, %v3578_v25  ;;  %v3610_v54 = vsub.f32 %v11256_v37, %v3578_v25  ;;  %v11332_v25 = vmul.f32 0.0, %v9465_v40 }
 0x5c3   : > { %v3559_v33 = vpop.xlane.xlu0 %3558  ;;  %v3594_v34 = vmul.f32 1.442695, %v3586_v52  ;;  %v3618_v35 = vmul.f32 1.442695, %v3610_v54 }
 0x5c4   : > { %v3579_v11 = vmax.f32 %v10997_v15, %v3559_v33  ;;  %v3166_v33 = vadd.f32 %v11237_v44, %v11332_v25 }
 0x5c5   : > { %9470 = vpow2.f32 %v3594_v34 }
 0x5c6   : > { %v3587_v51 = vsub.f32 %v10997_v15, %v3579_v11  ;;  %v3611_v59 = vsub.f32 %v11261_v42, %v3579_v11  ;;  %9472 = vpow2.f32 %v3618_v35  ;;  %v3787_v35 = vrot.slane %v11052_v13, 2 }
 0x5c7   : > { %v3562_v61 = vpop.xlane.xlu0 %3561  ;;  %9474 = vpow2.f32 %v2715_v24 }
 0x5c8   : > { %v3596_v63 = vmul.f32 1.442695, %v3587_v51  ;;  %v3620_v56 = vmul.f32 1.442695, %v3611_v59  ;;  %v3580_v37 = vmax.f32 %v11080_v27, %v3562_v61 }
 0x5ca   : > { %9476 = vpow2.f32 %v3596_v63  ;;  %v3588_v55 = vsub.f32 %v11080_v27, %v3580_v37  ;;  %v3612_v14 = vsub.f32 %v11266_v10, %v3580_v37  ;;  %v9467_v27 = vpop.eup %9466  ;;  %v2708_v10 = vsub.f32 -inf, %v11107_v58 }
 0x5cb   : > { %9478 = vpow2.f32 %v3620_v56  ;;  %v3565_v15 = vpop.xlane.xlu0 %3564  ;;  %v9469_v46 = vpop.eup %9468  ;;  %v11334_v53 = vmul.f32 0.0, %v9467_v27 }
 0x5cc   : > { %v3598_v42 = vmul.f32 1.442695, %v3588_v55  ;;  %v3622_v36 = vmul.f32 1.442695, %v3612_v14  ;;  %v3581_v39 = vmax.f32 %v11084_v26, %v3565_v15  ;;  %v2723_v54 = vmul.f32 1.442695, %v2708_v10 }
 0x5cd   : > { %v3167_v44 = vadd.f32 %v11239_v21, %v11334_v53  ;;  %v11354_v37 = vmul.f32 0.0, %v9469_v46  ;;  %v3792_v55 = vsel %vm2800_vm4, %v3787_v35, 0 }
 0x5ce   : > { %9480 = vpow2.f32 %v3598_v42  ;;  %v3589_v2 = vsub.f32 %v11084_v26, %v3581_v39  ;;  %v3613_v8 = vsub.f32 %v11271_v3, %v3581_v39  ;;  %v3568_v38 = vpop.xlane.xlu1 %3567 }
 0x5cf   : > { %9482 = vpow2.f32 %v3622_v36  ;;  %v3582_v12 = vmax.f32 %v11086_v32, %v3568_v38  ;;  %v3168_v16 = vadd.f32 %v11241_v57, %v11354_v37 }
 0x5d0   : > { %9484 = vpow2.f32 %v2717_v28  ;;  %v3600_v7 = vmul.f32 1.442695, %v3589_v2  ;;  %v3624_v17 = vmul.f32 1.442695, %v3613_v8  ;;  %v3840_v8 = vsel %vm2800_vm4, %v3835_v20, 0 }
 0x5d1   : > { %v3590_v26 = vsub.f32 %v11086_v32, %v3582_v12  ;;  %v3614_v3 = vsub.f32 %v11276_v31, %v3582_v12 }
 0x5d2   : > { %9486 = vpow2.f32 %v3600_v7  ;;  %v11338_v52 = vpop.eup %9470 }
 0x5d3   : > { %9488 = vpow2.f32 %v3624_v17  ;;  %v3571_v34 = vpop.xlane.xlu0 %3570  ;;  %v9473_v11 = vpop.eup %9472  ;;  %v3602_v24 = vmul.f32 1.442695, %v3590_v26  ;;  %v3626_v51 = vmul.f32 1.442695, %v3614_v3  ;;  %v11346_v61 = vmul.f32 %v11338_v52, %v3166_v33 }
 0x5d4   : > { %9490 = vpow2.f32 %v2719_v29  ;;  %v3583_v59 = vmax.f32 %v11098_v49, %v3571_v34  ;;  %v3642_v32 = vsel %vm2676_vm3, %v9473_v11, 0.0  ;;  %v3682_v31 = vpack.c.bf16 %v9473_v11, %v9473_v11  ;;  %v9475_v19 = vpop.eup %9474 }
 0x5d5   : > { %9492 = vpow2.f32 %v2721_v5  ;;  %3643 = vadd.xlane.f32.xlu1 %v3642_v32  ;;  %v11373_v2 = vmul.f32 0.0, %v9475_v19  ;;  %v3883_v29 = vrot.slane %v11113_v23, 2 }
 0x5d6   : > { %9494 = vpow2.f32 %v3602_v24  ;;  %v3591_v13 = vsub.f32 %v11098_v49, %v3583_v59  ;;  %v3615_v63 = vsub.f32 %v11281_v62, %v3583_v59  ;;  %8846 = vmatmul.mubr.msk.bf16.vlgmr.msra.gmra.mxu1 %vm2676_vm3, %v3682_v31  ;;  %v3979_v31 = vrot.slane %v11136_v30, 2 }
 0x5d7   : > { %v11352_v56 = vpop.eup %9476  ;;  %9496 = vpow2.f32 %v3626_v51  ;;  %v3574_v14 = vpop.xlane.xlu0 %3573  ;;  %8856 = vmatpush3.bf16.msra.mxu1 %v3792_v55  ;;  %8857 = vmatprep.mubr.msk.bf16.mxu1 %vm10216_vm0, %v10215_v0  ;;  %v3169_v23 = vadd.f32 %v11243_v18, %v11373_v2  ;;  %v3888_v3 = vsel %vm2800_vm4, %v3883_v29, 0 }
 0x5d8   : > { %v9479_v15 = vpop.eup %9478  ;;  %v3604_v21 = vmul.f32 1.442695, %v3591_v13  ;;  %v3628_v28 = vmul.f32 1.442695, %v3615_v63  ;;  %v3584_v49 = vmax.f32 %v11096_v47, %v3574_v14  ;;  %v11363_v62 = vmul.f32 %v11352_v56, %v3167_v44  ;;  %8867 = vmatprep.subr.bf16.mxu1 %v10215_v0 }
 0x5d9   : > { %9498 = vpow2.f32 %v2723_v54  ;;  %v3645_v42 = vsel %vm2676_vm3, %v9479_v15, 0.0  ;;  %v3683_v36 = vpack.c.bf16 %v9479_v15, %v9479_v15  ;;  %v3931_v54 = vrot.slane %v11122_v9, 2 }
 0x5da   : > { %9500 = vpow2.f32 %v3604_v21  ;;  %v3592_v39 = vsub.f32 %v11096_v47, %v3584_v49  ;;  %v3616_v4 = vsub.f32 %v11288_v22, %v3584_v49  ;;  %3646 = vadd.xlane.f32.xlu0 %v3645_v42  ;;  %v3984_v20 = vsel %vm2800_vm4, %v3979_v31, 0 }
 0x5db   : > { %v11371_v40 = vpop.eup %9480  ;;  %9502 = vpow2.f32 %v3628_v28  ;;  %8852 = vmatmul.mubr.msk.bf16.vlgmr.msra.gmra.mxu0 %vm2676_vm3, %v3683_v36  ;;  %v3577_v27 = vpop.xlane.xlu0 %3576  ;;  %v3936_v32 = vsel %vm2800_vm4, %v3931_v54, 0  ;;  %v4027_v15 = vrot.slane %v11150_v45, 2 }
 0x5dc   : > { %v9483_v10 = vpop.eup %9482  ;;  %v3606_v57 = vmul.f32 1.442695, %v3592_v39  ;;  %v3630_v38 = vmul.f32 1.442695, %v3616_v4  ;;  %8862 = vmatpush3.bf16.msra.mxu0 %v3840_v8  ;;  %v3585_v47 = vmax.f32 %v11107_v58, %v3577_v27  ;;  %8863 = vmatprep.mubr.msk.bf16.mxu0 %vm10216_vm0, %v10215_v0  ;;  %v11382_v22 = vmul.f32 %v11371_v40, %v3168_v16 }
 0x5dd   : > { %v9485_v7 = vpop.eup %9484  ;;  %v3648_v17 = vsel %vm2676_vm3, %v9483_v10, 0.0  ;;  %v3684_v12 = vpack.c.bf16 %v9483_v10, %v9483_v10  ;;  %8873 = vmatprep.subr.bf16.mxu0 %v10215_v0  ;;  %v4032_v16 = vsel %vm2800_vm4, %v4027_v15, 0 }
 0x5de   : > { %9504 = vpow2.f32 %v3606_v57  ;;  %v3593_v5 = vsub.f32 %v11107_v58, %v3585_v47  ;;  %v3617_v46 = vsub.f32 %v11293_v6, %v3585_v47  ;;  %3649 = vadd.xlane.f32.xlu1 %v3648_v17  ;;  %v11395_v34 = vmul.f32 0.0, %v9485_v7 }
 0x5df   : > { %v11390_v26 = vpop.eup %9486  ;;  %9506 = vpow2.f32 %v3630_v38  ;;  %8858 = vmatmul.mubr.msk.bf16.vlgmr.msra.gmra.mxu1 %vm2676_vm3, %v3684_v12 }
 0x5e0   : > { %v9489_v33 = vpop.eup %9488  ;;  %v3608_v35 = vmul.f32 1.442695, %v3593_v5  ;;  %v3632_v18 = vmul.f32 1.442695, %v3617_v46  ;;  %8868 = vmatpush3.bf16.msra.mxu1 %v3888_v3  ;;  %8869 = vmatprep.mubr.msk.bf16.mxu1 %vm10216_vm0, %v10215_v0  ;;  %v11400_v58 = vmul.f32 %v11390_v26, %v3169_v23  ;;  %v3170_v9 = vadd.f32 %v11245_v43, %v11395_v34  ;;  %v2777_v3 = vpop.xlane.xlu1 %2776 }
 0x5e1   : > { %v9491_v6 = vpop.eup %9490  ;;  %v3651_v11 = vsel %vm2676_vm3, %v9489_v33, 0.0  ;;  %v3685_v24 = vpack.c.bf16 %v9489_v33, %v9489_v33  ;;  %8879 = vmatprep.subr.bf16.mxu1 %v10215_v0 }
 0x5e2   : > { %v9493_v51 = vpop.eup %9492  ;;  %9508 = vpow2.f32 %v3608_v35  ;;  %3652 = vadd.xlane.f32.xlu0 %v3651_v11  ;;  %v11411_v44 = vmul.f32 0.0, %v9491_v6 }
 0x5e3   : > { %v11406_v59 = vpop.eup %9494  ;;  %9510 = vpow2.f32 %v3632_v18  ;;  %8864 = vmatmul.mubr.msk.bf16.vlgmr.msra.gmra.mxu0 %vm2676_vm3, %v3685_v24  ;;  %v11427_v28 = vmul.f32 0.0, %v9493_v51 }
 0x5e4   : > { %v9497_v19 = vpop.eup %9496  ;;  %8874 = vmatpush3.bf16.msra.mxu0 %v3936_v32  ;;  %8875 = vmatprep.mubr.msk.bf16.mxu0 %vm10216_vm0, %v10215_v0  ;;  %v11416_v43 = vmul.f32 %v11406_v59, %v3170_v9  ;;  %v3171_v14 = vadd.f32 %v11247_v50, %v11411_v44 }
 0x5e5   : > { %v3654_v13 = vsel %vm2676_vm3, %v9497_v19, 0.0  ;;  %v3686_v63 = vpack.c.bf16 %v9497_v19, %v9497_v19  ;;  %8885 = vmatprep.subr.bf16.mxu0 %v10215_v0  ;;  %v3172_v36 = vadd.f32 %v11249_v60, %v11427_v28 }
 0x5e6   : > { %v9499_v55 = vpop.eup %9498  ;;  %3655 = vadd.xlane.f32.xlu1 %v3654_v13 }
 0x5e7   : > { %v11422_v30 = vpop.eup %9500  ;;  %8870 = vmatmul.mubr.msk.bf16.vlgmr.msra.gmra.mxu1 %vm2676_vm3, %v3686_v63  ;;  %v11442_v4 = vmul.f32 0.0, %v9499_v55 }
 0x5e8   : > { %v9503_v21 = vpop.eup %9502  ;;  %8880 = vmatpush3.bf16.msra.mxu1 %v3984_v20  ;;  %8881 = vmatprep.mubr.msk.bf16.mxu1 %vm10216_vm0, %v10215_v0  ;;  %v11432_v49 = vmul.f32 %v11422_v30, %v3171_v14 }
 0x5e9   : > { %v3657_v50 = vsel %vm2676_vm3, %v9503_v21, 0.0  ;;  %v3687_v42 = vpack.c.bf16 %v9503_v21, %v9503_v21  ;;  %8891 = vmatprep.subr.bf16.mxu1 %v10215_v0  ;;  %v3173_v29 = vadd.f32 %v11251_v1, %v11442_v4  ;;  %v2759_v1 = vpop.xlane.xlu0 %2758 }
 0x5ea   : > { %3658 = vadd.xlane.f32.xlu0 %v3657_v50  ;;  %v2781_v54 = vadd.f32 %v2759_v1, %v11332_v25 }
 0x5eb   : > { %v11438_v45 = vpop.eup %9504  ;;  %8876 = vmatmul.mubr.msk.bf16.vlgmr.msra.gmra.mxu0 %vm2676_vm3, %v3687_v42 }
 0x5ec   : > { %v9507_v39 = vpop.eup %9506  ;;  %8886 = vmatpush3.bf16.msra.mxu0 %v4032_v16  ;;  %8887 = vmatprep.mubr.msk.bf16.mxu0 %vm10216_vm0, %v10215_v0  ;;  %v11447_v8 = vmul.f32 %v11438_v45, %v3172_v36  ;;  %v3634_v6 = vmul.f32 %v11338_v52, %v2781_v54  ;;  %v2787_v16 = vadd.f32 %v2777_v3, %v11427_v28 }
 0x5ed   : > { %v3660_v27 = vsel %vm2676_vm3, %v9507_v39, 0.0  ;;  %v3688_v60 = vpack.c.bf16 %v9507_v39, %v9507_v39  ;;  %8899 = vmatprep.subr.bf16.mxu0 %v10215_v0  ;;  %v2762_v17 = vpop.xlane.xlu0 %2761 }
 0x5ee   : > { %3661 = vadd.xlane.f32.xlu1 %v3660_v27  ;;  %v2782_v18 = vadd.f32 %v2762_v17, %v11334_v53 }
 0x5ef   : > { %v11453_v10 = vpop.eup %9508  ;;  %8882 = vmatmul.mubr.msk.bf16.vlgmr.msra.gmra.mxu1 %vm2676_vm3, %v3688_v60 }
 0x5f0   : > { %v9511_v57 = vpop.eup %9510  ;;  %v11457_v38 = vmul.f32 %v11453_v10, %v3173_v29  ;;  %8895 = vmatprep.mubr.msk.bf16.mxu1 %vm10216_vm0, %v10215_v0  ;;  %v3635_v9 = vmul.f32 %v11352_v56, %v2782_v18 }
 0x5f1   : > { %v3663_v47 = vsel %vm2676_vm3, %v9511_v57, 0.0  ;;  %v3689_v7 = vpack.c.bf16 %v9511_v57, %v9511_v57  ;;  %v2765_v12 = vpop.xlane.xlu0 %2764  ;;  %v3640_v57 = vmul.f32 %v11438_v45, %v2787_v16 }
 0x5f2   : > { %3664 = vadd.xlane.f32.xlu0 %v3663_v47  ;;  %v2783_v51 = vadd.f32 %v2765_v12, %v11354_v37 }
 0x5f3   : > { %8888 = vmatmul.mubr.msk.bf16.vlgmr.msra.gmra.mxu0 %vm2676_vm3, %v3689_v7 }
 0x5f4   : > { %8903 = vmatprep.mubr.msk.bf16.mxu0 %vm10216_vm0, %v10215_v0  ;;  %v3636_v13 = vmul.f32 %v11371_v40, %v2783_v51 }
 0x5f5   : > { %v2768_v23 = vpop.xlane.xlu0 %2767 }
 0x5f6   : > { %v2784_v19 = vadd.f32 %v2768_v23, %v11373_v2 }
 0x5f8   : > { %v3637_v52 = vmul.f32 %v11390_v26, %v2784_v19 }
 0x5f9   : > { %v2771_v5 = vpop.xlane.xlu0 %2770 }
 0x5fa   : > { %v2785_v53 = vadd.f32 %v2771_v5, %v11395_v34 }
 0x5fc   : > { %v3638_v56 = vmul.f32 %v11406_v59, %v2785_v53 }
 0x5fd   : > { %v2774_v46 = vpop.xlane.xlu0 %2773 }
 0x5fe   : > { %v2786_v37 = vadd.f32 %v2774_v46, %v11411_v44 }
 0x600   : > { %v3639_v42 = vmul.f32 %v11422_v30, %v2786_v37 }
 0x601   : > { %v2780_v33 = vpop.xlane.xlu0 %2779 }
 0x65e   : > { %v3644_v35 = vpop.xlane.xlu1 %3643 }
 0x65f   : > { %v3666_v11 = vadd.f32 %v3644_v35, %v3634_v6 }
 0x661   : > { %9512 = vrcp.f32 %v3666_v11 }
 0x663   : > { %v3647_v24 = vpop.xlane.xlu0 %3646 }
 0x664   : > { %v3667_v32 = vadd.f32 %v3647_v24, %v3635_v9 }
 0x666   : > { %9514 = vrcp.f32 %v3667_v32 }
 0x667   : > { %v3650_v31 = vpop.xlane.xlu1 %3649 }
 0x668   : > { %v3668_v25 = vadd.f32 %v3650_v31, %v3636_v13 }
 0x66a   : > { %9516 = vrcp.f32 %v3668_v25 }
 0x66b   : > { %v3653_v63 = vpop.xlane.xlu0 %3652 }
 0x66c   : > { %v3669_v55 = vadd.f32 %v3653_v63, %v3637_v52 }
 0x66e   : > { %9518 = vrcp.f32 %v3669_v55  ;;  %v9513_v40 = vpop.eup %9512 }
 0x66f   : > { %v3656_v14 = vpop.xlane.xlu1 %3655 }
 0x670   : > { %v3670_v15 = vadd.f32 %v3656_v14, %v3638_v56 }
 0x672   : > { %9520 = vrcp.f32 %v3670_v15 }
 0x673   : > { %v3659_v21 = vpop.xlane.xlu0 %3658  ;;  %v9515_v27 = vpop.eup %9514 }
 0x674   : > { %v3671_v44 = vadd.f32 %v3659_v21, %v3639_v42 }
 0x676   : > { %9522 = vrcp.f32 %v3671_v44 }
 0x677   : > { %v3662_v39 = vpop.xlane.xlu1 %3661  ;;  %v9517_v12 = vpop.eup %9516 }
 0x678   : > { %v3672_v1 = vadd.f32 %v3662_v39, %v3640_v57 }
 0x67a   : > { %9524 = vrcp.f32 %v3672_v1 }
 0x67b   : > { %v3665_v17 = vpop.xlane.xlu0 %3664 }
 0x696   : > { %v3732_v20 = vpop.f32.mrf.mxu1 }
 0x697   : > { %v4074_v2 = vadd.f32 %v3732_v20, %v11346_v61  ;;  %v2788_v61 = vadd.f32 %v2780_v33, %v11442_v4  ;;  %v9519_v33 = vpop.eup %9518 }
 0x698   : > { %v8847_v50 = vpop.f32.mrf.mxu1  ;;  %v9521_v51 = vpop.eup %9520 }
 0x699   : > { %v11478_v34 = vmul.f32 %v9513_v40, %v4074_v2  ;;  %v9523_v63 = vpop.eup %9522 }
 0x69a   : > { %v3735_v26 = vpop.f32.mrf.mxu1  ;;  %v9525_v15 = vpop.eup %9524 }
 0x69b   : > { %v3780_v36 = vpop.f32.mrf.mxu0 }
 0x69c   : > { %v4075_v59 = vadd.f32 %v3780_v36, %v11363_v62  ;;  %v8848_v60 = vpop.f32.mrf.mxu1  ;;  %v3641_v62 = vmul.f32 %v11453_v10, %v2788_v61 }
 0x69d   : > { %v8853_v29 = vpop.f32.mrf.mxu0 }
 0x69e   : > { %v11484_v47 = vmul.f32 %v9515_v27, %v4075_v59  ;;  %v3673_v4 = vadd.f32 %v3665_v17, %v3641_v62 }
 0x69f   : > { %v3783_v30 = vpop.f32.mrf.mxu0  ;;  %v3828_v7 = vpop.f32.mrf.mxu1 }
 0x6a0   : > { %v4076_v28 = vadd.f32 %v3828_v7, %v11382_v22  ;;  %9526 = vrcp.f32 %v3673_v4 }
 0x6a1   : > { %v8854_v23 = vpop.f32.mrf.mxu0  ;;  %v8859_v5 = vpop.f32.mrf.mxu1 }
 0x6a2   : > { %v4092_v46 = vmul.f32 %v9517_v12, %v4076_v28 }
 0x6a3   : > { %v3831_v3 = vpop.f32.mrf.mxu1  ;;  %v3876_v54 = vpop.f32.mrf.mxu0 }
 0x6a4   : > { %v4077_v45 = vadd.f32 %v3876_v54, %v11400_v58 }
 0x6a5   : > { %v8860_v35 = vpop.f32.mrf.mxu1  ;;  %v8865_v18 = vpop.f32.mrf.mxu0 }
 0x6a6   : > { %v4093_v6 = vmul.f32 %v9519_v33, %v4077_v45 }
 0x6a7   : > { %v3879_v11 = vpop.f32.mrf.mxu0  ;;  %v3924_v24 = vpop.f32.mrf.mxu1 }
 0x6a8   : > { %v4078_v22 = vadd.f32 %v3924_v24, %v11416_v43 }
 0x6a9   : > { %v8866_v9 = vpop.f32.mrf.mxu0  ;;  %v8871_v32 = vpop.f32.mrf.mxu1 }
 0x6aa   : > { %v4094_v10 = vmul.f32 %v9521_v51, %v4078_v22 }
 0x6ab   : > { %v3927_v31 = vpop.f32.mrf.mxu1  ;;  %v3972_v19 = vpop.f32.mrf.mxu0 }
 0x6ac   : > { %v4098_v13 = vcombine.low %v11478_v34, %v4094_v10  ;;  %v4099_v25 = vcombine.high %v11478_v34, %v4094_v10  ;;  %v4079_v58 = vadd.f32 %v3972_v19, %v11432_v49 }
 0x6ad   : > { %v8872_v53 = vpop.f32.mrf.mxu1  ;;  %v8877_v52 = vpop.f32.mrf.mxu0 }
 0x6ae   : > { %v4095_v55 = vmul.f32 %v9523_v63, %v4079_v58  ;;  %v9527_v36 = vpop.eup %9526  ;;  %v4106_v16 = vrot.slane %v4098_v13, %v10725_v41  ;;  %v4113_v59 = vrot.slane %v4099_v25, %v10725_v41 }
 0x6af   : > { %v3975_v14 = vpop.f32.mrf.mxu0  ;;  %v4020_v37 = vpop.f32.mrf.mxu1 }
 0x6b0   : > { %v4166_v43 = vcombine.low %v11484_v47, %v4095_v55  ;;  %v4167_v56 = vcombine.high %v11484_v47, %v4095_v55  ;;  %v4080_v20 = vadd.f32 %v4020_v37, %v11447_v8 }
 0x6b1   : > { %v8878_v2 = vpop.f32.mrf.mxu0  ;;  %v8883_v40 = vpop.f32.mrf.mxu1 }
 0x6b2   : > { %v4096_v21 = vmul.f32 %v9525_v15, %v4080_v20  ;;  %v4174_v5 = vrot.slane %v4166_v43, %v10725_v41  ;;  %v4181_v62 = vrot.slane %v4167_v56, %v10725_v41  ;;  %v9432_v15 = vld [vmem:[%s12526_s14 + $0x8] sm:$0xff]  }
 0x6b3   : > { %v4023_v50 = vpop.f32.mrf.mxu1  ;;  %v4068_v42 = vpop.f32.mrf.mxu0  ;;  %8892 = vmatpush3.bf16.msra.mxu1 %v9432_v15 }
 0x6b4   : > { %v4114_v34 = vcombine.low %v4092_v46, %v4096_v21  ;;  %v4115_v49 = vcombine.high %v4092_v46, %v4096_v21  ;;  %v4081_v26 = vadd.f32 %v4068_v42, %v11457_v38  ;;  %8893 = vmatprep.subr.bf16.mxu1 %v10215_v0 }
 0x6b5   : > { %v8884_v44 = vpop.f32.mrf.mxu1  ;;  %v8889_v39 = vpop.f32.mrf.mxu0 }
 0x6b6   : > { %v4122_v27 = vrot.slane %v4114_v34, %v10725_v41  ;;  %v4129_v8 = vrot.slane %v4115_v49, %v10725_v41  ;;  %v4097_v60 = vmul.f32 %v9527_v36, %v4081_v26 }
 0x6b7   : > { %v4071_v29 = vpop.f32.mrf.mxu0 }
 0x6b8   : > { %v4130_v61 = vcombine.low %v4106_v16, %v4122_v27  ;;  %v4131_v57 = vcombine.high %v4106_v16, %v4122_v27  ;;  %v4146_v47 = vcombine.low %v4113_v59, %v4129_v8  ;;  %v4147_v30 = vcombine.high %v4113_v59, %v4129_v8  ;;  %v9433_v29 = vld [vmem:[%s12526_s14] sm:$0xff]  }
 0x6b9   : > { %v4182_v7 = vcombine.low %v4093_v6, %v4097_v60  ;;  %v4183_v1 = vcombine.high %v4093_v6, %v4097_v60  ;;  %v8890_v38 = vpop.f32.mrf.mxu0  ;;  %8894 = vmatpush3.bf16.msra.mxu1 %v9433_v29 }
 0x6ba   : > { %v4138_v17 = vrot.slane %v4130_v61, %v10727_v48  ;;  %v4145_v28 = vrot.slane %v4131_v57, %v10727_v48  ;;  %v4154_v12 = vrot.slane %v4146_v47, %v10727_v48  ;;  %v4161_v23 = vrot.slane %v4147_v30, %v10727_v48  ;;  %8907 = vmatprep.subr.bf16.mxu1 %v10215_v0 }
 0x6bb   : > { %v4190_v46 = vrot.slane %v4182_v7, %v10725_v41  ;;  %v4197_v3 = vrot.slane %v4183_v1, %v10725_v41 }
 0x6bc   : > { %v4234_v54 = vcombine.low %v4138_v17, %v4145_v28  ;;  %v8420_v4 = vcombine.high %v4138_v17, %v4145_v28  ;;  %v4250_v45 = vcombine.low %v4154_v12, %v4161_v23  ;;  %v8421_v33 = vcombine.high %v4154_v12, %v4161_v23 }
 0x6bd   : > { %v4198_v35 = vcombine.low %v4174_v5, %v4190_v46  ;;  %v4199_v18 = vcombine.high %v4174_v5, %v4190_v46  ;;  %v4214_v6 = vcombine.low %v4181_v62, %v4197_v3  ;;  %v4215_v11 = vcombine.high %v4181_v62, %v4197_v3 }
 0x6be   : > { %v4241_v24 = vrot.slane %v4234_v54, %v10725_v41  ;;  %v4249_v22 = vrot.slane %v8420_v4, %v10725_v41  ;;  %v4257_v51 = vrot.slane %v4250_v45, %v10725_v41  ;;  %v4265_v9 = vrot.slane %v8421_v33, %v10725_v41 }
 0x6bf   : > { %v4206_v32 = vrot.slane %v4198_v35, %v10727_v48  ;;  %v4213_v10 = vrot.slane %v4199_v18, %v10727_v48  ;;  %v4222_v31 = vrot.slane %v4214_v6, %v10727_v48  ;;  %v4229_v19 = vrot.slane %v4215_v11, %v10727_v48 }
 0x6c0   : > { %v4267_v13 = vcombine.high %v4241_v24, %v4249_v22  ;;  %v4283_v25 = vcombine.high %v4257_v51, %v4265_v9  ;;  %v4266_v58 = vcombine.low %v4241_v24, %v4249_v22  ;;  %v4282_v63 = vcombine.low %v4257_v51, %v4265_v9  ;;  %v8424_v24 = vld [vmem:[#allocation16] ss:$0 sm:$0xff] }
 0x6c1   : > { %v4302_v53 = vcombine.low %v4206_v32, %v4213_v10  ;;  %v8422_v52 = vcombine.high %v4206_v32, %v4213_v10  ;;  %v4318_v55 = vcombine.low %v4222_v31, %v4229_v19  ;;  %v8423_v14 = vcombine.high %v4222_v31, %v4229_v19  ;;  %v9620_v32 = vld [vmem:[%s10666_s28] sm:$0xff] }
 0x6c2   : > { %v4281_v37 = vrot.slane %v4267_v13, %v10727_v48  ;;  %v4297_v43 = vrot.slane %v4283_v25, %v10727_v48  ;;  %v4274_v56 = vrot.slane %v4266_v58, %v10727_v48  ;;  %v4290_v20 = vrot.slane %v4282_v63, %v10727_v48  ;;  %v9621_v58 = vld [vmem:[%s10666_s28 + $0x8] sm:$0xff]  ;;  %s12528_s28 = sld [smem:[#allocation58_spill]] }
 0x6c3   : > { %v4309_v2 = vrot.slane %v4302_v53, %v10725_v41  ;;  %v4317_v40 = vrot.slane %v8422_v52, %v10725_v41  ;;  %v4325_v21 = vrot.slane %v4318_v55, %v10725_v41  ;;  %v4333_v50 = vrot.slane %v8423_v14, %v10725_v41  ;;  %v9434_v52 = vld [vmem:[#allocation20 + $0x8] sm:$0xff]   ;;  %v9435_v55 = vld [vmem:[#allocation20] sm:$0xff]  }
 0x6c4   : > { %v4300_v42 = vcombine.low %v4281_v37, %v4297_v43  ;;  %v4298_v34 = vcombine.low %v4274_v56, %v4290_v20  ;;  %v4299_v49 = vcombine.high %v4274_v56, %v4290_v20  ;;  %v4301_v26 = vcombine.high %v4281_v37, %v4297_v43  ;;  %v1190_v14 = vld [vmem:[%s10619_s9] sm:$0xff]  ;;  %v1191_v37 = vld [vmem:[%s10619_s9 + $0x8] sm:$0xff]  ;;  %s12527_s9 = sld [smem:[#allocation57_spill]] }
 0x6c5   : > { %v4335_v36 = vcombine.high %v4309_v2, %v4317_v40  ;;  %v4351_v16 = vcombine.high %v4325_v21, %v4333_v50  ;;  %v4334_v44 = vcombine.low %v4309_v2, %v4317_v40  ;;  %v4350_v39 = vcombine.low %v4325_v21, %v4333_v50 }
 0x6c6   : > { %v11552_v43 = vpack.c.bf16 %v1191_v37, %v1190_v14 }
 0x6c7   : > { %v4349_v59 = vrot.slane %v4335_v36, %v10727_v48  ;;  %v4365_v27 = vrot.slane %v4351_v16, %v10727_v48  ;;  %v4342_v8 = vrot.slane %v4334_v44, %v10727_v48  ;;  %v4358_v60 = vrot.slane %v4350_v39, %v10727_v48  ;;  %v9437_v36 = vld [vmem:[#allocation17] sm:$0xff]  }
 0x6c8   : > { %v8434_v16 = vld [vmem:[#allocation22] ss:$0 sm:$0xff] }
 0x6c9   : > { %v4368_v61 = vcombine.low %v4349_v59, %v4365_v27  ;;  %v4367_v57 = vcombine.high %v4342_v8, %v4358_v60  ;;  %v4366_v47 = vcombine.low %v4342_v8, %v4358_v60  ;;  %v4369_v30 = vcombine.high %v4349_v59, %v4365_v27 }
 0x6cb   : > { %v9401_v7 = vpack.i.bf16 %v4368_v61, %v4300_v42  ;;  %v9396_v1 = vpack.i.bf16 %v4367_v57, %v4299_v49  ;;  %v9406_v38 = vpack.i.bf16 %v4369_v30, %v4301_v26  ;;  %v9436_v26 = vld [vmem:[#allocation17 + $0x8] sm:$0xff]  }
 0x6cc   : > { %8900 = vmatpush3.bf16.msra.mxu0 %v9436_v26 }
 0x6cd   : > { %9402 = vrot.lane.b32.xlu0 %v9401_v7, %s10223_s6  ;;  %9397 = vrot.lane.b32.xlu1 %v9396_v1, %s12462_s12 }
 0x6ce   : > { %8901 = vmatprep.subr.bf16.mxu0 %v10215_v0 }
 0x6d0   : > { %8902 = vmatpush3.bf16.msra.mxu0 %v9437_v36 }
 0x6d1   : > { %9407 = vrot.lane.b32.xlu1 %v9406_v38, %s10225_s10  ;;  %8915 = vmatprep.subr.bf16.mxu0 %v10215_v0 }
 0x73f   : > { %v9403_v17 = vpop.permute.xlu0 %9402  ;;  %v9398_v28 = vpop.permute.xlu1 %9397 }
 0x740   : > { %v9400_v12 = vunpack.i.h.bf16 %v9398_v28  ;;  %v9399_v23 = vunpack.i.l.bf16 %v9398_v28  ;;  %v9405_v5 = vunpack.i.h.bf16 %v9403_v17  ;;  %v9404_v62 = vunpack.i.l.bf16 %v9403_v17  ;;  %v8428_v17 = vld [vmem:[%s12527_s9] ss:$0 sm:$0xff]  ;;  %s12535_s9 = sld [smem:[#allocation61_spill]] }
 0x742   : > { %v4394_v46 = vsel %vm2291_vm2, %v4298_v34, %v9399_v23  ;;  %v4395_v3 = vsel %vm2291_vm2, %v4366_v47, %v9400_v12 }
 0x743   : > { %v9408_v54 = vpop.permute.xlu1 %9407  ;;  %v4397_v33 = vsel %vm4396_vm5, %v4394_v46, %v9404_v62  ;;  %v4398_v35 = vsel %vm4396_vm5, %v4395_v3, %v9405_v5  ;;  %v8429_v5 = vld [vmem:[%s12528_s28] ss:$0 sm:$0xff]  ;;  %s8514_s28 = sshll.u32 %s10409_s26, 8  ;;  %s10226_s26 = smov [#allocation29]  }
 0x744   : > { %v9410_v4 = vunpack.i.h.bf16 %v9408_v54  ;;  %v9409_v45 = vunpack.i.l.bf16 %v9408_v54  ;;  %v9438_v54 = vld [vmem:[#allocation23 + $0x8] sm:$0xff]  }
 0x746   : > { %v4400_v18 = vsel %vm4399_vm6, %v4397_v33, %v9409_v45  ;;  %v4401_v6 = vsel %vm4399_vm6, %v4398_v35, %v9410_v4  ;;  %v9439_v45 = vld [vmem:[#allocation23] sm:$0xff]  }
 0x747   : > { %v4402_v11 = vpack.c.bf16 %v4401_v6, %v4400_v18 }
 0x749   : > { %8896 = vmatmul.mubr.msk.bf16.vlgmr.msra.gmra.mxu1 %vm1218_vm1, %v4402_v11 }
 0x74a   : > { %8911 = vmatprep.mubr.msk.bf16.mxu1 %vm10216_vm0, %v10215_v0  ;;  %8908 = vmatpush3.bf16.msra.mxu1 %v9434_v52 }
 0x74b   : > { %8909 = vmatprep.subr.bf16.mxu1 %v10215_v0 }
 0x74e   : > { %8910 = vmatpush3.bf16.msra.mxu1 %v9435_v55 }
 0x74f   : > { %8923 = vmatprep.subr.bf16.mxu1 %v10215_v0 }
 0x751   : > { %8912 = vmatmul.mubr.msk.bf16.vlgmr.msra.gmra.mxu1 %vm1218_vm1, %v11552_v43 }
 0x752   : > { %8925 = vmatprep.mubr.msk.bf16.mxu1 %vm10216_vm0, %v10215_v0 }
 0x809   : > { %v4463_v22 = vpop.f32.mrf.mxu1 }
 0x80a   : > { %v4464_v51 = vadd.f32 %v8424_v24, %v4463_v22 }
 0x80b   : > { %v8897_v9 = vpop.f32.mrf.mxu1 }
 0x80c   : > { %v4470_v10 = vadd.f32 %v9620_v32, %v4464_v51 }
 0x80d   : > { %v4466_v31 = vpop.f32.mrf.mxu1 }
 0x80e   : > { %v4467_v19 = vadd.f32 %v8424_v24, %v4466_v31  ;;  %v4474_v13 = vsel %vm1218_vm1, %v4470_v10, 0.0 }
 0x80f   : > { %4475 = vadd.xlane.f32.xlu1 %v4474_v13  ;;  %v8898_v25 = vpop.f32.mrf.mxu1 }
 0x810   : > { %v4471_v63 = vadd.f32 %v9621_v58, %v4467_v19 }
 0x811   : > { %v4646_v44 = vpop.f32.mrf.mxu1 }
 0x812   : > { %v4477_v53 = vsel %vm1218_vm1, %v4471_v63, 0.0  ;;  %v4647_v39 = vadd.f32 %v8434_v16, %v4646_v44 }
 0x813   : > { %4478 = vadd.xlane.f32.xlu0 %v4477_v53  ;;  %v8913_v59 = vpop.f32.mrf.mxu1 }
 0x815   : > { %v4649_v27 = vpop.f32.mrf.mxu1 }
 0x816   : > { %v4650_v8 = vadd.f32 %v8434_v16, %v4649_v27 }
 0x817   : > { %v8914_v60 = vpop.f32.mrf.mxu1 }
 0x898   : > { %v4476_v56 = vpop.xlane.xlu1 %4475 }
 0x899   : > { %v4481_v20 = vmul.f32 0.03125, %v4476_v56 }
 0x89b   : > { %v4483_v15 = vsub.f32 %v4470_v10, %v4481_v20 }
 0x89c   : > { %v4479_v2 = vpop.xlane.xlu0 %4478 }
 0x89d   : > { %v4482_v40 = vmul.f32 0.03125, %v4479_v2  ;;  %v4485_v21 = vmul.f32 %v4483_v15, %v4483_v15 }
 0x89f   : > { %v4484_v50 = vsub.f32 %v4471_v63, %v4482_v40  ;;  %v4487_v42 = vsel %vm1218_vm1, %v4485_v21, 0.0 }
 0x8a0   : > { %4488 = vadd.xlane.f32.xlu0 %v4487_v42 }
 0x8a1   : > { %v4486_v34 = vmul.f32 %v4484_v50, %v4484_v50 }
 0x8a3   : > { %v4490_v49 = vsel %vm1218_vm1, %v4486_v34, 0.0 }
 0x8a4   : > { %4491 = vadd.xlane.f32.xlu1 %v4490_v49 }
 0x8b5   : > { %5021 = vrot.lane.b32.xlu1 %v4650_v8, %s10218_s17 }
 0x8b6   : > { %5019 = vrot.lane.b32.xlu0 %v4647_v39, %s10218_s17 }
 0x8b9   : > { %5025 = vrot.lane.b32.xlu1 %v4647_v39, %s10217_s4 }
 0x8ba   : > { %5027 = vrot.lane.b32.xlu0 %v4650_v8, %s10217_s4 }
 0x8bd   : > { %5031 = vrot.lane.b32.xlu1 %v4647_v39, %s10219_s22 }
 0x8be   : > { %5033 = vrot.lane.b32.xlu0 %v4650_v8, %s10219_s22 }
 0x929   : > { %v4489_v29 = vpop.xlane.xlu0 %4488 }
 0x92a   : > { %v4493_v61 = vmul.f32 0.03125, %v4489_v29 }
 0x92c   : > { %v4495_v57 = vadd.f32 1e-05, %v4493_v61 }
 0x92d   : > { %v4492_v47 = vpop.xlane.xlu1 %4491  ;;  %v5020_v33 = vpop.permute.xlu0 %5019 }
 0x92e   : > { %9528 = vrsqrt.f32 %v4495_v57  ;;  %v4494_v30 = vmul.f32 0.03125, %v4492_v47 }
 0x930   : > { %v4496_v7 = vadd.f32 1e-05, %v4494_v30 }
 0x931   : > { %v5022_v35 = vpop.permute.xlu1 %5021  ;;  %v5028_v18 = vpop.permute.xlu0 %5027 }
 0x932   : > { %9530 = vrsqrt.f32 %v4496_v7  ;;  %v5105_v22 = vcombine.low %v4650_v8, %v5028_v18  ;;  %v5106_v51 = vcombine.high %v4650_v8, %v5028_v18 }
 0x934   : > { %v5113_v25 = vrot.slane %v5105_v22, %v10725_v41  ;;  %v5120_v58 = vrot.slane %v5106_v51, %v10725_v41 }
 0x935   : > { %v5026_v6 = vpop.permute.xlu1 %5025  ;;  %v5034_v11 = vpop.permute.xlu0 %5033 }
 0x936   : > { %v5121_v9 = vcombine.low %v5022_v35, %v5034_v11  ;;  %v5122_v32 = vcombine.high %v5022_v35, %v5034_v11  ;;  %v5037_v10 = vcombine.low %v4647_v39, %v5026_v6  ;;  %v5038_v31 = vcombine.high %v4647_v39, %v5026_v6 }
 0x938   : > { %v5129_v63 = vrot.slane %v5121_v9, %v10725_v41  ;;  %v5136_v53 = vrot.slane %v5122_v32, %v10725_v41  ;;  %v5045_v52 = vrot.slane %v5037_v10, %v10725_v41  ;;  %v5052_v55 = vrot.slane %v5038_v31, %v10725_v41 }
 0x939   : > { %v5032_v24 = vpop.permute.xlu1 %5031 }
 0x93a   : > { %v5053_v19 = vcombine.low %v5020_v33, %v5032_v24  ;;  %v5054_v13 = vcombine.high %v5020_v33, %v5032_v24  ;;  %v5138_v56 = vcombine.high %v5113_v25, %v5129_v63  ;;  %v5153_v20 = vcombine.low %v5120_v58, %v5136_v53 }
 0x93b   : > { %v9529_v1 = vpop.eup %9528 }
 0x93c   : > { %v4499_v38 = vmul.f32 %v9529_v1, %v4483_v15  ;;  %v5061_v14 = vrot.slane %v5053_v19, %v10725_v41  ;;  %v5068_v37 = vrot.slane %v5054_v13, %v10725_v41  ;;  %v5154_v15 = vcombine.high %v5120_v58, %v5136_v53 }
 0x93d   : > { %v5152_v34 = vrot.slane %v5138_v56, %v10727_v48  ;;  %v5161_v49 = vrot.slane %v5153_v20, %v10727_v48  ;;  %v8430_v56 = vld [vmem:[#allocation19] ss:$0 sm:$0xff] }
 0x93e   : > { %v4507_v23 = vmul.f32 %v8428_v17, %v4499_v38  ;;  %v5069_v2 = vcombine.low %v5045_v52, %v5061_v14  ;;  %v5070_v40 = vcombine.high %v5045_v52, %v5061_v14  ;;  %v5085_v21 = vcombine.low %v5052_v55, %v5068_v37 }
 0x93f   : > { %v9531_v28 = vpop.eup %9530  ;;  %v5168_v26 = vrot.slane %v5154_v15, %v10727_v48 }
 0x940   : > { %v4500_v12 = vmul.f32 %v9531_v28, %v4484_v50  ;;  %v11571_v46 = vadd.f32 %v8429_v5, %v4507_v23  ;;  %v5086_v50 = vcombine.high %v5052_v55, %v5068_v37  ;;  %v5077_v36 = vrot.slane %v5069_v2, %v10727_v48 }
 0x941   : > { %v5084_v16 = vrot.slane %v5070_v40, %v10727_v48  ;;  %v5093_v44 = vrot.slane %v5085_v21, %v10727_v48  ;;  %v5257_v8 = vcombine.low %v5161_v49, %v5168_v26  ;;  %v8449_v60 = vcombine.high %v5161_v49, %v5168_v26 }
 0x942   : > { %v4508_v62 = vmul.f32 %v8428_v17, %v4500_v12  ;;  %v5100_v39 = vrot.slane %v5086_v50, %v10727_v48 }
 0x943   : > { %v5173_v29 = vcombine.low %v5077_v36, %v5084_v16  ;;  %v8446_v61 = vcombine.high %v5077_v36, %v5084_v16  ;;  %v5264_v1 = vrot.slane %v5257_v8, %v10725_v41  ;;  %v5272_v38 = vrot.slane %v8449_v60, %v10725_v41 }
 0x944   : > { %v11573_v3 = vadd.f32 %v8429_v5, %v4508_v62  ;;  %v5189_v57 = vcombine.low %v5093_v44, %v5100_v39  ;;  %v8447_v47 = vcombine.high %v5093_v44, %v5100_v39 }
 0x945   : > { %v5180_v17 = vrot.slane %v5173_v29, %v10725_v41  ;;  %v5188_v28 = vrot.slane %v8446_v61, %v10725_v41  ;;  %v5290_v19 = vcombine.high %v5264_v1, %v5272_v38 }
 0x946   : > { %v4517_v4 = vpack.c.bf16 %v11573_v3, %v11571_v46  ;;  %v5196_v12 = vrot.slane %v5189_v57, %v10725_v41  ;;  %v5204_v23 = vrot.slane %v8447_v47, %v10725_v41 }
 0x947   : > { %v5205_v5 = vcombine.low %v5180_v17, %v5188_v28  ;;  %v5206_v32 = vcombine.high %v5180_v17, %v5188_v28 }
 0x948   : > { %8904 = vmatmul.mubr.msk.bf16.vlgmr.msra.gmra.mxu0 %vm1218_vm1, %v4517_v4  ;;  %v5221_v62 = vcombine.low %v5196_v12, %v5204_v23  ;;  %v5289_v4 = vcombine.low %v5264_v1, %v5272_v38  ;;  %v5222_v10 = vcombine.high %v5196_v12, %v5204_v23 }
 0x949   : > { %8916 = vmatpush3.bf16.msra.mxu0 %v9438_v54  ;;  %8919 = vmatprep.mubr.msk.bf16.mxu0 %vm10216_vm0, %v10215_v0  ;;  %v5220_v13 = vrot.slane %v5206_v32, %v10727_v48 }
 0x94a   : > { %8917 = vmatprep.subr.bf16.mxu0 %v10215_v0  ;;  %v5229_v33 = vrot.slane %v5221_v62, %v10727_v48  ;;  %v5297_v18 = vrot.slane %v5289_v4, %v10727_v48 }
 0x94d   : > { %8918 = vmatpush3.bf16.msra.mxu0 %v9439_v45  ;;  %v5213_v45 = vrot.slane %v5205_v5, %v10727_v48 }
 0x94e   : > { %8929 = vmatprep.subr.bf16.mxu0 %v10215_v0 }
 0x94f   : > { %v5237_v6 = vcombine.low %v5213_v45, %v5229_v33  ;;  %v11628_v53 = vcombine.high %v5213_v45, %v5229_v33 }
 0x950   : > { %8920 = vmatmul.mubr.msk.bf16.vlgmr.msra.gmra.mxu0 %vm1218_vm1, %v11552_v43  ;;  %v5137_v43 = vcombine.low %v5113_v25, %v5129_v63  ;;  %v5236_v25 = vrot.slane %v5222_v10, %v10727_v48  ;;  %v5304_v63 = vrot.slane %v5290_v19, %v10727_v48 }
 0x951   : > { %8931 = vmatprep.mubr.msk.bf16.mxu0 %vm10216_vm0, %v10215_v0  ;;  %v11614_v24 = vpack.c.bf16 %v5237_v6, %v5237_v6 }
 0x952   : > { %v5145_v42 = vrot.slane %v5137_v43, %v10727_v48  ;;  %v11632_v55 = vcombine.low %v5220_v13, %v5236_v25  ;;  %v11634_v14 = vcombine.high %v5220_v13, %v5236_v25 }
 0x953   : > { %v5621_v51 = vsel %vm2291_vm2, %v11614_v24, 0 }
 0x954   : > { %v5241_v59 = vcombine.low %v5145_v42, %v5152_v34  ;;  %v8448_v27 = vcombine.high %v5145_v42, %v5152_v34  ;;  %8924 = vmatpush3.bf16.xpose.msra.mxu1 %v5621_v51  ;;  %v8438_v42 = vld [vmem:[#allocation25] ss:$0 sm:$0xff] }
 0x955   : > { %8935 = vmatprep.subr.bf16.mxu1 %v10215_v0 }
 0x956   : > { %v5248_v30 = vrot.slane %v5241_v59, %v10725_v41  ;;  %v5256_v7 = vrot.slane %v8448_v27, %v10725_v41 }
 0x958   : > { %v5273_v54 = vcombine.low %v5248_v30, %v5256_v7  ;;  %v5274_v31 = vcombine.high %v5248_v30, %v5256_v7 }
 0x95a   : > { %v5281_v35 = vrot.slane %v5273_v54, %v10727_v48  ;;  %v5288_v58 = vrot.slane %v5274_v31, %v10727_v48 }
 0x95c   : > { %v5305_v11 = vcombine.low %v5281_v35, %v5297_v18  ;;  %v11630_v52 = vcombine.high %v5281_v35, %v5297_v18  ;;  %v11636_v37 = vcombine.low %v5288_v58, %v5304_v63  ;;  %v11638_v43 = vcombine.high %v5288_v58, %v5304_v63 }
 0x95e   : > { %v11616_v22 = vpack.c.bf16 %v5305_v11, %v5305_v11 }
 0x960   : > { %v5667_v9 = vsel %vm2291_vm2, %v11616_v22, 0 }
 0x961   : > { %8930 = vmatpush3.bf16.xpose.msra.mxu0 %v5667_v9 }
 0x962   : > { %8941 = vmatprep.subr.bf16.mxu0 %v10215_v0 }
 0xa08   : > { %v4579_v20 = vpop.f32.mrf.mxu0 }
 0xa09   : > { %v4580_v15 = vadd.f32 %v8430_v56, %v4579_v20 }
 0xa0a   : > { %v8905_v2 = vpop.f32.mrf.mxu0 }
 0xa0b   : > { %4719 = vrot.lane.b32.xlu1 %v4580_v15, %s10218_s17 }
 0xa0c   : > { %v4582_v40 = vpop.f32.mrf.mxu0 }
 0xa0d   : > { %v4583_v21 = vadd.f32 %v8430_v56, %v4582_v40 }
 0xa0e   : > { %v8906_v50 = vpop.f32.mrf.mxu0 }
 0xa0f   : > { %4725 = vrot.lane.b32.xlu1 %v4580_v15, %s10217_s4  ;;  %4721 = vrot.lane.b32.xlu0 %v4583_v21, %s10218_s17 }
 0xa10   : > { %v4710_v34 = vpop.f32.mrf.mxu0 }
 0xa11   : > { %v11646_v49 = vadd.f32 %v8438_v42, %v4710_v34 }
 0xa12   : > { %v8921_v26 = vpop.f32.mrf.mxu0 }
 0xa13   : > { %4731 = vrot.lane.b32.xlu1 %v4580_v15, %s10219_s22  ;;  %4727 = vrot.lane.b32.xlu0 %v4583_v21, %s10217_s4 }
 0xa14   : > { %v4713_v36 = vpop.f32.mrf.mxu0 }
 0xa15   : > { %v11652_v16 = vadd.f32 %v8438_v42, %v4713_v36 }
 0xa16   : > { %v8922_v44 = vpop.f32.mrf.mxu0 }
 0xa17   : > { %4733 = vrot.lane.b32.xlu0 %v4583_v21, %s10219_s22  ;;  %5325 = vrot.lane.b32.xlu1 %v11646_v49, %s10217_s4 }
 0xa1b   : > { %5319 = vrot.lane.b32.xlu0 %v11646_v49, %s10218_s17  ;;  %5321 = vrot.lane.b32.xlu1 %v11652_v16, %s10218_s17  ;;  %s12531_s17 = sld [smem:[#allocation59_spill]] }
 0xa1f   : > { %5327 = vrot.lane.b32.xlu0 %v11652_v16, %s10217_s4  ;;  %s12529_s4 = sld [smem:[#allocation52_spill]] }
 0xa7d   : > { %v4720_v39 = vpop.permute.xlu1 %4719 }
 0xa81   : > { %v4726_v59 = vpop.permute.xlu1 %4725  ;;  %v4722_v27 = vpop.permute.xlu0 %4721 }
 0xa82   : > { %v4737_v8 = vcombine.low %v4580_v15, %v4726_v59  ;;  %v4738_v60 = vcombine.high %v4580_v15, %v4726_v59 }
 0xa84   : > { %v4745_v30 = vrot.slane %v4737_v8, %v10725_v41  ;;  %v4752_v7 = vrot.slane %v4738_v60, %v10725_v41 }
 0xa85   : > { %v4732_v29 = vpop.permute.xlu1 %4731  ;;  %v4728_v61 = vpop.permute.xlu0 %4727 }
 0xa86   : > { %v4753_v57 = vcombine.low %v4720_v39, %v4732_v29  ;;  %v4754_v47 = vcombine.high %v4720_v39, %v4732_v29  ;;  %v4805_v17 = vcombine.low %v4583_v21, %v4728_v61  ;;  %v4806_v28 = vcombine.high %v4583_v21, %v4728_v61 }
 0xa88   : > { %v4761_v1 = vrot.slane %v4753_v57, %v10725_v41  ;;  %v4768_v38 = vrot.slane %v4754_v47, %v10725_v41  ;;  %v4813_v11 = vrot.slane %v4805_v17, %v10725_v41  ;;  %v4820_v51 = vrot.slane %v4806_v28, %v10725_v41 }
 0xa89   : > { %v4734_v12 = vpop.permute.xlu0 %4733 }
 0xa8a   : > { %v4769_v23 = vcombine.low %v4745_v30, %v4761_v1  ;;  %v4770_v5 = vcombine.high %v4745_v30, %v4761_v1  ;;  %v4785_v62 = vcombine.low %v4752_v7, %v4768_v38  ;;  %v4786_v54 = vcombine.high %v4752_v7, %v4768_v38 }
 0xa8b   : > { %v4821_v4 = vcombine.low %v4722_v27, %v4734_v12  ;;  %v4822_v45 = vcombine.high %v4722_v27, %v4734_v12  ;;  %v11686_v7 = vpack.c.bf16 %v11628_v53, %v11628_v53  ;;  %v11698_v53 = vpack.c.bf16 %v11630_v52, %v11630_v52 }
 0xa8c   : > { %v4777_v33 = vrot.slane %v4769_v23, %v10727_v48  ;;  %v4784_v35 = vrot.slane %v4770_v5, %v10727_v48  ;;  %v4793_v18 = vrot.slane %v4785_v62, %v10727_v48  ;;  %v4800_v6 = vrot.slane %v4786_v54, %v10727_v48 }
 0xa8d   : > { %v4829_v9 = vrot.slane %v4821_v4, %v10725_v41  ;;  %v4836_v32 = vrot.slane %v4822_v45, %v10725_v41  ;;  %v5713_v23 = vsel %vm2291_vm2, %v11686_v7, 0  ;;  %v5759_v52 = vsel %vm2291_vm2, %v11698_v53, 0 }
 0xa8e   : > { %v4873_v10 = vcombine.low %v4777_v33, %v4784_v35  ;;  %v8442_v31 = vcombine.high %v4777_v33, %v4784_v35  ;;  %v4889_v19 = vcombine.low %v4793_v18, %v4800_v6  ;;  %v8443_v13 = vcombine.high %v4793_v18, %v4800_v6 }
 0xa8f   : > { %v4837_v25 = vcombine.low %v4813_v11, %v4829_v9  ;;  %v4838_v58 = vcombine.high %v4813_v11, %v4829_v9  ;;  %v4853_v63 = vcombine.low %v4820_v51, %v4836_v32  ;;  %v4854_v56 = vcombine.high %v4820_v51, %v4836_v32 }
 0xa90   : > { %v4880_v20 = vrot.slane %v4873_v10, %v10725_v41  ;;  %v4888_v15 = vrot.slane %v8442_v31, %v10725_v41  ;;  %v4896_v2 = vrot.slane %v4889_v19, %v10725_v41  ;;  %v4904_v40 = vrot.slane %v8443_v13, %v10725_v41 }
 0xa91   : > { %v4845_v21 = vrot.slane %v4837_v25, %v10727_v48  ;;  %v4852_v50 = vrot.slane %v4838_v58, %v10727_v48  ;;  %v4861_v42 = vrot.slane %v4853_v63, %v10727_v48  ;;  %v4868_v34 = vrot.slane %v4854_v56, %v10727_v48 }
 0xa92   : > { %v4905_v26 = vcombine.low %v4880_v20, %v4888_v15  ;;  %v4921_v36 = vcombine.low %v4896_v2, %v4904_v40  ;;  %v4906_v62 = vcombine.high %v4880_v20, %v4888_v15  ;;  %v4922_v54 = vcombine.high %v4896_v2, %v4904_v40 }
 0xa93   : > { %v4941_v44 = vcombine.low %v4845_v21, %v4852_v50  ;;  %v8444_v39 = vcombine.high %v4845_v21, %v4852_v50  ;;  %v4957_v59 = vcombine.low %v4861_v42, %v4868_v34  ;;  %v8445_v27 = vcombine.high %v4861_v42, %v4868_v34  ;;  %v11780_v42 = vld [vmem:[#allocation7] sm:$0xff] }
 0xa94   : > { %v4913_v8 = vrot.slane %v4905_v26, %v10727_v48  ;;  %v4929_v60 = vrot.slane %v4921_v36, %v10727_v48  ;;  %v11707_v33 = vpack.c.bf16 %v11632_v55, %v11632_v55  ;;  %v4920_v18 = vrot.slane %v4906_v62, %v10727_v48 }
 0xa95   : > { %v4948_v29 = vrot.slane %v4941_v44, %v10725_v41  ;;  %v4956_v61 = vrot.slane %v8444_v39, %v10725_v41  ;;  %v4964_v57 = vrot.slane %v4957_v59, %v10725_v41  ;;  %v4972_v47 = vrot.slane %v8445_v27, %v10725_v41 }
 0xa96   : > { %v4937_v30 = vcombine.low %v4913_v8, %v4929_v60  ;;  %v4938_v4 = vcombine.high %v4913_v8, %v4929_v60  ;;  %v4936_v6 = vrot.slane %v4922_v54, %v10727_v48  ;;  %v5805_v9 = vsel %vm2291_vm2, %v11707_v33, 0 }
 0xa97   : > { %v4973_v1 = vcombine.low %v4948_v29, %v4956_v61  ;;  %v4989_v38 = vcombine.low %v4964_v57, %v4972_v47  ;;  %v4974_v11 = vcombine.high %v4948_v29, %v4956_v61  ;;  %v4990_v51 = vcombine.high %v4964_v57, %v4972_v47 }
 0xa98   : > { %v11688_v17 = vpack.c.bf16 %v4937_v30, %v4937_v30  ;;  %v11713_v35 = vpack.c.bf16 %v4938_v4, %v4938_v4  ;;  %v11726_v32 = vpack.c.bf16 %v11636_v37, %v11636_v37  ;;  %v4939_v10 = vcombine.low %v4920_v18, %v4936_v6 }
 0xa99   : > { %v4981_v28 = vrot.slane %v4973_v1, %v10727_v48  ;;  %v4997_v12 = vrot.slane %v4989_v38, %v10727_v48  ;;  %v4988_v19 = vrot.slane %v4974_v11, %v10727_v48  ;;  %v5004_v13 = vrot.slane %v4990_v51, %v10727_v48 }
 0xa9a   : > { %8926 = vmatmul.mubr.msk.bf16.vlgmr.msra.gmra.mxu1 %vm2291_vm2, %v11688_v17  ;;  %v11737_v25 = vpack.c.bf16 %v11634_v14, %v11634_v14  ;;  %v5851_v37 = vsel %vm2291_vm2, %v11726_v32, 0  ;;  %v11743_v58 = vpack.c.bf16 %v4939_v10, %v4939_v10  ;;  %v11754_v56 = vpack.c.bf16 %v11638_v43, %v11638_v43 }
 0xa9b   : > { %8936 = vmatpush3.bf16.xpose.msra.mxu1 %v5713_v23  ;;  %v5005_v5 = vcombine.low %v4981_v28, %v4997_v12  ;;  %8937 = vmatprep.mubr.msk.bf16.mxu1 %vm10216_vm0, %v10215_v0  ;;  %v5006_v55 = vcombine.high %v4981_v28, %v4997_v12  ;;  %v5007_v63 = vcombine.low %v4988_v19, %v5004_v13 }
 0xa9c   : > { %8947 = vmatprep.subr.bf16.mxu1 %v10215_v0  ;;  %v5897_v14 = vsel %vm2291_vm2, %v11737_v25, 0  ;;  %v4940_v20 = vcombine.high %v4920_v18, %v4936_v6  ;;  %v5943_v2 = vsel %vm2291_vm2, %v11754_v56, 0  ;;  %v5008_v43 = vcombine.high %v4988_v19, %v5004_v13 }
 0xa9d   : > { %v11703_v45 = vpack.c.bf16 %v5005_v5, %v5005_v5  ;;  %v11731_v31 = vpack.c.bf16 %v5006_v55, %v5006_v55  ;;  %v11759_v15 = vpack.c.bf16 %v5007_v63, %v5007_v63 }
 0xa9e   : > { %v11765_v40 = vpack.c.bf16 %v4940_v20, %v4940_v20  ;;  %v11774_v21 = vpack.c.bf16 %v5008_v43, %v5008_v43 }
 0xa9f   : > { %8932 = vmatmul.mubr.msk.bf16.vlgmr.msra.gmra.mxu0 %vm2291_vm2, %v11703_v45 }
 0xaa0   : > { %8942 = vmatpush3.bf16.xpose.msra.mxu0 %v5759_v52  ;;  %8943 = vmatprep.mubr.msk.bf16.mxu0 %vm10216_vm0, %v10215_v0 }
 0xaa1   : > { %8953 = vmatprep.subr.bf16.mxu0 %v10215_v0 }
 0xaa2   : > { %8938 = vmatmul.mubr.msk.bf16.vlgmr.msra.gmra.mxu1 %vm2291_vm2, %v11713_v35 }
 0xaa3   : > { %8948 = vmatpush3.bf16.xpose.msra.mxu1 %v5805_v9  ;;  %8949 = vmatprep.mubr.msk.bf16.mxu1 %vm10216_vm0, %v10215_v0 }
 0xaa4   : > { %8959 = vmatprep.subr.bf16.mxu1 %v10215_v0 }
 0xaa7   : > { %8944 = vmatmul.mubr.msk.bf16.vlgmr.msra.gmra.mxu0 %vm2291_vm2, %v11731_v31 }
 0xaa8   : > { %8954 = vmatpush3.bf16.xpose.msra.mxu0 %v5851_v37  ;;  %8955 = vmatprep.mubr.msk.bf16.mxu0 %vm10216_vm0, %v10215_v0 }
 0xaa9   : > { %8965 = vmatprep.subr.bf16.mxu0 %v10215_v0 }
 0xaaa   : > { %8950 = vmatmul.mubr.msk.bf16.vlgmr.msra.gmra.mxu1 %vm2291_vm2, %v11743_v58 }
 0xaab   : > { %8960 = vmatpush3.bf16.xpose.msra.mxu1 %v5897_v14  ;;  %8961 = vmatprep.mubr.msk.bf16.mxu1 %vm10216_vm0, %v10215_v0 }
 0xaac   : > { %8971 = vmatprep.subr.bf16.mxu1 %v10215_v0 }
 0xaaf   : > { %8956 = vmatmul.mubr.msk.bf16.vlgmr.msra.gmra.mxu0 %vm2291_vm2, %v11759_v15 }
 0xab0   : > { %8966 = vmatpush3.bf16.xpose.msra.mxu0 %v5943_v2  ;;  %8967 = vmatprep.mubr.msk.bf16.mxu0 %vm10216_vm0, %v10215_v0 }
 0xab1   : > { %8977 = vmatprep.subr.bf16.mxu0 %v10215_v0 }
 0xab2   : > { %8962 = vmatmul.mubr.msk.bf16.vlgmr.msra.gmra.mxu1 %vm2291_vm2, %v11765_v40 }
 0xab3   : > { %8973 = vmatprep.mubr.msk.bf16.mxu1 %vm10216_vm0, %v10215_v0 }
 0xab7   : > { %8968 = vmatmul.mubr.msk.bf16.vlgmr.msra.gmra.mxu0 %vm2291_vm2, %v11774_v21 }
 0xab8   : > { %8979 = vmatprep.mubr.msk.bf16.mxu0 %vm10216_vm0, %v10215_v0 }
 0xb5a   : > { %v5657_v50 = vpop.f32.mrf.mxu1 }
 0xb5b   : > { %v5985_v34 = vmul.f32 0.35355338, %v5657_v50 }
 0xb5c   : > { %v8927_v26 = vpop.f32.mrf.mxu1 }
 0xb5d   : > { %v11783_v36 = vadd.f32 %v5985_v34, %v11780_v42 }
 0xb5e   : > { %v5660_v44 = vpop.f32.mrf.mxu1 }
 0xb5f   : > { %v5703_v39 = vpop.f32.mrf.mxu0  ;;  %v6001_v59 = vsel %vm2676_vm3, %v11783_v36, -inf }
 0xb60   : > { %v5986_v27 = vmul.f32 0.35355338, %v5703_v39  ;;  %v8928_v8 = vpop.f32.mrf.mxu1  ;;  %6002 = vmax.xlane.f32.xlu1 %v6001_v59 }
 0xb61   : > { %v8933_v60 = vpop.f32.mrf.mxu0 }
 0xb62   : > { %v5749_v29 = vpop.f32.mrf.mxu1  ;;  %v11788_v61 = vadd.f32 %v5986_v27, %v11780_v42 }
 0xb63   : > { %v5706_v57 = vpop.f32.mrf.mxu0  ;;  %v5987_v2 = vmul.f32 0.35355338, %v5749_v29 }
 0xb64   : > { %v8939_v47 = vpop.f32.mrf.mxu1  ;;  %v6004_v30 = vsel %vm2676_vm3, %v11788_v61, -inf }
 0xb65   : > { %6005 = vmax.xlane.f32.xlu0 %v6004_v30  ;;  %v8934_v1 = vpop.f32.mrf.mxu0  ;;  %v11797_v50 = vadd.f32 %v5987_v2, %v11780_v42 }
 0xb66   : > { %v5752_v38 = vpop.f32.mrf.mxu1 }
 0xb67   : > { %v5795_v28 = vpop.f32.mrf.mxu0  ;;  %v6007_v44 = vsel %vm2676_vm3, %v11797_v50, -inf }
 0xb68   : > { %v8940_v12 = vpop.f32.mrf.mxu1  ;;  %v5988_v34 = vmul.f32 0.35355338, %v5795_v28 }
 0xb69   : > { %v8945_v23 = vpop.f32.mrf.mxu0  ;;  %v5326_v12 = vpop.permute.xlu1 %5325 }
 0xb6a   : > { %v5841_v5 = vpop.f32.mrf.mxu1  ;;  %v11805_v27 = vadd.f32 %v5988_v34, %v11780_v42  ;;  %v5320_v23 = vpop.permute.xlu0 %5319 }
 0xb6b   : > { %v5798_v62 = vpop.f32.mrf.mxu0  ;;  %v5989_v59 = vmul.f32 0.35355338, %v5841_v5 }
 0xb6c   : > { %v8951_v54 = vpop.f32.mrf.mxu1  ;;  %v6010_v57 = vsel %vm2676_vm3, %v11805_v27, -inf }
 0xb6d   : > { %v8946_v4 = vpop.f32.mrf.mxu0  ;;  %v11815_v47 = vadd.f32 %v5989_v59, %v11780_v42  ;;  %v5322_v5 = vpop.permute.xlu1 %5321 }
 0xb6e   : > { %v5844_v52 = vpop.f32.mrf.mxu1  ;;  %v5328_v54 = vpop.permute.xlu0 %5327 }
 0xb6f   : > { %v5887_v18 = vpop.f32.mrf.mxu0  ;;  %v6013_v1 = vsel %vm2676_vm3, %v11815_v47, -inf  ;;  %v5337_v52 = vcombine.low %v11646_v49, %v5326_v12 }
 0xb70   : > { %v8952_v6 = vpop.f32.mrf.mxu1  ;;  %v5990_v43 = vmul.f32 0.35355338, %v5887_v18  ;;  %v5338_v18 = vcombine.high %v11646_v49, %v5326_v12 }
 0xb71   : > { %v8957_v11 = vpop.f32.mrf.mxu0  ;;  %5331 = vrot.lane.b32.xlu1 %v11646_v49, %s10219_s22  ;;  %v5406_v49 = vcombine.high %v11652_v16, %v5328_v54 }
 0xb72   : > { %v5933_v51 = vpop.f32.mrf.mxu1  ;;  %v11802_v39 = vadd.f32 %v5990_v43, %v11780_v42 }
 0xb73   : > { %v5890_v55 = vpop.f32.mrf.mxu0  ;;  %v5991_v29 = vmul.f32 0.35355338, %v5933_v51 }
 0xb74   : > { %v8963_v9 = vpop.f32.mrf.mxu1  ;;  %v6016_v8 = vsel %vm2676_vm3, %v11802_v39, -inf }
 0xb75   : > { %v8958_v10 = vpop.f32.mrf.mxu0  ;;  %v11822_v38 = vadd.f32 %v5991_v29, %v11780_v42 }
 0xb76   : > { %v5936_v19 = vpop.f32.mrf.mxu1 }
 0xb77   : > { %v5979_v13 = vpop.f32.mrf.mxu0  ;;  %v6019_v28 = vsel %vm2676_vm3, %v11822_v38, -inf  ;;  %v5345_v19 = vrot.slane %v5337_v52, %v10725_v41 }
 0xb78   : > { %v8964_v37 = vpop.f32.mrf.mxu1  ;;  %v5992_v26 = vmul.f32 0.35355338, %v5979_v13  ;;  %v5352_v13 = vrot.slane %v5338_v18, %v10725_v41 }
 0xb79   : > { %v8969_v63 = vpop.f32.mrf.mxu0 }
 0xb7a   : > { %v11810_v60 = vadd.f32 %v5992_v26, %v11780_v42 }
 0xb7b   : > { %5333 = vrot.lane.b32.xlu0 %v11652_v16, %s10219_s22  ;;  %v5982_v14 = vpop.f32.mrf.mxu0  ;;  %s12532_s22 = sld [smem:[#allocation54_spill]] }
 0xb7c   : > { %v6022_v30 = vsel %vm2676_vm3, %v11810_v60, -inf }
 0xb7d   : > { %v8970_v20 = vpop.f32.mrf.mxu0 }
 0xb95   : > { %6008 = vmax.xlane.f32.xlu1 %v6007_v44 }
 0xb99   : > { %6017 = vmax.xlane.f32.xlu1 %v6016_v8 }
 0xb9a   : > { %6011 = vmax.xlane.f32.xlu0 %v6010_v57 }
 0xb9d   : > { %6023 = vmax.xlane.f32.xlu1 %v6022_v30 }
 0xb9e   : > { %6014 = vmax.xlane.f32.xlu0 %v6013_v1 }
 0xba2   : > { %6020 = vmax.xlane.f32.xlu0 %v6019_v28 }
 0xbb8   : > { %6866 = vrot.lane.b32.xlu0 %v11780_v42, %s10222_s1  ;;  %v5405_v42 = vcombine.low %v11652_v16, %v5328_v54  ;;  %v5420_v16 = vrot.slane %v5406_v49, %v10725_v41  ;;  %s12533_s1 = sld [smem:[#allocation56_spill]] }
 0xbba   : > { %v5413_v26 = vrot.slane %v5405_v42, %v10725_v41 }
 0xbe9   : > { %v11828_v62 = vpop.xlane.xlu1 %6002 }
 0xbea   : > { %v6049_v4 = vsub.f32 %v11783_v36, %v11828_v62 }
 0xbec   : > { %v6057_v9 = vmul.f32 1.442695, %v6049_v4 }
 0xbed   : > { %v5332_v6 = vpop.permute.xlu1 %5331 }
 0xbee   : > { %v5353_v11 = vcombine.low %v5320_v23, %v5332_v6  ;;  %v5354_v51 = vcombine.high %v5320_v23, %v5332_v6  ;;  %v11834_v55 = vpop.xlane.xlu0 %6005  ;;  %9532 = vpow2.f32 %v6057_v9 }
 0xbef   : > { %v6050_v10 = vsub.f32 %v11788_v61, %v11834_v55 }
 0xbf0   : > { %v5361_v36 = vrot.slane %v5353_v11, %v10725_v41  ;;  %v5368_v37 = vrot.slane %v5354_v51, %v10725_v41 }
 0xbf1   : > { %v6059_v63 = vmul.f32 1.442695, %v6050_v10 }
 0xbf2   : > { %v5369_v14 = vcombine.low %v5345_v19, %v5361_v36  ;;  %v5370_v20 = vcombine.high %v5345_v19, %v5361_v36  ;;  %v5385_v2 = vcombine.low %v5352_v13, %v5368_v37  ;;  %v5386_v43 = vcombine.high %v5352_v13, %v5368_v37  ;;  %v5334_v34 = vpop.permute.xlu0 %5333 }
 0xbf3   : > { %v5421_v61 = vcombine.low %v5322_v5, %v5334_v34  ;;  %v5422_v44 = vcombine.high %v5322_v5, %v5334_v34  ;;  %9534 = vpow2.f32 %v6059_v63 }
 0xbf4   : > { %v5377_v59 = vrot.slane %v5369_v14, %v10727_v48  ;;  %v5384_v8 = vrot.slane %v5370_v20, %v10727_v48  ;;  %v5393_v29 = vrot.slane %v5385_v2, %v10727_v48  ;;  %v5400_v57 = vrot.slane %v5386_v43, %v10727_v48 }
 0xbf5   : > { %v5429_v30 = vrot.slane %v5421_v61, %v10725_v41  ;;  %v5436_v1 = vrot.slane %v5422_v44, %v10725_v41 }
 0xbf6   : > { %v5473_v28 = vcombine.low %v5377_v59, %v5384_v8  ;;  %v8450_v12 = vcombine.high %v5377_v59, %v5384_v8  ;;  %v5489_v23 = vcombine.low %v5393_v29, %v5400_v57  ;;  %v8451_v54 = vcombine.high %v5393_v29, %v5400_v57 }
 0xbf7   : > { %v5437_v5 = vcombine.low %v5413_v26, %v5429_v30  ;;  %v5438_v4 = vcombine.high %v5413_v26, %v5429_v30  ;;  %v5453_v52 = vcombine.low %v5420_v16, %v5436_v1  ;;  %v5454_v18 = vcombine.high %v5420_v16, %v5436_v1 }
 0xbf8   : > { %v11853_v6 = vrot.slane %v5473_v28, %v10725_v41  ;;  %v11856_v11 = vrot.slane %v8450_v12, %v10725_v41  ;;  %v11859_v51 = vrot.slane %v5489_v23, %v10725_v41  ;;  %v11862_v42 = vrot.slane %v8451_v54, %v10725_v41 }
 0xbf9   : > { %v5445_v9 = vrot.slane %v5437_v5, %v10727_v48  ;;  %v5452_v10 = vrot.slane %v5438_v4, %v10727_v48  ;;  %v5461_v19 = vrot.slane %v5453_v52, %v10727_v48  ;;  %v5468_v13 = vrot.slane %v5454_v18, %v10727_v48 }
 0xbfa   : > { %v5505_v36 = vcombine.low %v11853_v6, %v11856_v11  ;;  %v5521_v37 = vcombine.low %v11859_v51, %v11862_v42 }
 0xbfb   : > { %v5541_v49 = vcombine.low %v5445_v9, %v5452_v10  ;;  %v8452_v63 = vcombine.high %v5445_v9, %v5452_v10  ;;  %v5557_v14 = vcombine.low %v5461_v19, %v5468_v13  ;;  %v8453_v20 = vcombine.high %v5461_v19, %v5468_v13  ;;  %v11878_v16 = vpop.eup %9532 }
 0xbfc   : > { %v5513_v2 = vrot.slane %v5505_v36, %v10727_v48  ;;  %v5529_v43 = vrot.slane %v5521_v37, %v10727_v48  ;;  %v6113_v52 = vpack.c.bf16 %v11878_v16, %v11878_v16 }
 0xbfd   : > { %v5548_v34 = vrot.slane %v5541_v49, %v10725_v41  ;;  %v5556_v26 = vrot.slane %v8452_v63, %v10725_v41  ;;  %v5564_v61 = vrot.slane %v5557_v14, %v10725_v41  ;;  %v5572_v44 = vrot.slane %v8453_v20, %v10725_v41 }
 0xbfe   : > { %v5537_v59 = vcombine.low %v5513_v2, %v5529_v43  ;;  %v5538_v8 = vcombine.high %v5513_v2, %v5529_v43  ;;  %v5506_v2 = vcombine.high %v11853_v6, %v11856_v11  ;;  %v5522_v43 = vcombine.high %v11859_v51, %v11862_v42 }
 0xbff   : > { %v5573_v29 = vcombine.low %v5548_v34, %v5556_v26  ;;  %v5589_v57 = vcombine.low %v5564_v61, %v5572_v44  ;;  %v5574_v11 = vcombine.high %v5548_v34, %v5556_v26 }
 0xc00   : > { %v11880_v30 = vpack.c.bf16 %v5537_v59, %v5537_v59  ;;  %v11884_v12 = vpop.eup %9534  ;;  %v11888_v54 = vpack.c.bf16 %v5538_v8, %v5538_v8 }
 0xc01   : > { %v5581_v1 = vrot.slane %v5573_v29, %v10727_v48  ;;  %v5597_v28 = vrot.slane %v5589_v57, %v10727_v48  ;;  %v6114_v13 = vpack.c.bf16 %v11884_v12, %v11884_v12  ;;  %v5520_v57 = vrot.slane %v5506_v2, %v10727_v48 }
 0xc02   : > { %v6125_v23 = vsel %vm2800_vm4, %v11880_v30, 0  ;;  %v6217_v9 = vsel %vm2800_vm4, %v11888_v54, 0 }
 0xc03   : > { %8972 = vmatpush3.bf16.msra.mxu1 %v6125_v23  ;;  %v5605_v5 = vcombine.low %v5581_v1, %v5597_v28  ;;  %v5606_v4 = vcombine.high %v5581_v1, %v5597_v28  ;;  %v5536_v1 = vrot.slane %v5522_v43, %v10727_v48  ;;  %v5590_v28 = vcombine.high %v5564_v61, %v5572_v44 }
 0xc04   : > { %8983 = vmatprep.subr.bf16.mxu1 %v10215_v0 }
 0xc05   : > { %v11893_v18 = vpack.c.bf16 %v5605_v5, %v5605_v5  ;;  %v11900_v19 = vpack.c.bf16 %v5606_v4, %v5606_v4  ;;  %v5539_v5 = vcombine.low %v5520_v57, %v5536_v1  ;;  %v5588_v4 = vrot.slane %v5574_v11, %v10727_v48 }
 0xc06   : > { %8974 = vmatmul.mubr.msk.bf16.vlgmr.msra.gmra.mxu1 %vm2676_vm3, %v6113_v52  ;;  %v5604_v52 = vrot.slane %v5590_v28, %v10727_v48 }
 0xc07   : > { %v6171_v10 = vsel %vm2800_vm4, %v11893_v18, 0  ;;  %8984 = vmatpush3.bf16.msra.mxu1 %v6217_v9  ;;  %8985 = vmatprep.mubr.msk.bf16.mxu1 %vm10216_vm0, %v10215_v0  ;;  %v6263_v36 = vsel %vm2800_vm4, %v11900_v19, 0  ;;  %v11946_v26 = vpack.c.bf16 %v5539_v5, %v5539_v5 }
 0xc08   : > { %8978 = vmatpush3.bf16.msra.mxu0 %v6171_v10  ;;  %8995 = vmatprep.subr.bf16.mxu1 %v10215_v0  ;;  %v5607_v44 = vcombine.low %v5588_v4, %v5604_v52  ;;  %v5608_v43 = vcombine.high %v5588_v4, %v5604_v52  ;;  %v6543_v4 = vrot.slane %v11616_v22, 2 }
 0xc09   : > { %8989 = vmatprep.subr.bf16.mxu0 %v10215_v0 }
 0xc0a   : > { %v6545_v52 = vsel %vm2291_vm2, %v6543_v4, 0 }
 0xc0b   : > { %8980 = vmatmul.mubr.msk.bf16.vlgmr.msra.gmra.mxu0 %vm2676_vm3, %v6114_v13  ;;  %v11955_v13 = vpack.c.bf16 %v5607_v44, %v5607_v44  ;;  %v6678_v44 = vrot.slane %v11707_v33, 2  ;;  %v6768_v33 = vrot.slane %v11737_v25, 2  ;;  %v7014_v25 = vrot.slane %v11880_v30, 2 }
 0xc0c   : > { %8990 = vmatpush3.bf16.msra.mxu0 %v6263_v36  ;;  %8991 = vmatprep.mubr.msk.bf16.mxu0 %vm10216_vm0, %v10215_v0 }
 0xc0d   : > { %9001 = vmatprep.subr.bf16.mxu0 %v10215_v0 }
 0xc1e   : > { %v11914_v37 = vpop.xlane.xlu1 %6008 }
 0xc1f   : > { %v6051_v49 = vsub.f32 %v11797_v50, %v11914_v37 }
 0xc21   : > { %v6061_v63 = vmul.f32 1.442695, %v6051_v49 }
 0xc22   : > { %v11920_v20 = vpop.xlane.xlu1 %6017 }
 0xc23   : > { %9536 = vpow2.f32 %v6061_v63  ;;  %v11918_v14 = vpop.xlane.xlu0 %6011  ;;  %v6054_v29 = vsub.f32 %v11802_v39, %v11920_v20  ;;  %v6355_v63 = vsel %vm2800_vm4, %v11955_v13, 0 }
 0xc24   : > { %v6052_v59 = vsub.f32 %v11805_v27, %v11918_v14 }
 0xc25   : > { %v6067_v51 = vmul.f32 1.442695, %v6054_v29 }
 0xc26   : > { %v6063_v8 = vmul.f32 1.442695, %v6052_v59  ;;  %v11936_v23 = vpop.xlane.xlu1 %6023 }
 0xc27   : > { %v11930_v50 = vpop.xlane.xlu0 %6014 }
 0xc28   : > { %9538 = vpow2.f32 %v6063_v8  ;;  %v6053_v6 = vsub.f32 %v11815_v47, %v11930_v50  ;;  %v6056_v47 = vsub.f32 %v11810_v60, %v11936_v23  ;;  %v5540_v60 = vcombine.high %v5520_v57, %v5536_v1 }
 0xc29   : > { %v11981_v1 = vpack.c.bf16 %v5608_v43, %v5608_v43 }
 0xc2a   : > { %v6065_v42 = vmul.f32 1.442695, %v6053_v6  ;;  %v6071_v10 = vmul.f32 1.442695, %v6056_v47  ;;  %v11967_v2 = vpack.c.bf16 %v5540_v60, %v5540_v60  ;;  %v6588_v47 = vrot.slane %v11686_v7, 2 }
 0xc2b   : > { %v11938_v27 = vpop.xlane.xlu0 %6020  ;;  %v6447_v28 = vsel %vm2800_vm4, %v11981_v1, 0 }
 0xc2c   : > { %9540 = vpow2.f32 %v6065_v42  ;;  %v6055_v39 = vsub.f32 %v11822_v38, %v11938_v27  ;;  %v6309_v38 = vsel %vm2800_vm4, %v11946_v26, 0  ;;  %v6401_v57 = vsel %vm2800_vm4, %v11967_v2, 0 }
 0xc2d   : > { %9542 = vpow2.f32 %v6067_v51  ;;  %v6498_v51 = vrot.slane %v11614_v24, 2  ;;  %v6590_v22 = vsel %vm2291_vm2, %v6588_v47, 0 }
 0xc2e   : > { %v6069_v34 = vmul.f32 1.442695, %v6055_v39 }
 0xc2f   : > { %v6500_v39 = vsel %vm2291_vm2, %v6498_v51, 0 }
 0xc30   : > { %v11948_v61 = vpop.eup %9536  ;;  %9544 = vpow2.f32 %v6069_v34  ;;  %v6633_v34 = vrot.slane %v11698_v53, 2  ;;  %v6723_v53 = vrot.slane %v11726_v32, 2  ;;  %v6813_v32 = vrot.slane %v11754_v56, 2 }
 0xc31   : > { %v6115_v9 = vpack.c.bf16 %v11948_v61, %v11948_v61  ;;  %9546 = vpow2.f32 %v6071_v10  ;;  %v7062_v56 = vrot.slane %v11893_v18, 2 }
 0xc32   : > { %v6635_v7 = vsel %vm2291_vm2, %v6633_v34, 0 }
 0xc33   : > { %8986 = vmatmul.mubr.msk.bf16.vlgmr.msra.gmra.mxu1 %vm2676_vm3, %v6115_v9 }
 0xc34   : > { %8996 = vmatpush3.bf16.msra.mxu1 %v6309_v38  ;;  %8997 = vmatprep.mubr.msk.bf16.mxu1 %vm10216_vm0, %v10215_v0 }
 0xc35   : > { %v11959_v36 = vpop.eup %9538  ;;  %9007 = vmatprep.subr.bf16.mxu1 %v10215_v0 }
 0xc36   : > { %v6116_v49 = vpack.c.bf16 %v11959_v36, %v11959_v36 }
 0xc38   : > { %8992 = vmatmul.mubr.msk.bf16.vlgmr.msra.gmra.mxu0 %vm2676_vm3, %v6116_v49 }
 0xc39   : > { %v11969_v59 = vpop.eup %9540  ;;  %9002 = vmatpush3.bf16.msra.mxu0 %v6355_v63  ;;  %9003 = vmatprep.mubr.msk.bf16.mxu0 %vm10216_vm0, %v10215_v0 }
 0xc3a   : > { %v6117_v8 = vpack.c.bf16 %v11969_v59, %v11969_v59  ;;  %9013 = vmatprep.subr.bf16.mxu0 %v10215_v0  ;;  %v11976_v29 = vpop.eup %9542 }
 0xc3b   : > { %v6118_v6 = vpack.c.bf16 %v11976_v29, %v11976_v29 }
 0xc3c   : > { %8998 = vmatmul.mubr.msk.bf16.vlgmr.msra.gmra.mxu1 %vm2676_vm3, %v6117_v8 }
 0xc3d   : > { %9008 = vmatpush3.bf16.msra.mxu1 %v6401_v57  ;;  %9009 = vmatprep.mubr.msk.bf16.mxu1 %vm10216_vm0, %v10215_v0  ;;  %v11988_v11 = vpop.eup %9544 }
 0xc3e   : > { %9019 = vmatprep.subr.bf16.mxu1 %v10215_v0  ;;  %v6119_v42 = vpack.c.bf16 %v11988_v11, %v11988_v11  ;;  %v11999_v5 = vpop.eup %9546 }
 0xc3f   : > { %v6120_v24 = vpack.c.bf16 %v11999_v5, %v11999_v5 }
 0xc40   : > { %9004 = vmatmul.mubr.msk.bf16.vlgmr.msra.gmra.mxu0 %vm2676_vm3, %v6118_v6 }
 0xc41   : > { %9014 = vmatpush3.bf16.msra.mxu0 %v6447_v28  ;;  %9015 = vmatprep.mubr.msk.bf16.mxu0 %vm10216_vm0, %v10215_v0 }
 0xc42   : > { %9025 = vmatprep.subr.bf16.mxu0 %v10215_v0 }
 0xc44   : > { %9010 = vmatmul.mubr.msk.bf16.vlgmr.msra.gmra.mxu1 %vm2676_vm3, %v6119_v42 }
 0xc45   : > { %9020 = vmatpush3.bf16.xpose.msra.mxu1 %v6500_v39  ;;  %9021 = vmatprep.mubr.msk.bf16.mxu1 %vm10216_vm0, %v10215_v0 }
 0xc46   : > { %9031 = vmatprep.subr.bf16.mxu1 %v10215_v0 }
 0xc48   : > { %9016 = vmatmul.mubr.msk.bf16.vlgmr.msra.gmra.mxu0 %vm2676_vm3, %v6120_v24 }
 0xc49   : > { %9026 = vmatpush3.bf16.xpose.msra.mxu0 %v6545_v52  ;;  %9027 = vmatprep.mubr.msk.bf16.mxu0 %vm10216_vm0, %v10215_v0 }
 0xc4a   : > { %9037 = vmatprep.subr.bf16.mxu0 %v10215_v0 }
 0xc4c   : > { %9022 = vmatmul.mubr.msk.bf16.vlgmr.msra.gmra.mxu1 %vm2291_vm2, %v11688_v17  ;;  %v6680_v17 = vsel %vm2291_vm2, %v6678_v44, 0 }
 0xc4d   : > { %9032 = vmatpush3.bf16.xpose.msra.mxu1 %v6590_v22  ;;  %9033 = vmatprep.mubr.msk.bf16.mxu1 %vm10216_vm0, %v10215_v0 }
 0xc4e   : > { %9043 = vmatprep.subr.bf16.mxu1 %v10215_v0 }
 0xc50   : > { %9028 = vmatmul.mubr.msk.bf16.vlgmr.msra.gmra.mxu0 %vm2291_vm2, %v11703_v45  ;;  %v6725_v45 = vsel %vm2291_vm2, %v6723_v53, 0 }
 0xc51   : > { %9038 = vmatpush3.bf16.xpose.msra.mxu0 %v6635_v7  ;;  %9039 = vmatprep.mubr.msk.bf16.mxu0 %vm10216_vm0, %v10215_v0 }
 0xc52   : > { %9049 = vmatprep.subr.bf16.mxu0 %v10215_v0 }
 0xc54   : > { %9034 = vmatmul.mubr.msk.bf16.vlgmr.msra.gmra.mxu1 %vm2291_vm2, %v11713_v35  ;;  %v6770_v35 = vsel %vm2291_vm2, %v6768_v33, 0 }
 0xc55   : > { %9044 = vmatpush3.bf16.xpose.msra.mxu1 %v6680_v17  ;;  %9045 = vmatprep.mubr.msk.bf16.mxu1 %vm10216_vm0, %v10215_v0 }
 0xc56   : > { %9055 = vmatprep.subr.bf16.mxu1 %v10215_v0 }
 0xc58   : > { %9040 = vmatmul.mubr.msk.bf16.vlgmr.msra.gmra.mxu0 %vm2291_vm2, %v11731_v31  ;;  %v6815_v31 = vsel %vm2291_vm2, %v6813_v32, 0 }
 0xc59   : > { %9050 = vmatpush3.bf16.xpose.msra.mxu0 %v6725_v45  ;;  %9051 = vmatprep.mubr.msk.bf16.mxu0 %vm10216_vm0, %v10215_v0 }
 0xc5a   : > { %9061 = vmatprep.subr.bf16.mxu0 %v10215_v0 }
 0xc5c   : > { %9046 = vmatmul.mubr.msk.bf16.vlgmr.msra.gmra.mxu1 %vm2291_vm2, %v11743_v58  ;;  %v7019_v58 = vsel %vm2800_vm4, %v7014_v25, 0 }
 0xc5d   : > { %9056 = vmatpush3.bf16.xpose.msra.mxu1 %v6770_v35  ;;  %9057 = vmatprep.mubr.msk.bf16.mxu1 %vm10216_vm0, %v10215_v0  ;;  %v12086_v35 = vpop.permute.xlu0 %6866 }
 0xc5e   : > { %9067 = vmatprep.subr.bf16.mxu1 %v10215_v0 }
 0xc60   : > { %9052 = vmatmul.mubr.msk.bf16.vlgmr.msra.gmra.mxu0 %vm2291_vm2, %v11759_v15  ;;  %v7067_v15 = vsel %vm2800_vm4, %v7062_v56, 0 }
 0xc61   : > { %9062 = vmatpush3.bf16.xpose.msra.mxu0 %v6815_v31  ;;  %9063 = vmatprep.mubr.msk.bf16.mxu0 %vm10216_vm0, %v10215_v0 }
 0xc62   : > { %9073 = vmatprep.subr.bf16.mxu0 %v10215_v0 }
 0xc64   : > { %9058 = vmatmul.mubr.msk.bf16.vlgmr.msra.gmra.mxu1 %vm2291_vm2, %v11765_v40 }
 0xc65   : > { %9068 = vmatpush3.bf16.msra.mxu1 %v7019_v58  ;;  %9069 = vmatprep.mubr.msk.bf16.mxu1 %vm10216_vm0, %v10215_v0 }
 0xc66   : > { %9079 = vmatprep.subr.bf16.mxu1 %v10215_v0 }
 0xc68   : > { %9064 = vmatmul.mubr.msk.bf16.vlgmr.msra.gmra.mxu0 %vm2291_vm2, %v11774_v21 }
 0xc69   : > { %9074 = vmatpush3.bf16.msra.mxu0 %v7067_v15  ;;  %9075 = vmatprep.mubr.msk.bf16.mxu0 %vm10216_vm0, %v10215_v0 }
 0xc6a   : > { %9085 = vmatprep.subr.bf16.mxu0 %v10215_v0 }
 0xcc6   : > { %v12070_v40 = vpop.f32.mrf.mxu1 }
 0xcc8   : > { %v8975_v30 = vpop.f32.mrf.mxu1 }
 0xcca   : > { %v6164_v18 = vpop.f32.mrf.mxu1 }
 0xccb   : > { %v12072_v9 = vpop.f32.mrf.mxu0 }
 0xccc   : > { %v8976_v10 = vpop.f32.mrf.mxu1 }
 0xccd   : > { %v8981_v38 = vpop.f32.mrf.mxu0 }
 0xccf   : > { %v6210_v60 = vpop.f32.mrf.mxu0 }
 0xcd1   : > { %v8982_v49 = vpop.f32.mrf.mxu0 }
 0xcf3   : > { %v12074_v63 = vpop.f32.mrf.mxu1 }
 0xcf5   : > { %v8987_v21 = vpop.f32.mrf.mxu1 }
 0xcf7   : > { %v6256_v43 = vpop.f32.mrf.mxu1 }
 0xcf8   : > { %v12076_v8 = vpop.f32.mrf.mxu0 }
 0xcf9   : > { %v8988_v57 = vpop.f32.mrf.mxu1 }
 0xcfa   : > { %v8993_v6 = vpop.f32.mrf.mxu0 }
 0xcfc   : > { %v6302_v28 = vpop.f32.mrf.mxu0  ;;  %v12078_v51 = vpop.f32.mrf.mxu1 }
 0xcfe   : > { %v8994_v42 = vpop.f32.mrf.mxu0  ;;  %v8999_v39 = vpop.f32.mrf.mxu1 }
 0xd00   : > { %v6348_v4 = vpop.f32.mrf.mxu1  ;;  %v12080_v24 = vpop.f32.mrf.mxu0 }
 0xd02   : > { %v9000_v52 = vpop.f32.mrf.mxu1  ;;  %v9005_v47 = vpop.f32.mrf.mxu0 }
 0xd04   : > { %v6394_v22 = vpop.f32.mrf.mxu0  ;;  %v12082_v34 = vpop.f32.mrf.mxu1 }
 0xd06   : > { %v9006_v7 = vpop.f32.mrf.mxu0  ;;  %v9011_v44 = vpop.f32.mrf.mxu1 }
 0xd08   : > { %v6440_v17 = vpop.f32.mrf.mxu1  ;;  %v12084_v53 = vpop.f32.mrf.mxu0 }
 0xd0a   : > { %v9012_v45 = vpop.f32.mrf.mxu1  ;;  %v9017_v33 = vpop.f32.mrf.mxu0 }
 0xd0c   : > { %v6486_v32 = vpop.f32.mrf.mxu0  ;;  %v6536_v31 = vpop.f32.mrf.mxu1 }
 0xd0d   : > { %v6857_v25 = vmul.f32 0.35355338, %v6536_v31 }
 0xd0e   : > { %v9023_v58 = vpop.f32.mrf.mxu1  ;;  %v9018_v56 = vpop.f32.mrf.mxu0 }
 0xd0f   : > { %v12089_v15 = vadd.f32 %v12086_v35, %v6857_v25 }
 0xd10   : > { %v6539_v30 = vpop.f32.mrf.mxu1  ;;  %v6581_v18 = vpop.f32.mrf.mxu0 }
 0xd11   : > { %v6858_v10 = vmul.f32 0.35355338, %v6581_v18  ;;  %v6877_v38 = vsel %vm2676_vm3, %v12089_v15, -inf }
 0xd12   : > { %v9024_v60 = vpop.f32.mrf.mxu1  ;;  %6878 = vmax.xlane.f32.xlu1 %v6877_v38  ;;  %v9029_v49 = vpop.f32.mrf.mxu0 }
 0xd13   : > { %v12094_v21 = vadd.f32 %v12086_v35, %v6858_v10 }
 0xd14   : > { %v6584_v43 = vpop.f32.mrf.mxu0  ;;  %v6626_v57 = vpop.f32.mrf.mxu1 }
 0xd15   : > { %v6859_v6 = vmul.f32 0.35355338, %v6626_v57  ;;  %v6880_v28 = vsel %vm2676_vm3, %v12094_v21, -inf }
 0xd16   : > { %v9035_v42 = vpop.f32.mrf.mxu1  ;;  %6881 = vmax.xlane.f32.xlu1 %v6880_v28  ;;  %v9030_v39 = vpop.f32.mrf.mxu0 }
 0xd17   : > { %v12099_v4 = vadd.f32 %v12086_v35, %v6859_v6 }
 0xd18   : > { %v6629_v52 = vpop.f32.mrf.mxu1  ;;  %v6671_v47 = vpop.f32.mrf.mxu0 }
 0xd19   : > { %v6860_v22 = vmul.f32 0.35355338, %v6671_v47  ;;  %v6883_v7 = vsel %vm2676_vm3, %v12099_v4, -inf }
 0xd1a   : > { %v9036_v44 = vpop.f32.mrf.mxu1  ;;  %6884 = vmax.xlane.f32.xlu1 %v6883_v7  ;;  %v9041_v17 = vpop.f32.mrf.mxu0 }
 0xd1b   : > { %v12104_v45 = vadd.f32 %v12086_v35, %v6860_v22 }
 0xd1c   : > { %v6674_v33 = vpop.f32.mrf.mxu0  ;;  %v6716_v32 = vpop.f32.mrf.mxu1 }
 0xd1d   : > { %v6861_v31 = vmul.f32 0.35355338, %v6716_v32  ;;  %v6886_v25 = vsel %vm2676_vm3, %v12104_v45, -inf  ;;  %v6099_v32 = vsel %vm2676_vm3, %v11988_v11, 0.0  ;;  %v6084_v11 = vsel %vm2676_vm3, %v11884_v12, 0.0 }
 0xd1e   : > { %v9047_v58 = vpop.f32.mrf.mxu1  ;;  %6887 = vmax.xlane.f32.xlu1 %v6886_v25  ;;  %v9042_v56 = vpop.f32.mrf.mxu0  ;;  %v6102_v12 = vsel %vm2676_vm3, %v11999_v5, 0.0 }
 0xd1f   : > { %v12109_v30 = vadd.f32 %v12086_v35, %v6861_v31 }
 0xd20   : > { %v6719_v18 = vpop.f32.mrf.mxu1  ;;  %v6761_v10 = vpop.f32.mrf.mxu0 }
 0xd21   : > { %v6862_v38 = vmul.f32 0.35355338, %v6761_v10  ;;  %v6889_v60 = vsel %vm2676_vm3, %v12109_v30, -inf }
 0xd22   : > { %v9048_v49 = vpop.f32.mrf.mxu1  ;;  %6890 = vmax.xlane.f32.xlu1 %v6889_v60  ;;  %v9053_v43 = vpop.f32.mrf.mxu0  ;;  %v6087_v60 = vsel %vm2676_vm3, %v11948_v61, 0.0 }
 0xd23   : > { %v12114_v57 = vadd.f32 %v12086_v35, %v6862_v38  ;;  %v6081_v38 = vsel %vm2676_vm3, %v11878_v16, 0.0  ;;  %v6093_v49 = vsel %vm2676_vm3, %v11969_v59, 0.0  ;;  %v6096_v16 = vsel %vm2676_vm3, %v11976_v29, 0.0 }
 0xd24   : > { %v6764_v6 = vpop.f32.mrf.mxu0  ;;  %v6806_v28 = vpop.f32.mrf.mxu1  ;;  %v6025_v43 = vsub.f32 -inf, %v11828_v62  ;;  %v6028_v29 = vsub.f32 -inf, %v11918_v14 }
 0xd25   : > { %v6863_v42 = vmul.f32 0.35355338, %v6806_v28  ;;  %v6892_v39 = vsel %vm2676_vm3, %v12114_v57, -inf  ;;  %v6026_v6 = vsub.f32 -inf, %v11834_v55 }
 0xd26   : > { %v9059_v52 = vpop.f32.mrf.mxu1  ;;  %6893 = vmax.xlane.f32.xlu0 %v6892_v39  ;;  %v9054_v47 = vpop.f32.mrf.mxu0  ;;  %v6033_v61 = vmul.f32 1.442695, %v6025_v43  ;;  %v6031_v43 = vsub.f32 -inf, %v11938_v27 }
 0xd27   : > { %v12119_v22 = vadd.f32 %v12086_v35, %v6863_v42  ;;  %v6035_v28 = vmul.f32 1.442695, %v6026_v6 }
 0xd28   : > { %v6809_v7 = vpop.f32.mrf.mxu1  ;;  %v6851_v44 = vpop.f32.mrf.mxu0  ;;  %9548 = vpow2.f32 %v6033_v61 }
 0xd29   : > { %v6864_v17 = vmul.f32 0.35355338, %v6851_v44  ;;  %v6895_v33 = vsel %vm2676_vm3, %v12119_v22, -inf  ;;  %9550 = vpow2.f32 %v6035_v28 }
 0xd2a   : > { %v9060_v31 = vpop.f32.mrf.mxu1  ;;  %6896 = vmax.xlane.f32.xlu1 %v6895_v33  ;;  %6100 = vadd.xlane.f32.xlu0 %v6099_v32  ;;  %v9065_v25 = vpop.f32.mrf.mxu0  ;;  %v6039_v33 = vmul.f32 1.442695, %v6028_v29  ;;  %v6045_v29 = vmul.f32 1.442695, %v6031_v43 }
 0xd2b   : > { %v12126_v58 = vadd.f32 %v12086_v35, %v6864_v17  ;;  %v6090_v35 = vsel %vm2676_vm3, %v11959_v36, 0.0  ;;  %v6027_v36 = vsub.f32 -inf, %v11914_v37 }
 0xd2c   : > { %v6854_v56 = vpop.f32.mrf.mxu0 }
 0xd2d   : > { %v6898_v18 = vsel %vm2676_vm3, %v12126_v58, -inf  ;;  %v6037_v39 = vmul.f32 1.442695, %v6027_v36  ;;  %v6029_v56 = vsub.f32 -inf, %v11930_v50 }
 0xd2e   : > { %6899 = vmax.xlane.f32.xlu1 %v6898_v18  ;;  %v9066_v10 = vpop.f32.mrf.mxu0 }
 0xd2f   : > { %9552 = vpow2.f32 %v6037_v39  ;;  %v6030_v10 = vsub.f32 -inf, %v11920_v20  ;;  %v6032_v39 = vsub.f32 -inf, %v11936_v23 }
 0xd32   : > { %6082 = vadd.xlane.f32.xlu1 %v6081_v38 }
 0xd36   : > { %6085 = vadd.xlane.f32.xlu1 %v6084_v11 }
 0xd3a   : > { %6088 = vadd.xlane.f32.xlu1 %v6087_v60  ;;  %v9549_v60 = vpop.eup %9548 }
 0xd3b   : > { %v12163_v36 = vmul.f32 0.0, %v9549_v60 }
 0xd3e   : > { %6091 = vadd.xlane.f32.xlu1 %v6090_v35 }
 0xd42   : > { %6094 = vadd.xlane.f32.xlu1 %v6093_v49 }
 0xd46   : > { %6097 = vadd.xlane.f32.xlu1 %v6096_v16 }
 0xd4a   : > { %6103 = vadd.xlane.f32.xlu1 %v6102_v12  ;;  %v6043_v12 = vmul.f32 1.442695, %v6030_v10 }
 0xd9b   : > { %v6879_v42 = vpop.xlane.xlu1 %6878 }
 0xd9c   : > { %v6901_v59 = vmax.f32 %v11828_v62, %v6879_v42 }
 0xd9e   : > { %v6909_v52 = vsub.f32 %v11828_v62, %v6901_v59  ;;  %v6933_v5 = vsub.f32 %v12089_v15, %v6901_v59 }
 0xd9f   : > { %v6882_v47 = vpop.xlane.xlu1 %6881 }
 0xda0   : > { %v6917_v7 = vmul.f32 1.442695, %v6909_v52  ;;  %v6941_v44 = vmul.f32 1.442695, %v6933_v5  ;;  %v6902_v17 = vmax.f32 %v11834_v55, %v6882_v47 }
 0xda2   : > { %9554 = vpow2.f32 %v6917_v7  ;;  %v6910_v32 = vsub.f32 %v11834_v55, %v6902_v17  ;;  %v6934_v31 = vsub.f32 %v12094_v21, %v6902_v17  ;;  %v6041_v21 = vmul.f32 1.442695, %v6029_v56 }
 0xda3   : > { %9556 = vpow2.f32 %v6941_v44  ;;  %v6885_v25 = vpop.xlane.xlu1 %6884  ;;  %v7110_v17 = vrot.slane %v11888_v54, 2  ;;  %v6047_v56 = vmul.f32 1.442695, %v6032_v39 }
 0xda4   : > { %v6919_v62 = vmul.f32 1.442695, %v6910_v32  ;;  %v6943_v18 = vmul.f32 1.442695, %v6934_v31  ;;  %v6903_v15 = vmax.f32 %v11914_v37, %v6885_v25  ;;  %9558 = vpow2.f32 %v6039_v33 }
 0xda6   : > { %9560 = vpow2.f32 %v6919_v62  ;;  %v6911_v38 = vsub.f32 %v11914_v37, %v6903_v15  ;;  %v6935_v11 = vsub.f32 %v12099_v4, %v6903_v15  ;;  %v9551_v4 = vpop.eup %9550 }
 0xda7   : > { %9562 = vpow2.f32 %v6943_v18  ;;  %v6888_v55 = vpop.xlane.xlu1 %6887  ;;  %v9553_v52 = vpop.eup %9552  ;;  %v12173_v7 = vmul.f32 0.0, %v9551_v4 }
 0xda8   : > { %v6921_v35 = vmul.f32 1.442695, %v6911_v38  ;;  %v6945_v49 = vmul.f32 1.442695, %v6935_v11  ;;  %v6904_v16 = vmax.f32 %v11918_v14, %v6888_v55  ;;  %v7115_v38 = vsel %vm2800_vm4, %v7110_v17, 0 }
 0xda9   : > { %v6490_v10 = vadd.f32 %v12072_v9, %v12173_v7  ;;  %v7158_v55 = vrot.slane %v11900_v19, 2 }
 0xdaa   : > { %9564 = vpow2.f32 %v6921_v35  ;;  %v6912_v61 = vsub.f32 %v11918_v14, %v6904_v16  ;;  %v6936_v6 = vsub.f32 %v12104_v45, %v6904_v16  ;;  %v6489_v14 = vadd.f32 %v12070_v40, %v12163_v36 }
 0xdab   : > { %9566 = vpow2.f32 %v6945_v49  ;;  %v6891_v37 = vpop.xlane.xlu1 %6890 }
 0xdac   : > { %9568 = vpow2.f32 %v6041_v21  ;;  %v6923_v28 = vmul.f32 1.442695, %v6912_v61  ;;  %v6947_v42 = vmul.f32 1.442695, %v6936_v6  ;;  %v6905_v59 = vmax.f32 %v11930_v50, %v6891_v37 }
 0xdad   : > { %9570 = vpow2.f32 %v6043_v12  ;;  %v12190_v21 = vmul.f32 0.0, %v9553_v52  ;;  %v7163_v37 = vsel %vm2800_vm4, %v7158_v55, 0 }
 0xdae   : > { %9572 = vpow2.f32 %v6923_v28  ;;  %v6913_v45 = vsub.f32 %v11930_v50, %v6905_v59  ;;  %v6937_v5 = vsub.f32 %v12109_v30, %v6905_v59  ;;  %v7206_v28 = vrot.slane %v11946_v26, 2 }
 0xdaf   : > { %v12171_v47 = vpop.eup %9554  ;;  %9574 = vpow2.f32 %v6947_v42  ;;  %v6894_v44 = vpop.xlane.xlu0 %6893  ;;  %v6491_v19 = vadd.f32 %v12074_v63, %v12190_v21 }
 0xdb0   : > { %v9557_v33 = vpop.eup %9556  ;;  %v6925_v32 = vmul.f32 1.442695, %v6913_v45  ;;  %v6949_v31 = vmul.f32 1.442695, %v6937_v5  ;;  %v6906_v25 = vmax.f32 %v11920_v20, %v6894_v44  ;;  %v12178_v40 = vmul.f32 %v12171_v47, %v6489_v14 }
 0xdb1   : > { %9576 = vpow2.f32 %v6045_v29  ;;  %v6965_v50 = vsel %vm2676_vm3, %v9557_v33, 0.0  ;;  %v7005_v30 = vpack.c.bf16 %v9557_v33, %v9557_v33  ;;  %v9559_v62 = vpop.eup %9558  ;;  %v7211_v17 = vsel %vm2800_vm4, %v7206_v28, 0 }
 0xdb2   : > { %9578 = vpow2.f32 %v6925_v32  ;;  %v6914_v18 = vsub.f32 %v11920_v20, %v6906_v25  ;;  %v6938_v15 = vsub.f32 %v12114_v57, %v6906_v25  ;;  %6966 = vadd.xlane.f32.xlu0 %v6965_v50  ;;  %v12206_v6 = vmul.f32 0.0, %v9559_v62 }
 0xdb3   : > { %v12183_v54 = vpop.eup %9560  ;;  %9580 = vpow2.f32 %v6949_v31  ;;  %9070 = vmatmul.mubr.msk.bf16.vlgmr.msra.gmra.mxu1 %vm2676_vm3, %v7005_v30  ;;  %v6897_v11 = vpop.xlane.xlu1 %6896  ;;  %v7254_v33 = vrot.slane %v11955_v13, 2 }
 0xdb4   : > { %v9563_v60 = vpop.eup %9562  ;;  %v6927_v20 = vmul.f32 1.442695, %v6914_v18  ;;  %v6951_v35 = vmul.f32 1.442695, %v6938_v15  ;;  %9080 = vmatpush3.bf16.msra.mxu1 %v7115_v38  ;;  %v6907_v57 = vmax.f32 %v11938_v27, %v6897_v11  ;;  %9081 = vmatprep.mubr.msk.bf16.mxu1 %vm10216_vm0, %v10215_v0  ;;  %9582 = vpow2.f32 %v6047_v56 }
 0xdb5   : > { %v6968_v9 = vsel %vm2676_vm3, %v9563_v60, 0.0  ;;  %v7006_v49 = vpack.c.bf16 %v9563_v60, %v9563_v60  ;;  %9091 = vmatprep.subr.bf16.mxu1 %v10215_v0  ;;  %v12198_v16 = vmul.f32 %v12183_v54, %v6490_v10  ;;  %v6492_v26 = vadd.f32 %v12076_v8, %v12206_v6 }
 0xdb6   : > { %9584 = vpow2.f32 %v6927_v20  ;;  %v6915_v12 = vsub.f32 %v11938_v27, %v6907_v57  ;;  %v6939_v43 = vsub.f32 %v12119_v22, %v6907_v57  ;;  %6969 = vadd.xlane.f32.xlu1 %v6968_v9  ;;  %v7259_v62 = vsel %vm2800_vm4, %v7254_v33, 0  ;;  %v6101_v33 = vpop.xlane.xlu0 %6100 }
 0xdb7   : > { %v12204_v61 = vpop.eup %9564  ;;  %9586 = vpow2.f32 %v6951_v35  ;;  %9076 = vmatmul.mubr.msk.bf16.vlgmr.msra.gmra.mxu0 %vm2676_vm3, %v7006_v49  ;;  %v6900_v4 = vpop.xlane.xlu1 %6899  ;;  %v7302_v18 = vrot.slane %v11967_v2, 2  ;;  %v7350_v35 = vrot.slane %v11981_v1, 2 }
 0xdb8   : > { %v9567_v42 = vpop.eup %9566  ;;  %v6929_v63 = vmul.f32 1.442695, %v6915_v12  ;;  %v6953_v59 = vmul.f32 1.442695, %v6939_v43  ;;  %9086 = vmatpush3.bf16.msra.mxu0 %v7163_v37  ;;  %v6908_v27 = vmax.f32 %v11936_v23, %v6900_v4  ;;  %9087 = vmatprep.mubr.msk.bf16.mxu0 %vm10216_vm0, %v10215_v0  ;;  %v12215_v22 = vmul.f32 %v12204_v61, %v6491_v19 }
 0xdb9   : > { %v9569_v39 = vpop.eup %9568  ;;  %v6971_v29 = vsel %vm2676_vm3, %v9567_v42, 0.0  ;;  %v7007_v52 = vpack.c.bf16 %v9567_v42, %v9567_v42  ;;  %9097 = vmatprep.subr.bf16.mxu0 %v10215_v0  ;;  %v7307_v20 = vsel %vm2800_vm4, %v7302_v18, 0  ;;  %v7355_v43 = vsel %vm2800_vm4, %v7350_v35, 0 }
 0xdba   : > { %v9571_v14 = vpop.eup %9570  ;;  %9588 = vpow2.f32 %v6929_v63  ;;  %v6916_v45 = vsub.f32 %v11936_v23, %v6908_v27  ;;  %v6940_v5 = vsub.f32 %v12126_v58, %v6908_v27  ;;  %6972 = vadd.xlane.f32.xlu0 %v6971_v29  ;;  %v12228_v31 = vmul.f32 0.0, %v9569_v39 }
 0xdbb   : > { %v12223_v44 = vpop.eup %9572  ;;  %9590 = vpow2.f32 %v6953_v59  ;;  %9082 = vmatmul.mubr.msk.bf16.vlgmr.msra.gmra.mxu1 %vm2676_vm3, %v7007_v52  ;;  %v12244_v10 = vmul.f32 0.0, %v9571_v14 }
 0xdbc   : > { %v9575_v32 = vpop.eup %9574  ;;  %v6931_v25 = vmul.f32 1.442695, %v6916_v45  ;;  %v6955_v8 = vmul.f32 1.442695, %v6940_v5  ;;  %9092 = vmatpush3.bf16.msra.mxu1 %v7211_v17  ;;  %9093 = vmatprep.mubr.msk.bf16.mxu1 %vm10216_vm0, %v10215_v0  ;;  %v12233_v23 = vmul.f32 %v12223_v44, %v6492_v26  ;;  %v6493_v13 = vadd.f32 %v12078_v51, %v12228_v31 }
 0xdbd   : > { %v6974_v58 = vsel %vm2676_vm3, %v9575_v32, 0.0  ;;  %v7008_v56 = vpack.c.bf16 %v9575_v32, %v9575_v32  ;;  %9103 = vmatprep.subr.bf16.mxu1 %v10215_v0  ;;  %v6494_v60 = vadd.f32 %v12080_v24, %v12244_v10 }
 0xdbe   : > { %v9577_v50 = vpop.eup %9576  ;;  %9592 = vpow2.f32 %v6931_v25  ;;  %6975 = vadd.xlane.f32.xlu1 %v6974_v58 }
 0xdbf   : > { %v12239_v30 = vpop.eup %9578  ;;  %9594 = vpow2.f32 %v6955_v8  ;;  %9088 = vmatmul.mubr.msk.bf16.vlgmr.msra.gmra.mxu0 %vm2676_vm3, %v7008_v56  ;;  %v12260_v9 = vmul.f32 0.0, %v9577_v50 }
 0xdc0   : > { %v9581_v15 = vpop.eup %9580  ;;  %9098 = vmatpush3.bf16.msra.mxu0 %v7259_v62  ;;  %9099 = vmatprep.mubr.msk.bf16.mxu0 %vm10216_vm0, %v10215_v0  ;;  %v12249_v51 = vmul.f32 %v12239_v30, %v6493_v13 }
 0xdc1   : > { %v6977_v38 = vsel %vm2676_vm3, %v9581_v15, 0.0  ;;  %v7009_v11 = vpack.c.bf16 %v9581_v15, %v9581_v15  ;;  %9109 = vmatprep.subr.bf16.mxu0 %v10215_v0  ;;  %v9583_v55 = vpop.eup %9582  ;;  %v6495_v12 = vadd.f32 %v12082_v34, %v12260_v9 }
 0xdc2   : > { %6978 = vadd.xlane.f32.xlu0 %v6977_v38  ;;  %v12275_v4 = vmul.f32 0.0, %v9583_v55 }
 0xdc3   : > { %v12255_v2 = vpop.eup %9584  ;;  %9094 = vmatmul.mubr.msk.bf16.vlgmr.msra.gmra.mxu1 %vm2676_vm3, %v7009_v11 }
 0xdc4   : > { %v9587_v57 = vpop.eup %9586  ;;  %9104 = vmatpush3.bf16.msra.mxu1 %v7307_v20  ;;  %9105 = vmatprep.mubr.msk.bf16.mxu1 %vm10216_vm0, %v10215_v0  ;;  %v12265_v49 = vmul.f32 %v12255_v2, %v6494_v60  ;;  %v6496_v63 = vadd.f32 %v12084_v53, %v12275_v4  ;;  %v6083_v53 = vpop.xlane.xlu1 %6082 }
 0xdc5   : > { %v6980_v24 = vsel %vm2676_vm3, %v9587_v57, 0.0  ;;  %v7010_v19 = vpack.c.bf16 %v9587_v57, %v9587_v57  ;;  %9115 = vmatprep.subr.bf16.mxu1 %v10215_v0  ;;  %v6105_v32 = vadd.f32 %v6083_v53, %v12163_v36 }
 0xdc6   : > { %6981 = vadd.xlane.f32.xlu1 %v6980_v24 }
 0xdc7   : > { %v12271_v1 = vpop.eup %9588  ;;  %9100 = vmatmul.mubr.msk.bf16.vlgmr.msra.gmra.mxu0 %vm2676_vm3, %v7010_v19  ;;  %v6957_v56 = vmul.f32 %v12171_v47, %v6105_v32 }
 0xdc8   : > { %v9591_v37 = vpop.eup %9590  ;;  %9110 = vmatpush3.bf16.msra.mxu0 %v7355_v43  ;;  %9111 = vmatprep.mubr.msk.bf16.mxu0 %vm10216_vm0, %v10215_v0  ;;  %v12280_v28 = vmul.f32 %v12271_v1, %v6495_v12  ;;  %v6086_v14 = vpop.xlane.xlu1 %6085 }
 0xdc9   : > { %v6983_v42 = vsel %vm2676_vm3, %v9591_v37, 0.0  ;;  %v7011_v34 = vpack.c.bf16 %v9591_v37, %v9591_v37  ;;  %9123 = vmatprep.subr.bf16.mxu0 %v10215_v0  ;;  %v6106_v58 = vadd.f32 %v6086_v14, %v12173_v7 }
 0xdca   : > { %6984 = vadd.xlane.f32.xlu0 %v6983_v42  ;;  %v6111_v42 = vadd.f32 %v6101_v33, %v12260_v9 }
 0xdcb   : > { %v12286_v59 = vpop.eup %9592  ;;  %9106 = vmatmul.mubr.msk.bf16.vlgmr.msra.gmra.mxu1 %vm2676_vm3, %v7011_v34  ;;  %v6958_v18 = vmul.f32 %v12183_v54, %v6106_v58 }
 0xdcc   : > { %v9595_v27 = vpop.eup %9594  ;;  %v12290_v39 = vmul.f32 %v12286_v59, %v6496_v63  ;;  %9119 = vmatprep.mubr.msk.bf16.mxu1 %vm10216_vm0, %v10215_v0  ;;  %v6089_v26 = vpop.xlane.xlu1 %6088 }
 0xdcd   : > { %v6986_v29 = vsel %vm2676_vm3, %v9595_v27, 0.0  ;;  %v7012_v52 = vpack.c.bf16 %v9595_v27, %v9595_v27  ;;  %v6107_v62 = vadd.f32 %v6089_v26, %v12190_v21 }
 0xdce   : > { %6987 = vadd.xlane.f32.xlu1 %v6986_v29 }
 0xdcf   : > { %9112 = vmatmul.mubr.msk.bf16.vlgmr.msra.gmra.mxu0 %vm2676_vm3, %v7012_v52  ;;  %v6959_v55 = vmul.f32 %v12204_v61, %v6107_v62  ;;  %v6963_v52 = vmul.f32 %v12271_v1, %v6111_v42 }
 0xdd0   : > { %9127 = vmatprep.mubr.msk.bf16.mxu0 %vm10216_vm0, %v10215_v0  ;;  %v6092_v45 = vpop.xlane.xlu1 %6091 }
 0xdd1   : > { %v6108_v11 = vadd.f32 %v6092_v45, %v12206_v6 }
 0xdd3   : > { %v6960_v47 = vmul.f32 %v12223_v44, %v6108_v11 }
 0xdd4   : > { %v6095_v5 = vpop.xlane.xlu1 %6094 }
 0xdd5   : > { %v6109_v7 = vadd.f32 %v6095_v5, %v12228_v31 }
 0xdd7   : > { %v6961_v54 = vmul.f32 %v12239_v30, %v6109_v7 }
 0xdd8   : > { %v6098_v17 = vpop.xlane.xlu1 %6097 }
 0xdd9   : > { %v6110_v21 = vadd.f32 %v6098_v17, %v12244_v10 }
 0xddb   : > { %v6962_v43 = vmul.f32 %v12255_v2, %v6110_v21 }
 0xddc   : > { %v6104_v25 = vpop.xlane.xlu1 %6103 }
 0xe3b   : > { %v6967_v8 = vpop.xlane.xlu0 %6966 }
 0xe3c   : > { %v6989_v50 = vadd.f32 %v6967_v8, %v6957_v56 }
 0xe3e   : > { %9596 = vrcp.f32 %v6989_v50 }
 0xe3f   : > { %v6970_v13 = vpop.xlane.xlu1 %6969 }
 0xe40   : > { %v6990_v15 = vadd.f32 %v6970_v13, %v6958_v18 }
 0xe42   : > { %9598 = vrcp.f32 %v6990_v15 }
 0xe43   : > { %v6973_v38 = vpop.xlane.xlu0 %6972 }
 0xe44   : > { %v6991_v36 = vadd.f32 %v6973_v38, %v6959_v55 }
 0xe46   : > { %9600 = vrcp.f32 %v6991_v36 }
 0xe47   : > { %v6976_v60 = vpop.xlane.xlu1 %6975 }
 0xe48   : > { %v6992_v20 = vadd.f32 %v6976_v60, %v6960_v47 }
 0xe4a   : > { %9602 = vrcp.f32 %v6992_v20 }
 0xe4b   : > { %v6979_v35 = vpop.xlane.xlu0 %6978  ;;  %v9597_v61 = vpop.eup %9596 }
 0xe4c   : > { %v6993_v24 = vadd.f32 %v6979_v35, %v6961_v54 }
 0xe4e   : > { %9604 = vrcp.f32 %v6993_v24 }
 0xe4f   : > { %v6982_v19 = vpop.xlane.xlu1 %6981  ;;  %v9599_v63 = vpop.eup %9598 }
 0xe50   : > { %v6994_v10 = vadd.f32 %v6982_v19, %v6962_v43 }
 0xe52   : > { %9606 = vrcp.f32 %v6994_v10 }
 0xe53   : > { %v6985_v34 = vpop.xlane.xlu0 %6984  ;;  %v9601_v5 = vpop.eup %9600 }
 0xe54   : > { %v6995_v26 = vadd.f32 %v6985_v34, %v6963_v52 }
 0xe56   : > { %9608 = vrcp.f32 %v6995_v26 }
 0xe57   : > { %v6988_v45 = vpop.xlane.xlu1 %6987 }
 0xe73   : > { %v7055_v57 = vpop.f32.mrf.mxu1 }
 0xe74   : > { %v7397_v6 = vadd.f32 %v7055_v57, %v12178_v40  ;;  %v6112_v40 = vadd.f32 %v6104_v25, %v12275_v4  ;;  %v9603_v25 = vpop.eup %9602 }
 0xe75   : > { %v9071_v12 = vpop.f32.mrf.mxu1  ;;  %v9605_v15 = vpop.eup %9604 }
 0xe76   : > { %v12311_v31 = vmul.f32 %v9597_v61, %v7397_v6  ;;  %v9607_v47 = vpop.eup %9606 }
 0xe77   : > { %v7058_v44 = vpop.f32.mrf.mxu1  ;;  %v7103_v37 = vpop.f32.mrf.mxu0 }
 0xe78   : > { %v7398_v30 = vadd.f32 %v7103_v37, %v12198_v16  ;;  %v6964_v16 = vmul.f32 %v12286_v59, %v6112_v40  ;;  %v9609_v61 = vpop.eup %9608 }
 0xe79   : > { %v9072_v27 = vpop.f32.mrf.mxu1  ;;  %v9077_v29 = vpop.f32.mrf.mxu0 }
 0xe7a   : > { %v12317_v53 = vmul.f32 %v9599_v63, %v7398_v30  ;;  %v6996_v4 = vadd.f32 %v6988_v45, %v6964_v16 }
 0xe7b   : > { %v7106_v2 = vpop.f32.mrf.mxu0  ;;  %v7151_v14 = vpop.f32.mrf.mxu1 }
 0xe7c   : > { %v7399_v9 = vadd.f32 %v7151_v14, %v12215_v22  ;;  %9610 = vrcp.f32 %v6996_v4 }
 0xe7d   : > { %v9078_v17 = vpop.f32.mrf.mxu0  ;;  %v9083_v33 = vpop.f32.mrf.mxu1 }
 0xe7e   : > { %v7415_v32 = vmul.f32 %v9601_v5, %v7399_v9 }
 0xe7f   : > { %v7154_v8 = vpop.f32.mrf.mxu1  ;;  %v7199_v58 = vpop.f32.mrf.mxu0 }
 0xe80   : > { %v7400_v1 = vadd.f32 %v7199_v58, %v12233_v23 }
 0xe81   : > { %v9084_v56 = vpop.f32.mrf.mxu1  ;;  %v9089_v50 = vpop.f32.mrf.mxu0 }
 0xe82   : > { %v7416_v13 = vmul.f32 %v9603_v25, %v7400_v1 }
 0xe83   : > { %v7202_v62 = vpop.f32.mrf.mxu0  ;;  %v7247_v18 = vpop.f32.mrf.mxu1 }
 0xe84   : > { %v7401_v22 = vadd.f32 %v7247_v18, %v12249_v51 }
 0xe85   : > { %v9090_v38 = vpop.f32.mrf.mxu0  ;;  %v9095_v11 = vpop.f32.mrf.mxu1 }
 0xe86   : > { %v7417_v59 = vmul.f32 %v9605_v15, %v7401_v22 }
 0xe87   : > { %v7250_v55 = vpop.f32.mrf.mxu1  ;;  %v7295_v36 = vpop.f32.mrf.mxu0 }
 0xe88   : > { %v7421_v60 = vcombine.low %v12311_v31, %v7417_v59  ;;  %v7422_v7 = vcombine.high %v12311_v31, %v7417_v59  ;;  %v7402_v23 = vadd.f32 %v7295_v36, %v12265_v49 }
 0xe89   : > { %v9096_v20 = vpop.f32.mrf.mxu1  ;;  %v9101_v35 = vpop.f32.mrf.mxu0 }
 0xe8a   : > { %v7418_v21 = vmul.f32 %v9607_v47, %v7402_v23  ;;  %v9611_v10 = vpop.eup %9610  ;;  %v7429_v34 = vrot.slane %v7421_v60, %v10725_v41  ;;  %v7436_v27 = vrot.slane %v7422_v7, %v10725_v41 }
 0xe8b   : > { %v7298_v54 = vpop.f32.mrf.mxu0  ;;  %v7343_v57 = vpop.f32.mrf.mxu1 }
 0xe8c   : > { %v7489_v51 = vcombine.low %v12317_v53, %v7418_v21  ;;  %v7490_v24 = vcombine.high %v12317_v53, %v7418_v21  ;;  %v7403_v6 = vadd.f32 %v7343_v57, %v12280_v28 }
 0xe8d   : > { %v9102_v19 = vpop.f32.mrf.mxu0  ;;  %v9107_v12 = vpop.f32.mrf.mxu1 }
 0xe8e   : > { %v7419_v43 = vmul.f32 %v9609_v61, %v7403_v6  ;;  %v7504_v8 = vrot.slane %v7490_v24, %v10725_v41  ;;  %v9440_v12 = vld [vmem:[#allocation26 + $0x8] sm:$0xff]  }
 0xe8f   : > { %v7346_v44 = vpop.f32.mrf.mxu1  ;;  %v7391_v31 = vpop.f32.mrf.mxu0  ;;  %9116 = vmatpush3.bf16.msra.mxu1 %v9440_v12  ;;  %v9442_v12 = vld [vmem:[#allocation28 + $0x8] sm:$0xff]  }
 0xe90   : > { %v7437_v37 = vcombine.low %v7415_v32, %v7419_v43  ;;  %v7438_v49 = vcombine.high %v7415_v32, %v7419_v43  ;;  %v7404_v42 = vadd.f32 %v7391_v31, %v12290_v39  ;;  %v7497_v32 = vrot.slane %v7489_v51, %v10725_v41  ;;  %9117 = vmatprep.subr.bf16.mxu1 %v10215_v0 }
 0xe91   : > { %v9108_v30 = vpop.f32.mrf.mxu1  ;;  %v9113_v63 = vpop.f32.mrf.mxu0  ;;  %9124 = vmatpush3.bf16.msra.mxu0 %v9442_v12 }
 0xe92   : > { %v7445_v29 = vrot.slane %v7437_v37, %v10725_v41  ;;  %v7452_v28 = vrot.slane %v7438_v49, %v10725_v41  ;;  %v7420_v40 = vmul.f32 %v9611_v10, %v7404_v42  ;;  %9125 = vmatprep.subr.bf16.mxu0 %v10215_v0 }
 0xe93   : > { %v7394_v52 = vpop.f32.mrf.mxu0 }
 0xe94   : > { %v7453_v53 = vcombine.low %v7429_v34, %v7445_v29  ;;  %v7454_v2 = vcombine.high %v7429_v34, %v7445_v29  ;;  %v7469_v14 = vcombine.low %v7436_v27, %v7452_v28  ;;  %v7470_v26 = vcombine.high %v7436_v27, %v7452_v28 }
 0xe95   : > { %v7505_v45 = vcombine.low %v7416_v13, %v7420_v40  ;;  %v7506_v9 = vcombine.high %v7416_v13, %v7420_v40  ;;  %v9114_v39 = vpop.f32.mrf.mxu0 }
 0xe96   : > { %v7461_v5 = vrot.slane %v7453_v53, %v10727_v48  ;;  %v7468_v17 = vrot.slane %v7454_v2, %v10727_v48  ;;  %v7477_v33 = vrot.slane %v7469_v14, %v10727_v48  ;;  %v7484_v16 = vrot.slane %v7470_v26, %v10727_v48 }
 0xe97   : > { %v7513_v58 = vrot.slane %v7505_v45, %v10725_v41  ;;  %v7520_v4 = vrot.slane %v7506_v9, %v10725_v41 }
 0xe98   : > { %v7557_v1 = vcombine.low %v7461_v5, %v7468_v17  ;;  %v8486_v25 = vcombine.high %v7461_v5, %v7468_v17  ;;  %v7573_v56 = vcombine.low %v7477_v33, %v7484_v16  ;;  %v8487_v50 = vcombine.high %v7477_v33, %v7484_v16 }
 0xe99   : > { %v7521_v13 = vcombine.low %v7497_v32, %v7513_v58  ;;  %v7522_v62 = vcombine.high %v7497_v32, %v7513_v58  ;;  %v7537_v18 = vcombine.low %v7504_v8, %v7520_v4  ;;  %v7538_v22 = vcombine.high %v7504_v8, %v7520_v4 }
 0xe9a   : > { %v7564_v15 = vrot.slane %v7557_v1, %v10725_v41  ;;  %v7572_v38 = vrot.slane %v8486_v25, %v10725_v41  ;;  %v7580_v11 = vrot.slane %v7573_v56, %v10725_v41  ;;  %v7588_v59 = vrot.slane %v8487_v50, %v10725_v41 }
 0xe9b   : > { %v7529_v55 = vrot.slane %v7521_v13, %v10727_v48  ;;  %v7536_v36 = vrot.slane %v7522_v62, %v10727_v48  ;;  %v7545_v60 = vrot.slane %v7537_v18, %v10727_v48  ;;  %v7552_v7 = vrot.slane %v7538_v22, %v10727_v48 }
 0xe9c   : > { %v7590_v23 = vcombine.high %v7564_v15, %v7572_v38  ;;  %v7606_v47 = vcombine.high %v7580_v11, %v7588_v59  ;;  %v7589_v20 = vcombine.low %v7564_v15, %v7572_v38  ;;  %v7605_v35 = vcombine.low %v7580_v11, %v7588_v59  ;;  %v8490_v15 = vld [vmem:[%s12529_s4] ss:$0 sm:$0xff]  ;;  %s12536_s4 = sshll.u32 %s10613_s7, 4 }
 0xe9d   : > { %v7625_v21 = vcombine.low %v7529_v55, %v7536_v36  ;;  %v8488_v54 = vcombine.high %v7529_v55, %v7536_v36  ;;  %v7641_v57 = vcombine.low %v7545_v60, %v7552_v7  ;;  %v8489_v51 = vcombine.high %v7545_v60, %v7552_v7 }
 0xe9e   : > { %v7604_v24 = vrot.slane %v7590_v23, %v10727_v48  ;;  %v7620_v6 = vrot.slane %v7606_v47, %v10727_v48  ;;  %v7597_v61 = vrot.slane %v7589_v20, %v10727_v48  ;;  %v7613_v19 = vrot.slane %v7605_v35, %v10727_v48 }
 0xe9f   : > { %v7632_v43 = vrot.slane %v7625_v21, %v10725_v41  ;;  %v7640_v44 = vrot.slane %v8488_v54, %v10725_v41  ;;  %v7648_v31 = vrot.slane %v7641_v57, %v10725_v41  ;;  %v7656_v37 = vrot.slane %v8489_v51, %v10725_v41  ;;  %v9441_v41 = vld [vmem:[#allocation26] sm:$0xff]  }
 0xea0   : > { %v7623_v49 = vcombine.low %v7604_v24, %v7620_v6  ;;  %v7622_v42 = vcombine.high %v7597_v61, %v7613_v19  ;;  %v7624_v10 = vcombine.high %v7604_v24, %v7620_v6  ;;  %v7621_v34 = vcombine.low %v7597_v61, %v7613_v19  ;;  %9118 = vmatpush3.bf16.msra.mxu1 %v9441_v41 }
 0xea1   : > { %v7658_v30 = vcombine.high %v7632_v43, %v7640_v44  ;;  %v7674_v63 = vcombine.high %v7648_v31, %v7656_v37  ;;  %v7657_v27 = vcombine.low %v7632_v43, %v7640_v44  ;;  %v7673_v29 = vcombine.low %v7648_v31, %v7656_v37  ;;  %9131 = vmatprep.subr.bf16.mxu1 %v10215_v0 }
 0xea3   : > { %v7672_v28 = vrot.slane %v7658_v30, %v10727_v48  ;;  %v7688_v40 = vrot.slane %v7674_v63, %v10727_v48  ;;  %v7665_v52 = vrot.slane %v7657_v27, %v10727_v48  ;;  %v7681_v53 = vrot.slane %v7673_v29, %v10727_v48  ;;  %v8494_v63 = vld [vmem:[%s12531_s17] ss:$0 sm:$0xff]  ;;  %s1178_s17 = scalar_lea.vmem [#allocation29], %s12536_s4  ;;  %s10070_s4 = sshll.u32 %s10226_s26, 4  ;;  %s10071_s4 = int_to_ptr.vmem [resolvable:$false] %s10070_s4 }
 0xea4   : > { %s10072_s3 = scalar_lea.vmem %s10071_s4, 512 }
 0xea5   : > { %v7691_v2 = vcombine.low %v7672_v28, %v7688_v40  ;;  %v7690_v14 = vcombine.high %v7665_v52, %v7681_v53  ;;  %v7692_v26 = vcombine.high %v7672_v28, %v7688_v40  ;;  %v7689_v45 = vcombine.low %v7665_v52, %v7681_v53  ;;  %v8495_v40 = vld [vmem:[%s10371_s5] ss:$0 sm:$0xff] }
 0xea7   : > { %v9416_v9 = vpack.i.bf16 %v7691_v2, %v7623_v49  ;;  %v9411_v39 = vpack.i.bf16 %v7690_v14, %v7622_v42  ;;  %v9421_v5 = vpack.i.bf16 %v7692_v26, %v7624_v10 }
 0xea9   : > { %9417 = vrot.lane.b32.xlu1 %v9416_v9, %s10223_s6  ;;  %9412 = vrot.lane.b32.xlu0 %v9411_v39, %s12462_s12  ;;  %v8496_v9 = vld [vmem:[%s12532_s22] ss:$0 sm:$0xff]  ;;  %s12534_s6 = sld [smem:[#allocation60_spill]]  ;;  %s8054_s22 = sshll.u32 %s1178_s17, 4  ;;  %s12409_s22 = int_to_ptr.vmem [resolvable:$true] %s8054_s22 }
 0xeaa   : > { %s10066_s12 = scalar_lea.vmem %s12409_s22, 256  ;;  %p10073_p2 = scmp.lt.s32.totalorder %s12409_s22, %s10071_s4 }
 0xeab   : > { %p10067_p13 = scmp.ne.s32.totalorder %s12409_s22, %s10066_s12  ;;  %p10074_p3 = scmp.lt.s32.totalorder %s10072_s3, %s10066_s12 }
 0xead   : > { %9422 = vrot.lane.b32.xlu1 %v9421_v5, %s10225_s10  ;;  %s12530_s10 = sld [smem:[#allocation55_spill]]  ;;  %p10068_p4 = pnand %p10067_p13, %p12537_p1 }
 0xeae   : > { %p10075_p5 = por %p10074_p3, %p10073_p2 }
 0xeaf   : > { %p10069_p0 = pneg %p10068_p4 }
 0xeb1   : > { %p10076_p11 = pnand %p10075_p5, %p10069_p0 }
 0xeb3   : > { %v9444_v43 = vld [vmem:[%s12530_s10 + $0x18] sm:$0xff]   ;;  %v9445_v14 = vld [vmem:[%s12530_s10 + $0x10] sm:$0xff]   ;;  %v9446_v26 = vld [vmem:[%s12530_s10 + $0x8] sm:$0xff]  }
 0xf1b   : > { %v9418_v17 = vpop.permute.xlu1 %9417  ;;  %v9413_v33 = vpop.permute.xlu0 %9412 }
 0xf1c   : > { %v9415_v48 = vunpack.i.h.bf16 %v9413_v33  ;;  %v9414_v16 = vunpack.i.l.bf16 %v9413_v33  ;;  %v9420_v32 = vunpack.i.h.bf16 %v9418_v17  ;;  %v9419_v8 = vunpack.i.l.bf16 %v9418_v17 }
 0xf1e   : > { %v7717_v58 = vsel %vm2291_vm2, %v7621_v34, %v9414_v16  ;;  %v7718_v4 = vsel %vm2291_vm2, %v7689_v45, %v9415_v48  ;;  %v9447_v45 = vld [vmem:[%s12530_s10] sm:$0xff]  }
 0xf1f   : > { %v9423_v1 = vpop.permute.xlu1 %9422  ;;  %v7719_v50 = vsel %vm4396_vm5, %v7717_v58, %v9419_v8  ;;  %v7720_v13 = vsel %vm4396_vm5, %v7718_v4, %v9420_v32  ;;  %v8500_v4 = vld [vmem:[%s12533_s1] ss:$0 sm:$0xff]  ;;  %s12407_s1 = scalar_lea.hbm %s12535_s9, %s8514_s28 }
 0xf20   : > { %v9425_v25 = vunpack.i.h.bf16 %v9423_v1  ;;  %v9424_v56 = vunpack.i.l.bf16 %v9423_v1 }
 0xf22   : > { %v7721_v62 = vsel %vm4399_vm6, %v7719_v50, %v9424_v56  ;;  %v7722_v18 = vsel %vm4399_vm6, %v7720_v13, %v9425_v25 }
 0xf23   : > { %v7723_v22 = vpack.c.bf16 %v7722_v18, %v7721_v62 }
 0xf25   : > { %9120 = vmatmul.mubr.msk.bf16.vlgmr.msra.gmra.mxu1 %vm1218_vm1, %v7723_v22 }
 0xf26   : > { %9139 = vmatprep.mubr.msk.bf16.mxu1 %vm10216_vm0, %v10215_v0  ;;  %9132 = vmatpush3.bf16.msra.mxu1 %v9444_v43 }
 0xf27   : > { %9133 = vmatprep.subr.bf16.mxu1 %v10215_v0 }
 0xf2a   : > { %9134 = vmatpush3.bf16.msra.mxu1 %v9445_v14 }
 0xf2b   : > { %9135 = vmatprep.subr.bf16.mxu1 %v10215_v0 }
 0xf2e   : > { %9136 = vmatpush3.bf16.msra.mxu1 %v9446_v26 }
 0xf2f   : > { %9137 = vmatprep.subr.bf16.mxu1 %v10215_v0 }
 0xf32   : > { %9138 = vmatpush3.bf16.msra.mxu1 %v9447_v45 }
 0xfe5   : > { %v7784_v38 = vpop.f32.mrf.mxu1 }
 0xfe6   : > { %v7785_v11 = vadd.f32 %v8490_v15, %v7784_v38 }
 0xfe7   : > { %v9121_v59 = vpop.f32.mrf.mxu1 }
 0xfe8   : > { %v7791_v55 = vadd.f32 %v7785_v11, %v11571_v46 }
 0xfe9   : > { %v7787_v36 = vpop.f32.mrf.mxu1 }
 0xfea   : > { %v7788_v60 = vadd.f32 %v8490_v15, %v7787_v36  ;;  %v7795_v7 = vsel %vm1218_vm1, %v7791_v55, 0.0 }
 0xfeb   : > { %7796 = vadd.xlane.f32.xlu0 %v7795_v7  ;;  %v9122_v23 = vpop.f32.mrf.mxu1 }
 0xfec   : > { %v7792_v47 = vadd.f32 %v7788_v60, %v11573_v3  ;;  %v9443_v3 = vld [vmem:[#allocation28] sm:$0xff]  }
 0xfed   : > { %9126 = vmatpush3.bf16.msra.mxu0 %v9443_v3 }
 0xfee   : > { %v7798_v20 = vsel %vm1218_vm1, %v7792_v47, 0.0 }
 0xfef   : > { %7799 = vadd.xlane.f32.xlu1 %v7798_v20 }
0x1074   : > { %v7797_v35 = vpop.xlane.xlu0 %7796 }
0x1075   : > { %v7801_v21 = vmul.f32 0.03125, %v7797_v35 }
0x1077   : > { %v7803_v54 = vsub.f32 %v7791_v55, %v7801_v21 }
0x1078   : > { %v7800_v57 = vpop.xlane.xlu1 %7799 }
0x1079   : > { %v7802_v51 = vmul.f32 0.03125, %v7800_v57  ;;  %v7805_v24 = vmul.f32 %v7803_v54, %v7803_v54 }
0x107b   : > { %v7804_v6 = vsub.f32 %v7792_v47, %v7802_v51  ;;  %v7807_v46 = vsel %vm1218_vm1, %v7805_v24, 0.0 }
0x107c   : > { %7808 = vadd.xlane.f32.xlu0 %v7807_v46  ;;  %v8506_v46 = vld [vmem:[%s10376_s21] ss:$0 sm:$0xff] }
0x107d   : > { %v7806_v61 = vmul.f32 %v7804_v6, %v7804_v6 }
0x107f   : > { %v7810_v19 = vsel %vm1218_vm1, %v7806_v61, 0.0 }
0x1080   : > { %7811 = vadd.xlane.f32.xlu0 %v7810_v19  ;;  %v8507_v19 = vld [vmem:[%s12534_s6] ss:$0 sm:$0xff]  ;;  %s8041_s6 = scalar_lea.sflag [#allocation4], %s10613_s7 }
0x1105   : > { %v7809_v44 = vpop.xlane.xlu0 %7808 }
0x1106   : > { %v7813_v31 = vmul.f32 0.03125, %v7809_v44 }
0x1108   : > { %v7815_v37 = vadd.f32 1e-05, %v7813_v31 }
0x1109   : > { %v7812_v49 = vpop.xlane.xlu0 %7811 }
0x110a   : > { %9612 = vrsqrt.f32 %v7815_v37  ;;  %v7814_v42 = vmul.f32 0.03125, %v7812_v49 }
0x110c   : > { %v7816_v10 = vadd.f32 1e-05, %v7814_v42 }
0x110e   : > { %9614 = vrsqrt.f32 %v7816_v10 }
0x1117   : > { %v9613_v34 = vpop.eup %9612 }
0x1118   : > { %v7819_v30 = vmul.f32 %v9613_v34, %v7803_v54 }
0x111a   : > { %v7827_v29 = vmul.f32 %v8494_v63, %v7819_v30 }
0x111b   : > { %v9615_v27 = vpop.eup %9614 }
0x111c   : > { %v7820_v28 = vmul.f32 %v9615_v27, %v7804_v6  ;;  %v7835_v53 = vadd.f32 %v8495_v40, %v7827_v29 }
0x111e   : > { %v7828_v52 = vmul.f32 %v8494_v63, %v7820_v28 }
0x1120   : > { %v7836_v41 = vadd.f32 %v8495_v40, %v7828_v52 }
0x1122   : > { %v7837_v2 = vpack.c.bf16 %v7836_v41, %v7835_v53 }
0x1124   : > { %9128 = vmatmul.mubr.msk.bf16.vlgmr.msra.gmra.mxu0 %vm1218_vm1, %v7837_v2 }
0x11e4   : > { %v7898_v39 = vpop.f32.mrf.mxu0 }
0x11e5   : > { %v7899_v17 = vadd.f32 %v8496_v9, %v7898_v39 }
0x11e6   : > { %v9129_v5 = vpop.f32.mrf.mxu0 }
0x11e7   : > { %v7905_v32 = vmax.f32 %v7899_v17, 0.0 }
0x11e8   : > { %v7901_v33 = vpop.f32.mrf.mxu0 }
0x11e9   : > { %v7902_v48 = vadd.f32 %v8496_v9, %v7901_v33 }
0x11ea   : > { %v9130_v16 = vpop.f32.mrf.mxu0 }
0x11eb   : > { %v7906_v8 = vmax.f32 %v7902_v48, 0.0 }
0x11ed   : > { %v7907_v58 = vpack.c.bf16 %v7906_v8, %v7905_v32 }
0x11ef   : > { %9140 = vmatmul.mubr.msk.bf16.vlgmr.msra.gmra.mxu1 %vm7947_vm7, %v7907_v58 }
0x12af   : > { %v7985_v1 = vpop.f32.mrf.mxu1 }
0x12b0   : > { %v7986_v25 = vadd.f32 %v8500_v4, %v7985_v1 }
0x12b1   : > { %v9141_v56 = vpop.f32.mrf.mxu1 }
0x12b2   : > { %v7992_v50 = vadd.f32 %v7986_v25, %v7835_v53 }
0x12b3   : > { %v7988_v13 = vpop.f32.mrf.mxu1 }
0x12b4   : > { %v7989_v0 = vadd.f32 %v8500_v4, %v7988_v13  ;;  %v7996_v62 = vsel %vm1218_vm1, %v7992_v50, 0.0 }
0x12b5   : > { %7997 = vadd.xlane.f32.xlu1 %v7996_v62  ;;  %v9142_v18 = vpop.f32.mrf.mxu1 }
0x12b6   : > { %v7993_v22 = vadd.f32 %v7989_v0, %v7836_v41 }
0x12b8   : > { %v7999_v15 = vsel %vm1218_vm1, %v7993_v22, 0.0 }
0x12b9   : > { %8000 = vadd.xlane.f32.xlu0 %v7999_v15 }
0x133e   : > { %v7998_v38 = vpop.xlane.xlu1 %7997 }
0x133f   : > { %v8002_v11 = vmul.f32 0.03125, %v7998_v38 }
0x1341   : > { %v8004_v59 = vsub.f32 %v7992_v50, %v8002_v11 }
0x1342   : > { %v8001_v55 = vpop.xlane.xlu0 %8000 }
0x1343   : > { %v8003_v36 = vmul.f32 0.03125, %v8001_v55  ;;  %v8006_v60 = vmul.f32 %v8004_v59, %v8004_v59 }
0x1345   : > { %v8005_v7 = vsub.f32 %v7993_v22, %v8003_v36  ;;  %v8008_v23 = vsel %vm1218_vm1, %v8006_v60, 0.0 }
0x1346   : > { %8009 = vadd.xlane.f32.xlu1 %v8008_v23 }
0x1347   : > { %v8007_v47 = vmul.f32 %v8005_v7, %v8005_v7 }
0x1349   : > { %v8011_v20 = vsel %vm1218_vm1, %v8007_v47, 0.0 }
0x134a   : > { %8012 = vadd.xlane.f32.xlu0 %v8011_v20 }
0x13cf   : > { %v8010_v35 = vpop.xlane.xlu1 %8009 }
0x13d0   : > { %v8014_v21 = vmul.f32 0.03125, %v8010_v35 }
0x13d2   : > { %v8016_v54 = vadd.f32 1e-05, %v8014_v21 }
0x13d3   : > { %v8013_v57 = vpop.xlane.xlu0 %8012 }
0x13d4   : > { %9616 = vrsqrt.f32 %v8016_v54  ;;  %v8015_v51 = vmul.f32 0.03125, %v8013_v57 }
0x13d6   : > { %v8017_v24 = vadd.f32 1e-05, %v8015_v51 }
0x13d8   : > { %9618 = vrsqrt.f32 %v8017_v24 }
0x13e1   : > { %v9617_v6 = vpop.eup %9616 }
0x13e2   : > { %v8020_v61 = vmul.f32 %v9617_v6, %v8004_v59 }
0x13e4   : > { %v8028_v12 = vmul.f32 %v8506_v46, %v8020_v61 }
0x13e5   : > { %v9619_v3 = vpop.eup %9618 }
0x13e6   : > { %v8036_v43 = vadd.f32 %v8507_v19, %v8028_v12  ;;  %v8021_v44 = vmul.f32 %v9619_v3, %v8005_v7 }
0x13e8   : > { %v8029_v31 = vmul.f32 %v8506_v46, %v8021_v44  ;;  %8038 = vst.msk [vmem:[%s1178_s17] sm:$0xff] %vm1218_vm1, %v8036_v43 }
0x13ea   : > { %v8037_v37 = vadd.f32 %v8507_v19, %v8029_v31 }
0x13ec   : > { %8039 = vst.msk [vmem:[%s1178_s17 + $0x8] sm:$0xff] %vm1218_vm1, %v8037_v37 }
0x13ed   : > { %10079 = shalt.err (!%p10076_p11)
}
0x13ee   : > { %s10080_s28 = scalar_lea.hbm %s12407_s1, 256  ;;  %s10084_s17 = scalar_lea.hbm %s12535_s9, 512 }
0x13ef   : > { %p10081_p12 = scmp.ne.s32.totalorder %s12407_s1, %s10080_s28  ;;  %p10085_p8 = scmp.lt.s32.totalorder %s12407_s1, %s12535_s9 }
0x13f0   : > { %p10086_p9 = scmp.lt.s32.totalorder %s10084_s17, %s10080_s28 }
0x13f1   : > { %p10082_p7 = pnand %p10081_p12, %p12537_p1 }
0x13f2   : > { %p10087_p10 = por %p10086_p9, %p10085_p8 }
0x13f3   : > { %p10083_p6 = pneg %p10082_p7 }
0x13f5   : > { %p10088_p13 = pnand %p10087_p10, %p10083_p6 }
0x13f7   : > { %10091 = shalt.err (!%p10088_p13)
}
0x13f8   : > { %s10227_s3 = smov 128   ;;  %s12538_s12 = smov 8  }
0x13f9   : > { %9209 = dma.vmem_to_hbm [thread:$0]  (%p12537_p1), %s12409_s22, 256, %s12407_s1, %s8041_s6, %s10227_s3, %s10227_s3, %s12538_s12  }
0x13fa PF: > { %s8069_s26 = sand.u32 1, %s10150_s15   ;;  %p12539_p4 = scmp.ne.s32.totalorder %s12504_s23, 0 }
0x13fb   : > { %p12540_p0 = scmp.ge.s32.totalorder %s10162_s0, 2  ;;  %s8070_s4 = scalar_lea.sflag [#allocation4], %s8069_s26 }
0x13fd   : > { %p9265_p2 = pnand %p12540_p0, %p12539_p4 }
0x13ff   : > { %p9266_p3 = pneg %p9265_p2 }
0x1401   : > { %10145 = dma.done.wait (%p9266_p3), %s8070_s4, 256  }
0x1402   : > { %10147 = vsyncadd (%p9266_p3), %s8070_s4, 4294967040  ;;  %p82_p5 = scmp.ge.s32.totalorder %s10547_s11, 4   ;;  %s12541_s15 = smov %s10154_s16 }
0x1403   : > { %s12542_s16 = smov %s10158_s18  ;;  %s12543_s18 = smov %s10558_s13 }
0x1404   : > { %s12544_s0 = smov %s10547_s11  ;;  %84 = sbr.rel (!%p82_p5) target bundleno = 73 (0x49), region = 282 }
0x1409   :  { %8075 = vsyncpa [#allocation3], 1 }
0x140a   :  { %8077 = vsyncpa [#allocation3 + $0x1], 1 }
0x140b   :  { %8078 = vsyncpa [#allocation6], 1 }
0x140c   :  { %8079 = vsyncpa [#allocation9], 1 }
0x140d   :  { %8080 = vsyncpa [#allocation12], 1 }
0x140e   :  { %8081 = vsyncpa [#allocation15], 1 }
0x140f   :  { %8082 = vsyncpa [#allocation18], 1 }
0x1410   :  { %8083 = vsyncpa [#allocation21], 1 }
0x1411   :  { %8084 = vsyncpa [#allocation24], 1 }
0x1412   :  { %8085 = vsyncpa [#allocation27], 1 }
0x1413   :  { %8086 = vsyncpa [#allocation4], 1 }
0x1414   :  { %8088 = vsyncpa [#allocation4 + $0x1], 1 }

// kernel: tpu_custom_call.1
= control target key start
LH: loop header
LB: loop body
LE: loop exit
PB: predicated region body
PF: predicated region fallthrough
CT: control target
= control target key end

     0   :  { %s8044_s6 = smov 1   ;;  %s8045_s10 = smov 2   ;;  %s9878_s0 = inlined_call_operand.smem [shape: u32[31], index: -1, kind: input, shape index: {}] }
   0x1   :  { %s8114_s5 = sld [smem:[%s9878_s0]]   ;;  %s8046_s14 = smov 3  }
   0x2   :  { %s8119_s9 = sld [smem:[%s9878_s0 + %s8044_s6]]   ;;  %s8047_s18 = smov 4  }
   0x3   :  { %s8124_s13 = sld [smem:[%s9878_s0 + %s8045_s10]]   ;;  %s8048_s22 = smov 5  }
   0x4   :  { %s8129_s17 = sld [smem:[%s9878_s0 + %s8046_s14]]   ;;  %s8049_s26 = smov 6  }
   0x5   :  { %s8134_s21 = sld [smem:[%s9878_s0 + %s8047_s18]]   ;;  %s8050_s30 = smov 7  }
   0x6   :  { %s8139_s25 = sld [smem:[%s9878_s0 + %s8048_s22]]   ;;  %s8051_s4 = smov 8  }
   0x7   :  { %9893 = sst [smem:[#allocation40_spill]] %s8114_s5  ;;  %s8052_s10 = smov 9  }
   0x8   :  { %9894 = sst [smem:[#allocation41_spill]] %s8119_s9  ;;  %s8053_s15 = smov 10  }
   0x9   :  { %9895 = sst [smem:[#allocation42_spill]] %s8124_s13  ;;  %s8054_s20 = smov 11  }
   0xa   :  { %9896 = sst [smem:[#allocation43_spill]] %s8129_s17  ;;  %s8056_s1 = smov 13  }
   0xb   :  { %9897 = sst [smem:[#allocation44_spill]] %s8134_s21  ;;  %s8057_s7 = smov 14  }
   0xc   :  { %s8144_s29 = sld [smem:[%s9878_s0 + %s8049_s26]]   ;;  %s8055_s26 = smov 12  }
   0xd   :  { %s8149_s3 = sld [smem:[%s9878_s0 + %s8050_s30]]   ;;  %s8059_s22 = smov 16  }
   0xe   :  { %s8154_s8 = sld [smem:[%s9878_s0 + %s8051_s4]]   ;;  %s8060_s28 = smov 17  }
   0xf   :  { %s8159_s14 = sld [smem:[%s9878_s0 + %s8052_s10]]  }
  0x10   :  { %s8164_s19 = sld [smem:[%s9878_s0 + %s8053_s15]]   ;;  %s8058_s15 = smov 15  }
  0x11   :  { %s8169_s24 = sld [smem:[%s9878_s0 + %s8054_s20]]  }
  0x12   :  { %s8174_s30 = sld [smem:[%s9878_s0 + %s8055_s26]]  }
  0x13   :  { %9898 = sst [smem:[#allocation45_spill]] %s8149_s3 }
  0x14   :  { %9899 = sst [smem:[#allocation46_spill]] %s8154_s8 }
  0x15   :  { %9900 = sst [smem:[#allocation47_spill]] %s8159_s14 }
  0x16   :  { %9901 = sst [smem:[#allocation48_spill]] %s8164_s19 }
  0x17   :  { %s8179_s6 = sld [smem:[%s9878_s0 + %s8056_s1]]  }
  0x18   :  { %s8184_s12 = sld [smem:[%s9878_s0 + %s8057_s7]]   ;;  %s8061_s7 = smov 18  }
  0x19   :  { %s8189_s20 = sld [smem:[%s9878_s0 + %s8058_s15]]   ;;  %s8062_s15 = smov 19  }
  0x1a   :  { %s8194_s27 = sld [smem:[%s9878_s0 + %s8059_s22]]   ;;  %s8063_s22 = smov 20  }
  0x1b   :  { %s8199_s4 = sld [smem:[%s9878_s0 + %s8060_s28]]   ;;  %s8064_s28 = smov 21  }
  0x1c   :  { %s8204_s19 = sld [smem:[%s9878_s0 + %s8061_s7]]   ;;  %s8065_s7 = smov 22  }
  0x1d   :  { %9902 = sst [smem:[#allocation49_spill]] %s8179_s6 }
  0x1e   :  { %9903 = sst [smem:[#allocation50_spill]] %s8184_s12 }
  0x1f   :  { %s8209_s5 = sld [smem:[%s9878_s0 + %s8062_s15]]   ;;  %s8066_s15 = smov 23  }
  0x20   :  { %s8214_s21 = sld [smem:[%s9878_s0 + %s8063_s22]]   ;;  %s8067_s22 = smov 24  }
  0x21   :  { %9904 = sst [smem:[#allocation51_spill]] %s8199_s4 }
  0x22   :  { %s8219_s9 = sld [smem:[%s9878_s0 + %s8064_s28]]   ;;  %s8068_s28 = smov 25  }
  0x23   :  { %s8224_s4 = sld [smem:[%s9878_s0 + %s8065_s7]]   ;;  %s8069_s7 = smov 26  }
  0x25   :  { %9905 = sst [smem:[#allocation52_spill]] %s8209_s5 }
  0x26   :  { %9906 = sst [smem:[#allocation53_spill]] %s8214_s21 }
  0x27   :  { %s8229_s5 = sld [smem:[%s9878_s0 + %s8066_s15]]   ;;  %s8070_s15 = smov 27  }
  0x28   :  { %9907 = sst [smem:[#allocation54_spill]] %s8219_s9 }
  0x29   :  { %9908 = sst [smem:[#allocation55_spill]] %s8224_s4 }
  0x2a   :  { %s8234_s21 = sld [smem:[%s9878_s0 + %s8067_s22]]   ;;  %s8071_s22 = smov 28  }
  0x2b   :  { %s8239_s9 = sld [smem:[%s9878_s0 + %s8068_s28]]   ;;  %s8072_s28 = smov 29  }
  0x2c   :  { %s8244_s4 = sld [smem:[%s9878_s0 + %s8069_s7]]   ;;  %s8073_s7 = smov 30  }
  0x2d   :  { %9909 = sst [smem:[#allocation56_spill]] %s8229_s5 }
  0x2e   :  { %s8249_s5 = sld [smem:[%s9878_s0 + %s8070_s15]]  }
  0x30   :  { %9910 = sst [smem:[#allocation57_spill]] %s8234_s21 }
  0x31   :  { %9911 = sst [smem:[#allocation58_spill]] %s8239_s9 }
  0x32   :  { %9912 = sst [smem:[#allocation59_spill]] %s8244_s4 }
  0x33   :  { %s8254_s21 = sld [smem:[%s9878_s0 + %s8071_s22]]  }
  0x34   :  { %s8259_s9 = sld [smem:[%s9878_s0 + %s8072_s28]]  }
  0x35   :  { %s8264_s4 = sld [smem:[%s9878_s0 + %s8073_s7]]  }
  0x3a   :  { %9913 = sst [smem:[#allocation60_spill]] %s8259_s9 }
  0x3b   :  { %9914 = sst [smem:[#allocation61_spill]] %s8264_s4 }
  0x3c   :  { %66 = vsyncpa [#allocation3], 0 }
  0x3d   :  { %68 = vsyncpa [#allocation3 + $0x1], 0 }
  0x3e   :  { %69 = vsyncpa [#allocation6], 0 }
  0x3f   :  { %70 = vsyncpa [#allocation9], 0 }
  0x40   :  { %71 = vsyncpa [#allocation12], 0 }
  0x41   :  { %72 = vsyncpa [#allocation15], 0 }
  0x42   :  { %73 = vsyncpa [#allocation18], 0 }
  0x43   :  { %74 = vsyncpa [#allocation21], 0 }
  0x44   :  { %75 = vsyncpa [#allocation24], 0 }
  0x45   :  { %76 = vsyncpa [#allocation27], 0 }
  0x46   :  { %77 = vsyncpa [#allocation4], 0 }
  0x47   :  { %79 = vsyncpa [#allocation4 + $0x1], 0  ;;  %s8266_s15 = smov 0   ;;  %s8268_s16 = smov 0  }
  0x48   :  { %s8270_s18 = smov 0   ;;  %s8272_s0 = smov 0  }
  0x49 LB: > { %s8074_s22 = smov [#allocation5]   ;;  %s8287_s26 = sadd.s32 4294967295, %s8042_s0   ;;  %s8042_s0 = sphi %s8272_s0, %s9974_s0   ;;  %s8038_s18 = sphi %s8270_s18, %s9973_s18   ;;  %s8034_s16 = sphi %s8268_s16, %s9972_s16   ;;  %s8030_s15 = sphi %s8266_s15, %s9971_s15  }
  0x4a   : > { %s769_s23 = sshll.u32 %s8074_s22, 4  ;;  %p6146_p0 = scmp.ge.s32.totalorder %s8042_s0, 1  ;;  %s770_s23 = int_to_ptr.vmem [resolvable:$true] %s769_s23 }
  0x4b   : > { %p9884_p1 = scmp.eq.s32.totalorder %s8287_s26, 0  ;;  %p756_p2 = scmp.lt.s32.totalorder %s8042_s0, 3 }
  0x4c   : > { %s8075_s1 = smov [#allocation8]   ;;  %s8076_s7 = smov [#allocation11]  }
  0x4d   : > { %p8292_p3 = pnand %p6146_p0, %p756_p2  ;;  %s794_s2 = sshll.u32 %s8075_s1, 4  ;;  %s795_s2 = int_to_ptr.vmem [resolvable:$true] %s794_s2 }
  0x4e   : > { %s818_s10 = sshll.u32 %s8076_s7, 4  ;;  %s8077_s22 = smov [#allocation14]   ;;  %s8305_s10 = int_to_ptr.vmem [resolvable:$true] %s818_s10 }
  0x4f   : > { %s9915_s28 = scalar_select %p8292_p3, 1, 0 }
  0x50   : > { %p7003_p5 = pneg %p8292_p3  ;;  %s8307_s4 = sshll.u32 %s8077_s22, 4  ;;  %s843_s4 = int_to_ptr.vmem [resolvable:$true] %s8307_s4 }
  0x51   : > { %s7513_s1 = scalar_lea.vmem %s770_s23, 128  ;;  %p7521_p11 = scmp.lt.s32.totalorder %s770_s23, %s770_s23 }
  0x52   : > { %p8301_p6 = pnand %p7003_p5, %p9884_p1  ;;  %p7514_p8 = scmp.ne.s32.totalorder %s770_s23, %s7513_s1 }
  0x53   : > { %p7522_p12 = scmp.lt.s32.totalorder %s7513_s1, %s7513_s1 }
  0x54   : > { %p8311_p7 = pneg %p8301_p6 }
  0x55   : > { %p7523_p13 = por %p7522_p12, %p7521_p11 }
  0x56   : > { %p7516_p9 = pnand %p7514_p8, %p8311_p7 }
  0x58   : > { %p7517_p10 = pneg %p7516_p9 }
  0x5a   : > { %p7524_p0 = pnand %p7523_p13, %p7517_p10 }
  0x5c   : > { %7527 = shalt.err (!%p7524_p0)
}
  0x5d   : > { %s9918_s13 = sld [smem:[#allocation42_spill]]  ;;  %s7539_s7 = scalar_lea.vmem %s795_s2, 16 }
  0x5e   : > { %p7540_p2 = scmp.ne.s32.totalorder %s795_s2, %s7539_s7  ;;  %s7546_s22 = scalar_lea.vmem %s795_s2, 32 }
  0x5f   : > { %p7547_p1 = scmp.lt.s32.totalorder %s795_s2, %s795_s2  ;;  %p7548_p3 = scmp.lt.s32.totalorder %s7546_s22, %s7539_s7 }
  0x60   : > { %p7542_p5 = pnand %p7540_p2, %p8311_p7 }
  0x61   : > { %p7549_p8 = por %p7548_p3, %p7547_p1 }
  0x62   : > { %p7543_p4 = pneg %p7542_p5 }
  0x63   : > { %7006 = dma.hbm_to_vmem [thread:$0]  (!%p8301_p6), %s9918_s13, 128, %s770_s23, [#allocation6]  }
  0x64   : > { %p7550_p9 = pnand %p7549_p8, %p7543_p4 }
  0x66   : > { %7553 = shalt.err (!%p7550_p9)
}
  0x67   : > { %7012 = dma.hbm_to_vmem [thread:$0]  (!%p8301_p6), %s8139_s25, 16, %s795_s2, [#allocation9]  }
  0x68   : > { %s7565_s23 = scalar_lea.vmem %s8305_s10, 16  ;;  %s7572_s1 = scalar_lea.vmem %s8305_s10, 32 }
  0x69   : > { %p7566_p10 = scmp.ne.s32.totalorder %s8305_s10, %s7565_s23  ;;  %p7573_p13 = scmp.lt.s32.totalorder %s8305_s10, %s8305_s10 }
  0x6a   : > { %p7574_p1 = scmp.lt.s32.totalorder %s7572_s1, %s7565_s23 }
  0x6b   : > { %p7568_p11 = pnand %p7566_p10, %p8311_p7 }
  0x6c   : > { %p7575_p3 = por %p7574_p1, %p7573_p13 }
  0x6d   : > { %p7569_p12 = pneg %p7568_p11 }
  0x6f   : > { %p7576_p4 = pnand %p7575_p3, %p7569_p12 }
  0x71   : > { %7579 = shalt.err (!%p7576_p4)
}
  0x72   : > { %s9919_s3 = sld [smem:[#allocation45_spill]]  ;;  %s7591_s2 = scalar_lea.vmem %s843_s4, 16 }
  0x73   : > { %p7592_p0 = scmp.ne.s32.totalorder %s843_s4, %s7591_s2  ;;  %s7598_s7 = scalar_lea.vmem %s843_s4, 32 }
  0x74   : > { %p7599_p8 = scmp.lt.s32.totalorder %s843_s4, %s843_s4  ;;  %p7600_p9 = scmp.lt.s32.totalorder %s7598_s7, %s7591_s2 }
  0x75   : > { %p7594_p2 = pnand %p7592_p0, %p8311_p7 }
  0x76   : > { %p7601_p10 = por %p7600_p9, %p7599_p8 }
  0x77   : > { %p7595_p5 = pneg %p7594_p2 }
  0x78   : > { %7018 = dma.hbm_to_vmem [thread:$0]  (!%p8301_p6), %s9919_s3, 16, %s8305_s10, [#allocation12]  }
  0x79   : > { %p7602_p11 = pnand %p7601_p10, %p7595_p5 }
  0x7b   : > { %7605 = shalt.err (!%p7602_p11)
}
  0x7c   : > { %s9920_s14 = sld [smem:[#allocation47_spill]]  ;;  %s8078_s22 = smov [#allocation17]  }
  0x7d   : > { %s866_s23 = sshll.u32 %s8078_s22, 4  ;;  %s8079_s10 = smov [#allocation20]   ;;  %s867_s23 = int_to_ptr.vmem [resolvable:$true] %s866_s23 }
  0x7e   : > { %s890_s1 = sshll.u32 %s8079_s10, 4  ;;  %s7617_s3 = scalar_lea.vmem %s867_s23, 256  ;;  %s891_s1 = int_to_ptr.vmem [resolvable:$true] %s890_s1 }
  0x7f   : > { %p7618_p12 = scmp.ne.s32.totalorder %s867_s23, %s7617_s3  ;;  %p7625_p3 = scmp.lt.s32.totalorder %s867_s23, %s867_s23 }
  0x80   : > { %p7626_p4 = scmp.lt.s32.totalorder %s7617_s3, %s7617_s3 }
  0x81   : > { %p7620_p13 = pnand %p7618_p12, %p8311_p7 }
  0x82   : > { %7024 = dma.hbm_to_vmem [thread:$0]  (!%p8301_p6), %s9920_s14, 16, %s843_s4, [#allocation15]  }
  0x83   : > { %p7621_p1 = pneg %p7620_p13  ;;  %p7627_p0 = por %p7626_p4, %p7625_p3 }
  0x85   : > { %p7628_p2 = pnand %p7627_p0, %p7621_p1 }
  0x87   : > { %7631 = shalt.err (!%p7628_p2)
}
  0x88   : > { %s9886_s2 = smov 64   ;;  %s8081_s4 = smov 4  }
  0x89   : > { %7030 = dma.hbm_to_vmem [thread:$0]  (!%p8301_p6), %s8174_s30, 256, %s867_s23, [#allocation18], %s9886_s2, %s9886_s2, %s8081_s4  }
  0x8a   : > { %s7643_s7 = scalar_lea.vmem %s891_s1, 256  ;;  %p7651_p10 = scmp.lt.s32.totalorder %s891_s1, %s891_s1 }
  0x8b   : > { %p7644_p5 = scmp.ne.s32.totalorder %s891_s1, %s7643_s7  ;;  %p7652_p11 = scmp.lt.s32.totalorder %s7643_s7, %s7643_s7 }
  0x8d   : > { %p7646_p8 = pnand %p7644_p5, %p8311_p7  ;;  %p7653_p12 = por %p7652_p11, %p7651_p10 }
  0x8f   : > { %p7647_p9 = pneg %p7646_p8 }
  0x91   : > { %p7654_p13 = pnand %p7653_p12, %p7647_p9 }
  0x93   : > { %7657 = shalt.err (!%p7654_p13)
}
  0x94   : > { %s9921_s12 = sld [smem:[#allocation50_spill]]  ;;  %s8082_s3 = smov [#allocation23]  }
  0x95   : > { %s914_s22 = sshll.u32 %s8082_s3, 4  ;;  %s8083_s23 = smov [#allocation26]   ;;  %s915_s22 = int_to_ptr.vmem [resolvable:$true] %s914_s22 }
  0x96   : > { %s938_s10 = sshll.u32 %s8083_s23, 4  ;;  %s7669_s13 = scalar_lea.vmem %s915_s22, 256  ;;  %s939_s10 = int_to_ptr.vmem [resolvable:$true] %s938_s10 }
  0x97   : > { %p7670_p1 = scmp.ne.s32.totalorder %s915_s22, %s7669_s13  ;;  %p7677_p0 = scmp.lt.s32.totalorder %s915_s22, %s915_s22 }
  0x98   : > { %p7678_p2 = scmp.lt.s32.totalorder %s7669_s13, %s7669_s13 }
  0x99   : > { %p7672_p3 = pnand %p7670_p1, %p8311_p7 }
  0x9a   : > { %7036 = dma.hbm_to_vmem [thread:$0]  (!%p8301_p6), %s9921_s12, 256, %s891_s1, [#allocation21], %s9886_s2, %s9886_s2, %s8081_s4  }
  0x9b   : > { %p7673_p4 = pneg %p7672_p3  ;;  %p7679_p5 = por %p7678_p2, %p7677_p0 }
  0x9d   : > { %p7680_p8 = pnand %p7679_p5, %p7673_p4 }
  0x9f   : > { %7683 = shalt.err (!%p7680_p8)
}
  0xa0   : > { %7042 = dma.hbm_to_vmem [thread:$0]  (!%p8301_p6), %s8194_s27, 256, %s915_s22, [#allocation24], %s9886_s2, %s9886_s2, %s8081_s4  }
  0xa1   : > { %s7695_s1 = scalar_lea.vmem %s939_s10, 256  ;;  %p7703_p12 = scmp.lt.s32.totalorder %s939_s10, %s939_s10 }
  0xa2   : > { %p7696_p9 = scmp.ne.s32.totalorder %s939_s10, %s7695_s1  ;;  %p7704_p13 = scmp.lt.s32.totalorder %s7695_s1, %s7695_s1 }
  0xa4   : > { %p7698_p10 = pnand %p7696_p9, %p8311_p7  ;;  %p7705_p1 = por %p7704_p13, %p7703_p12 }
  0xa6   : > { %p7699_p11 = pneg %p7698_p10 }
  0xa8   : > { %p7706_p3 = pnand %p7705_p1, %p7699_p11 }
  0xaa   : > { %7709 = shalt.err (!%p7706_p3)
}
  0xab   : > { %7048 = dma.hbm_to_vmem [thread:$0]  (!%p8301_p6), %s8204_s19, 256, %s939_s10, [#allocation27], %s9886_s2, %s9886_s2, %s8081_s4  }
  0xac   : > { %s8084_s13 = smov [#allocation7]   ;;  %s8085_s3 = smov [#allocation10]  }
  0xad   : > { %s780_s7 = sshll.u32 %s8084_s13, 4  ;;  %s804_s22 = sshll.u32 %s8085_s3, 4  ;;  %s781_s7 = int_to_ptr.vmem [resolvable:$true] %s780_s7  ;;  %s805_s22 = int_to_ptr.vmem [resolvable:$true] %s804_s22 }
  0xae   : > { %s7721_s23 = scalar_lea.vmem %s781_s7, 128  ;;  %p7729_p5 = scmp.lt.s32.totalorder %s781_s7, %s781_s7 }
  0xaf   : > { %p7722_p4 = scmp.ne.s32.totalorder %s781_s7, %s7721_s23  ;;  %p7730_p8 = scmp.lt.s32.totalorder %s7721_s23, %s7721_s23 }
  0xb1   : > { %p7724_p0 = pnand %p7722_p4, %p8311_p7  ;;  %p7731_p9 = por %p7730_p8, %p7729_p5 }
  0xb3   : > { %p7725_p2 = pneg %p7724_p0 }
  0xb5   : > { %p7732_p10 = pnand %p7731_p9, %p7725_p2 }
  0xb7   : > { %7735 = shalt.err (!%p7732_p10)
}
  0xb8   : > { %s9922_s17 = sld [smem:[#allocation43_spill]]  ;;  %s7747_s10 = scalar_lea.vmem %s805_s22, 256 }
  0xb9   : > { %p7748_p11 = scmp.ne.s32.totalorder %s805_s22, %s7747_s10  ;;  %p7755_p1 = scmp.lt.s32.totalorder %s805_s22, %s805_s22 }
  0xba   : > { %p7756_p3 = scmp.lt.s32.totalorder %s7747_s10, %s7747_s10 }
  0xbb   : > { %p7750_p12 = pnand %p7748_p11, %p8311_p7 }
  0xbc   : > { %p7757_p4 = por %p7756_p3, %p7755_p1 }
  0xbd   : > { %p7751_p13 = pneg %p7750_p12 }
  0xbe   : > { %7009 = dma.hbm_to_vmem [thread:$0]  (!%p8301_p6), %s9922_s17, 128, %s781_s7, [#allocation6]  }
  0xbf   : > { %p7758_p0 = pnand %p7757_p4, %p7751_p13 }
  0xc1   : > { %7761 = shalt.err (!%p7758_p0)
}
  0xc2   : > { %7015 = dma.hbm_to_vmem [thread:$0]  (!%p8301_p6), %s8144_s29, 256, %s805_s22, [#allocation9], %s9886_s2, %s9886_s2, %s8081_s4  }
  0xc3   : > { %s8086_s1 = smov [#allocation13]   ;;  %s8087_s7 = smov [#allocation16]  }
  0xc4   : > { %s828_s13 = sshll.u32 %s8086_s1, 4  ;;  %s856_s3 = sshll.u32 %s8087_s7, 4  ;;  %s829_s13 = int_to_ptr.vmem [resolvable:$true] %s828_s13  ;;  %s857_s3 = int_to_ptr.vmem [resolvable:$true] %s856_s3 }
  0xc5   : > { %s7773_s23 = scalar_lea.vmem %s829_s13, 256  ;;  %p7781_p9 = scmp.lt.s32.totalorder %s829_s13, %s829_s13 }
  0xc6   : > { %p7774_p2 = scmp.ne.s32.totalorder %s829_s13, %s7773_s23  ;;  %p7782_p10 = scmp.lt.s32.totalorder %s7773_s23, %s7773_s23 }
  0xc8   : > { %p7776_p5 = pnand %p7774_p2, %p8311_p7  ;;  %p7783_p11 = por %p7782_p10, %p7781_p9 }
  0xca   : > { %p7777_p8 = pneg %p7776_p5 }
  0xcc   : > { %p7784_p12 = pnand %p7783_p11, %p7777_p8 }
  0xce   : > { %7787 = shalt.err (!%p7784_p12)
}
  0xcf   : > { %s9923_s8 = sld [smem:[#allocation46_spill]]  ;;  %s7799_s22 = scalar_lea.vmem %s857_s3, 16 }
  0xd0   : > { %p7800_p13 = scmp.ne.s32.totalorder %s857_s3, %s7799_s22  ;;  %s7806_s10 = scalar_lea.vmem %s857_s3, 32 }
  0xd1   : > { %p7807_p4 = scmp.lt.s32.totalorder %s857_s3, %s857_s3  ;;  %p7808_p0 = scmp.lt.s32.totalorder %s7806_s10, %s7799_s22 }
  0xd2   : > { %p7802_p1 = pnand %p7800_p13, %p8311_p7 }
  0xd3   : > { %p7809_p2 = por %p7808_p0, %p7807_p4 }
  0xd4   : > { %p7803_p3 = pneg %p7802_p1 }
  0xd5   : > { %7021 = dma.hbm_to_vmem [thread:$0]  (!%p8301_p6), %s9923_s8, 256, %s829_s13, [#allocation12], %s9886_s2, %s9886_s2, %s8081_s4  }
  0xd6   : > { %p7810_p5 = pnand %p7809_p2, %p7803_p3 }
  0xd8   : > { %7813 = shalt.err (!%p7810_p5)
}
  0xd9   : > { %7027 = dma.hbm_to_vmem [thread:$0]  (!%p8301_p6), %s8169_s24, 16, %s857_s3, [#allocation15]  }
  0xda   : > { %s8088_s1 = smov [#allocation19]   ;;  %s8089_s23 = smov [#allocation22]  }
  0xdb   : > { %s880_s7 = sshll.u32 %s8088_s1, 4  ;;  %s904_s13 = sshll.u32 %s8089_s23, 4  ;;  %s881_s7 = int_to_ptr.vmem [resolvable:$true] %s880_s7  ;;  %s905_s13 = int_to_ptr.vmem [resolvable:$true] %s904_s13 }
  0xdc   : > { %s7825_s2 = scalar_lea.vmem %s881_s7, 16  ;;  %s7832_s22 = scalar_lea.vmem %s881_s7, 32 }
  0xdd   : > { %p7826_p8 = scmp.ne.s32.totalorder %s881_s7, %s7825_s2  ;;  %p7833_p11 = scmp.lt.s32.totalorder %s881_s7, %s881_s7 }
  0xde   : > { %p7834_p12 = scmp.lt.s32.totalorder %s7832_s22, %s7825_s2 }
  0xdf   : > { %p7828_p9 = pnand %p7826_p8, %p8311_p7 }
  0xe0   : > { %p7835_p13 = por %p7834_p12, %p7833_p11 }
  0xe1   : > { %p7829_p10 = pneg %p7828_p9 }
  0xe3   : > { %p7836_p1 = pnand %p7835_p13, %p7829_p10 }
  0xe5   : > { %7839 = shalt.err (!%p7836_p1)
}
  0xe6   : > { %s9924_s6 = sld [smem:[#allocation49_spill]]  ;;  %s7851_s3 = scalar_lea.vmem %s905_s13, 16 }
  0xe7   : > { %p7852_p3 = scmp.ne.s32.totalorder %s905_s13, %s7851_s3  ;;  %s7858_s10 = scalar_lea.vmem %s905_s13, 32 }
  0xe8   : > { %p7859_p2 = scmp.lt.s32.totalorder %s905_s13, %s905_s13  ;;  %p7860_p5 = scmp.lt.s32.totalorder %s7858_s10, %s7851_s3 }
  0xe9   : > { %p7854_p4 = pnand %p7852_p3, %p8311_p7 }
  0xea   : > { %p7861_p8 = por %p7860_p5, %p7859_p2 }
  0xeb   : > { %p7855_p0 = pneg %p7854_p4 }
  0xec   : > { %7033 = dma.hbm_to_vmem [thread:$0]  (!%p8301_p6), %s9924_s6, 16, %s881_s7, [#allocation18]  }
  0xed   : > { %p7862_p9 = pnand %p7861_p8, %p7855_p0 }
  0xef   : > { %7865 = shalt.err (!%p7862_p9)
}
  0xf0   : > { %7039 = dma.hbm_to_vmem [thread:$0]  (!%p8301_p6), %s8189_s20, 16, %s905_s13, [#allocation21]  }
  0xf1   : > { %s8090_s2 = smov [#allocation25]   ;;  %s8091_s23 = smov [#allocation28]  }
  0xf2   : > { %s928_s1 = sshll.u32 %s8090_s2, 4  ;;  %s954_s7 = sshll.u32 %s8091_s23, 4  ;;  %s929_s1 = int_to_ptr.vmem [resolvable:$true] %s928_s1  ;;  %s955_s7 = int_to_ptr.vmem [resolvable:$true] %s954_s7 }
  0xf3   : > { %s7877_s22 = scalar_lea.vmem %s929_s1, 16  ;;  %s7884_s3 = scalar_lea.vmem %s929_s1, 32 }
  0xf4   : > { %p7878_p10 = scmp.ne.s32.totalorder %s929_s1, %s7877_s22  ;;  %p7885_p13 = scmp.lt.s32.totalorder %s929_s1, %s929_s1 }
  0xf5   : > { %p7886_p1 = scmp.lt.s32.totalorder %s7884_s3, %s7877_s22 }
  0xf6   : > { %p7880_p11 = pnand %p7878_p10, %p8311_p7 }
  0xf7   : > { %p7887_p3 = por %p7886_p1, %p7885_p13 }
  0xf8   : > { %p7881_p12 = pneg %p7880_p11 }
  0xfa   : > { %p7888_p4 = pnand %p7887_p3, %p7881_p12 }
  0xfc   : > { %7891 = shalt.err (!%p7888_p4)
}
  0xfd   : > { %s9925_s13 = sld [smem:[#allocation51_spill]]  ;;  %s7903_s10 = scalar_lea.vmem %s955_s7, 256 }
  0xfe   : > { %p7904_p0 = scmp.ne.s32.totalorder %s955_s7, %s7903_s10  ;;  %p7911_p8 = scmp.lt.s32.totalorder %s955_s7, %s955_s7 }
  0xff   : > { %p7912_p9 = scmp.lt.s32.totalorder %s7903_s10, %s7903_s10 }
 0x100   : > { %p7906_p2 = pnand %p7904_p0, %p8311_p7 }
 0x101   : > { %p7913_p10 = por %p7912_p9, %p7911_p8 }
 0x102   : > { %p7907_p5 = pneg %p7906_p2 }
 0x103   : > { %7045 = dma.hbm_to_vmem [thread:$0]  (!%p8301_p6), %s9925_s13, 16, %s929_s1, [#allocation24]  }
 0x104   : > { %p7914_p11 = pnand %p7913_p10, %p7907_p5 }
 0x106   : > { %7917 = shalt.err (!%p7914_p11)
}
 0x107   : > { %s9926_s2 = smov 64   ;;  %s9927_s23 = sld [smem:[#allocation53_spill]] }
 0x108   : > { %s6145_s9 = sadd.s32 4294967294, %s8042_s0   ;;  %s8425_s11 = sadd.s32 1, %s8042_s0  }
 0x109   : > { %s115_s1 = ssub.s32 %s8042_s0, %s8425_s11  ;;  %s118_s22 = sadd.s32 1, %s8038_s18 }
 0x10a   : > { %s9928_s3 = sld [smem:[#allocation41_spill]]  ;;  %p116_p7 = scmp.eq.s32.totalorder %s115_s1, 0 }
 0x10b   : > { %p125_p12 = scmp.ne.s32.totalorder %s8038_s18, %s8034_s16  ;;  %p126_p13 = scmp.eq.s32.totalorder %s8042_s0, 0 }
 0x10c   : > { %p131_p1 = scmp.ne.s32.totalorder %s8034_s16, %s8030_s15  ;;  %p9930_p4 = scmp.eq.s32.totalorder %s8287_s26, 0 }
 0x10d   : > { %7051 = dma.hbm_to_vmem [thread:$0]  (!%p8301_p6), %s9927_s23, 256, %s955_s7, [#allocation27], %s9926_s2, %s9926_s2, %s8081_s4  }
 0x10e   : > { %s8436_s13 = scalar_select %p116_p7, %s8038_s18, %s118_s22  }
 0x10f   : > { %p8438_p3 = por %p126_p13, %p125_p12  ;;  %p8444_p6 = por %p9930_p4, %p131_p1 }
 0x110   : > { %p743_p0 = scmp.eq.s32.totalorder %s8287_s26, 1  ;;  %p749_p2 = scmp.eq.s32.totalorder %s6145_s9, 1 }
 0x111   : > { %s9931_s4 = scalar_select %p8444_p6, 1, 0 }
 0x112   : > { %p7076_p5 = scmp.lt.s32.totalorder %s8042_s0, 2  ;;  %s1004_s7 = sand.u32 1, %s8038_s18  }
 0x113   : > { %p8451_p8 = por %p743_p0, %p125_p12  ;;  %p8455_p9 = por %p749_p2, %p131_p1 }
 0x114   : > { %s6164_s1 = sshll.u32 %s1004_s7, 4  ;;  %s6305_s22 = sshll.u32 %s8042_s0, 8 }
 0x115   : > { %s9932_s2 = scalar_select %p8451_p8, 1, 0 }
 0x116   : > { %s9933_s23 = scalar_select %p8455_p9, 1, 0 }
 0x117   : > { %s8461_s6 = scalar_lea.hbm %s9928_s3, %s6305_s22  ;;  %s1008_s9 = scalar_lea.vmem [#allocation2], %s6164_s1 }
 0x118   : > { %s1015_s8 = sshll.u32 %s1008_s9, 4  ;;  %p8467_p10 = pnand %p7076_p5, %p8438_p3  ;;  %s8463_s8 = int_to_ptr.vmem [resolvable:$true] %s1015_s8 }
 0x119   : > { %s8471_s14 = scalar_lea.sflag [#allocation3], %s1004_s7  ;;  %s7918_s17 = scalar_lea.hbm %s8461_s6, 256 }
 0x11a   : > { %p7919_p11 = scmp.ne.s32.totalorder %s8461_s6, %s7918_s17  ;;  %p7920_p7 = pneg %p8467_p10 }
 0x11b   : > { %s7923_s22 = scalar_lea.hbm %s9928_s3, 512  ;;  %p7924_p1 = scmp.lt.s32.totalorder %s8461_s6, %s9928_s3 }
 0x11c   : > { %p7921_p12 = pnand %p7920_p7, %p7919_p11  ;;  %p7925_p4 = scmp.lt.s32.totalorder %s7923_s22, %s7918_s17 }
 0x11e   : > { %p7922_p13 = pneg %p7921_p12  ;;  %p7926_p0 = por %p7925_p4, %p7924_p1 }
 0x120   : > { %p7927_p2 = pnand %p7926_p0, %p7922_p13 }
 0x122   : > { %7930 = shalt.err (!%p7927_p2)
}
 0x123   : > { %s7931_s10 = scalar_lea.vmem %s8463_s8, 256  ;;  %s8092_s7 = smov [#allocation2]  }
 0x124   : > { %p7932_p3 = scmp.ne.s32.totalorder %s8463_s8, %s7931_s10  ;;  %s7936_s1 = sshll.u32 %s8092_s7, 4  ;;  %s7937_s1 = int_to_ptr.vmem [resolvable:$false] %s7936_s1 }
 0x125   : > { %s7938_s9 = scalar_lea.vmem %s7937_s1, 512  ;;  %p7939_p8 = scmp.lt.s32.totalorder %s8463_s8, %s7937_s1 }
 0x126   : > { %p7934_p5 = pnand %p7932_p3, %p7920_p7  ;;  %p7940_p11 = scmp.lt.s32.totalorder %s7938_s9, %s7931_s10 }
 0x128   : > { %p7935_p9 = pneg %p7934_p5  ;;  %p7941_p12 = por %p7940_p11, %p7939_p8 }
 0x12a   : > { %p7942_p6 = pnand %p7941_p12, %p7935_p9 }
 0x12c   : > { %7945 = shalt.err (!%p7942_p6)
}
 0x12d   : > { %s8093_s17 = smov 128   ;;  %s8094_s22 = smov 8  }
 0x12e   : > { %7055 = dma.hbm_to_vmem [thread:$0]  (!%p8467_p10), %s8461_s6, 256, %s8463_s8, %s8471_s14, %s8093_s17, %s8093_s17, %s8094_s22  }
 0x12f   : > { %p9935_p7 = scmp.ne.s32.totalorder %s9915_s28, 0 }
 0x130   : > { %s8491_s7 = sand.u32 (!%p9935_p7), 1, %s8034_s16   ;;  %p9936_p6 = scmp.ne.s32.totalorder (!%p9935_p7), %s9931_s4, 0 }
 0x131   : > { %1027 = sbr.rel (%p9935_p7) target bundleno = 4962 (0x1362), region = 140  ;;  %s9889_s10 = sshll.u32 (!%p9935_p7), %s8491_s7, 4 }
 0x132   : > { %s1030_s1 = scalar_lea.sflag (!%p9935_p7), [#allocation3], %s8491_s7  ;;  %s8497_s9 = scalar_lea.vmem (!%p9935_p7), [#allocation2], %s9889_s10 }
 0x136   : > { %7989 = dma.done.wait (%p9936_p6), %s1030_s1, 256  }
 0x137   : > { %7991 = vsyncadd (%p9936_p6), %s1030_s1, 4294967040  ;;  %p9937_p8 = scmp.eq.s32.totalorder %s8287_s26, 0 }
 0x139   : > { %7993 = dma.done.wait (%p9937_p8), [#allocation6], 256   ;;  %p9938_p9 = pmov %p9937_p8 }
 0x13a   : > { %p9939_p10 = pmov %p9937_p8 }
 0x13b   : > { %7995 = vsyncadd (%p9938_p9), [#allocation6], 4294967040 }
 0x13c   : > { %7997 = dma.done.wait (%p9939_p10), [#allocation9], 272   ;;  %p9940_p13 = pmov %p9937_p8 }
 0x13d   : > { %p9941_p1 = pmov %p9937_p8 }
 0x13e   : > { %7999 = vsyncadd (%p9940_p13), [#allocation9], 4294967024 }
 0x13f   : > { %8001 = dma.done.wait (%p9941_p1), [#allocation12], 272   ;;  %p9942_p4 = pmov %p9941_p1 }
 0x140   : > { %p9943_p0 = pmov %p9941_p1 }
 0x141   : > { %8003 = vsyncadd (%p9942_p4), [#allocation12], 4294967024 }
 0x142   : > { %8005 = dma.done.wait (%p9943_p0), [#allocation15], 32   ;;  %p9944_p2 = pmov %p9943_p0 }
 0x143   : > { %p9945_p3 = pmov %p9943_p0 }
 0x144   : > { %8007 = vsyncadd (%p9944_p2), [#allocation15], 4294967264 }
 0x145   : > { %8009 = dma.done.wait (%p9945_p3), [#allocation18], 272   ;;  %p9946_p5 = pmov %p9943_p0 }
 0x146   : > { %p9947_p11 = pmov %p9943_p0 }
 0x147   : > { %8011 = vsyncadd (%p9946_p5), [#allocation18], 4294967024 }
 0x148   : > { %8013 = dma.done.wait (%p9947_p11), [#allocation21], 272   ;;  %p9948_p12 = pmov %p9943_p0 }
 0x149   : > { %p9949_p7 = pmov %p9943_p0 }
 0x14a   : > { %8015 = vsyncadd (%p9948_p12), [#allocation21], 4294967024 }
 0x14b   : > { %8017 = dma.done.wait (%p9949_p7), [#allocation24], 272   ;;  %p9950_p6 = pmov %p9943_p0 }
 0x14c   : > { %p9951_p8 = pmov %p9943_p0 }
 0x14d   : > { %8019 = vsyncadd (%p9950_p6), [#allocation24], 4294967024 }
 0x14e   : > { %8021 = dma.done.wait (%p9951_p8), [#allocation27], 512   ;;  %p9952_p9 = pmov %p9943_p0 }
 0x14f   : > { %s9953_s8 = sld [smem:[#allocation44_spill]]  ;;  %s6186_s6 = sshll.u32 %s8287_s26, 1  ;;  %v8095_v0 = vmov 0.0   ;;  %vm8096_vm0 = vmmov 0   ;;  %v7306_v1 = vld [vmem:[#allocation10 + $0x8] sm:$0xff]   ;;  %v7308_v3 = vld [vmem:[#allocation10] sm:$0xff]  }
 0x150   : > { %8023 = vsyncadd (%p9952_p9), [#allocation27], 4294966784  ;;  %s9954_s14 = sld [smem:[#allocation40_spill]]  ;;  %6475 = vmatprep.subr.bf16.mxu1 %v8095_v0  ;;  %6467 = vmatprep.subr.bf16.mxu0 %v8095_v0  ;;  %p1180_p10 = scmp.lt.s32.totalorder %s6186_s6, 3  ;;  %vm1218_vm1 = vcmask 261120   ;;  %v7310_v8 = vld [vmem:[#allocation13 + $0x8] sm:$0xff]  }
 0x151   : > { %6479 = vmatprep.mubr.msk.bf16.mxu1 %vm8096_vm0, %v8095_v0  ;;  %6471 = vmatprep.mubr.msk.bf16.mxu0 %vm8096_vm0, %v8095_v0  ;;  %v7311_v9 = vld [vmem:[#allocation13] sm:$0xff]   ;;  %v6192_v10 = vld [vmem:[#allocation11] ss:$0 sm:$0xff]  ;;  %v6188_v14 = vld [vmem:[#allocation8] ss:$0 sm:$0xff]  ;;  %vm1475_vm2 = vcmask 64512  }
 0x152   : > { %s9976_s6 = smov (!%p1180_p10, %s6186_s6), 3  ;;  %6476 = vmatpush3.bf16.msra.mxu1 %v7306_v1  ;;  %s8097_s4 = smov 112   ;;  %v6196_v36 = vld [vmem:[#allocation14] ss:$0 sm:$0xff]  ;;  %vm1984_vm3 = vcmask 1041408   ;;  %vm1860_vm4 = vcmask 31744  }
 0x153   : > { %s6187_s12 = sshll.u32 %s9976_s6, 3  ;;  %6477 = vmatprep.subr.bf16.mxu1 %v8095_v0  ;;  %s8098_s17 = smov 120   ;;  %vm3308_vm5 = vcmask 130048   ;;  %vm3311_vm6 = vcmask 195584   ;;  %vm5771_vm7 = vcmask 523264  }
 0x154   : > { %s8099_s22 = smov 104   ;;  %s8100_s1 = smov 124  }
 0x155   : > { %v7307_v2 = vld [vmem:[%s9953_s8 + $0x8] sm:$0xff]   ;;  %v7309_v4 = vld [vmem:[%s9953_s8] sm:$0xff]   ;;  %s9891_s6 = smov 8   ;;  %s9890_s10 = smov 24  }
 0x156   : > { %s8544_s28 = scalar_lea.vmem %s9954_s14, %s6187_s12  ;;  %6468 = vmatpush3.bf16.msra.mxu0 %v7307_v2  ;;  %6478 = vmatpush3.bf16.msra.mxu1 %v7308_v3  ;;  %s9955_s14 = sld [smem:[#allocation48_spill]] }
 0x157   : > { %6469 = vmatprep.subr.bf16.mxu0 %v8095_v0  ;;  %v1188_v5 = vld [vmem:[%s8544_s28] sm:$0xff]  ;;  %v1189_v6 = vld [vmem:[%s8544_s28 + $0x8] sm:$0xff]  ;;  %6491 = vmatprep.subr.bf16.mxu1 %v8095_v0  ;;  %s8102_s12 = smov 16   ;;  %p9967_p1 = scmp.ne.s32.totalorder %s9932_s2, 0 }
 0x158   : > { %v1194_v7 = vpack.c.bf16 %v1189_v6, %v1188_v5 }
 0x15a   : > { %6470 = vmatpush3.bf16.msra.mxu0 %v7309_v4  ;;  %6480 = vmatmul.mubr.msk.bf16.vlgmr.msra.gmra.mxu1 %vm1218_vm1, %v1194_v7 }
 0x15b   : > { %6483 = vmatprep.subr.bf16.mxu0 %v8095_v0  ;;  %6493 = vmatprep.mubr.msk.bf16.mxu1 %vm8096_vm0, %v8095_v0 }
 0x15d   : > { %6472 = vmatmul.mubr.msk.bf16.vlgmr.msra.gmra.mxu0 %vm1218_vm1, %v1194_v7 }
 0x15e   : > { %6487 = vmatprep.mubr.msk.bf16.mxu0 %vm8096_vm0, %v8095_v0  ;;  %6484 = vmatpush3.bf16.msra.mxu0 %v7310_v8 }
 0x15f   : > { %6485 = vmatprep.subr.bf16.mxu0 %v8095_v0 }
 0x162   : > { %6486 = vmatpush3.bf16.msra.mxu0 %v7311_v9 }
 0x163   : > { %6497 = vmatprep.subr.bf16.mxu0 %v8095_v0 }
 0x165   : > { %6488 = vmatmul.mubr.msk.bf16.vlgmr.msra.gmra.mxu0 %vm1218_vm1, %v1194_v7 }
 0x166   : > { %6499 = vmatprep.mubr.msk.bf16.mxu0 %vm8096_vm0, %v8095_v0 }
 0x21a   : > { %v1320_v11 = vpop.f32.mrf.mxu1 }
 0x21b   : > { %v1321_v12 = vadd.f32 %v6192_v10, %v1320_v11 }
 0x21c   : > { %v6481_v15 = vpop.f32.mrf.mxu1 }
 0x21d   : > { %v1256_v13 = vpop.f32.mrf.mxu0  ;;  %v8564_v17 = vpack.c.bf16 %v1321_v12, %v1321_v12 }
 0x21e   : > { %v1323_v18 = vpop.f32.mrf.mxu1  ;;  %v1257_v19 = vadd.f32 %v6188_v14, %v1256_v13 }
 0x21f   : > { %v6473_v16 = vpop.f32.mrf.mxu0  ;;  %v1324_v20 = vadd.f32 %v6192_v10, %v1323_v18  ;;  %v1480_v22 = vsel %vm1475_vm2, %v8564_v17, 0 }
 0x220   : > { %v6482_v24 = vpop.f32.mrf.mxu1  ;;  %6492 = vmatpush3.bf16.xpose.msra.mxu1 %v1480_v22  ;;  %v8571_v28 = vpack.c.bf16 %v1257_v19, %v1257_v19 }
 0x221   : > { %v1259_v21 = vpop.f32.mrf.mxu0  ;;  %v7196_v26 = vpack.i.bf16 %v1324_v20, %v1321_v12  ;;  %v8568_v27 = vpack.c.bf16 %v1324_v20, %v1324_v20  ;;  %6503 = vmatprep.subr.bf16.mxu1 %v8095_v0 }
 0x222   : > { %v1260_v23 = vadd.f32 %v6188_v14, %v1259_v21 }
 0x223   : > { %v6474_v25 = vpop.f32.mrf.mxu0  ;;  %7197 = vrot.lane.b32.xlu1 %v7196_v26, %s8097_s4  ;;  %7187 = vrot.lane.b32.xlu0 %v7196_v26, %s8098_s17  ;;  %v1526_v29 = vsel %vm1475_vm2, %v8568_v27, 0 }
 0x224   : > { %v7201_v30 = vpack.i.bf16 %v1260_v23, %v1257_v19  ;;  %6498 = vmatpush3.bf16.xpose.msra.mxu0 %v1526_v29  ;;  %v8584_v31 = vpack.c.bf16 %v1260_v23, %v1260_v23  ;;  %v8670_v19 = vld [vmem:[#allocation5] sm:$0xff] }
 0x225   : > { %6509 = vmatprep.subr.bf16.mxu0 %v8095_v0  ;;  %v1384_v32 = vpop.f32.mrf.mxu0 }
 0x226   : > { %v1385_v37 = vadd.f32 %v6196_v36, %v1384_v32 }
 0x227   : > { %6494 = vmatmul.mubr.msk.bf16.vlgmr.msra.gmra.mxu1 %vm1475_vm2, %v8571_v28  ;;  %7202 = vrot.lane.b32.xlu1 %v7201_v30, %s8097_s4  ;;  %v6489_v33 = vpop.f32.mrf.mxu0 }
 0x228   : > { %7192 = vrot.lane.b32.xlu0 %v7201_v30, %s8098_s17  ;;  %6505 = vmatprep.mubr.msk.bf16.mxu1 %vm8096_vm0, %v8095_v0  ;;  %v8646_v11 = vpack.c.bf16 %v1385_v37, %v1385_v37 }
 0x229   : > { %v1387_v34 = vpop.f32.mrf.mxu0 }
 0x22a   : > { %v1388_v38 = vadd.f32 %v6196_v36, %v1387_v34  ;;  %v1986_v15 = vsel %vm1984_vm3, %v8646_v11, 0 }
 0x22b   : > { %7212 = vrot.lane.b32.xlu1 %v7201_v30, %s8099_s22  ;;  %6500 = vmatmul.mubr.msk.bf16.vlgmr.msra.gmra.mxu0 %vm1475_vm2, %v8584_v31  ;;  %v6490_v35 = vpop.f32.mrf.mxu0 }
 0x22c   : > { %7207 = vrot.lane.b32.xlu0 %v7196_v26, %s8099_s22  ;;  %6511 = vmatprep.mubr.msk.bf16.mxu0 %vm8096_vm0, %v8095_v0  ;;  %v8592_v39 = vpack.i.bf16 %v1388_v38, %v1385_v37  ;;  %v8648_v12 = vpack.c.bf16 %v1388_v38, %v1388_v38 }
 0x22e   : > { %v2032_v16 = vsel %vm1984_vm3, %v8648_v12, 0 }
 0x295   : > { %v7188_v40 = vpop.permute.xlu0 %7187  ;;  %v7198_v43 = vpop.permute.xlu1 %7197 }
 0x296   : > { %v7190_v41 = vunpack.i.h.bf16 %v7188_v40  ;;  %v7189_v42 = vunpack.i.l.bf16 %v7188_v40  ;;  %v7200_v46 = vunpack.i.h.bf16 %v7198_v43  ;;  %v7199_v47 = vunpack.i.l.bf16 %v7198_v43 }
 0x298   : > { %v8594_v44 = vpack.c.bf16 %v7190_v41, %v7190_v41  ;;  %v8596_v45 = vpack.c.bf16 %v7189_v42, %v7189_v42  ;;  %v8604_v53 = vpack.c.bf16 %v7200_v46, %v7200_v46  ;;  %v8606_v54 = vpack.c.bf16 %v7199_v47, %v7199_v47 }
 0x299   : > { %v7203_v58 = vpop.permute.xlu1 %7202 }
 0x29a   : > { %v7193_v48 = vpop.permute.xlu0 %7192  ;;  %v1572_v49 = vsel %vm1475_vm2, %v8596_v45, 0  ;;  %v1618_v50 = vsel %vm1475_vm2, %v8594_v44, 0  ;;  %v1664_v61 = vsel %vm1475_vm2, %v8606_v54, 0  ;;  %v1710_v62 = vsel %vm1475_vm2, %v8604_v53, 0 }
 0x29b   : > { %6504 = vmatpush3.bf16.xpose.msra.mxu1 %v1572_v49  ;;  %6510 = vmatpush3.bf16.xpose.msra.mxu0 %v1618_v50  ;;  %v7195_v51 = vunpack.i.h.bf16 %v7193_v48  ;;  %v7194_v52 = vunpack.i.l.bf16 %v7193_v48  ;;  %v7205_v63 = vunpack.i.h.bf16 %v7203_v58  ;;  %v7204_v1 = vunpack.i.l.bf16 %v7203_v58 }
 0x29c   : > { %6515 = vmatprep.subr.bf16.mxu1 %v8095_v0  ;;  %6521 = vmatprep.subr.bf16.mxu0 %v8095_v0 }
 0x29d   : > { %v8608_v56 = vpack.c.bf16 %v7195_v51, %v7195_v51  ;;  %v8610_v57 = vpack.c.bf16 %v7194_v52, %v7194_v52  ;;  %v8630_v4 = vpack.c.bf16 %v7205_v63, %v7205_v63  ;;  %v8632_v5 = vpack.c.bf16 %v7204_v1, %v7204_v1  ;;  %v7213_v6 = vpop.permute.xlu1 %7212 }
 0x29e   : > { %v7208_v55 = vpop.permute.xlu0 %7207  ;;  %v7215_v9 = vunpack.i.h.bf16 %v7213_v6  ;;  %v7214_v10 = vunpack.i.l.bf16 %v7213_v6 }
 0x29f   : > { %v7210_v59 = vunpack.i.h.bf16 %v7208_v55  ;;  %v7209_v60 = vunpack.i.l.bf16 %v7208_v55 }
 0x2a0   : > { %v8652_v13 = vpack.c.bf16 %v7215_v9, %v7215_v9  ;;  %v8654_v14 = vpack.c.bf16 %v7214_v10, %v7214_v10 }
 0x2a1   : > { %v8626_v2 = vpack.c.bf16 %v7210_v59, %v7210_v59  ;;  %v8628_v3 = vpack.c.bf16 %v7209_v60, %v7209_v60 }
 0x2a2   : > { %6506 = vmatmul.mubr.msk.bf16.vlgmr.msra.gmra.mxu1 %vm1475_vm2, %v8610_v57  ;;  %6512 = vmatmul.mubr.msk.bf16.vlgmr.msra.gmra.mxu0 %vm1475_vm2, %v8608_v56 }
 0x2a3   : > { %6516 = vmatpush3.bf16.xpose.msra.mxu1 %v1664_v61  ;;  %6522 = vmatpush3.bf16.xpose.msra.mxu0 %v1710_v62  ;;  %v1756_v7 = vsel %vm1475_vm2, %v8628_v3, 0  ;;  %v1802_v8 = vsel %vm1475_vm2, %v8626_v2, 0 }
 0x2a4   : > { %6517 = vmatprep.mubr.msk.bf16.mxu1 %vm8096_vm0, %v8095_v0  ;;  %6523 = vmatprep.mubr.msk.bf16.mxu0 %vm8096_vm0, %v8095_v0 }
 0x2a5   : > { %6527 = vmatprep.subr.bf16.mxu1 %v8095_v0  ;;  %6533 = vmatprep.subr.bf16.mxu0 %v8095_v0 }
 0x2aa   : > { %6518 = vmatmul.mubr.msk.bf16.vlgmr.msra.gmra.mxu1 %vm1475_vm2, %v8632_v5  ;;  %6524 = vmatmul.mubr.msk.bf16.vlgmr.msra.gmra.mxu0 %vm1475_vm2, %v8630_v4 }
 0x2ab   : > { %6528 = vmatpush3.bf16.xpose.msra.mxu1 %v1756_v7  ;;  %6534 = vmatpush3.bf16.xpose.msra.mxu0 %v1802_v8 }
 0x2ac   : > { %6529 = vmatprep.mubr.msk.bf16.mxu1 %vm8096_vm0, %v8095_v0  ;;  %6535 = vmatprep.mubr.msk.bf16.mxu0 %vm8096_vm0, %v8095_v0 }
 0x2ad   : > { %6539 = vmatprep.subr.bf16.mxu1 %v8095_v0  ;;  %6545 = vmatprep.subr.bf16.mxu0 %v8095_v0 }
 0x2b2   : > { %6530 = vmatmul.mubr.msk.bf16.vlgmr.msra.gmra.mxu1 %vm1475_vm2, %v8654_v14  ;;  %6536 = vmatmul.mubr.msk.bf16.vlgmr.msra.gmra.mxu0 %vm1475_vm2, %v8652_v13 }
 0x2b3   : > { %6540 = vmatpush3.bf16.msra.mxu1 %v1986_v15  ;;  %6546 = vmatpush3.bf16.msra.mxu0 %v2032_v16 }
 0x2b4   : > { %6541 = vmatprep.mubr.msk.bf16.mxu1 %vm8096_vm0, %v8095_v0  ;;  %6547 = vmatprep.mubr.msk.bf16.mxu0 %vm8096_vm0, %v8095_v0 }
 0x2b5   : > { %6551 = vmatprep.subr.bf16.mxu1 %v8095_v0  ;;  %6557 = vmatprep.subr.bf16.mxu0 %v8095_v0 }
 0x2e7   : > { %v1516_v18 = vpop.f32.mrf.mxu1 }
 0x2e8   : > { %v1844_v20 = vmul.f32 0.35355338, %v1516_v18 }
 0x2e9   : > { %v6495_v21 = vpop.f32.mrf.mxu1 }
 0x2ea   : > { %v8673_v22 = vadd.f32 %v1844_v20, %v8670_v19 }
 0x2eb   : > { %v1519_v23 = vpop.f32.mrf.mxu1  ;;  %v1562_v24 = vpop.f32.mrf.mxu0 }
 0x2ec   : > { %v1845_v25 = vmul.f32 0.35355338, %v1562_v24  ;;  %v1861_v26 = vsel %vm1860_vm4, %v8673_v22, -inf }
 0x2ed   : > { %v6496_v29 = vpop.f32.mrf.mxu1  ;;  %1862 = vmax.xlane.f32.xlu0 %v1861_v26  ;;  %v6501_v30 = vpop.f32.mrf.mxu0 }
 0x2ee   : > { %v1853_v32 = vadd.f32 %v1845_v25, %v8670_v19 }
 0x2ef   : > { %v1565_v33 = vpop.f32.mrf.mxu0 }
 0x2f0   : > { %v1864_v34 = vsel %vm1860_vm4, %v1853_v32, -inf }
 0x2f1   : > { %1865 = vmax.xlane.f32.xlu1 %v1864_v34  ;;  %v6502_v35 = vpop.f32.mrf.mxu0 }
 0x302   : > { %7217 = vrot.lane.b32.xlu1 %v8592_v39, %s8098_s17 }
 0x362   : > { %v1608_v36 = vpop.f32.mrf.mxu1  ;;  %v1654_v37 = vpop.f32.mrf.mxu0 }
 0x363   : > { %v1846_v38 = vmul.f32 0.35355338, %v1608_v36  ;;  %v1847_v40 = vmul.f32 0.35355338, %v1654_v37 }
 0x364   : > { %v6507_v41 = vpop.f32.mrf.mxu1  ;;  %v6513_v42 = vpop.f32.mrf.mxu0 }
 0x365   : > { %v8682_v43 = vadd.f32 %v1846_v38, %v8670_v19  ;;  %v8687_v49 = vadd.f32 %v1847_v40, %v8670_v19 }
 0x366   : > { %v1611_v46 = vpop.f32.mrf.mxu1  ;;  %v1657_v47 = vpop.f32.mrf.mxu0 }
 0x367   : > { %v1867_v48 = vsel %vm1860_vm4, %v8682_v43, -inf  ;;  %v1870_v60 = vsel %vm1860_vm4, %v8687_v49, -inf }
 0x368   : > { %1868 = vmax.xlane.f32.xlu0 %v1867_v48  ;;  %v6508_v50 = vpop.f32.mrf.mxu1  ;;  %v6514_v51 = vpop.f32.mrf.mxu0 }
 0x36a   : > { %v1700_v52 = vpop.f32.mrf.mxu1  ;;  %v1746_v55 = vpop.f32.mrf.mxu0 }
 0x36b   : > { %v1848_v58 = vmul.f32 0.35355338, %v1700_v52  ;;  %v1849_v59 = vmul.f32 0.35355338, %v1746_v55 }
 0x36c   : > { %v6519_v61 = vpop.f32.mrf.mxu1  ;;  %1871 = vmax.xlane.f32.xlu0 %v1870_v60  ;;  %v6525_v62 = vpop.f32.mrf.mxu0 }
 0x36d   : > { %v8692_v63 = vadd.f32 %v1848_v58, %v8670_v19  ;;  %v8695_v1 = vadd.f32 %v1849_v59, %v8670_v19 }
 0x36e   : > { %v1703_v6 = vpop.f32.mrf.mxu1  ;;  %v1749_v7 = vpop.f32.mrf.mxu0 }
 0x36f   : > { %v1873_v8 = vsel %vm1860_vm4, %v8692_v63, -inf  ;;  %v1876_v9 = vsel %vm1860_vm4, %v8695_v1, -inf }
 0x370   : > { %v6520_v10 = vpop.f32.mrf.mxu1  ;;  %1874 = vmax.xlane.f32.xlu1 %v1873_v8  ;;  %1877 = vmax.xlane.f32.xlu0 %v1876_v9  ;;  %v6526_v15 = vpop.f32.mrf.mxu0 }
 0x372   : > { %v1792_v16 = vpop.f32.mrf.mxu1  ;;  %v1838_v18 = vpop.f32.mrf.mxu0 }
 0x373   : > { %v1850_v20 = vmul.f32 0.35355338, %v1792_v16  ;;  %v1851_v21 = vmul.f32 0.35355338, %v1838_v18 }
 0x374   : > { %v6531_v23 = vpop.f32.mrf.mxu1  ;;  %v6537_v24 = vpop.f32.mrf.mxu0 }
 0x375   : > { %v1858_v25 = vadd.f32 %v1850_v20, %v8670_v19  ;;  %v8703_v26 = vadd.f32 %v1851_v21, %v8670_v19 }
 0x376   : > { %v8705_v29 = vpop.xlane.xlu0 %1862  ;;  %v1795_v30 = vpop.f32.mrf.mxu1 }
 0x377   : > { %v1909_v33 = vsub.f32 %v8673_v22, %v8705_v29  ;;  %v1841_v34 = vpop.f32.mrf.mxu0  ;;  %v1879_v35 = vsel %vm1860_vm4, %v1858_v25, -inf  ;;  %v1882_v36 = vsel %vm1860_vm4, %v8703_v26, -inf }
 0x378   : > { %v6532_v37 = vpop.f32.mrf.mxu1  ;;  %1880 = vmax.xlane.f32.xlu1 %v1879_v35  ;;  %1883 = vmax.xlane.f32.xlu0 %v1882_v36 }
 0x379   : > { %v1917_v38 = vmul.f32 1.442695, %v1909_v33  ;;  %v6538_v40 = vpop.f32.mrf.mxu0 }
 0x37a   : > { %v8712_v41 = vpop.xlane.xlu1 %1865 }
 0x37b   : > { %7328 = vpow2.f32 %v1917_v38  ;;  %v1910_v42 = vsub.f32 %v1853_v32, %v8712_v41 }
 0x37d   : > { %v1919_v46 = vmul.f32 1.442695, %v1910_v42 }
 0x37e   : > { %v7218_v47 = vpop.permute.xlu1 %7217 }
 0x37f   : > { %7330 = vpow2.f32 %v1919_v46  ;;  %v7219_v22 = vunpack.i.l.bf16 %v7218_v47  ;;  %v7220_v48 = vunpack.i.h.bf16 %v7218_v47 }
 0x381   : > { %v8715_v50 = vpack.c.bf16 %v7219_v22, %v7219_v22  ;;  %v8723_v55 = vpack.c.bf16 %v7220_v48, %v7220_v48 }
 0x383   : > { %v2078_v32 = vsel %vm1984_vm3, %v8715_v50, 0  ;;  %v2124_v60 = vsel %vm1984_vm3, %v8723_v55, 0 }
 0x388   : > { %v8717_v51 = vpop.eup %7328 }
 0x389   : > { %7227 = vrot.lane.b32.xlu1 %v8592_v39, %s8099_s22  ;;  %v1973_v52 = vpack.c.bf16 %v8717_v51, %v8717_v51 }
 0x38b   : > { %6542 = vmatmul.mubr.msk.bf16.vlgmr.msra.gmra.mxu1 %vm1860_vm4, %v1973_v52 }
 0x38c   : > { %v8728_v58 = vpop.eup %7330  ;;  %6552 = vmatpush3.bf16.msra.mxu1 %v2078_v32  ;;  %6553 = vmatprep.mubr.msk.bf16.mxu1 %vm8096_vm0, %v8095_v0 }
 0x38d   : > { %v1974_v59 = vpack.c.bf16 %v8728_v58, %v8728_v58  ;;  %6563 = vmatprep.subr.bf16.mxu1 %v8095_v0  ;;  %2727 = vrot.lane.b32.xlu1 %v8670_v19, %s8100_s1 }
 0x38e   : > { %7222 = vrot.lane.b32.xlu0 %v8592_v39, %s8097_s4 }
 0x38f   : > { %6548 = vmatmul.mubr.msk.bf16.vlgmr.msra.gmra.mxu0 %vm1860_vm4, %v1974_v59 }
 0x390   : > { %6558 = vmatpush3.bf16.msra.mxu0 %v2124_v60  ;;  %6559 = vmatprep.mubr.msk.bf16.mxu0 %vm8096_vm0, %v8095_v0 }
 0x391   : > { %6569 = vmatprep.subr.bf16.mxu0 %v8095_v0 }
 0x3f1   : > { %v8745_v61 = vpop.xlane.xlu0 %1868 }
 0x3f2   : > { %v1911_v62 = vsub.f32 %v8682_v43, %v8745_v61 }
 0x3f4   : > { %v1921_v6 = vmul.f32 1.442695, %v1911_v62 }
 0x3f5   : > { %v8749_v7 = vpop.xlane.xlu0 %1871 }
 0x3f6   : > { %7332 = vpow2.f32 %v1921_v6  ;;  %v1912_v39 = vsub.f32 %v8687_v49, %v8749_v7 }
 0x3f8   : > { %v1923_v8 = vmul.f32 1.442695, %v1912_v39  ;;  %v2359_v39 = vrot.slane %v8564_v17, 2 }
 0x3f9   : > { %v8753_v9 = vpop.xlane.xlu1 %1874  ;;  %v8755_v10 = vpop.xlane.xlu0 %1877 }
 0x3fa   : > { %7334 = vpow2.f32 %v1923_v8  ;;  %v1913_v19 = vsub.f32 %v8692_v63, %v8753_v9  ;;  %v1914_v15 = vsub.f32 %v8695_v1, %v8755_v10 }
 0x3fc   : > { %v1925_v43 = vmul.f32 1.442695, %v1913_v19  ;;  %v1927_v16 = vmul.f32 1.442695, %v1914_v15  ;;  %v2404_v15 = vrot.slane %v8568_v27, 2  ;;  %v2449_v27 = vrot.slane %v8596_v45, 2 }
 0x3fe   : > { %7336 = vpow2.f32 %v1925_v43  ;;  %v2361_v43 = vsel %vm1475_vm2, %v2359_v39, 0 }
 0x3ff   : > { %7338 = vpow2.f32 %v1927_v16  ;;  %v2406_v16 = vsel %vm1475_vm2, %v2404_v15, 0 }
 0x401   : > { %v8761_v18 = vpop.xlane.xlu1 %1880  ;;  %v8763_v20 = vpop.xlane.xlu0 %1883 }
 0x402   : > { %v1915_v49 = vsub.f32 %v1858_v25, %v8761_v18  ;;  %v1916_v21 = vsub.f32 %v8703_v26, %v8763_v20 }
 0x403   : > { %v8768_v23 = vpop.eup %7332 }
 0x404   : > { %v1929_v24 = vmul.f32 1.442695, %v1915_v49  ;;  %v1975_v63 = vpack.c.bf16 %v8768_v23, %v8768_v23  ;;  %v1931_v1 = vmul.f32 1.442695, %v1916_v21  ;;  %v2494_v49 = vrot.slane %v8594_v44, 2 }
 0x405   : > { %v7228_v30 = vpop.permute.xlu1 %7227  ;;  %v7223_v33 = vpop.permute.xlu0 %7222  ;;  %v2451_v21 = vsel %vm1475_vm2, %v2449_v27, 0 }
 0x406   : > { %7340 = vpow2.f32 %v1929_v24  ;;  %v7225_v34 = vunpack.i.h.bf16 %v7223_v33  ;;  %6554 = vmatmul.mubr.msk.bf16.vlgmr.msra.gmra.mxu1 %vm1860_vm4, %v1975_v63  ;;  %v7229_v36 = vunpack.i.l.bf16 %v7228_v30  ;;  %v7224_v25 = vunpack.i.l.bf16 %v7223_v33 }
 0x407   : > { %v8773_v35 = vpop.eup %7334  ;;  %6565 = vmatprep.mubr.msk.bf16.mxu1 %vm8096_vm0, %v8095_v0  ;;  %7342 = vpow2.f32 %v1931_v1  ;;  %v7230_v40 = vunpack.i.h.bf16 %v7228_v30  ;;  %v2496_v45 = vsel %vm1475_vm2, %v2494_v49, 0  ;;  %v2539_v24 = vrot.slane %v8606_v54, 2 }
 0x408   : > { %v8777_v26 = vpack.c.bf16 %v7225_v34, %v7225_v34  ;;  %v1976_v37 = vpack.c.bf16 %v8773_v35, %v8773_v35  ;;  %v8781_v38 = vpack.c.bf16 %v7224_v25, %v7224_v25  ;;  %v8788_v47 = vpack.c.bf16 %v7229_v36, %v7229_v36 }
 0x409   : > { %v8800_v32 = vpack.c.bf16 %v7230_v40, %v7230_v40  ;;  %v2541_v44 = vsel %vm1475_vm2, %v2539_v24, 0  ;;  %v2629_v54 = vrot.slane %v8628_v3, 2  ;;  %v2875_v3 = vrot.slane %v8646_v11, 2 }
 0x40a   : > { %6560 = vmatmul.mubr.msk.bf16.vlgmr.msra.gmra.mxu0 %vm1860_vm4, %v1976_v37  ;;  %v2216_v42 = vsel %vm1984_vm3, %v8777_v26, 0  ;;  %v2170_v22 = vsel %vm1984_vm3, %v8781_v38, 0  ;;  %v2262_v59 = vsel %vm1984_vm3, %v8788_v47, 0 }
 0x40b   : > { %v8786_v46 = vpop.eup %7336  ;;  %6570 = vmatpush3.bf16.msra.mxu0 %v2216_v42  ;;  %6571 = vmatprep.mubr.msk.bf16.mxu0 %vm8096_vm0, %v8095_v0  ;;  %v2308_v62 = vsel %vm1984_vm3, %v8800_v32, 0 }
 0x40c   : > { %6564 = vmatpush3.bf16.msra.mxu1 %v2170_v22  ;;  %v1977_v48 = vpack.c.bf16 %v8786_v46, %v8786_v46  ;;  %6581 = vmatprep.subr.bf16.mxu0 %v8095_v0  ;;  %v8797_v52 = vpop.eup %7338 }
 0x40d   : > { %6575 = vmatprep.subr.bf16.mxu1 %v8095_v0  ;;  %v1978_v60 = vpack.c.bf16 %v8797_v52, %v8797_v52 }
 0x40f   : > { %6566 = vmatmul.mubr.msk.bf16.vlgmr.msra.gmra.mxu1 %vm1860_vm4, %v1977_v48 }
 0x410   : > { %6576 = vmatpush3.bf16.msra.mxu1 %v2262_v59  ;;  %6577 = vmatprep.mubr.msk.bf16.mxu1 %vm8096_vm0, %v8095_v0 }
 0x411   : > { %6587 = vmatprep.subr.bf16.mxu1 %v8095_v0 }
 0x412   : > { %6572 = vmatmul.mubr.msk.bf16.vlgmr.msra.gmra.mxu0 %vm1860_vm4, %v1978_v60 }
 0x413   : > { %v8813_v6 = vpop.eup %7340  ;;  %6582 = vmatpush3.bf16.msra.mxu0 %v2308_v62  ;;  %6583 = vmatprep.mubr.msk.bf16.mxu0 %vm8096_vm0, %v8095_v0 }
 0x414   : > { %v1979_v8 = vpack.c.bf16 %v8813_v6, %v8813_v6  ;;  %6593 = vmatprep.subr.bf16.mxu0 %v8095_v0  ;;  %v8821_v19 = vpop.eup %7342 }
 0x415   : > { %v1980_v17 = vpack.c.bf16 %v8821_v19, %v8821_v19 }
 0x417   : > { %6578 = vmatmul.mubr.msk.bf16.vlgmr.msra.gmra.mxu1 %vm1860_vm4, %v1979_v8 }
 0x418   : > { %6588 = vmatpush3.bf16.xpose.msra.mxu1 %v2361_v43  ;;  %6589 = vmatprep.mubr.msk.bf16.mxu1 %vm8096_vm0, %v8095_v0 }
 0x419   : > { %6599 = vmatprep.subr.bf16.mxu1 %v8095_v0 }
 0x41a   : > { %6584 = vmatmul.mubr.msk.bf16.vlgmr.msra.gmra.mxu0 %vm1860_vm4, %v1980_v17 }
 0x41b   : > { %6594 = vmatpush3.bf16.xpose.msra.mxu0 %v2406_v16  ;;  %6595 = vmatprep.mubr.msk.bf16.mxu0 %vm8096_vm0, %v8095_v0 }
 0x41c   : > { %6605 = vmatprep.subr.bf16.mxu0 %v8095_v0 }
 0x41f   : > { %6590 = vmatmul.mubr.msk.bf16.vlgmr.msra.gmra.mxu1 %vm1475_vm2, %v8571_v28  ;;  %v2584_v28 = vrot.slane %v8604_v53, 2  ;;  %v2674_v53 = vrot.slane %v8626_v2, 2  ;;  %v2923_v2 = vrot.slane %v8648_v12, 2 }
 0x420   : > { %6600 = vmatpush3.bf16.xpose.msra.mxu1 %v2451_v21  ;;  %6601 = vmatprep.mubr.msk.bf16.mxu1 %vm8096_vm0, %v8095_v0 }
 0x421   : > { %6611 = vmatprep.subr.bf16.mxu1 %v8095_v0 }
 0x422   : > { %6596 = vmatmul.mubr.msk.bf16.vlgmr.msra.gmra.mxu0 %vm1475_vm2, %v8584_v31  ;;  %v2586_v31 = vsel %vm1475_vm2, %v2584_v28, 0 }
 0x423   : > { %6606 = vmatpush3.bf16.xpose.msra.mxu0 %v2496_v45  ;;  %6607 = vmatprep.mubr.msk.bf16.mxu0 %vm8096_vm0, %v8095_v0 }
 0x424   : > { %6617 = vmatprep.subr.bf16.mxu0 %v8095_v0 }
 0x427   : > { %6602 = vmatmul.mubr.msk.bf16.vlgmr.msra.gmra.mxu1 %vm1475_vm2, %v8610_v57  ;;  %v2631_v57 = vsel %vm1475_vm2, %v2629_v54, 0 }
 0x428   : > { %6612 = vmatpush3.bf16.xpose.msra.mxu1 %v2541_v44  ;;  %6613 = vmatprep.mubr.msk.bf16.mxu1 %vm8096_vm0, %v8095_v0 }
 0x429   : > { %6623 = vmatprep.subr.bf16.mxu1 %v8095_v0 }
 0x42a   : > { %6608 = vmatmul.mubr.msk.bf16.vlgmr.msra.gmra.mxu0 %vm1475_vm2, %v8608_v56  ;;  %v2676_v56 = vsel %vm1475_vm2, %v2674_v53, 0 }
 0x42b   : > { %6618 = vmatpush3.bf16.xpose.msra.mxu0 %v2586_v31  ;;  %6619 = vmatprep.mubr.msk.bf16.mxu0 %vm8096_vm0, %v8095_v0  ;;  %v2728_v31 = vpop.permute.xlu1 %2727 }
 0x42c   : > { %6629 = vmatprep.subr.bf16.mxu0 %v8095_v0 }
 0x42f   : > { %6614 = vmatmul.mubr.msk.bf16.vlgmr.msra.gmra.mxu1 %vm1475_vm2, %v8632_v5  ;;  %v2880_v5 = vsel %vm1984_vm3, %v2875_v3, 0 }
 0x430   : > { %6624 = vmatpush3.bf16.xpose.msra.mxu1 %v2631_v57  ;;  %6625 = vmatprep.mubr.msk.bf16.mxu1 %vm8096_vm0, %v8095_v0 }
 0x431   : > { %6635 = vmatprep.subr.bf16.mxu1 %v8095_v0 }
 0x432   : > { %6620 = vmatmul.mubr.msk.bf16.vlgmr.msra.gmra.mxu0 %vm1475_vm2, %v8630_v4  ;;  %v2928_v4 = vsel %vm1984_vm3, %v2923_v2, 0 }
 0x433   : > { %6630 = vmatpush3.bf16.xpose.msra.mxu0 %v2676_v56  ;;  %6631 = vmatprep.mubr.msk.bf16.mxu0 %vm8096_vm0, %v8095_v0 }
 0x434   : > { %6641 = vmatprep.subr.bf16.mxu0 %v8095_v0 }
 0x437   : > { %6626 = vmatmul.mubr.msk.bf16.vlgmr.msra.gmra.mxu1 %vm1475_vm2, %v8654_v14 }
 0x438   : > { %6636 = vmatpush3.bf16.msra.mxu1 %v2880_v5  ;;  %6637 = vmatprep.mubr.msk.bf16.mxu1 %vm8096_vm0, %v8095_v0 }
 0x439   : > { %6647 = vmatprep.subr.bf16.mxu1 %v8095_v0 }
 0x43a   : > { %6632 = vmatmul.mubr.msk.bf16.vlgmr.msra.gmra.mxu0 %vm1475_vm2, %v8652_v13 }
 0x43b   : > { %6642 = vmatpush3.bf16.msra.mxu0 %v2928_v4  ;;  %6643 = vmatprep.mubr.msk.bf16.mxu0 %vm8096_vm0, %v8095_v0 }
 0x43c   : > { %6653 = vmatprep.subr.bf16.mxu0 %v8095_v0 }
 0x44b   : > { %v8892_v11 = vpop.f32.mrf.mxu1 }
 0x44d   : > { %v6543_v12 = vpop.f32.mrf.mxu1 }
 0x44f   : > { %v2025_v14 = vpop.f32.mrf.mxu1  ;;  %v8894_v63 = vpop.f32.mrf.mxu0 }
 0x451   : > { %v6544_v1 = vpop.f32.mrf.mxu1  ;;  %v6549_v30 = vpop.f32.mrf.mxu0 }
 0x453   : > { %v2071_v33 = vpop.f32.mrf.mxu0 }
 0x455   : > { %v6550_v34 = vpop.f32.mrf.mxu0 }
 0x4c6   : > { %v8896_v36 = vpop.f32.mrf.mxu1 }
 0x4c8   : > { %v6555_v13 = vpop.f32.mrf.mxu1 }
 0x4ca   : > { %v2117_v25 = vpop.f32.mrf.mxu1  ;;  %v8898_v37 = vpop.f32.mrf.mxu0 }
 0x4cc   : > { %v6556_v40 = vpop.f32.mrf.mxu1  ;;  %v6561_v42 = vpop.f32.mrf.mxu0 }
 0x4ce   : > { %v2163_v22 = vpop.f32.mrf.mxu0 }
 0x4cf   : > { %v8900_v48 = vpop.f32.mrf.mxu1 }
 0x4d0   : > { %v6562_v59 = vpop.f32.mrf.mxu0 }
 0x4d1   : > { %v6567_v60 = vpop.f32.mrf.mxu1 }
 0x4d2   : > { %v8902_v62 = vpop.f32.mrf.mxu0 }
 0x4d3   : > { %v2209_v39 = vpop.f32.mrf.mxu1 }
 0x4d4   : > { %v6573_v8 = vpop.f32.mrf.mxu0 }
 0x4d5   : > { %v6568_v15 = vpop.f32.mrf.mxu1 }
 0x4d6   : > { %v2255_v43 = vpop.f32.mrf.mxu0 }
 0x4d7   : > { %v8904_v17 = vpop.f32.mrf.mxu1 }
 0x4d8   : > { %v6574_v16 = vpop.f32.mrf.mxu0 }
 0x4d9   : > { %v6579_v27 = vpop.f32.mrf.mxu1 }
 0x4da   : > { %v8906_v49 = vpop.f32.mrf.mxu0 }
 0x4db   : > { %v2301_v21 = vpop.f32.mrf.mxu1 }
 0x4dc   : > { %v6585_v45 = vpop.f32.mrf.mxu0 }
 0x4dd   : > { %v6580_v24 = vpop.f32.mrf.mxu1 }
 0x4de   : > { %v2347_v28 = vpop.f32.mrf.mxu0 }
 0x4df   : > { %v2397_v44 = vpop.f32.mrf.mxu1 }
 0x4e0   : > { %v2718_v54 = vmul.f32 0.35355338, %v2397_v44  ;;  %v6586_v53 = vpop.f32.mrf.mxu0 }
 0x4e1   : > { %v6591_v57 = vpop.f32.mrf.mxu1 }
 0x4e2   : > { %v2442_v56 = vpop.f32.mrf.mxu0  ;;  %v8908_v3 = vadd.f32 %v2728_v31, %v2718_v54 }
 0x4e3   : > { %v2400_v2 = vpop.f32.mrf.mxu1  ;;  %v2719_v5 = vmul.f32 0.35355338, %v2442_v56 }
 0x4e4   : > { %v2738_v4 = vsel %vm1860_vm4, %v8908_v3, -inf  ;;  %v6597_v12 = vpop.f32.mrf.mxu0 }
 0x4e5   : > { %2739 = vmax.xlane.f32.xlu0 %v2738_v4  ;;  %v6592_v14 = vpop.f32.mrf.mxu1  ;;  %v8912_v1 = vadd.f32 %v2728_v31, %v2719_v5 }
 0x4e6   : > { %v2445_v30 = vpop.f32.mrf.mxu0 }
 0x4e7   : > { %v2487_v33 = vpop.f32.mrf.mxu1  ;;  %v2741_v34 = vsel %vm1860_vm4, %v8912_v1, -inf }
 0x4e8   : > { %v2720_v13 = vmul.f32 0.35355338, %v2487_v33  ;;  %2742 = vmax.xlane.f32.xlu1 %v2741_v34  ;;  %v6598_v25 = vpop.f32.mrf.mxu0 }
 0x4e9   : > { %v6603_v40 = vpop.f32.mrf.mxu1 }
 0x4ea   : > { %v2532_v42 = vpop.f32.mrf.mxu0  ;;  %v8916_v22 = vadd.f32 %v2728_v31, %v2720_v13 }
 0x4eb   : > { %v2490_v59 = vpop.f32.mrf.mxu1  ;;  %v2721_v60 = vmul.f32 0.35355338, %v2532_v42 }
 0x4ec   : > { %v2744_v39 = vsel %vm1860_vm4, %v8916_v22, -inf  ;;  %v6609_v8 = vpop.f32.mrf.mxu0 }
 0x4ed   : > { %2745 = vmax.xlane.f32.xlu0 %v2744_v39  ;;  %v6604_v15 = vpop.f32.mrf.mxu1  ;;  %v8920_v43 = vadd.f32 %v2728_v31, %v2721_v60 }
 0x4ee   : > { %v2535_v16 = vpop.f32.mrf.mxu0 }
 0x4ef   : > { %v2577_v27 = vpop.f32.mrf.mxu1  ;;  %v2747_v21 = vsel %vm1860_vm4, %v8920_v43, -inf }
 0x4f0   : > { %v2722_v45 = vmul.f32 0.35355338, %v2577_v27  ;;  %v6610_v24 = vpop.f32.mrf.mxu0 }
 0x4f1   : > { %v6615_v28 = vpop.f32.mrf.mxu1  ;;  %2748 = vmax.xlane.f32.xlu0 %v2747_v21  ;;  %v1947_v21 = vsel %vm1860_vm4, %v8768_v23, 0.0  ;;  %v1950_v24 = vsel %vm1860_vm4, %v8773_v35, 0.0  ;;  %v1962_v23 = vsel %vm1860_vm4, %v8821_v19, 0.0 }
 0x4f2   : > { %v2622_v44 = vpop.f32.mrf.mxu0  ;;  %v8924_v54 = vadd.f32 %v2728_v31, %v2722_v45  ;;  %v1953_v28 = vsel %vm1860_vm4, %v8786_v46, 0.0 }
 0x4f3   : > { %v2580_v53 = vpop.f32.mrf.mxu1  ;;  %v2723_v57 = vmul.f32 0.35355338, %v2622_v44  ;;  %v1959_v44 = vsel %vm1860_vm4, %v8813_v6, 0.0 }
 0x4f4   : > { %v2750_v56 = vsel %vm1860_vm4, %v8924_v54, -inf  ;;  %v6621_v2 = vpop.f32.mrf.mxu0  ;;  %v1885_v53 = vsub.f32 -inf, %v8705_v29 }
 0x4f5   : > { %v6616_v5 = vpop.f32.mrf.mxu1  ;;  %2751 = vmax.xlane.f32.xlu1 %v2750_v56  ;;  %v8928_v4 = vadd.f32 %v2728_v31, %v2723_v57  ;;  %v1886_v57 = vsub.f32 -inf, %v8712_v41  ;;  %v1887_v56 = vsub.f32 -inf, %v8745_v61 }
 0x4f6   : > { %v2625_v12 = vpop.f32.mrf.mxu0  ;;  %v1893_v35 = vmul.f32 1.442695, %v1885_v53 }
 0x4f7   : > { %v2667_v14 = vpop.f32.mrf.mxu1  ;;  %v2753_v30 = vsel %vm1860_vm4, %v8928_v4, -inf  ;;  %v1895_v46 = vmul.f32 1.442695, %v1886_v57 }
 0x4f8   : > { %v2724_v33 = vmul.f32 0.35355338, %v2667_v14  ;;  %2754 = vmax.xlane.f32.xlu0 %v2753_v30  ;;  %v6622_v34 = vpop.f32.mrf.mxu0  ;;  %7344 = vpow2.f32 %v1893_v35  ;;  %v1897_v14 = vmul.f32 1.442695, %v1887_v56  ;;  %v1888_v30 = vsub.f32 -inf, %v8749_v7 }
 0x4f9   : > { %v6627_v13 = vpop.f32.mrf.mxu1  ;;  %7346 = vpow2.f32 %v1895_v46 }
 0x4fa   : > { %v2712_v25 = vpop.f32.mrf.mxu0  ;;  %v8932_v40 = vadd.f32 %v2728_v31, %v2724_v33  ;;  %v1889_v13 = vsub.f32 -inf, %v8753_v9 }
 0x4fb   : > { %v2670_v42 = vpop.f32.mrf.mxu1  ;;  %v2725_v59 = vmul.f32 0.35355338, %v2712_v25 }
 0x4fc   : > { %v2756_v60 = vsel %vm1860_vm4, %v8932_v40, -inf  ;;  %v6633_v39 = vpop.f32.mrf.mxu0 }
 0x4fd   : > { %v6628_v8 = vpop.f32.mrf.mxu1  ;;  %2757 = vmax.xlane.f32.xlu1 %v2756_v60  ;;  %v8936_v15 = vadd.f32 %v2728_v31, %v2725_v59  ;;  %v1956_v31 = vsel %vm1860_vm4, %v8797_v52, 0.0  ;;  %v1899_v60 = vmul.f32 1.442695, %v1888_v30 }
 0x4fe   : > { %v2715_v16 = vpop.f32.mrf.mxu0  ;;  %v1901_v8 = vmul.f32 1.442695, %v1889_v13 }
 0x4ff   : > { %v2759_v27 = vsel %vm1860_vm4, %v8936_v15, -inf  ;;  %v1890_v16 = vsub.f32 -inf, %v8755_v10 }
 0x500   : > { %2760 = vmax.xlane.f32.xlu0 %v2759_v27  ;;  %v6634_v45 = vpop.f32.mrf.mxu0 }
 0x501   : > { %1948 = vadd.xlane.f32.xlu1 %v1947_v21 }
 0x504   : > { %1951 = vadd.xlane.f32.xlu0 %v1950_v24 }
 0x505   : > { %1954 = vadd.xlane.f32.xlu1 %v1953_v28 }
 0x508   : > { %1957 = vadd.xlane.f32.xlu0 %v1956_v31  ;;  %v1903_v31 = vmul.f32 1.442695, %v1890_v16 }
 0x509   : > { %1960 = vadd.xlane.f32.xlu1 %v1959_v44 }
 0x50c   : > { %1963 = vadd.xlane.f32.xlu0 %v1962_v23 }
 0x56e   : > { %v2740_v2 = vpop.xlane.xlu0 %2739 }
 0x56f   : > { %v2762_v52 = vmax.f32 %v8705_v29, %v2740_v2  ;;  %v2971_v2 = vrot.slane %v8715_v50, 2 }
 0x571   : > { %v2770_v6 = vsub.f32 %v8705_v29, %v2762_v52  ;;  %v2794_v5 = vsub.f32 %v8908_v3, %v2762_v52  ;;  %v2743_v12 = vpop.xlane.xlu1 %2742  ;;  %v1892_v52 = vsub.f32 -inf, %v8763_v20 }
 0x572   : > { %v2763_v19 = vmax.f32 %v8712_v41, %v2743_v12 }
 0x573   : > { %v2778_v33 = vmul.f32 1.442695, %v2770_v6  ;;  %v2802_v34 = vmul.f32 1.442695, %v2794_v5 }
 0x574   : > { %v2771_v25 = vsub.f32 %v8712_v41, %v2763_v19  ;;  %v2795_v42 = vsub.f32 %v8912_v1, %v2763_v19  ;;  %v7345_v1 = vpop.eup %7344 }
 0x575   : > { %7348 = vpow2.f32 %v2778_v33  ;;  %v8970_v53 = vmul.f32 0.0, %v7345_v1  ;;  %v7347_v35 = vpop.eup %7346 }
 0x576   : > { %7350 = vpow2.f32 %v2802_v34  ;;  %v2780_v29 = vmul.f32 1.442695, %v2771_v25  ;;  %v2804_v59 = vmul.f32 1.442695, %v2795_v42  ;;  %v2746_v3 = vpop.xlane.xlu0 %2745  ;;  %v8983_v19 = vmul.f32 0.0, %v7347_v35 }
 0x577   : > { %7352 = vpow2.f32 %v1897_v14  ;;  %v2764_v39 = vmax.f32 %v8745_v61, %v2746_v3  ;;  %v3019_v14 = vrot.slane %v8723_v55, 2  ;;  %v2976_v3 = vsel %vm1984_vm3, %v2971_v2, 0 }
 0x578   : > { %7354 = vpow2.f32 %v2780_v29 }
 0x579   : > { %7356 = vpow2.f32 %v2804_v59  ;;  %v2772_v27 = vsub.f32 %v8745_v61, %v2764_v39  ;;  %v2796_v41 = vsub.f32 %v8916_v22, %v2764_v39  ;;  %v1891_v22 = vsub.f32 -inf, %v8761_v18 }
 0x57a   : > { %v2749_v21 = vpop.xlane.xlu0 %2748  ;;  %7358 = vpow2.f32 %v1899_v60  ;;  %v1907_v59 = vmul.f32 1.442695, %v1892_v52  ;;  %v3115_v52 = vrot.slane %v8777_v26, 2 }
 0x57b   : > { %v2782_v45 = vmul.f32 1.442695, %v2772_v27  ;;  %v2806_v24 = vmul.f32 1.442695, %v2796_v41  ;;  %v2765_v28 = vmax.f32 %v8749_v7, %v2749_v21  ;;  %7360 = vpow2.f32 %v1901_v8 }
 0x57c   : > { %v1905_v33 = vmul.f32 1.442695, %v1891_v22  ;;  %v3024_v21 = vsel %vm1984_vm3, %v3019_v14, 0 }
 0x57d   : > { %7362 = vpow2.f32 %v2782_v45  ;;  %v2773_v44 = vsub.f32 %v8749_v7, %v2765_v28  ;;  %v2797_v23 = vsub.f32 %v8920_v43, %v2765_v28  ;;  %v2350_v7 = vadd.f32 %v8892_v11, %v8970_v53 }
 0x57e   : > { %7364 = vpow2.f32 %v2806_v24  ;;  %v2752_v61 = vpop.xlane.xlu1 %2751 }
 0x57f   : > { %v2784_v57 = vmul.f32 1.442695, %v2773_v44  ;;  %v2808_v46 = vmul.f32 1.442695, %v2797_v23  ;;  %v2766_v56 = vmax.f32 %v8753_v9, %v2752_v61  ;;  %7366 = vpow2.f32 %v1903_v31 }
 0x580   : > { %v3067_v23 = vrot.slane %v8781_v38, 2 }
 0x581   : > { %7368 = vpow2.f32 %v2784_v57  ;;  %v2774_v43 = vsub.f32 %v8753_v9, %v2766_v56  ;;  %v2798_v6 = vsub.f32 %v8924_v54, %v2766_v56  ;;  %v2755_v5 = vpop.xlane.xlu0 %2754  ;;  %v2351_v54 = vadd.f32 %v8894_v63, %v8983_v19 }
 0x582   : > { %v8980_v12 = vpop.eup %7348  ;;  %7370 = vpow2.f32 %v2808_v46  ;;  %v2767_v50 = vmax.f32 %v8755_v10, %v2755_v5 }
 0x583   : > { %v8986_v30 = vpop.eup %7350  ;;  %v2786_v34 = vmul.f32 1.442695, %v2774_v43  ;;  %v2810_v11 = vmul.f32 1.442695, %v2798_v6  ;;  %v8989_v13 = vmul.f32 %v8980_v12, %v2350_v7 }
 0x584   : > { %v7353_v9 = vpop.eup %7352  ;;  %v2775_v25 = vsub.f32 %v8755_v10, %v2767_v50  ;;  %v2799_v55 = vsub.f32 %v8928_v4, %v2767_v50  ;;  %v2866_v42 = vpack.c.bf16 %v8986_v30, %v8986_v30 }
 0x585   : > { %v8997_v29 = vpop.eup %7354  ;;  %7372 = vpow2.f32 %v2786_v34  ;;  %v9006_v4 = vmul.f32 0.0, %v7353_v9 }
 0x586   : > { %v9000_v60 = vpop.eup %7356  ;;  %7374 = vpow2.f32 %v2810_v11  ;;  %v2788_v39 = vmul.f32 1.442695, %v2775_v25  ;;  %v2812_v8 = vmul.f32 1.442695, %v2799_v55  ;;  %6638 = vmatmul.mubr.msk.bf16.vlgmr.msra.gmra.mxu1 %vm1860_vm4, %v2866_v42  ;;  %v2758_v63 = vpop.xlane.xlu1 %2757  ;;  %v9004_v10 = vmul.f32 %v8997_v29, %v2351_v54 }
 0x587   : > { %7376 = vpow2.f32 %v1905_v33  ;;  %6648 = vmatpush3.bf16.msra.mxu1 %v2976_v3  ;;  %v2768_v16 = vmax.f32 %v8761_v18, %v2758_v63  ;;  %v2867_v27 = vpack.c.bf16 %v9000_v60, %v9000_v60  ;;  %6649 = vmatprep.mubr.msk.bf16.mxu1 %vm8096_vm0, %v8095_v0  ;;  %v7359_v41 = vpop.eup %7358  ;;  %v2352_v45 = vadd.f32 %v8896_v36, %v9006_v4 }
 0x588   : > { %7378 = vpow2.f32 %v2788_v39  ;;  %6659 = vmatprep.subr.bf16.mxu1 %v8095_v0  ;;  %v7361_v1 = vpop.eup %7360  ;;  %v9026_v35 = vmul.f32 0.0, %v7359_v41  ;;  %v3163_v11 = vrot.slane %v8788_v47, 2  ;;  %v3120_v54 = vsel %vm1984_vm3, %v3115_v52, 0 }
 0x589   : > { %7380 = vpow2.f32 %v2812_v8  ;;  %v2776_v24 = vsub.f32 %v8761_v18, %v2768_v16  ;;  %v2800_v28 = vsub.f32 %v8932_v40, %v2768_v16  ;;  %6644 = vmatmul.mubr.msk.bf16.vlgmr.msra.gmra.mxu0 %vm1860_vm4, %v2867_v27  ;;  %v2761_v31 = vpop.xlane.xlu0 %2760  ;;  %v9042_v14 = vmul.f32 0.0, %v7361_v1 }
 0x58a   : > { %v9020_v44 = vpop.eup %7362  ;;  %7382 = vpow2.f32 %v1907_v59  ;;  %6654 = vmatpush3.bf16.msra.mxu0 %v3024_v21  ;;  %v2769_v61 = vmax.f32 %v8763_v20, %v2761_v31  ;;  %6655 = vmatprep.mubr.msk.bf16.mxu0 %vm8096_vm0, %v8095_v0  ;;  %v2353_v7 = vadd.f32 %v8898_v37, %v9026_v35  ;;  %v3211_v8 = vrot.slane %v8800_v32, 2 }
 0x58b   : > { %v7365_v36 = vpop.eup %7364  ;;  %v2790_v18 = vmul.f32 1.442695, %v2776_v24  ;;  %v2814_v22 = vmul.f32 1.442695, %v2800_v28  ;;  %6665 = vmatprep.subr.bf16.mxu0 %v8095_v0  ;;  %v9030_v40 = vmul.f32 %v9020_v44, %v2352_v45  ;;  %v2354_v33 = vadd.f32 %v8900_v48, %v9042_v14 }
 0x58c   : > { %v2777_v57 = vsub.f32 %v8763_v20, %v2769_v61  ;;  %v2801_v38 = vsub.f32 %v8936_v15, %v2769_v61  ;;  %v2832_v46 = vsel %vm1860_vm4, %v7365_v36, 0.0  ;;  %v2868_v56 = vpack.c.bf16 %v7365_v36, %v7365_v36  ;;  %v7367_v2 = vpop.eup %7366 }
 0x58d   : > { %7384 = vpow2.f32 %v2790_v18  ;;  %2833 = vadd.xlane.f32.xlu1 %v2832_v46  ;;  %v3072_v20 = vsel %vm1984_vm3, %v3067_v23, 0  ;;  %v9056_v9 = vmul.f32 0.0, %v7367_v2  ;;  %v3168_v63 = vsel %vm1984_vm3, %v3163_v11, 0  ;;  %v1952_v52 = vpop.xlane.xlu0 %1951 }
 0x58e   : > { %v9038_v43 = vpop.eup %7368  ;;  %7386 = vpow2.f32 %v2814_v22  ;;  %v2792_v6 = vmul.f32 1.442695, %v2777_v57  ;;  %v2816_v5 = vmul.f32 1.442695, %v2801_v38  ;;  %6650 = vmatmul.mubr.msk.bf16.vlgmr.msra.gmra.mxu1 %vm1860_vm4, %v2868_v56  ;;  %v3216_v24 = vsel %vm1984_vm3, %v3211_v8, 0 }
 0x58f   : > { %v7371_v15 = vpop.eup %7370  ;;  %6660 = vmatpush3.bf16.msra.mxu1 %v3072_v20  ;;  %6661 = vmatprep.mubr.msk.bf16.mxu1 %vm8096_vm0, %v8095_v0  ;;  %v9047_v26 = vmul.f32 %v9038_v43, %v2353_v7  ;;  %v2355_v42 = vadd.f32 %v8902_v62, %v9056_v9  ;;  %v1944_v46 = vsel %vm1860_vm4, %v8728_v58, 0.0  ;;  %v2826_v56 = vsel %vm1860_vm4, %v8986_v30, 0.0 }
 0x590   : > { %7388 = vpow2.f32 %v2792_v6  ;;  %v2835_v37 = vsel %vm1860_vm4, %v7371_v15, 0.0  ;;  %v2869_v50 = vpack.c.bf16 %v7371_v15, %v7371_v15  ;;  %6671 = vmatprep.subr.bf16.mxu1 %v8095_v0  ;;  %v2829_v2 = vsel %vm1860_vm4, %v9000_v60, 0.0 }
 0x591   : > { %7390 = vpow2.f32 %v2816_v5  ;;  %2836 = vadd.xlane.f32.xlu0 %v2835_v37  ;;  %v1958_v6 = vpop.xlane.xlu0 %1957 }
 0x592   : > { %v9053_v34 = vpop.eup %7372  ;;  %6656 = vmatmul.mubr.msk.bf16.vlgmr.msra.gmra.mxu0 %vm1860_vm4, %v2869_v50 }
 0x593   : > { %v7375_v25 = vpop.eup %7374  ;;  %6666 = vmatpush3.bf16.msra.mxu0 %v3120_v54  ;;  %6667 = vmatprep.mubr.msk.bf16.mxu0 %vm8096_vm0, %v8095_v0  ;;  %v9063_v55 = vmul.f32 %v9053_v34, %v2354_v33 }
 0x594   : > { %v7377_v48 = vpop.eup %7376  ;;  %v2838_v47 = vsel %vm1860_vm4, %v7375_v25, 0.0  ;;  %v2870_v59 = vpack.c.bf16 %v7375_v25, %v7375_v25  ;;  %6677 = vmatprep.subr.bf16.mxu0 %v8095_v0 }
 0x595   : > { %v9069_v3 = vpop.eup %7378  ;;  %2839 = vadd.xlane.f32.xlu1 %v2838_v47  ;;  %v9077_v62 = vmul.f32 0.0, %v7377_v48  ;;  %v1964_v20 = vpop.xlane.xlu0 %1963 }
 0x596   : > { %v7381_v39 = vpop.eup %7380  ;;  %6662 = vmatmul.mubr.msk.bf16.vlgmr.msra.gmra.mxu1 %vm1860_vm4, %v2870_v59  ;;  %v9075_v16 = vmul.f32 %v9069_v3, %v2355_v42 }
 0x597   : > { %v7383_v27 = vpop.eup %7382  ;;  %6672 = vmatpush3.bf16.msra.mxu1 %v3168_v63  ;;  %v2841_v41 = vsel %vm1860_vm4, %v7381_v39, 0.0  ;;  %v2871_v21 = vpack.c.bf16 %v7381_v39, %v7381_v39  ;;  %6673 = vmatprep.mubr.msk.bf16.mxu1 %vm8096_vm0, %v8095_v0  ;;  %v2356_v32 = vadd.f32 %v8904_v17, %v9077_v62 }
 0x598   : > { %2842 = vadd.xlane.f32.xlu0 %v2841_v41  ;;  %6683 = vmatprep.subr.bf16.mxu1 %v8095_v0  ;;  %v9087_v45 = vmul.f32 0.0, %v7383_v27  ;;  %v1968_v27 = vadd.f32 %v1952_v52, %v9026_v35 }
 0x59a   : > { %v9085_v1 = vpop.eup %7384  ;;  %6668 = vmatmul.mubr.msk.bf16.vlgmr.msra.gmra.mxu0 %vm1860_vm4, %v2871_v21  ;;  %v2357_v23 = vadd.f32 %v8906_v49, %v9087_v45  ;;  %v1941_v49 = vsel %vm1860_vm4, %v8717_v51, 0.0  ;;  %v1949_v51 = vpop.xlane.xlu1 %1948  ;;  %v2821_v21 = vmul.f32 %v9038_v43, %v1968_v27 }
 0x59b   : > { %v7387_v28 = vpop.eup %7386  ;;  %6678 = vmatpush3.bf16.msra.mxu0 %v3216_v24  ;;  %6679 = vmatprep.mubr.msk.bf16.mxu0 %vm8096_vm0, %v8095_v0  ;;  %v9094_v31 = vmul.f32 %v9085_v1, %v2356_v32  ;;  %v1967_v8 = vadd.f32 %v1949_v51, %v9006_v4  ;;  %v1970_v24 = vadd.f32 %v1958_v6, %v9056_v9 }
 0x59c   : > { %v2844_v17 = vsel %vm1860_vm4, %v7387_v28, 0.0  ;;  %v2872_v61 = vpack.c.bf16 %v7387_v28, %v7387_v28  ;;  %6691 = vmatprep.subr.bf16.mxu0 %v8095_v0 }
 0x59d   : > { %v9100_v36 = vpop.eup %7388  ;;  %2845 = vadd.xlane.f32.xlu1 %v2844_v17  ;;  %v2820_v41 = vmul.f32 %v9020_v44, %v1967_v8  ;;  %v2823_v44 = vmul.f32 %v9069_v3, %v1970_v24  ;;  %v1972_v3 = vadd.f32 %v1964_v20, %v9087_v45 }
 0x59e   : > { %v7391_v18 = vpop.eup %7390  ;;  %6674 = vmatmul.mubr.msk.bf16.vlgmr.msra.gmra.mxu1 %vm1860_vm4, %v2872_v61  ;;  %v9104_v22 = vmul.f32 %v9100_v36, %v2357_v23  ;;  %v1955_v7 = vpop.xlane.xlu1 %1954 }
 0x59f   : > { %v2847_v57 = vsel %vm1860_vm4, %v7391_v18, 0.0  ;;  %v2873_v38 = vpack.c.bf16 %v7391_v18, %v7391_v18  ;;  %6687 = vmatprep.mubr.msk.bf16.mxu1 %vm8096_vm0, %v8095_v0 }
 0x5a0   : > { %2848 = vadd.xlane.f32.xlu0 %v2847_v57 }
 0x5a1   : > { %1942 = vadd.xlane.f32.xlu1 %v1941_v49 }
 0x5a2   : > { %6680 = vmatmul.mubr.msk.bf16.vlgmr.msra.gmra.mxu0 %vm1860_vm4, %v2873_v38  ;;  %v1961_v5 = vpop.xlane.xlu1 %1960 }
 0x5a3   : > { %6695 = vmatprep.mubr.msk.bf16.mxu0 %vm8096_vm0, %v8095_v0 }
 0x5a4   : > { %1945 = vadd.xlane.f32.xlu0 %v1944_v46 }
 0x5a5   : > { %2827 = vadd.xlane.f32.xlu1 %v2826_v56 }
 0x5a8   : > { %2830 = vadd.xlane.f32.xlu0 %v2829_v2 }
 0x616   : > { %v2834_v15 = vpop.xlane.xlu1 %2833 }
 0x61a   : > { %v2837_v58 = vpop.xlane.xlu0 %2836 }
 0x61e   : > { %v2840_v37 = vpop.xlane.xlu1 %2839 }
 0x621   : > { %v2843_v50 = vpop.xlane.xlu0 %2842 }
 0x622   : > { %v2855_v57 = vadd.f32 %v2843_v50, %v2823_v44 }
 0x626   : > { %v2846_v33 = vpop.xlane.xlu1 %2845 }
 0x629   : > { %v2849_v11 = vpop.xlane.xlu0 %2848 }
 0x62a   : > { %v1943_v54 = vpop.xlane.xlu1 %1942 }
 0x62b   : > { %v1965_v30 = vadd.f32 %v1943_v54, %v8970_v53  ;;  %v2852_v53 = vadd.f32 %v2834_v15, %v2820_v41 }
 0x62d   : > { %v1946_v25 = vpop.xlane.xlu0 %1945  ;;  %v2818_v60 = vmul.f32 %v8980_v12, %v1965_v30  ;;  %v2853_v12 = vadd.f32 %v2837_v58, %v2821_v21  ;;  %v7313_v21 = vld [vmem:[%s9955_s14] sm:$0xff]  }
 0x62e   : > { %v1966_v48 = vadd.f32 %v1946_v25, %v8983_v19  ;;  %v2828_v42 = vpop.xlane.xlu1 %2827  ;;  %v1969_v19 = vadd.f32 %v1955_v7, %v9042_v14  ;;  %v2825_v7 = vmul.f32 %v9100_v36, %v1972_v3 }
 0x62f   : > { %v2850_v59 = vadd.f32 %v2828_v42, %v2818_v60 }
 0x630   : > { %v2819_v47 = vmul.f32 %v8997_v29, %v1966_v48  ;;  %v2822_v29 = vmul.f32 %v9053_v34, %v1969_v19  ;;  %v1971_v34 = vadd.f32 %v1961_v5, %v9077_v62  ;;  %v2857_v58 = vadd.f32 %v2849_v11, %v2825_v7 }
 0x631   : > { %v2831_v39 = vpop.xlane.xlu0 %2830  ;;  %7392 = vrcp.f32 %v2850_v59 }
 0x632   : > { %v2851_v63 = vadd.f32 %v2831_v39, %v2819_v47  ;;  %v2854_v4 = vadd.f32 %v2840_v37, %v2822_v29 }
 0x634   : > { %7394 = vrcp.f32 %v2851_v63 }
 0x635   : > { %7396 = vrcp.f32 %v2852_v53 }
 0x636   : > { %7398 = vrcp.f32 %v2853_v12 }
 0x637   : > { %7400 = vrcp.f32 %v2854_v4 }
 0x638   : > { %7402 = vrcp.f32 %v2855_v57 }
 0x63e   : > { %v7393_v35 = vpop.eup %7392 }
 0x641   : > { %v7395_v18 = vpop.eup %7394 }
 0x642   : > { %v7397_v52 = vpop.eup %7396 }
 0x643   : > { %v7399_v37 = vpop.eup %7398 }
 0x644   : > { %v7401_v48 = vpop.eup %7400 }
 0x645   : > { %v7403_v59 = vpop.eup %7402 }
 0x646   : > { %v2916_v32 = vpop.f32.mrf.mxu1 }
 0x647   : > { %v3258_v28 = vadd.f32 %v2916_v32, %v8989_v13  ;;  %v2824_v13 = vmul.f32 %v9085_v1, %v1971_v34 }
 0x648   : > { %v6639_v23 = vpop.f32.mrf.mxu1 }
 0x649   : > { %v9133_v17 = vmul.f32 %v7393_v35, %v3258_v28  ;;  %v2964_v43 = vpop.f32.mrf.mxu0  ;;  %v2856_v2 = vadd.f32 %v2846_v33, %v2824_v13 }
 0x64a   : > { %v2919_v61 = vpop.f32.mrf.mxu1  ;;  %v3259_v14 = vadd.f32 %v2964_v43, %v9004_v10 }
 0x64b   : > { %v6645_v9 = vpop.f32.mrf.mxu0  ;;  %7404 = vrcp.f32 %v2856_v2 }
 0x64c   : > { %v9137_v38 = vmul.f32 %v7395_v18, %v3259_v14  ;;  %v6640_v49 = vpop.f32.mrf.mxu1  ;;  %7406 = vrcp.f32 %v2857_v58 }
 0x64d   : > { %v2967_v46 = vpop.f32.mrf.mxu0 }
 0x64e   : > { %v3012_v56 = vpop.f32.mrf.mxu1 }
 0x64f   : > { %v3260_v51 = vadd.f32 %v3012_v56, %v9030_v40  ;;  %v6646_v10 = vpop.f32.mrf.mxu0  ;;  %v7312_v40 = vld [vmem:[%s9955_s14 + $0x8] sm:$0xff]  }
 0x650   : > { %v6651_v62 = vpop.f32.mrf.mxu1  ;;  %6684 = vmatpush3.bf16.msra.mxu1 %v7312_v40 }
 0x651   : > { %v3276_v6 = vmul.f32 %v7397_v52, %v3260_v51  ;;  %6685 = vmatprep.subr.bf16.mxu1 %v8095_v0 }
 0x652   : > { %v3015_v5 = vpop.f32.mrf.mxu1  ;;  %v3060_v15 = vpop.f32.mrf.mxu0 }
 0x653   : > { %v3261_v1 = vadd.f32 %v3060_v15, %v9047_v26  ;;  %v7500_v5 = vld [vmem:[%s8544_s28] sm:$0xff] }
 0x654   : > { %v6652_v50 = vpop.f32.mrf.mxu1  ;;  %v6657_v45 = vpop.f32.mrf.mxu0  ;;  %6686 = vmatpush3.bf16.msra.mxu1 %v7313_v21 }
 0x655   : > { %v3277_v20 = vmul.f32 %v7399_v37, %v3261_v1  ;;  %6699 = vmatprep.subr.bf16.mxu1 %v8095_v0  ;;  %v7501_v45 = vld [vmem:[%s8544_s28 + $0x8] sm:$0xff]  ;;  %s9956_s28 = sld [smem:[#allocation57_spill]] }
 0x656   : > { %v3063_v33 = vpop.f32.mrf.mxu0  ;;  %v3108_v54 = vpop.f32.mrf.mxu1 }
 0x657   : > { %v3262_v30 = vadd.f32 %v3108_v54, %v9063_v55  ;;  %v7231_v25 = vpack.i.bf16 %v3277_v20, %v3276_v6 }
 0x658   : > { %v6658_v36 = vpop.f32.mrf.mxu0  ;;  %v6663_v60 = vpop.f32.mrf.mxu1 }
 0x659   : > { %v3278_v42 = vmul.f32 %v7401_v48, %v3262_v30  ;;  %7232 = vrot.lane.b32.xlu1 %v7231_v25, %s9891_s6  ;;  %v7405_v19 = vpop.eup %7404 }
 0x65a   : > { %v3111_v26 = vpop.f32.mrf.mxu1  ;;  %v3156_v11 = vpop.f32.mrf.mxu0 }
 0x65b   : > { %v3263_v47 = vadd.f32 %v3156_v11, %v9075_v16  ;;  %v7407_v28 = vpop.eup %7406 }
 0x65c   : > { %v6664_v39 = vpop.f32.mrf.mxu1  ;;  %v6669_v8 = vpop.f32.mrf.mxu0 }
 0x65d   : > { %v3279_v55 = vmul.f32 %v7403_v59, %v3263_v47  ;;  %v7314_v47 = vld [vmem:[#allocation20 + $0x8] sm:$0xff]   ;;  %v7315_v59 = vld [vmem:[#allocation20] sm:$0xff]  }
 0x65e   : > { %v3159_v63 = vpop.f32.mrf.mxu0  ;;  %v3204_v27 = vpop.f32.mrf.mxu1  ;;  %v1190_v39 = vld [vmem:[%s8497_s9] sm:$0xff]  ;;  %v1191_v8 = vld [vmem:[%s8497_s9 + $0x8] sm:$0xff]  ;;  %s9959_s9 = sld [smem:[#allocation52_spill]] }
 0x65f   : > { %v3264_v41 = vadd.f32 %v3204_v27, %v9094_v31  ;;  %v7236_v53 = vpack.i.bf16 %v3279_v55, %v3278_v42  ;;  %v3430_v55 = vpack.c.bf16 %v1191_v8, %v1190_v39  ;;  %v7316_v63 = vld [vmem:[#allocation17 + $0x8] sm:$0xff]   ;;  %v7317_v27 = vld [vmem:[#allocation17] sm:$0xff]  }
 0x660   : > { %v6670_v12 = vpop.f32.mrf.mxu0  ;;  %v6675_v29 = vpop.f32.mrf.mxu1  ;;  %6692 = vmatpush3.bf16.msra.mxu0 %v7316_v63 }
 0x661   : > { %v3280_v32 = vmul.f32 %v7405_v19, %v3264_v41  ;;  %7237 = vrot.lane.b32.xlu0 %v7236_v53, %s8102_s12  ;;  %6693 = vmatprep.subr.bf16.mxu0 %v8095_v0 }
 0x662   : > { %v3207_v24 = vpop.f32.mrf.mxu1  ;;  %v3252_v16 = vpop.f32.mrf.mxu0 }
 0x663   : > { %v3265_v4 = vadd.f32 %v3252_v16, %v9104_v22  ;;  %v6236_v16 = vld [vmem:[%s9956_s28] ss:$0 sm:$0xff]  ;;  %s9965_s28 = sld [smem:[#allocation61_spill]] }
 0x664   : > { %v6676_v35 = vpop.f32.mrf.mxu1  ;;  %v6681_v23 = vpop.f32.mrf.mxu0  ;;  %6694 = vmatpush3.bf16.msra.mxu0 %v7317_v27 }
 0x665   : > { %v3281_v31 = vmul.f32 %v7407_v28, %v3265_v4  ;;  %6707 = vmatprep.subr.bf16.mxu0 %v8095_v0 }
 0x666   : > { %v3255_v44 = vpop.f32.mrf.mxu0 }
 0x667   : > { %v7241_v43 = vpack.i.bf16 %v3281_v31, %v3280_v32 }
 0x668   : > { %v6682_v61 = vpop.f32.mrf.mxu0 }
 0x669   : > { %7242 = vrot.lane.b32.xlu1 %v7241_v43, %s9890_s10  ;;  %s9957_s10 = sld [smem:[#allocation58_spill]]  ;;  %v7318_v61 = vld [vmem:[#allocation23 + $0x8] sm:$0xff]  }
 0x66f   : > { %v6237_v23 = vld [vmem:[%s9957_s10] ss:$0 sm:$0xff]  ;;  %s9958_s10 = smov 24  }
 0x6cb   : > { %v7233_v14 = vpop.permute.xlu1 %7232 }
 0x6cc   : > { %v7235_v34 = vunpack.i.h.bf16 %v7233_v14  ;;  %v7234_v57 = vunpack.i.l.bf16 %v7233_v14 }
 0x6ce   : > { %v3307_v22 = vsel %vm1475_vm2, %v9137_v38, %v7235_v34  ;;  %v3306_v46 = vsel %vm1475_vm2, %v9133_v17, %v7234_v57  ;;  %v6232_v38 = vld [vmem:[#allocation16] ss:$0 sm:$0xff]  ;;  %v6242_v34 = vld [vmem:[#allocation22] ss:$0 sm:$0xff] }
 0x6d3   : > { %v7238_v18 = vpop.permute.xlu0 %7237 }
 0x6d4   : > { %v7240_v9 = vunpack.i.h.bf16 %v7238_v18  ;;  %v7239_v49 = vunpack.i.l.bf16 %v7238_v18  ;;  %v7319_v18 = vld [vmem:[#allocation23] sm:$0xff]  }
 0x6d6   : > { %v3310_v2 = vsel %vm3308_vm5, %v3307_v22, %v7240_v9  ;;  %v3309_v51 = vsel %vm3308_vm5, %v3306_v46, %v7239_v49 }
 0x6db   : > { %v7243_v13 = vpop.permute.xlu1 %7242 }
 0x6dc   : > { %v7245_v56 = vunpack.i.h.bf16 %v7243_v13  ;;  %v7244_v3 = vunpack.i.l.bf16 %v7243_v13 }
 0x6de   : > { %v3313_v10 = vsel %vm3311_vm6, %v3310_v2, %v7245_v56  ;;  %v3312_v52 = vsel %vm3311_vm6, %v3309_v51, %v7244_v3 }
 0x6df   : > { %v3314_v62 = vpack.c.bf16 %v3313_v10, %v3312_v52 }
 0x6e1   : > { %6688 = vmatmul.mubr.msk.bf16.vlgmr.msra.gmra.mxu1 %vm1218_vm1, %v3314_v62 }
 0x6e2   : > { %6703 = vmatprep.mubr.msk.bf16.mxu1 %vm8096_vm0, %v8095_v0  ;;  %6700 = vmatpush3.bf16.msra.mxu1 %v7314_v47 }
 0x6e3   : > { %6701 = vmatprep.subr.bf16.mxu1 %v8095_v0 }
 0x6e6   : > { %6702 = vmatpush3.bf16.msra.mxu1 %v7315_v59 }
 0x6e7   : > { %6715 = vmatprep.subr.bf16.mxu1 %v8095_v0 }
 0x6e9   : > { %6704 = vmatmul.mubr.msk.bf16.vlgmr.msra.gmra.mxu1 %vm1218_vm1, %v3430_v55 }
 0x6ea   : > { %6717 = vmatprep.mubr.msk.bf16.mxu1 %vm8096_vm0, %v8095_v0 }
 0x7a1   : > { %v3375_v7 = vpop.f32.mrf.mxu1 }
 0x7a2   : > { %v3376_v17 = vadd.f32 %v6232_v38, %v3375_v7 }
 0x7a3   : > { %v6689_v6 = vpop.f32.mrf.mxu1 }
 0x7a4   : > { %v3382_v15 = vadd.f32 %v7500_v5, %v3376_v17 }
 0x7a5   : > { %v3378_v58 = vpop.f32.mrf.mxu1 }
 0x7a6   : > { %v3379_v1 = vadd.f32 %v6232_v38, %v3378_v58  ;;  %v3386_v37 = vsel %vm1218_vm1, %v3382_v15, 0.0  ;;  %v6238_v38 = vld [vmem:[#allocation19] ss:$0 sm:$0xff] }
 0x7a7   : > { %3387 = vadd.xlane.f32.xlu1 %v3386_v37  ;;  %v6690_v50 = vpop.f32.mrf.mxu1 }
 0x7a8   : > { %v3383_v20 = vadd.f32 %v7501_v45, %v3379_v1 }
 0x7a9   : > { %v3558_v57 = vpop.f32.mrf.mxu1 }
 0x7aa   : > { %v3389_v33 = vsel %vm1218_vm1, %v3383_v20, 0.0  ;;  %v3559_v9 = vadd.f32 %v6242_v34, %v3558_v57 }
 0x7ab   : > { %3390 = vadd.xlane.f32.xlu0 %v3389_v33  ;;  %v6705_v49 = vpop.f32.mrf.mxu1 }
 0x7ac   : > { %v9197_v13 = vpack.c.bf16 %v3559_v9, %v3559_v9 }
 0x7ad   : > { %v3561_v22 = vpop.f32.mrf.mxu1 }
 0x7ae   : > { %v3562_v46 = vadd.f32 %v6242_v34, %v3561_v22  ;;  %v3717_v56 = vsel %vm1475_vm2, %v9197_v13, 0 }
 0x7af   : > { %6716 = vmatpush3.bf16.xpose.msra.mxu1 %v3717_v56  ;;  %v6706_v3 = vpop.f32.mrf.mxu1 }
 0x7b0   : > { %6727 = vmatprep.subr.bf16.mxu1 %v8095_v0  ;;  %v7246_v2 = vpack.i.bf16 %v3562_v46, %v3559_v9  ;;  %v9202_v51 = vpack.c.bf16 %v3562_v46, %v3562_v46 }
 0x7b2   : > { %v3763_v10 = vsel %vm1475_vm2, %v9202_v51, 0 }
 0x830   : > { %v3388_v54 = vpop.xlane.xlu1 %3387 }
 0x831   : > { %v3393_v40 = vmul.f32 0.03125, %v3388_v54 }
 0x833   : > { %v3395_v30 = vsub.f32 %v3382_v15, %v3393_v40 }
 0x834   : > { %v3391_v25 = vpop.xlane.xlu0 %3390 }
 0x835   : > { %v3394_v48 = vmul.f32 0.03125, %v3391_v25  ;;  %v3397_v36 = vmul.f32 %v3395_v30, %v3395_v30 }
 0x837   : > { %v3396_v60 = vsub.f32 %v3383_v20, %v3394_v48  ;;  %v3399_v42 = vsel %vm1218_vm1, %v3397_v36, 0.0 }
 0x838   : > { %3400 = vadd.xlane.f32.xlu0 %v3399_v42 }
 0x839   : > { %v3398_v26 = vmul.f32 %v3396_v60, %v3396_v60 }
 0x83b   : > { %v3402_v11 = vsel %vm1218_vm1, %v3398_v26, 0.0 }
 0x83c   : > { %3403 = vadd.xlane.f32.xlu1 %v3402_v11 }
 0x84e   : > { %7247 = vrot.lane.b32.xlu0 %v7246_v2, %s8098_s17 }
 0x8c1   : > { %v3401_v41 = vpop.xlane.xlu0 %3400 }
 0x8c2   : > { %v3405_v53 = vmul.f32 0.03125, %v3401_v41 }
 0x8c4   : > { %v3407_v21 = vadd.f32 1e-05, %v3405_v53 }
 0x8c5   : > { %v3404_v19 = vpop.xlane.xlu1 %3403  ;;  %v7248_v52 = vpop.permute.xlu0 %7247 }
 0x8c6   : > { %7408 = vrsqrt.f32 %v3407_v21  ;;  %v3406_v12 = vmul.f32 0.03125, %v3404_v19  ;;  %v7249_v62 = vunpack.i.l.bf16 %v7248_v52  ;;  %v7250_v6 = vunpack.i.h.bf16 %v7248_v52 }
 0x8c8   : > { %v3408_v29 = vadd.f32 1e-05, %v3406_v12  ;;  %v9208_v7 = vpack.c.bf16 %v7249_v62, %v7249_v62  ;;  %v9214_v50 = vpack.c.bf16 %v7250_v6, %v7250_v6 }
 0x8ca   : > { %7410 = vrsqrt.f32 %v3408_v29  ;;  %v3809_v1 = vsel %vm1475_vm2, %v9208_v7, 0  ;;  %v3855_v40 = vsel %vm1475_vm2, %v9214_v50, 0 }
 0x8d3   : > { %v7409_v32 = vpop.eup %7408 }
 0x8d4   : > { %v3411_v24 = vmul.f32 %v7409_v32, %v3395_v30 }
 0x8d6   : > { %v3419_v35 = vmul.f32 %v6236_v16, %v3411_v24  ;;  %v6246_v24 = vld [vmem:[#allocation25] ss:$0 sm:$0xff] }
 0x8d7   : > { %v7411_v4 = vpop.eup %7410 }
 0x8d8   : > { %v3412_v28 = vmul.f32 %v7411_v4, %v3396_v60  ;;  %v9183_v44 = vadd.f32 %v6237_v23, %v3419_v35 }
 0x8da   : > { %v3420_v31 = vmul.f32 %v6236_v16, %v3412_v28 }
 0x8dc   : > { %v9185_v43 = vadd.f32 %v6237_v23, %v3420_v31 }
 0x8de   : > { %v3429_v14 = vpack.c.bf16 %v9185_v43, %v9183_v44 }
 0x8e0   : > { %6696 = vmatmul.mubr.msk.bf16.vlgmr.msra.gmra.mxu0 %vm1218_vm1, %v3429_v14 }
 0x8e1   : > { %6708 = vmatpush3.bf16.msra.mxu0 %v7318_v61  ;;  %6711 = vmatprep.mubr.msk.bf16.mxu0 %vm8096_vm0, %v8095_v0 }
 0x8e2   : > { %6709 = vmatprep.subr.bf16.mxu0 %v8095_v0 }
 0x8e5   : > { %6710 = vmatpush3.bf16.msra.mxu0 %v7319_v18 }
 0x8e6   : > { %6721 = vmatprep.subr.bf16.mxu0 %v8095_v0 }
 0x8e8   : > { %6712 = vmatmul.mubr.msk.bf16.vlgmr.msra.gmra.mxu0 %vm1218_vm1, %v3430_v55 }
 0x8e9   : > { %6723 = vmatprep.mubr.msk.bf16.mxu0 %vm8096_vm0, %v8095_v0  ;;  %6722 = vmatpush3.bf16.xpose.msra.mxu0 %v3763_v10  ;;  %v9309_v10 = vld [vmem:[#allocation7] sm:$0xff] }
 0x8ea   : > { %6733 = vmatprep.subr.bf16.mxu0 %v8095_v0 }
 0x9a0   : > { %v3491_v17 = vpop.f32.mrf.mxu0 }
 0x9a1   : > { %v3492_v5 = vadd.f32 %v6238_v38, %v3491_v17 }
 0x9a2   : > { %v6697_v15 = vpop.f32.mrf.mxu0 }
 0x9a3   : > { %v9210_v58 = vpack.c.bf16 %v3492_v5, %v3492_v5 }
 0x9a4   : > { %v3494_v37 = vpop.f32.mrf.mxu0 }
 0x9a5   : > { %v3495_v45 = vadd.f32 %v6238_v38, %v3494_v37  ;;  %6718 = vmatmul.mubr.msk.bf16.vlgmr.msra.gmra.mxu1 %vm1475_vm2, %v9210_v58 }
 0x9a6   : > { %v6698_v20 = vpop.f32.mrf.mxu0  ;;  %6728 = vmatpush3.bf16.xpose.msra.mxu1 %v3809_v1  ;;  %6729 = vmatprep.mubr.msk.bf16.mxu1 %vm8096_vm0, %v8095_v0 }
 0x9a7   : > { %v9220_v33 = vpack.c.bf16 %v3495_v45, %v3495_v45  ;;  %v7261_v54 = vpack.i.bf16 %v3495_v45, %v3492_v5  ;;  %6739 = vmatprep.subr.bf16.mxu1 %v8095_v0 }
 0x9a8   : > { %v3622_v30 = vpop.f32.mrf.mxu0 }
 0x9a9   : > { %7262 = vrot.lane.b32.xlu0 %v7261_v54, %s8097_s4  ;;  %7252 = vrot.lane.b32.xlu1 %v7261_v54, %s8098_s17  ;;  %v9265_v23 = vadd.f32 %v6246_v24, %v3622_v30 }
 0x9aa   : > { %6724 = vmatmul.mubr.msk.bf16.vlgmr.msra.gmra.mxu0 %vm1475_vm2, %v9220_v33  ;;  %v6713_v25 = vpop.f32.mrf.mxu0 }
 0x9ab   : > { %6734 = vmatpush3.bf16.xpose.msra.mxu0 %v3855_v40  ;;  %6735 = vmatprep.mubr.msk.bf16.mxu0 %vm8096_vm0, %v8095_v0  ;;  %v9283_v9 = vpack.c.bf16 %v9265_v23, %v9265_v23 }
 0x9ac   : > { %6745 = vmatprep.subr.bf16.mxu0 %v8095_v0  ;;  %v3625_v48 = vpop.f32.mrf.mxu0 }
 0x9ad   : > { %7272 = vrot.lane.b32.xlu0 %v7261_v54, %s8099_s22  ;;  %7257 = vrot.lane.b32.xlu1 %v7246_v2, %s8097_s4  ;;  %v9267_v31 = vadd.f32 %v6246_v24, %v3625_v48  ;;  %v4221_v56 = vsel %vm1984_vm3, %v9283_v9, 0 }
 0x9ae   : > { %v6714_v36 = vpop.f32.mrf.mxu0 }
 0x9af   : > { %v9287_v49 = vpack.c.bf16 %v9267_v31, %v9267_v31 }
 0x9b1   : > { %7267 = vrot.lane.b32.xlu1 %v7246_v2, %s8099_s22  ;;  %v4267_v3 = vsel %vm1984_vm3, %v9287_v49, 0 }
 0xa1b   : > { %v7253_v60 = vpop.permute.xlu1 %7252  ;;  %v7263_v41 = vpop.permute.xlu0 %7262 }
 0xa1c   : > { %v7255_v42 = vunpack.i.h.bf16 %v7253_v60  ;;  %v7254_v26 = vunpack.i.l.bf16 %v7253_v60  ;;  %v7265_v29 = vunpack.i.h.bf16 %v7263_v41  ;;  %v7264_v32 = vunpack.i.l.bf16 %v7263_v41 }
 0xa1e   : > { %v9235_v11 = vpack.c.bf16 %v7255_v42, %v7255_v42  ;;  %v9237_v47 = vpack.c.bf16 %v7254_v26, %v7254_v26  ;;  %v9261_v28 = vpack.c.bf16 %v7265_v29, %v7265_v29  ;;  %v9263_v35 = vpack.c.bf16 %v7264_v32, %v7264_v32 }
 0xa1f   : > { %v7258_v59 = vpop.permute.xlu1 %7257  ;;  %v7273_v61 = vpop.permute.xlu0 %7272 }
 0xa20   : > { %v7260_v39 = vunpack.i.h.bf16 %v7258_v59  ;;  %v7259_v8 = vunpack.i.l.bf16 %v7258_v59  ;;  %6730 = vmatmul.mubr.msk.bf16.vlgmr.msra.gmra.mxu1 %vm1475_vm2, %v9237_v47  ;;  %6736 = vmatmul.mubr.msk.bf16.vlgmr.msra.gmra.mxu0 %vm1475_vm2, %v9235_v11  ;;  %v7275_v34 = vunpack.i.h.bf16 %v7273_v61  ;;  %v7274_v57 = vunpack.i.l.bf16 %v7273_v61 }
 0xa21   : > { %6741 = vmatprep.mubr.msk.bf16.mxu1 %vm8096_vm0, %v8095_v0  ;;  %6747 = vmatprep.mubr.msk.bf16.mxu0 %vm8096_vm0, %v8095_v0 }
 0xa22   : > { %v9247_v55 = vpack.c.bf16 %v7260_v39, %v7260_v39  ;;  %v9249_v63 = vpack.c.bf16 %v7259_v8, %v7259_v8  ;;  %v9291_v22 = vpack.c.bf16 %v7275_v34, %v7275_v34  ;;  %v9293_v46 = vpack.c.bf16 %v7274_v57, %v7274_v57 }
 0xa23   : > { %v7268_v27 = vpop.permute.xlu1 %7267 }
 0xa24   : > { %v7270_v53 = vunpack.i.h.bf16 %v7268_v27  ;;  %v7269_v21 = vunpack.i.l.bf16 %v7268_v27  ;;  %v3901_v19 = vsel %vm1475_vm2, %v9249_v63, 0  ;;  %v3947_v12 = vsel %vm1475_vm2, %v9247_v55, 0 }
 0xa25   : > { %6740 = vmatpush3.bf16.xpose.msra.mxu1 %v3901_v19  ;;  %6746 = vmatpush3.bf16.xpose.msra.mxu0 %v3947_v12 }
 0xa26   : > { %6751 = vmatprep.subr.bf16.mxu1 %v8095_v0  ;;  %6757 = vmatprep.subr.bf16.mxu0 %v8095_v0  ;;  %v9257_v16 = vpack.c.bf16 %v7270_v53, %v7270_v53  ;;  %v9259_v4 = vpack.c.bf16 %v7269_v21, %v7269_v21 }
 0xa28   : > { %v3993_v14 = vsel %vm1475_vm2, %v9259_v4, 0  ;;  %v4039_v18 = vsel %vm1475_vm2, %v9257_v16, 0 }
 0xa2c   : > { %6742 = vmatmul.mubr.msk.bf16.vlgmr.msra.gmra.mxu1 %vm1475_vm2, %v9263_v35  ;;  %6748 = vmatmul.mubr.msk.bf16.vlgmr.msra.gmra.mxu0 %vm1475_vm2, %v9261_v28 }
 0xa2d   : > { %6752 = vmatpush3.bf16.xpose.msra.mxu1 %v3993_v14  ;;  %6758 = vmatpush3.bf16.xpose.msra.mxu0 %v4039_v18 }
 0xa2e   : > { %6753 = vmatprep.mubr.msk.bf16.mxu1 %vm8096_vm0, %v8095_v0  ;;  %6759 = vmatprep.mubr.msk.bf16.mxu0 %vm8096_vm0, %v8095_v0 }
 0xa2f   : > { %6763 = vmatprep.subr.bf16.mxu1 %v8095_v0  ;;  %6769 = vmatprep.subr.bf16.mxu0 %v8095_v0 }
 0xa34   : > { %6754 = vmatmul.mubr.msk.bf16.vlgmr.msra.gmra.mxu1 %vm1475_vm2, %v9293_v46  ;;  %6760 = vmatmul.mubr.msk.bf16.vlgmr.msra.gmra.mxu0 %vm1475_vm2, %v9291_v22 }
 0xa35   : > { %6764 = vmatpush3.bf16.msra.mxu1 %v4221_v56  ;;  %6770 = vmatpush3.bf16.msra.mxu0 %v4267_v3 }
 0xa36   : > { %6765 = vmatprep.mubr.msk.bf16.mxu1 %vm8096_vm0, %v8095_v0  ;;  %6771 = vmatprep.mubr.msk.bf16.mxu0 %vm8096_vm0, %v8095_v0 }
 0xa37   : > { %6775 = vmatprep.subr.bf16.mxu1 %v8095_v0  ;;  %6781 = vmatprep.subr.bf16.mxu0 %v8095_v0 }
 0xa65   : > { %v3753_v2 = vpop.f32.mrf.mxu1 }
 0xa66   : > { %v4081_v52 = vmul.f32 0.35355338, %v3753_v2 }
 0xa67   : > { %v6719_v62 = vpop.f32.mrf.mxu1 }
 0xa68   : > { %v4089_v38 = vadd.f32 %v4081_v52, %v9309_v10 }
 0xa69   : > { %v3756_v17 = vpop.f32.mrf.mxu1 }
 0xa6a   : > { %v3799_v6 = vpop.f32.mrf.mxu0  ;;  %v4097_v5 = vsel %vm1860_vm4, %v4089_v38, -inf }
 0xa6b   : > { %v4082_v15 = vmul.f32 0.35355338, %v3799_v6  ;;  %v6720_v1 = vpop.f32.mrf.mxu1  ;;  %4098 = vmax.xlane.f32.xlu1 %v4097_v5 }
 0xa6c   : > { %v6725_v37 = vpop.f32.mrf.mxu0 }
 0xa6d   : > { %v4090_v45 = vadd.f32 %v4082_v15, %v9309_v10 }
 0xa6e   : > { %v3802_v20 = vpop.f32.mrf.mxu0 }
 0xa6f   : > { %v4100_v54 = vsel %vm1860_vm4, %v4090_v45, -inf }
 0xa70   : > { %4101 = vmax.xlane.f32.xlu0 %v4100_v54  ;;  %v6726_v40 = vpop.f32.mrf.mxu0 }
 0xae0   : > { %v3845_v30 = vpop.f32.mrf.mxu1  ;;  %v3891_v25 = vpop.f32.mrf.mxu0 }
 0xae1   : > { %v4083_v48 = vmul.f32 0.35355338, %v3845_v30  ;;  %v4084_v36 = vmul.f32 0.35355338, %v3891_v25 }
 0xae2   : > { %v6731_v60 = vpop.f32.mrf.mxu1  ;;  %v6737_v42 = vpop.f32.mrf.mxu0 }
 0xae3   : > { %v9316_v26 = vadd.f32 %v4083_v48, %v9309_v10  ;;  %v9319_v59 = vadd.f32 %v4084_v36, %v9309_v10 }
 0xae4   : > { %v3848_v39 = vpop.f32.mrf.mxu1  ;;  %v3894_v8 = vpop.f32.mrf.mxu0 }
 0xae5   : > { %v4103_v27 = vsel %vm1860_vm4, %v9316_v26, -inf  ;;  %v4106_v41 = vsel %vm1860_vm4, %v9319_v59, -inf  ;;  %v7281_v39 = vpack.i.bf16 %v9267_v31, %v9265_v23 }
 0xae6   : > { %v6732_v53 = vpop.f32.mrf.mxu1  ;;  %4104 = vmax.xlane.f32.xlu0 %v4103_v27  ;;  %4107 = vmax.xlane.f32.xlu1 %v4106_v41  ;;  %v6738_v21 = vpop.f32.mrf.mxu0 }
 0xaec   : > { %v3937_v19 = vpop.f32.mrf.mxu1  ;;  %v3983_v12 = vpop.f32.mrf.mxu0 }
 0xaed   : > { %v4085_v29 = vmul.f32 0.35355338, %v3937_v19  ;;  %v4086_v32 = vmul.f32 0.35355338, %v3983_v12 }
 0xaee   : > { %v6743_v24 = vpop.f32.mrf.mxu1  ;;  %v6749_v61 = vpop.f32.mrf.mxu0 }
 0xaef   : > { %v4093_v14 = vadd.f32 %v4085_v29, %v9309_v10  ;;  %v4094_v18 = vadd.f32 %v4086_v32, %v9309_v10 }
 0xaf0   : > { %v3940_v34 = vpop.f32.mrf.mxu1  ;;  %v3986_v57 = vpop.f32.mrf.mxu0 }
 0xaf1   : > { %v4109_v56 = vsel %vm1860_vm4, %v4093_v14, -inf  ;;  %v4112_v3 = vsel %vm1860_vm4, %v4094_v18, -inf }
 0xaf2   : > { %v6744_v2 = vpop.f32.mrf.mxu1  ;;  %4110 = vmax.xlane.f32.xlu0 %v4109_v56  ;;  %4113 = vmax.xlane.f32.xlu1 %v4112_v3  ;;  %v6750_v52 = vpop.f32.mrf.mxu0 }
 0xaf4   : > { %v9329_v62 = vpop.xlane.xlu1 %4098  ;;  %v4029_v6 = vpop.f32.mrf.mxu1 }
 0xaf5   : > { %v4145_v17 = vsub.f32 %v4089_v38, %v9329_v62  ;;  %v4075_v5 = vpop.f32.mrf.mxu0  ;;  %v4087_v15 = vmul.f32 0.35355338, %v4029_v6 }
 0xaf6   : > { %v6755_v37 = vpop.f32.mrf.mxu1  ;;  %v4088_v23 = vmul.f32 0.35355338, %v4075_v5 }
 0xaf7   : > { %v4153_v1 = vmul.f32 1.442695, %v4145_v17  ;;  %v6761_v20 = vpop.f32.mrf.mxu0  ;;  %v9333_v54 = vadd.f32 %v4087_v15, %v9309_v10 }
 0xaf8   : > { %v4032_v40 = vpop.f32.mrf.mxu1  ;;  %v9361_v31 = vadd.f32 %v4088_v23, %v9309_v10 }
 0xaf9   : > { %7412 = vpow2.f32 %v4153_v1  ;;  %v9335_v30 = vpop.xlane.xlu0 %4101  ;;  %v4078_v48 = vpop.f32.mrf.mxu0  ;;  %v4115_v36 = vsel %vm1860_vm4, %v9333_v54, -inf }
 0xafa   : > { %v4146_v25 = vsub.f32 %v4090_v45, %v9335_v30  ;;  %v6756_v38 = vpop.f32.mrf.mxu1  ;;  %4116 = vmax.xlane.f32.xlu0 %v4115_v36  ;;  %v4118_v53 = vsel %vm1860_vm4, %v9361_v31, -inf }
 0xafb   : > { %v6762_v42 = vpop.f32.mrf.mxu0 }
 0xafc   : > { %v4155_v60 = vmul.f32 1.442695, %v4146_v25 }
 0xafe   : > { %7414 = vpow2.f32 %v4155_v60 }
 0xb03   : > { %7282 = vrot.lane.b32.xlu1 %v7281_v39, %s8097_s4  ;;  %s9960_s4 = sld [smem:[#allocation55_spill]] }
 0xb06   : > { %v9343_v8 = vpop.eup %7412 }
 0xb07   : > { %v4209_v27 = vpack.c.bf16 %v9343_v8, %v9343_v8 }
 0xb09   : > { %6766 = vmatmul.mubr.msk.bf16.vlgmr.msra.gmra.mxu1 %vm1860_vm4, %v4209_v27 }
 0xb0a   : > { %6777 = vmatprep.mubr.msk.bf16.mxu1 %vm8096_vm0, %v8095_v0 }
 0xb0b   : > { %v9350_v45 = vpop.eup %7414 }
 0xb0c   : > { %v4210_v41 = vpack.c.bf16 %v9350_v45, %v9350_v45 }
 0xb0e   : > { %6772 = vmatmul.mubr.msk.bf16.vlgmr.msra.gmra.mxu0 %vm1860_vm4, %v4210_v41 }
 0xb0f   : > { %6783 = vmatprep.mubr.msk.bf16.mxu0 %vm8096_vm0, %v8095_v0 }
 0xb10   : > { %7277 = vrot.lane.b32.xlu0 %v7281_v39, %s8098_s17  ;;  %s9961_s17 = sld [smem:[#allocation59_spill]] }
 0xb14   : > { %4962 = vrot.lane.b32.xlu0 %v9309_v10, %s8100_s1  ;;  %s9963_s1 = sld [smem:[#allocation56_spill]] }
 0xb27   : > { %4119 = vmax.xlane.f32.xlu1 %v4118_v53 }
 0xb38   : > { %7287 = vrot.lane.b32.xlu1 %v7281_v39, %s8099_s22  ;;  %s9962_s22 = sld [smem:[#allocation54_spill]] }
 0xb6f   : > { %v9366_v21 = vpop.xlane.xlu0 %4104  ;;  %v9368_v19 = vpop.xlane.xlu1 %4107 }
 0xb70   : > { %v4147_v12 = vsub.f32 %v9316_v26, %v9366_v21  ;;  %v4148_v29 = vsub.f32 %v9319_v59, %v9368_v19 }
 0xb72   : > { %v4157_v32 = vmul.f32 1.442695, %v4147_v12  ;;  %v4159_v24 = vmul.f32 1.442695, %v4148_v29 }
 0xb74   : > { %7416 = vpow2.f32 %v4157_v32 }
 0xb75   : > { %7418 = vpow2.f32 %v4159_v24 }
 0xb7b   : > { %v9374_v10 = vpop.xlane.xlu0 %4110  ;;  %v9376_v61 = vpop.xlane.xlu1 %4113 }
 0xb7c   : > { %v4149_v34 = vsub.f32 %v4093_v14, %v9374_v10  ;;  %v4150_v57 = vsub.f32 %v4094_v18, %v9376_v61 }
 0xb7e   : > { %v4161_v56 = vmul.f32 1.442695, %v4149_v34  ;;  %v4163_v3 = vmul.f32 1.442695, %v4150_v57 }
 0xb7f   : > { %v7283_v26 = vpop.permute.xlu1 %7282 }
 0xb80   : > { %7420 = vpow2.f32 %v4161_v56  ;;  %v7285_v52 = vunpack.i.h.bf16 %v7283_v26  ;;  %v7284_v17 = vunpack.i.l.bf16 %v7283_v26 }
 0xb81   : > { %7422 = vpow2.f32 %v4163_v3  ;;  %v9382_v15 = vpop.eup %7416 }
 0xb82   : > { %v9388_v37 = vpop.eup %7418  ;;  %v9390_v18 = vpack.c.bf16 %v7285_v52, %v7285_v52  ;;  %v9392_v20 = vpack.c.bf16 %v7284_v17, %v7284_v17  ;;  %v4211_v48 = vpack.c.bf16 %v9382_v15, %v9382_v15  ;;  %v4594_v52 = vrot.slane %v9197_v13, 2 }
 0xb83   : > { %v9380_v2 = vpop.xlane.xlu0 %4116  ;;  %v4212_v36 = vpack.c.bf16 %v9388_v37, %v9388_v37  ;;  %v4684_v13 = vrot.slane %v9208_v7, 2  ;;  %v4729_v7 = vrot.slane %v9214_v50, 2 }
 0xb84   : > { %v4405_v38 = vsel %vm1984_vm3, %v9392_v20, 0  ;;  %v4451_v60 = vsel %vm1984_vm3, %v9390_v18, 0  ;;  %v4151_v23 = vsub.f32 %v9333_v54, %v9380_v2  ;;  %v4596_v17 = vsel %vm1475_vm2, %v4594_v52, 0 }
 0xb86   : > { %v4165_v53 = vmul.f32 1.442695, %v4151_v23 }
 0xb87   : > { %v7278_v59 = vpop.permute.xlu0 %7277 }
 0xb88   : > { %v7280_v6 = vunpack.i.h.bf16 %v7278_v59  ;;  %v7279_v5 = vunpack.i.l.bf16 %v7278_v59  ;;  %7424 = vpow2.f32 %v4165_v53 }
 0xb8a   : > { %v9384_v1 = vpack.c.bf16 %v7280_v6, %v7280_v6  ;;  %v9386_v14 = vpack.c.bf16 %v7279_v5, %v7279_v5  ;;  %v4639_v6 = vrot.slane %v9202_v51, 2 }
 0xb8c   : > { %v4313_v40 = vsel %vm1984_vm3, %v9386_v14, 0  ;;  %v4359_v25 = vsel %vm1984_vm3, %v9384_v1, 0 }
 0xb8d   : > { %6776 = vmatpush3.bf16.msra.mxu1 %v4313_v40  ;;  %6782 = vmatpush3.bf16.msra.mxu0 %v4359_v25  ;;  %v9410_v42 = vpop.eup %7420  ;;  %v4641_v25 = vsel %vm1475_vm2, %v4639_v6, 0 }
 0xb8e   : > { %6787 = vmatprep.subr.bf16.mxu1 %v8095_v0  ;;  %6793 = vmatprep.subr.bf16.mxu0 %v8095_v0  ;;  %v9416_v39 = vpop.eup %7422  ;;  %v4213_v27 = vpack.c.bf16 %v9410_v42, %v9410_v42 }
 0xb8f   : > { %v4214_v41 = vpack.c.bf16 %v9416_v39, %v9416_v39 }
 0xb90   : > { %6778 = vmatmul.mubr.msk.bf16.vlgmr.msra.gmra.mxu1 %vm1860_vm4, %v4211_v48  ;;  %6784 = vmatmul.mubr.msk.bf16.vlgmr.msra.gmra.mxu0 %vm1860_vm4, %v4212_v36  ;;  %v4686_v48 = vsel %vm1475_vm2, %v4684_v13, 0 }
 0xb91   : > { %6788 = vmatpush3.bf16.msra.mxu1 %v4405_v38  ;;  %6794 = vmatpush3.bf16.msra.mxu0 %v4451_v60 }
 0xb92   : > { %6789 = vmatprep.mubr.msk.bf16.mxu1 %vm8096_vm0, %v8095_v0  ;;  %6795 = vmatprep.mubr.msk.bf16.mxu0 %vm8096_vm0, %v8095_v0 }
 0xb93   : > { %6799 = vmatprep.subr.bf16.mxu1 %v8095_v0  ;;  %6805 = vmatprep.subr.bf16.mxu0 %v8095_v0 }
 0xb95   : > { %v9440_v26 = vpop.eup %7424 }
 0xb98   : > { %6790 = vmatmul.mubr.msk.bf16.vlgmr.msra.gmra.mxu1 %vm1860_vm4, %v4213_v27  ;;  %6796 = vmatmul.mubr.msk.bf16.vlgmr.msra.gmra.mxu0 %vm1860_vm4, %v4214_v41  ;;  %v4731_v27 = vsel %vm1475_vm2, %v4729_v7, 0 }
 0xb99   : > { %6801 = vmatprep.mubr.msk.bf16.mxu1 %vm8096_vm0, %v8095_v0  ;;  %6807 = vmatprep.mubr.msk.bf16.mxu0 %vm8096_vm0, %v8095_v0 }
 0xbb0   : > { %v9432_v12 = vpop.xlane.xlu1 %4119 }
 0xbb1   : > { %v4152_v29 = vsub.f32 %v9361_v31, %v9432_v12  ;;  %v4215_v31 = vpack.c.bf16 %v9440_v26, %v9440_v26 }
 0xbb3   : > { %v4167_v32 = vmul.f32 1.442695, %v4152_v29 }
 0xbb4   : > { %v7288_v24 = vpop.permute.xlu1 %7287 }
 0xbb5   : > { %7426 = vpow2.f32 %v4167_v32  ;;  %v7290_v34 = vunpack.i.h.bf16 %v7288_v24  ;;  %v7289_v57 = vunpack.i.l.bf16 %v7288_v24 }
 0xbb7   : > { %v9436_v56 = vpack.c.bf16 %v7290_v34, %v7290_v34  ;;  %v9438_v3 = vpack.c.bf16 %v7289_v57, %v7289_v57 }
 0xbb9   : > { %v4497_v54 = vsel %vm1984_vm3, %v9438_v3, 0  ;;  %v4543_v59 = vsel %vm1984_vm3, %v9436_v56, 0 }
 0xbba   : > { %6800 = vmatpush3.bf16.msra.mxu1 %v4497_v54  ;;  %6806 = vmatpush3.bf16.msra.mxu0 %v4543_v59 }
 0xbbb   : > { %6811 = vmatprep.subr.bf16.mxu1 %v8095_v0  ;;  %6817 = vmatprep.subr.bf16.mxu0 %v8095_v0 }
 0xbbd   : > { %6802 = vmatmul.mubr.msk.bf16.vlgmr.msra.gmra.mxu1 %vm1860_vm4, %v4215_v31 }
 0xbbe   : > { %6812 = vmatpush3.bf16.xpose.msra.mxu1 %v4596_v17  ;;  %6813 = vmatprep.mubr.msk.bf16.mxu1 %vm8096_vm0, %v8095_v0 }
 0xbbf   : > { %6823 = vmatprep.subr.bf16.mxu1 %v8095_v0 }
 0xbc2   : > { %v9458_v5 = vpop.eup %7426 }
 0xbc3   : > { %v4216_v40 = vpack.c.bf16 %v9458_v5, %v9458_v5 }
 0xbc5   : > { %6808 = vmatmul.mubr.msk.bf16.vlgmr.msra.gmra.mxu0 %vm1860_vm4, %v4216_v40  ;;  %6814 = vmatmul.mubr.msk.bf16.vlgmr.msra.gmra.mxu1 %vm1475_vm2, %v9210_v58  ;;  %v4774_v58 = vrot.slane %v9249_v63, 2 }
 0xbc6   : > { %6818 = vmatpush3.bf16.xpose.msra.mxu0 %v4641_v25  ;;  %6824 = vmatpush3.bf16.xpose.msra.mxu1 %v4686_v48 }
 0xbc7   : > { %6819 = vmatprep.mubr.msk.bf16.mxu0 %vm8096_vm0, %v8095_v0  ;;  %6825 = vmatprep.mubr.msk.bf16.mxu1 %vm8096_vm0, %v8095_v0  ;;  %v4776_v41 = vsel %vm1475_vm2, %v4774_v58, 0 }
 0xbc8   : > { %6829 = vmatprep.subr.bf16.mxu0 %v8095_v0  ;;  %6835 = vmatprep.subr.bf16.mxu1 %v8095_v0 }
 0xbc9   : > { %v9471_v51 = vpop.f32.mrf.mxu1 }
 0xbcb   : > { %v6767_v36 = vpop.f32.mrf.mxu1 }
 0xbcd   : > { %v4260_v38 = vpop.f32.mrf.mxu1  ;;  %6820 = vmatmul.mubr.msk.bf16.vlgmr.msra.gmra.mxu0 %vm1475_vm2, %v9220_v33  ;;  %6826 = vmatmul.mubr.msk.bf16.vlgmr.msra.gmra.mxu1 %vm1475_vm2, %v9237_v47  ;;  %v4819_v33 = vrot.slane %v9247_v55, 2  ;;  %v4864_v47 = vrot.slane %v9259_v4, 2  ;;  %v5110_v55 = vrot.slane %v9283_v9, 2 }
 0xbce   : > { %v9477_v60 = vpop.f32.mrf.mxu0  ;;  %6830 = vmatpush3.bf16.xpose.msra.mxu0 %v4731_v27  ;;  %6836 = vmatpush3.bf16.xpose.msra.mxu1 %v4776_v41  ;;  %v9536_v38 = vpop.permute.xlu0 %4962 }
 0xbcf   : > { %v6768_v23 = vpop.f32.mrf.mxu1  ;;  %6831 = vmatprep.mubr.msk.bf16.mxu0 %vm8096_vm0, %v8095_v0  ;;  %6837 = vmatprep.mubr.msk.bf16.mxu1 %vm8096_vm0, %v8095_v0  ;;  %v4821_v29 = vsel %vm1475_vm2, %v4819_v33, 0  ;;  %v4866_v32 = vsel %vm1475_vm2, %v4864_v47, 0 }
 0xbd0   : > { %v6773_v50 = vpop.f32.mrf.mxu0  ;;  %6841 = vmatprep.subr.bf16.mxu0 %v8095_v0  ;;  %6847 = vmatprep.subr.bf16.mxu1 %v8095_v0 }
 0xbd2   : > { %v4306_v63 = vpop.f32.mrf.mxu0 }
 0xbd4   : > { %v6774_v53 = vpop.f32.mrf.mxu0 }
 0xbd5   : > { %6832 = vmatmul.mubr.msk.bf16.vlgmr.msra.gmra.mxu0 %vm1475_vm2, %v9235_v11  ;;  %6838 = vmatmul.mubr.msk.bf16.vlgmr.msra.gmra.mxu1 %vm1475_vm2, %v9263_v35  ;;  %v4909_v11 = vrot.slane %v9257_v16, 2  ;;  %v5115_v35 = vsel %vm1984_vm3, %v5110_v55, 0  ;;  %v5158_v16 = vrot.slane %v9287_v49, 2 }
 0xbd6   : > { %6842 = vmatpush3.bf16.xpose.msra.mxu0 %v4821_v29  ;;  %6848 = vmatpush3.bf16.xpose.msra.mxu1 %v4866_v32 }
 0xbd7   : > { %6843 = vmatprep.mubr.msk.bf16.mxu0 %vm8096_vm0, %v8095_v0  ;;  %6849 = vmatprep.mubr.msk.bf16.mxu1 %vm8096_vm0, %v8095_v0  ;;  %v4911_v4 = vsel %vm1475_vm2, %v4909_v11, 0 }
 0xbd8   : > { %6853 = vmatprep.subr.bf16.mxu0 %v8095_v0  ;;  %6859 = vmatprep.subr.bf16.mxu1 %v8095_v0 }
 0xbdd   : > { %6844 = vmatmul.mubr.msk.bf16.vlgmr.msra.gmra.mxu0 %vm1475_vm2, %v9261_v28  ;;  %6850 = vmatmul.mubr.msk.bf16.vlgmr.msra.gmra.mxu1 %vm1475_vm2, %v9293_v46  ;;  %v5163_v28 = vsel %vm1984_vm3, %v5158_v16, 0 }
 0xbde   : > { %6854 = vmatpush3.bf16.xpose.msra.mxu0 %v4911_v4  ;;  %6860 = vmatpush3.bf16.msra.mxu1 %v5115_v35 }
 0xbdf   : > { %6855 = vmatprep.mubr.msk.bf16.mxu0 %vm8096_vm0, %v8095_v0  ;;  %6865 = vmatprep.subr.bf16.mxu0 %v8095_v0 }
 0xbe0   : > { %6861 = vmatprep.mubr.msk.bf16.mxu1 %vm8096_vm0, %v8095_v0  ;;  %6871 = vmatprep.subr.bf16.mxu1 %v8095_v0 }
 0xbe5   : > { %6856 = vmatmul.mubr.msk.bf16.vlgmr.msra.gmra.mxu0 %vm1475_vm2, %v9291_v22 }
 0xbe6   : > { %6866 = vmatpush3.bf16.msra.mxu0 %v5163_v28  ;;  %6867 = vmatprep.mubr.msk.bf16.mxu0 %vm8096_vm0, %v8095_v0 }
 0xbe7   : > { %6877 = vmatprep.subr.bf16.mxu0 %v8095_v0 }
 0xc50   : > { %v9526_v9 = vpop.f32.mrf.mxu1  ;;  %v9528_v46 = vpop.f32.mrf.mxu0 }
 0xc52   : > { %v6779_v24 = vpop.f32.mrf.mxu1  ;;  %v6785_v34 = vpop.f32.mrf.mxu0 }
 0xc54   : > { %v4352_v57 = vpop.f32.mrf.mxu1  ;;  %v4398_v54 = vpop.f32.mrf.mxu0 }
 0xc56   : > { %v6780_v49 = vpop.f32.mrf.mxu1  ;;  %v6786_v59 = vpop.f32.mrf.mxu0 }
 0xc58   : > { %v9530_v52 = vpop.f32.mrf.mxu1  ;;  %v9532_v22 = vpop.f32.mrf.mxu0 }
 0xc5a   : > { %v6791_v31 = vpop.f32.mrf.mxu1  ;;  %v6797_v17 = vpop.f32.mrf.mxu0 }
 0xc5c   : > { %v4444_v13 = vpop.f32.mrf.mxu1  ;;  %v4490_v6 = vpop.f32.mrf.mxu0 }
 0xc5e   : > { %v6792_v40 = vpop.f32.mrf.mxu1  ;;  %v6798_v25 = vpop.f32.mrf.mxu0 }
 0xc7d   : > { %v9534_v48 = vpop.f32.mrf.mxu1 }
 0xc7f   : > { %v6803_v7 = vpop.f32.mrf.mxu1 }
 0xc81   : > { %v4536_v58 = vpop.f32.mrf.mxu1 }
 0xc83   : > { %v6804_v36 = vpop.f32.mrf.mxu1 }
 0xc85   : > { %v9538_v27 = vpop.f32.mrf.mxu0  ;;  %v4632_v41 = vpop.f32.mrf.mxu1 }
 0xc86   : > { %v4953_v23 = vmul.f32 0.35355338, %v4632_v41 }
 0xc87   : > { %v6809_v50 = vpop.f32.mrf.mxu0  ;;  %v6815_v33 = vpop.f32.mrf.mxu1 }
 0xc88   : > { %v9541_v47 = vadd.f32 %v9536_v38, %v4953_v23 }
 0xc89   : > { %v4582_v63 = vpop.f32.mrf.mxu0  ;;  %v4635_v53 = vpop.f32.mrf.mxu1 }
 0xc8a   : > { %v4973_v29 = vsel %vm1860_vm4, %v9541_v47, -inf }
 0xc8b   : > { %4974 = vmax.xlane.f32.xlu1 %v4973_v29  ;;  %v6810_v32 = vpop.f32.mrf.mxu0  ;;  %v6816_v11 = vpop.f32.mrf.mxu1 }
 0xc8d   : > { %v4677_v55 = vpop.f32.mrf.mxu0  ;;  %v4722_v4 = vpop.f32.mrf.mxu1 }
 0xc8e   : > { %v4954_v35 = vmul.f32 0.35355338, %v4677_v55  ;;  %v4955_v16 = vmul.f32 0.35355338, %v4722_v4 }
 0xc8f   : > { %v6821_v28 = vpop.f32.mrf.mxu0  ;;  %v6827_v24 = vpop.f32.mrf.mxu1 }
 0xc90   : > { %v9546_v34 = vadd.f32 %v9536_v38, %v4954_v35  ;;  %v9551_v59 = vadd.f32 %v9536_v38, %v4955_v16 }
 0xc91   : > { %v4680_v57 = vpop.f32.mrf.mxu0  ;;  %v4725_v54 = vpop.f32.mrf.mxu1 }
 0xc92   : > { %v4976_v49 = vsel %vm1860_vm4, %v9546_v34, -inf  ;;  %v4979_v7 = vsel %vm1860_vm4, %v9551_v59, -inf }
 0xc93   : > { %v6828_v31 = vpop.f32.mrf.mxu1  ;;  %4977 = vmax.xlane.f32.xlu0 %v4976_v49  ;;  %v6822_v17 = vpop.f32.mrf.mxu0 }
 0xc95   : > { %v4767_v13 = vpop.f32.mrf.mxu0  ;;  %v4812_v6 = vpop.f32.mrf.mxu1 }
 0xc96   : > { %v4956_v40 = vmul.f32 0.35355338, %v4767_v13  ;;  %v4957_v25 = vmul.f32 0.35355338, %v4812_v6 }
 0xc97   : > { %v6839_v58 = vpop.f32.mrf.mxu1  ;;  %4980 = vmax.xlane.f32.xlu0 %v4979_v7  ;;  %v6833_v36 = vpop.f32.mrf.mxu0  ;;  %v4183_v7 = vsel %vm1860_vm4, %v9382_v15, 0.0  ;;  %v4186_v15 = vsel %vm1860_vm4, %v9388_v37, 0.0 }
 0xc98   : > { %v9556_v41 = vadd.f32 %v9536_v38, %v4957_v25  ;;  %v9559_v23 = vadd.f32 %v9536_v38, %v4956_v40 }
 0xc99   : > { %v4770_v50 = vpop.f32.mrf.mxu0  ;;  %v4815_v33 = vpop.f32.mrf.mxu1 }
 0xc9a   : > { %v4985_v63 = vsel %vm1860_vm4, %v9556_v41, -inf  ;;  %v4982_v53 = vsel %vm1860_vm4, %v9559_v23, -inf  ;;  %v4189_v33 = vsel %vm1860_vm4, %v9410_v42, 0.0  ;;  %v4198_v42 = vsel %vm1860_vm4, %v9458_v5, 0.0 }
 0xc9b   : > { %v6840_v29 = vpop.f32.mrf.mxu1  ;;  %4986 = vmax.xlane.f32.xlu0 %v4985_v63  ;;  %4983 = vmax.xlane.f32.xlu1 %v4982_v53  ;;  %v6834_v32 = vpop.f32.mrf.mxu0 }
 0xc9c   : > { %v4195_v29 = vsel %vm1860_vm4, %v9440_v26, 0.0  ;;  %v4121_v32 = vsub.f32 -inf, %v9329_v62 }
 0xc9d   : > { %v4857_v11 = vpop.f32.mrf.mxu0  ;;  %v4902_v55 = vpop.f32.mrf.mxu1 }
 0xc9e   : > { %v4958_v4 = vmul.f32 0.35355338, %v4857_v11  ;;  %v4959_v35 = vmul.f32 0.35355338, %v4902_v55  ;;  %v4129_v11 = vmul.f32 1.442695, %v4121_v32 }
 0xc9f   : > { %v6845_v16 = vpop.f32.mrf.mxu0  ;;  %v6851_v28 = vpop.f32.mrf.mxu1 }
 0xca0   : > { %v9566_v24 = vadd.f32 %v9536_v38, %v4959_v35  ;;  %v9569_v57 = vadd.f32 %v9536_v38, %v4958_v4  ;;  %7428 = vpow2.f32 %v4129_v11  ;;  %v4122_v4 = vsub.f32 -inf, %v9335_v30 }
 0xca1   : > { %v4860_v54 = vpop.f32.mrf.mxu0  ;;  %v4905_v49 = vpop.f32.mrf.mxu1  ;;  %v4124_v16 = vsub.f32 -inf, %v9368_v19 }
 0xca2   : > { %v4991_v31 = vsel %vm1860_vm4, %v9566_v24, -inf  ;;  %v4988_v17 = vsel %vm1860_vm4, %v9569_v57, -inf  ;;  %v4131_v54 = vmul.f32 1.442695, %v4122_v4  ;;  %v4125_v49 = vsub.f32 -inf, %v9374_v10 }
 0xca3   : > { %v6852_v13 = vpop.f32.mrf.mxu1  ;;  %4992 = vmax.xlane.f32.xlu0 %v4991_v31  ;;  %4989 = vmax.xlane.f32.xlu1 %v4988_v17  ;;  %v6846_v6 = vpop.f32.mrf.mxu0 }
 0xca4   : > { %v4135_v13 = vmul.f32 1.442695, %v4124_v16  ;;  %v5206_v16 = vrot.slane %v9386_v14, 2 }
 0xca5   : > { %v4947_v40 = vpop.f32.mrf.mxu0 }
 0xca6   : > { %v4960_v25 = vmul.f32 0.35355338, %v4947_v40  ;;  %v4137_v40 = vmul.f32 1.442695, %v4125_v49  ;;  %v5211_v14 = vsel %vm1984_vm3, %v5206_v16, 0 }
 0xca7   : > { %4184 = vadd.xlane.f32.xlu0 %v4183_v7  ;;  %v6857_v58 = vpop.f32.mrf.mxu0 }
 0xca8   : > { %v9578_v36 = vadd.f32 %v9536_v38, %v4960_v25  ;;  %v4192_v38 = vsel %vm1860_vm4, %v9416_v39, 0.0  ;;  %v4123_v39 = vsub.f32 -inf, %v9366_v21 }
 0xca9   : > { %v4950_v50 = vpop.f32.mrf.mxu0 }
 0xcaa   : > { %v4994_v63 = vsel %vm1860_vm4, %v9578_v36, -inf  ;;  %v4133_v31 = vmul.f32 1.442695, %v4123_v39 }
 0xcab   : > { %4190 = vadd.xlane.f32.xlu0 %v4189_v33  ;;  %4995 = vmax.xlane.f32.xlu1 %v4994_v63  ;;  %v6858_v53 = vpop.f32.mrf.mxu0 }
 0xcad   : > { %v7429_v58 = vpop.eup %7428 }
 0xcaf   : > { %4196 = vadd.xlane.f32.xlu0 %v4195_v29  ;;  %4187 = vadd.xlane.f32.xlu1 %v4186_v15  ;;  %v4127_v29 = vsub.f32 -inf, %v9380_v2 }
 0xcb1   : > { %v4141_v4 = vmul.f32 1.442695, %v4127_v29 }
 0xcb3   : > { %4193 = vadd.xlane.f32.xlu1 %v4192_v38 }
 0xcb7   : > { %4199 = vadd.xlane.f32.xlu1 %v4198_v42 }
 0xd14   : > { %v4975_v55 = vpop.xlane.xlu1 %4974 }
 0xd15   : > { %v4997_v26 = vmax.f32 %v9329_v62, %v4975_v55 }
 0xd17   : > { %v5005_v37 = vsub.f32 %v9329_v62, %v4997_v26  ;;  %v5029_v35 = vsub.f32 %v9541_v47, %v4997_v26  ;;  %v4126_v62 = vsub.f32 -inf, %v9376_v61 }
 0xd19   : > { %v5013_v28 = vmul.f32 1.442695, %v5005_v37  ;;  %v5037_v5 = vmul.f32 1.442695, %v5029_v35  ;;  %v4139_v53 = vmul.f32 1.442695, %v4126_v62 }
 0xd1b   : > { %7430 = vpow2.f32 %v5013_v28 }
 0xd1c   : > { %7432 = vpow2.f32 %v5037_v5  ;;  %v4978_v17 = vpop.xlane.xlu0 %4977 }
 0xd1d   : > { %v4998_v6 = vmax.f32 %v9335_v30, %v4978_v17  ;;  %7434 = vpow2.f32 %v4131_v54 }
 0xd1e   : > { %7436 = vpow2.f32 %v4133_v31 }
 0xd1f   : > { %v5006_v47 = vsub.f32 %v9335_v30, %v4998_v6  ;;  %v5030_v25 = vsub.f32 %v9546_v34, %v4998_v6  ;;  %7438 = vpow2.f32 %v4135_v13  ;;  %v9608_v30 = vmul.f32 0.0, %v7429_v58 }
 0xd20   : > { %v4981_v7 = vpop.xlane.xlu0 %4980  ;;  %7440 = vpow2.f32 %v4137_v40 }
 0xd21   : > { %v5015_v50 = vmul.f32 1.442695, %v5006_v47  ;;  %v5039_v33 = vmul.f32 1.442695, %v5030_v25  ;;  %v4999_v63 = vmax.f32 %v9366_v21, %v4981_v7  ;;  %v4585_v37 = vadd.f32 %v9471_v51, %v9608_v30 }
 0xd23   : > { %7442 = vpow2.f32 %v5015_v50  ;;  %v5007_v15 = vsub.f32 %v9366_v21, %v4999_v63  ;;  %v5031_v38 = vsub.f32 %v9551_v59, %v4999_v63 }
 0xd24   : > { %7444 = vpow2.f32 %v5039_v33  ;;  %v4987_v34 = vpop.xlane.xlu0 %4986  ;;  %v4984_v42 = vpop.xlane.xlu1 %4983 }
 0xd25   : > { %v5017_v32 = vmul.f32 1.442695, %v5007_v15  ;;  %v5041_v11 = vmul.f32 1.442695, %v5031_v38  ;;  %v5001_v55 = vmax.f32 %v9374_v10, %v4987_v34  ;;  %v5000_v26 = vmax.f32 %v9368_v19, %v4984_v42 }
 0xd26   : > { %7446 = vpow2.f32 %v4139_v53  ;;  %v5254_v15 = vrot.slane %v9384_v1, 2 }
 0xd27   : > { %7448 = vpow2.f32 %v5017_v32  ;;  %v5009_v21 = vsub.f32 %v9374_v10, %v5001_v55  ;;  %v5033_v59 = vsub.f32 %v9556_v41, %v5001_v55  ;;  %v5008_v35 = vsub.f32 %v9368_v19, %v5000_v26 }
 0xd28   : > { %v9617_v39 = vpop.eup %7430  ;;  %7450 = vpow2.f32 %v5041_v11  ;;  %v5032_v28 = vsub.f32 %v9559_v23, %v5000_v26  ;;  %v4128_v10 = vsub.f32 -inf, %v9432_v12 }
 0xd29   : > { %v9621_v5 = vpop.eup %7432  ;;  %v5021_v54 = vmul.f32 1.442695, %v5009_v21  ;;  %v5045_v49 = vmul.f32 1.442695, %v5033_v59  ;;  %v5019_v51 = vmul.f32 1.442695, %v5008_v35  ;;  %v9624_v31 = vmul.f32 %v9617_v39, %v4585_v37 }
 0xd2a   : > { %7452 = vpow2.f32 %v4141_v4  ;;  %v5043_v41 = vmul.f32 1.442695, %v5032_v28  ;;  %v5101_v19 = vpack.c.bf16 %v9621_v5, %v9621_v5  ;;  %v7435_v17 = vpop.eup %7434  ;;  %v4143_v25 = vmul.f32 1.442695, %v4128_v10 }
 0xd2b   : > { %7454 = vpow2.f32 %v5021_v54  ;;  %v7437_v6 = vpop.eup %7436  ;;  %v9635_v7 = vmul.f32 0.0, %v7435_v17  ;;  %v5259_v4 = vsel %vm1984_vm3, %v5254_v15, 0 }
 0xd2c   : > { %7456 = vpow2.f32 %v5045_v49  ;;  %6862 = vmatmul.mubr.msk.bf16.vlgmr.msra.gmra.mxu1 %vm1860_vm4, %v5101_v19  ;;  %v4993_v23 = vpop.xlane.xlu0 %4992  ;;  %v4990_v13 = vpop.xlane.xlu1 %4989  ;;  %v9647_v34 = vmul.f32 0.0, %v7437_v6 }
 0xd2d   : > { %7458 = vpow2.f32 %v5019_v51  ;;  %6872 = vmatpush3.bf16.msra.mxu1 %v5211_v14  ;;  %v5003_v40 = vmax.f32 %v9380_v2, %v4993_v23  ;;  %v5002_v62 = vmax.f32 %v9376_v61, %v4990_v13  ;;  %6873 = vmatprep.mubr.msk.bf16.mxu1 %vm8096_vm0, %v8095_v0  ;;  %v7439_v47 = vpop.eup %7438  ;;  %v4586_v38 = vadd.f32 %v9477_v60, %v9635_v7 }
 0xd2e   : > { %7460 = vpow2.f32 %v5043_v41  ;;  %6883 = vmatprep.subr.bf16.mxu1 %v8095_v0  ;;  %v7441_v58 = vpop.eup %7440  ;;  %v5302_v60 = vrot.slane %v9392_v20, 2  ;;  %v4587_v26 = vadd.f32 %v9526_v9, %v9647_v34  ;;  %v9673_v54 = vmul.f32 0.0, %v7439_v47 }
 0xd2f   : > { %v5011_v50 = vsub.f32 %v9380_v2, %v5003_v40  ;;  %v5035_v33 = vsub.f32 %v9566_v24, %v5003_v40  ;;  %v5010_v63 = vsub.f32 %v9376_v61, %v5002_v62  ;;  %v5034_v53 = vsub.f32 %v9569_v57, %v5002_v62 }
 0xd30   : > { %v9642_v29 = vpop.eup %7442  ;;  %7462 = vpow2.f32 %v4143_v25  ;;  %v9663_v59 = vmul.f32 0.0, %v7441_v58  ;;  %v5307_v19 = vsel %vm1984_vm3, %v5302_v60, 0  ;;  %v4588_v14 = vadd.f32 %v9528_v46, %v9673_v54 }
 0xd31   : > { %v9649_v42 = vpop.eup %7444  ;;  %v5025_v32 = vmul.f32 1.442695, %v5011_v50  ;;  %v5049_v11 = vmul.f32 1.442695, %v5035_v33  ;;  %v5023_v2 = vmul.f32 1.442695, %v5010_v63  ;;  %v9654_v57 = vmul.f32 %v9642_v29, %v4586_v38 }
 0xd32   : > { %v5047_v24 = vmul.f32 1.442695, %v5034_v53  ;;  %v5102_v61 = vpack.c.bf16 %v9649_v42, %v9649_v42  ;;  %v4589_v41 = vadd.f32 %v9530_v52, %v9663_v59  ;;  %v5398_v62 = vrot.slane %v9438_v3, 2 }
 0xd33   : > { %v7447_v55 = vpop.eup %7446  ;;  %7464 = vpow2.f32 %v5025_v32 }
 0xd34   : > { %v9656_v1 = vpop.eup %7448  ;;  %7466 = vpow2.f32 %v5049_v11  ;;  %6868 = vmatmul.mubr.msk.bf16.vlgmr.msra.gmra.mxu0 %vm1860_vm4, %v5102_v61  ;;  %v4996_v37 = vpop.xlane.xlu1 %4995  ;;  %v9704_v63 = vmul.f32 0.0, %v7447_v55  ;;  %v5403_v15 = vsel %vm1984_vm3, %v5398_v62, 0 }
 0xd35   : > { %v7451_v21 = vpop.eup %7450  ;;  %7468 = vpow2.f32 %v5023_v2  ;;  %6878 = vmatpush3.bf16.msra.mxu0 %v5259_v4  ;;  %v5004_v35 = vmax.f32 %v9432_v12, %v4996_v37  ;;  %6879 = vmatprep.mubr.msk.bf16.mxu0 %vm8096_vm0, %v8095_v0  ;;  %v9671_v16 = vmul.f32 %v9656_v1, %v4587_v26  ;;  %v5446_v2 = vrot.slane %v9436_v56, 2 }
 0xd36   : > { %7470 = vpow2.f32 %v5047_v24  ;;  %v5067_v20 = vsel %vm1860_vm4, %v7451_v21, 0.0  ;;  %v5103_v9 = vpack.c.bf16 %v7451_v21, %v7451_v21  ;;  %6889 = vmatprep.subr.bf16.mxu0 %v8095_v0  ;;  %v4590_v32 = vadd.f32 %v9532_v22, %v9704_v63 }
 0xd37   : > { %v7453_v28 = vpop.eup %7452  ;;  %v5012_v49 = vsub.f32 %v9432_v12, %v5004_v35  ;;  %v5036_v51 = vsub.f32 %v9578_v36, %v5004_v35  ;;  %5068 = vadd.xlane.f32.xlu0 %v5067_v20  ;;  %v5350_v36 = vrot.slane %v9390_v18, 2  ;;  %v5451_v4 = vsel %vm1984_vm3, %v5446_v2, 0 }
 0xd38   : > { %v9677_v10 = vpop.eup %7454  ;;  %6874 = vmatmul.mubr.msk.bf16.vlgmr.msra.gmra.mxu1 %vm1860_vm4, %v5103_v9  ;;  %v9700_v18 = vmul.f32 0.0, %v7453_v28  ;;  %v4177_v56 = vsel %vm1860_vm4, %v9343_v8, 0.0  ;;  %v5061_v8 = vsel %vm1860_vm4, %v9621_v5, 0.0 }
 0xd39   : > { %v7457_v17 = vpop.eup %7456  ;;  %v5027_v23 = vmul.f32 1.442695, %v5012_v49  ;;  %v5051_v13 = vmul.f32 1.442695, %v5036_v51  ;;  %6884 = vmatpush3.bf16.msra.mxu1 %v5307_v19  ;;  %6885 = vmatprep.mubr.msk.bf16.mxu1 %vm8096_vm0, %v8095_v0  ;;  %v9693_v6 = vmul.f32 %v9677_v10, %v4589_v41  ;;  %v5355_v58 = vsel %vm1984_vm3, %v5350_v36, 0  ;;  %v4185_v41 = vpop.xlane.xlu0 %4184 }
 0xd3a   : > { %v9687_v12 = vpop.eup %7458  ;;  %v5073_v52 = vsel %vm1860_vm4, %v7457_v17, 0.0  ;;  %6895 = vmatprep.subr.bf16.mxu1 %v8095_v0  ;;  %v5105_v50 = vpack.c.bf16 %v7457_v17, %v7457_v17  ;;  %v4591_v53 = vadd.f32 %v9534_v48, %v9700_v18  ;;  %v4180_v49 = vsel %vm1860_vm4, %v9350_v45, 0.0  ;;  %v4188_v19 = vpop.xlane.xlu1 %4187 }
 0xd3b   : > { %v7461_v40 = vpop.eup %7460  ;;  %7472 = vpow2.f32 %v5027_v23  ;;  %5074 = vadd.xlane.f32.xlu0 %v5073_v52  ;;  %v9696_v46 = vmul.f32 %v9687_v12, %v4588_v14  ;;  %v5064_v51 = vsel %vm1860_vm4, %v9649_v42, 0.0 }
 0xd3c   : > { %7474 = vpow2.f32 %v5051_v13  ;;  %v5070_v47 = vsel %vm1860_vm4, %v7461_v40, 0.0  ;;  %v5104_v25 = vpack.c.bf16 %v7461_v40, %v7461_v40 }
 0xd3d   : > { %5071 = vadd.xlane.f32.xlu1 %v5070_v47  ;;  %v7463_v33 = vpop.eup %7462  ;;  %v4191_v5 = vpop.xlane.xlu0 %4190 }
 0xd3e   : > { %6880 = vmatmul.mubr.msk.bf16.vlgmr.msra.gmra.mxu0 %vm1860_vm4, %v5104_v25  ;;  %v9731_v26 = vmul.f32 0.0, %v7463_v33  ;;  %v4194_v14 = vpop.xlane.xlu1 %4193 }
 0xd3f   : > { %6890 = vmatpush3.bf16.msra.mxu0 %v5355_v58  ;;  %6891 = vmatprep.mubr.msk.bf16.mxu0 %vm8096_vm0, %v8095_v0 }
 0xd40   : > { %v9710_v3 = vpop.eup %7464  ;;  %6886 = vmatmul.mubr.msk.bf16.vlgmr.msra.gmra.mxu1 %vm1860_vm4, %v5105_v50  ;;  %6901 = vmatprep.subr.bf16.mxu0 %v8095_v0  ;;  %v4592_v21 = vadd.f32 %v9538_v27, %v9731_v26 }
 0xd41   : > { %v7467_v38 = vpop.eup %7466  ;;  %6896 = vmatpush3.bf16.msra.mxu1 %v5403_v15  ;;  %6897 = vmatprep.mubr.msk.bf16.mxu1 %vm8096_vm0, %v8095_v0  ;;  %v9720_v48 = vmul.f32 %v9710_v3, %v4591_v53  ;;  %v4197_v17 = vpop.xlane.xlu0 %4196 }
 0xd42   : > { %v9722_v11 = vpop.eup %7468  ;;  %v5079_v24 = vsel %vm1860_vm4, %v7467_v38, 0.0  ;;  %6907 = vmatprep.subr.bf16.mxu1 %v8095_v0  ;;  %v5107_v37 = vpack.c.bf16 %v7467_v38, %v7467_v38  ;;  %v4200_v13 = vpop.xlane.xlu1 %4199 }
 0xd43   : > { %v7471_v61 = vpop.eup %7470  ;;  %5080 = vadd.xlane.f32.xlu0 %v5079_v24  ;;  %v9728_v55 = vmul.f32 %v9722_v11, %v4590_v32  ;;  %v4203_v32 = vadd.f32 %v4185_v41, %v9647_v34 }
 0xd44   : > { %v5076_v22 = vsel %vm1860_vm4, %v7471_v61, 0.0  ;;  %v5106_v60 = vpack.c.bf16 %v7471_v61, %v7471_v61  ;;  %v4204_v61 = vadd.f32 %v4188_v19, %v9673_v54 }
 0xd45   : > { %5077 = vadd.xlane.f32.xlu1 %v5076_v22  ;;  %v5055_v24 = vmul.f32 %v9656_v1, %v4203_v32 }
 0xd46   : > { %6892 = vmatmul.mubr.msk.bf16.vlgmr.msra.gmra.mxu0 %vm1860_vm4, %v5106_v60  ;;  %v5056_v60 = vmul.f32 %v9687_v12, %v4204_v61 }
 0xd47   : > { %6902 = vmatpush3.bf16.msra.mxu0 %v5451_v4  ;;  %4178 = vadd.xlane.f32.xlu0 %v4177_v56 }
 0xd48   : > { %v9739_v35 = vpop.eup %7472  ;;  %6898 = vmatmul.mubr.msk.bf16.vlgmr.msra.gmra.mxu1 %vm1860_vm4, %v5107_v37  ;;  %6903 = vmatprep.mubr.msk.bf16.mxu0 %vm8096_vm0, %v8095_v0 }
 0xd49   : > { %v7475_v20 = vpop.eup %7474  ;;  %v9745_v9 = vmul.f32 %v9739_v35, %v4592_v21  ;;  %6911 = vmatprep.mubr.msk.bf16.mxu1 %vm8096_vm0, %v8095_v0  ;;  %6915 = vmatprep.subr.bf16.mxu0 %v8095_v0 }
 0xd4a   : > { %v5082_v27 = vsel %vm1860_vm4, %v7475_v20, 0.0  ;;  %v5108_v28 = vpack.c.bf16 %v7475_v20, %v7475_v20  ;;  %v4206_v20 = vadd.f32 %v4194_v14, %v9704_v63 }
 0xd4b   : > { %5062 = vadd.xlane.f32.xlu0 %v5061_v8  ;;  %5083 = vadd.xlane.f32.xlu1 %v5082_v27 }
 0xd4c   : > { %v5058_v12 = vmul.f32 %v9722_v11, %v4206_v20 }
 0xd4e   : > { %6904 = vmatmul.mubr.msk.bf16.vlgmr.msra.gmra.mxu0 %vm1860_vm4, %v5108_v28 }
 0xd4f   : > { %4181 = vadd.xlane.f32.xlu1 %v4180_v49  ;;  %6919 = vmatprep.mubr.msk.bf16.mxu0 %vm8096_vm0, %v8095_v0 }
 0xd53   : > { %5065 = vadd.xlane.f32.xlu1 %v5064_v51 }
 0xdc0   : > { %v5069_v23 = vpop.xlane.xlu0 %5068 }
 0xdc1   : > { %v5087_v22 = vadd.f32 %v5069_v23, %v5055_v24 }
 0xdc4   : > { %v5075_v36 = vpop.xlane.xlu0 %5074 }
 0xdc6   : > { %v5072_v52 = vpop.xlane.xlu1 %5071 }
 0xdc7   : > { %v5088_v34 = vadd.f32 %v5072_v52, %v5056_v60 }
 0xdcc   : > { %v5081_v40 = vpop.xlane.xlu0 %5080 }
 0xdce   : > { %v5078_v62 = vpop.xlane.xlu1 %5077 }
 0xdcf   : > { %v5090_v49 = vadd.f32 %v5078_v62, %v5058_v12 }
 0xdd0   : > { %v4179_v45 = vpop.xlane.xlu0 %4178 }
 0xdd1   : > { %v4201_v25 = vadd.f32 %v4179_v45, %v9608_v30 }
 0xdd3   : > { %v5053_v58 = vmul.f32 %v9617_v39, %v4201_v25  ;;  %v4205_v39 = vadd.f32 %v4191_v5, %v9663_v59  ;;  %v4207_v59 = vadd.f32 %v4197_v17, %v9700_v18  ;;  %v4208_v17 = vadd.f32 %v4200_v13, %v9731_v26  ;;  %v7320_v13 = vld [vmem:[#allocation26 + $0x8] sm:$0xff]  }
 0xdd4   : > { %v5084_v47 = vpop.xlane.xlu1 %5083  ;;  %v5063_v50 = vpop.xlane.xlu0 %5062  ;;  %6908 = vmatpush3.bf16.msra.mxu1 %v7320_v13 }
 0xdd5   : > { %v5085_v33 = vadd.f32 %v5063_v50, %v5053_v58  ;;  %v5057_v56 = vmul.f32 %v9677_v10, %v4205_v39  ;;  %v5059_v10 = vmul.f32 %v9710_v3, %v4207_v59  ;;  %6909 = vmatprep.subr.bf16.mxu1 %v8095_v0 }
 0xdd7   : > { %7476 = vrcp.f32 %v5085_v33  ;;  %v5089_v21 = vadd.f32 %v5075_v36, %v5057_v56  ;;  %v5091_v19 = vadd.f32 %v5081_v40, %v5059_v10  ;;  %v5060_v36 = vmul.f32 %v9739_v35, %v4208_v17 }
 0xdd8   : > { %v4182_v42 = vpop.xlane.xlu1 %4181 }
 0xdd9   : > { %v4202_v53 = vadd.f32 %v4182_v42, %v9635_v7  ;;  %v5092_v62 = vadd.f32 %v5084_v47, %v5060_v36 }
 0xddb   : > { %v5054_v15 = vmul.f32 %v9642_v29, %v4202_v53 }
 0xddc   : > { %v5066_v38 = vpop.xlane.xlu1 %5065 }
 0xddd   : > { %v5086_v2 = vadd.f32 %v5066_v38, %v5054_v15 }
 0xddf   : > { %7478 = vrcp.f32 %v5086_v2 }
 0xde0   : > { %7480 = vrcp.f32 %v5087_v22 }
 0xde1   : > { %7482 = vrcp.f32 %v5088_v34 }
 0xde2   : > { %7484 = vrcp.f32 %v5089_v21 }
 0xde3   : > { %7486 = vrcp.f32 %v5090_v49 }
 0xde4   : > { %v7477_v4 = vpop.eup %7476  ;;  %7488 = vrcp.f32 %v5091_v19 }
 0xde5   : > { %7490 = vrcp.f32 %v5092_v62 }
 0xdec   : > { %v5151_v30 = vpop.f32.mrf.mxu1  ;;  %v7479_v27 = vpop.eup %7478 }
 0xded   : > { %v5493_v7 = vadd.f32 %v5151_v30, %v9624_v31  ;;  %v7481_v14 = vpop.eup %7480  ;;  %v7321_v30 = vld [vmem:[#allocation26] sm:$0xff]  }
 0xdee   : > { %v6863_v29 = vpop.f32.mrf.mxu1  ;;  %v7483_v25 = vpop.eup %7482  ;;  %6910 = vmatpush3.bf16.msra.mxu1 %v7321_v30 }
 0xdef   : > { %v9771_v37 = vmul.f32 %v7477_v4, %v5493_v7  ;;  %v7485_v42 = vpop.eup %7484  ;;  %6923 = vmatprep.subr.bf16.mxu1 %v8095_v0 }
 0xdf0   : > { %v5154_v1 = vpop.f32.mrf.mxu1  ;;  %v7487_v2 = vpop.eup %7486 }
 0xdf1   : > { %v7489_v39 = vpop.eup %7488 }
 0xdf2   : > { %v6864_v54 = vpop.f32.mrf.mxu1 }
 0xdf3   : > { %v7491_v54 = vpop.eup %7490 }
 0xdf4   : > { %v5199_v8 = vpop.f32.mrf.mxu0 }
 0xdf5   : > { %v5494_v31 = vadd.f32 %v5199_v8, %v9654_v57 }
 0xdf6   : > { %v6869_v28 = vpop.f32.mrf.mxu0 }
 0xdf7   : > { %v9778_v51 = vmul.f32 %v7479_v27, %v5494_v31 }
 0xdf8   : > { %v5202_v41 = vpop.f32.mrf.mxu0  ;;  %v5247_v5 = vpop.f32.mrf.mxu1 }
 0xdf9   : > { %v5495_v63 = vadd.f32 %v5247_v5, %v9671_v16 }
 0xdfa   : > { %v6870_v23 = vpop.f32.mrf.mxu0  ;;  %v6875_v18 = vpop.f32.mrf.mxu1 }
 0xdfb   : > { %v5511_v11 = vmul.f32 %v7481_v14, %v5495_v63 }
 0xdfc   : > { %v5250_v57 = vpop.f32.mrf.mxu1 }
 0xdfe   : > { %v5295_v3 = vpop.f32.mrf.mxu0  ;;  %v6876_v52 = vpop.f32.mrf.mxu1 }
 0xdff   : > { %v5496_v45 = vadd.f32 %v5295_v3, %v9696_v46 }
 0xe00   : > { %v6881_v40 = vpop.f32.mrf.mxu0  ;;  %v5343_v58 = vpop.f32.mrf.mxu1 }
 0xe01   : > { %v5512_v16 = vmul.f32 %v7483_v25, %v5496_v45  ;;  %v5497_v50 = vadd.f32 %v5343_v58, %v9693_v6 }
 0xe02   : > { %v5298_v33 = vpop.f32.mrf.mxu0  ;;  %v6887_v26 = vpop.f32.mrf.mxu1 }
 0xe03   : > { %v5513_v53 = vmul.f32 %v7485_v42, %v5497_v50  ;;  %v7291_v15 = vpack.i.bf16 %v5512_v16, %v5511_v11 }
 0xe04   : > { %v6882_v38 = vpop.f32.mrf.mxu0  ;;  %v5346_v35 = vpop.f32.mrf.mxu1 }
 0xe05   : > { %7292 = vrot.lane.b32.xlu0 %v7291_v15, %s9891_s6 }
 0xe06   : > { %v5391_v46 = vpop.f32.mrf.mxu0  ;;  %v6888_v47 = vpop.f32.mrf.mxu1 }
 0xe07   : > { %v5498_v32 = vadd.f32 %v5391_v46, %v9728_v55  ;;  %v7322_v46 = vld [vmem:[#allocation28 + $0x8] sm:$0xff]   ;;  %v7324_v47 = vld [vmem:[%s9960_s4 + $0x18] sm:$0xff]  }
 0xe08   : > { %v6893_v6 = vpop.f32.mrf.mxu0  ;;  %v5439_v24 = vpop.f32.mrf.mxu1  ;;  %6916 = vmatpush3.bf16.msra.mxu0 %v7322_v46 }
 0xe09   : > { %v5514_v61 = vmul.f32 %v7487_v2, %v5498_v32  ;;  %v5499_v22 = vadd.f32 %v5439_v24, %v9720_v48  ;;  %6917 = vmatprep.subr.bf16.mxu0 %v8095_v0 }
 0xe0a   : > { %v5394_v60 = vpop.f32.mrf.mxu0  ;;  %v6899_v7 = vpop.f32.mrf.mxu1 }
 0xe0b   : > { %v5515_v4 = vmul.f32 %v7489_v39, %v5499_v22  ;;  %v7296_v29 = vpack.i.bf16 %v5514_v61, %v5513_v53  ;;  %v6286_v60 = vld [vmem:[%s9961_s17] ss:$0 sm:$0xff] }
 0xe0c   : > { %v6894_v56 = vpop.f32.mrf.mxu0  ;;  %v5442_v34 = vpop.f32.mrf.mxu1 }
 0xe0d   : > { %7297 = vrot.lane.b32.xlu1 %v7296_v29, %s8102_s12  ;;  %v6287_v56 = vld [vmem:[%s8249_s5] ss:$0 sm:$0xff]  ;;  %s9964_s12 = sld [smem:[#allocation60_spill]] }
 0xe0e   : > { %v5487_v55 = vpop.f32.mrf.mxu0  ;;  %v6900_v1 = vpop.f32.mrf.mxu1 }
 0xe0f   : > { %v5500_v21 = vadd.f32 %v5487_v55, %v9745_v9 }
 0xe10   : > { %v6905_v20 = vpop.f32.mrf.mxu0 }
 0xe11   : > { %v5516_v48 = vmul.f32 %v7491_v54, %v5500_v21  ;;  %v7325_v54 = vld [vmem:[%s9960_s4 + $0x10] sm:$0xff]   ;;  %v7326_v20 = vld [vmem:[%s9960_s4 + $0x8] sm:$0xff]  }
 0xe12   : > { %v5490_v8 = vpop.f32.mrf.mxu0 }
 0xe13   : > { %v7301_v59 = vpack.i.bf16 %v5516_v48, %v5515_v4  ;;  %v7327_v48 = vld [vmem:[%s9960_s4] sm:$0xff]  }
 0xe14   : > { %v6906_v12 = vpop.f32.mrf.mxu0  ;;  %v6288_v8 = vld [vmem:[%s9962_s22] ss:$0 sm:$0xff] }
 0xe15   : > { %7302 = vrot.lane.b32.xlu1 %v7301_v59, %s9958_s10  ;;  %s6306_s10 = sshll.u32 %s8287_s26, 8  ;;  %s8104_s26 = smov [#allocation29]  }
 0xe77   : > { %v7293_v31 = vpop.permute.xlu0 %7292 }
 0xe78   : > { %v7295_v28 = vunpack.i.h.bf16 %v7293_v31  ;;  %v7294_v10 = vunpack.i.l.bf16 %v7293_v31 }
 0xe7a   : > { %v5542_v19 = vsel %vm1475_vm2, %v9778_v51, %v7295_v28  ;;  %v5541_v9 = vsel %vm1475_vm2, %v9771_v37, %v7294_v10  ;;  %v6282_v51 = vld [vmem:[%s9959_s9] ss:$0 sm:$0xff]  ;;  %s9966_s9 = sshll.u32 %s8491_s7, 4 }
 0xe7b   : > { %s1178_s17 = scalar_lea.vmem [#allocation29], %s9966_s9  ;;  %s7950_s9 = sshll.u32 %s8104_s26, 4  ;;  %s7951_s9 = int_to_ptr.vmem [resolvable:$false] %s7950_s9 }
 0xe7c   : > { %s5878_s22 = sshll.u32 %s1178_s17, 4  ;;  %s7952_s3 = scalar_lea.vmem %s7951_s9, 512  ;;  %s9837_s22 = int_to_ptr.vmem [resolvable:$true] %s5878_s22 }
 0xe7d   : > { %s7946_s6 = scalar_lea.vmem %s9837_s22, 256  ;;  %p7953_p2 = scmp.lt.s32.totalorder %s9837_s22, %s7951_s9 }
 0xe7e   : > { %p7947_p13 = scmp.ne.s32.totalorder %s9837_s22, %s7946_s6  ;;  %p7954_p3 = scmp.lt.s32.totalorder %s7952_s3, %s7946_s6 }
 0xe7f   : > { %v7298_v27 = vpop.permute.xlu1 %7297 }
 0xe80   : > { %v7300_v49 = vunpack.i.h.bf16 %v7298_v27  ;;  %v7299_v41 = vunpack.i.l.bf16 %v7298_v27  ;;  %p7948_p4 = pnand %p7947_p13, %p9967_p1  ;;  %p7955_p5 = por %p7954_p3, %p7953_p2 }
 0xe82   : > { %v5544_v23 = vsel %vm3308_vm5, %v5542_v19, %v7300_v49  ;;  %v5543_v18 = vsel %vm3308_vm5, %v5541_v9, %v7299_v41  ;;  %v6292_v19 = vld [vmem:[%s9963_s1] ss:$0 sm:$0xff]  ;;  %s9835_s1 = scalar_lea.hbm %s9965_s28, %s6306_s10  ;;  %p7949_p0 = pneg %p7948_p4 }
 0xe84   : > { %p7956_p11 = pnand %p7955_p5, %p7949_p0 }
 0xe87   : > { %v7303_v5 = vpop.permute.xlu1 %7302 }
 0xe88   : > { %v7305_v63 = vunpack.i.h.bf16 %v7303_v5  ;;  %v7304_v14 = vunpack.i.l.bf16 %v7303_v5 }
 0xe8a   : > { %v5546_v17 = vsel %vm3311_vm6, %v5544_v23, %v7305_v63  ;;  %v5545_v11 = vsel %vm3311_vm6, %v5543_v18, %v7304_v14 }
 0xe8b   : > { %v5547_v57 = vpack.c.bf16 %v5546_v17, %v5545_v11 }
 0xe8d   : > { %6912 = vmatmul.mubr.msk.bf16.vlgmr.msra.gmra.mxu1 %vm1218_vm1, %v5547_v57 }
 0xe8e   : > { %6931 = vmatprep.mubr.msk.bf16.mxu1 %vm8096_vm0, %v8095_v0  ;;  %6924 = vmatpush3.bf16.msra.mxu1 %v7324_v47 }
 0xe8f   : > { %6925 = vmatprep.subr.bf16.mxu1 %v8095_v0 }
 0xe92   : > { %6926 = vmatpush3.bf16.msra.mxu1 %v7325_v54 }
 0xe93   : > { %6927 = vmatprep.subr.bf16.mxu1 %v8095_v0 }
 0xe96   : > { %6928 = vmatpush3.bf16.msra.mxu1 %v7326_v20 }
 0xe97   : > { %6929 = vmatprep.subr.bf16.mxu1 %v8095_v0 }
 0xe9a   : > { %6930 = vmatpush3.bf16.msra.mxu1 %v7327_v48 }
 0xf4d   : > { %v5608_v36 = vpop.f32.mrf.mxu1 }
 0xf4e   : > { %v5609_v3 = vadd.f32 %v6282_v51, %v5608_v36 }
 0xf4f   : > { %v6913_v37 = vpop.f32.mrf.mxu1 }
 0xf50   : > { %v5615_v52 = vadd.f32 %v5609_v3, %v9183_v44 }
 0xf51   : > { %v5611_v62 = vpop.f32.mrf.mxu1 }
 0xf52   : > { %v5612_v45 = vadd.f32 %v6282_v51, %v5611_v62  ;;  %v5619_v25 = vsel %vm1218_vm1, %v5615_v52, 0.0 }
 0xf53   : > { %5620 = vadd.xlane.f32.xlu0 %v5619_v25  ;;  %v6914_v40 = vpop.f32.mrf.mxu1 }
 0xf54   : > { %v5616_v58 = vadd.f32 %v5612_v45, %v9185_v43  ;;  %v7323_v43 = vld [vmem:[#allocation28] sm:$0xff]  }
 0xf55   : > { %6918 = vmatpush3.bf16.msra.mxu0 %v7323_v43 }
 0xf56   : > { %v5622_v16 = vsel %vm1218_vm1, %v5616_v58, 0.0 }
 0xf57   : > { %5623 = vadd.xlane.f32.xlu1 %v5622_v16 }
 0xfdc   : > { %v5621_v50 = vpop.xlane.xlu0 %5620 }
 0xfdd   : > { %v5625_v42 = vmul.f32 0.03125, %v5621_v50 }
 0xfdf   : > { %v5627_v33 = vsub.f32 %v5615_v52, %v5625_v42 }
 0xfe0   : > { %v5624_v26 = vpop.xlane.xlu1 %5623 }
 0xfe1   : > { %v5626_v13 = vmul.f32 0.03125, %v5624_v26  ;;  %v5629_v53 = vmul.f32 %v5627_v33, %v5627_v33 }
 0xfe3   : > { %v5628_v15 = vsub.f32 %v5616_v58, %v5626_v13  ;;  %v5631_v44 = vsel %vm1218_vm1, %v5629_v53, 0.0 }
 0xfe4   : > { %5632 = vadd.xlane.f32.xlu0 %v5631_v44  ;;  %v6298_v44 = vld [vmem:[%s8254_s21] ss:$0 sm:$0xff] }
 0xfe5   : > { %v5630_v38 = vmul.f32 %v5628_v15, %v5628_v15 }
 0xfe7   : > { %v5634_v35 = vsel %vm1218_vm1, %v5630_v38, 0.0 }
 0xfe8   : > { %5635 = vadd.xlane.f32.xlu0 %v5634_v35  ;;  %v6299_v35 = vld [vmem:[%s9964_s12] ss:$0 sm:$0xff]  ;;  %s5865_s12 = scalar_lea.sflag [#allocation4], %s8491_s7 }
0x106d   : > { %v5633_v32 = vpop.xlane.xlu0 %5632 }
0x106e   : > { %v5637_v2 = vmul.f32 0.03125, %v5633_v32 }
0x1070   : > { %v5639_v6 = vadd.f32 1e-05, %v5637_v2 }
0x1071   : > { %v5636_v24 = vpop.xlane.xlu0 %5635 }
0x1072   : > { %7492 = vrsqrt.f32 %v5639_v6  ;;  %v5638_v61 = vmul.f32 0.03125, %v5636_v24 }
0x1074   : > { %v5640_v22 = vadd.f32 1e-05, %v5638_v61 }
0x1076   : > { %7494 = vrsqrt.f32 %v5640_v22 }
0x107f   : > { %v7493_v30 = vpop.eup %7492 }
0x1080   : > { %v5643_v39 = vmul.f32 %v7493_v30, %v5627_v33 }
0x1082   : > { %v5651_v4 = vmul.f32 %v6286_v60, %v5643_v39 }
0x1083   : > { %v7495_v7 = vpop.eup %7494 }
0x1084   : > { %v5644_v29 = vmul.f32 %v7495_v7, %v5628_v15  ;;  %v5659_v55 = vadd.f32 %v6287_v56, %v5651_v4 }
0x1086   : > { %v5652_v34 = vmul.f32 %v6286_v60, %v5644_v29 }
0x1088   : > { %v5660_v1 = vadd.f32 %v6287_v56, %v5652_v34 }
0x108a   : > { %v5661_v21 = vpack.c.bf16 %v5660_v1, %v5659_v55 }
0x108c   : > { %6920 = vmatmul.mubr.msk.bf16.vlgmr.msra.gmra.mxu0 %vm1218_vm1, %v5661_v21 }
0x114c   : > { %v5722_v59 = vpop.f32.mrf.mxu0 }
0x114d   : > { %v5723_v31 = vadd.f32 %v6288_v8, %v5722_v59 }
0x114e   : > { %v6921_v12 = vpop.f32.mrf.mxu0 }
0x114f   : > { %v5729_v49 = vmax.f32 %v5723_v31, 0.0 }
0x1150   : > { %v5725_v27 = vpop.f32.mrf.mxu0 }
0x1151   : > { %v5726_v28 = vadd.f32 %v6288_v8, %v5725_v27 }
0x1152   : > { %v6922_v10 = vpop.f32.mrf.mxu0 }
0x1153   : > { %v5730_v41 = vmax.f32 %v5726_v28, 0.0 }
0x1155   : > { %v5731_v5 = vpack.c.bf16 %v5730_v41, %v5729_v49 }
0x1157   : > { %6932 = vmatmul.mubr.msk.bf16.vlgmr.msra.gmra.mxu1 %vm5771_vm7, %v5731_v5 }
0x1217   : > { %v5809_v9 = vpop.f32.mrf.mxu1 }
0x1218   : > { %v5810_v63 = vadd.f32 %v6292_v19, %v5809_v9 }
0x1219   : > { %v6933_v14 = vpop.f32.mrf.mxu1 }
0x121a   : > { %v5816_v23 = vadd.f32 %v5810_v63, %v5659_v55 }
0x121b   : > { %v5812_v0 = vpop.f32.mrf.mxu1 }
0x121c   : > { %v5813_v18 = vadd.f32 %v6292_v19, %v5812_v0  ;;  %v5820_v17 = vsel %vm1218_vm1, %v5816_v23, 0.0 }
0x121d   : > { %5821 = vadd.xlane.f32.xlu1 %v5820_v17  ;;  %v6934_v11 = vpop.f32.mrf.mxu1 }
0x121e   : > { %v5817_v57 = vadd.f32 %v5813_v18, %v5660_v1 }
0x1220   : > { %v5823_v51 = vsel %vm1218_vm1, %v5817_v57, 0.0 }
0x1221   : > { %5824 = vadd.xlane.f32.xlu0 %v5823_v51 }
0x12a6   : > { %v5822_v36 = vpop.xlane.xlu1 %5821 }
0x12a7   : > { %v5826_v3 = vmul.f32 0.03125, %v5822_v36 }
0x12a9   : > { %v5828_v37 = vsub.f32 %v5816_v23, %v5826_v3 }
0x12aa   : > { %v5825_v52 = vpop.xlane.xlu0 %5824 }
0x12ab   : > { %v5827_v62 = vmul.f32 0.03125, %v5825_v52  ;;  %v5830_v45 = vmul.f32 %v5828_v37, %v5828_v37 }
0x12ad   : > { %v5829_v25 = vsub.f32 %v5817_v57, %v5827_v62  ;;  %v5832_v40 = vsel %vm1218_vm1, %v5830_v45, 0.0 }
0x12ae   : > { %5833 = vadd.xlane.f32.xlu1 %v5832_v40 }
0x12af   : > { %v5831_v58 = vmul.f32 %v5829_v25, %v5829_v25 }
0x12b1   : > { %v5835_v16 = vsel %vm1218_vm1, %v5831_v58, 0.0 }
0x12b2   : > { %5836 = vadd.xlane.f32.xlu0 %v5835_v16 }
0x1337   : > { %v5834_v50 = vpop.xlane.xlu1 %5833 }
0x1338   : > { %v5838_v42 = vmul.f32 0.03125, %v5834_v50 }
0x133a   : > { %v5840_v33 = vadd.f32 1e-05, %v5838_v42 }
0x133b   : > { %v5837_v26 = vpop.xlane.xlu0 %5836 }
0x133c   : > { %7496 = vrsqrt.f32 %v5840_v33  ;;  %v5839_v13 = vmul.f32 0.03125, %v5837_v26 }
0x133e   : > { %v5841_v53 = vadd.f32 1e-05, %v5839_v13 }
0x1340   : > { %7498 = vrsqrt.f32 %v5841_v53 }
0x1349   : > { %v7497_v15 = vpop.eup %7496 }
0x134a   : > { %v5844_v38 = vmul.f32 %v7497_v15, %v5828_v37 }
0x134c   : > { %v5852_v46 = vmul.f32 %v6298_v44, %v5844_v38 }
0x134d   : > { %v7499_v43 = vpop.eup %7498 }
0x134e   : > { %v5860_v47 = vadd.f32 %v6299_v35, %v5852_v46  ;;  %v5845_v32 = vmul.f32 %v7499_v43, %v5829_v25 }
0x1350   : > { %v5853_v2 = vmul.f32 %v6298_v44, %v5845_v32  ;;  %5862 = vst.msk [vmem:[%s1178_s17] sm:$0xff] %vm1218_vm1, %v5860_v47 }
0x1352   : > { %v5861_v6 = vadd.f32 %v6299_v35, %v5853_v2 }
0x1354   : > { %5863 = vst.msk [vmem:[%s1178_s17 + $0x8] sm:$0xff] %vm1218_vm1, %v5861_v6 }
0x1355   : > { %7959 = shalt.err (!%p7956_p11)
}
0x1356   : > { %s7960_s10 = scalar_lea.hbm %s9835_s1, 256  ;;  %s7964_s17 = scalar_lea.hbm %s9965_s28, 512 }
0x1357   : > { %p7961_p12 = scmp.ne.s32.totalorder %s9835_s1, %s7960_s10  ;;  %p7965_p8 = scmp.lt.s32.totalorder %s9835_s1, %s9965_s28 }
0x1358   : > { %p7966_p9 = scmp.lt.s32.totalorder %s7964_s17, %s7960_s10 }
0x1359   : > { %p7962_p7 = pnand %p7961_p12, %p9967_p1 }
0x135a   : > { %p7967_p10 = por %p7966_p9, %p7965_p8 }
0x135b   : > { %p7963_p6 = pneg %p7962_p7 }
0x135d   : > { %p7968_p13 = pnand %p7967_p10, %p7963_p6 }
0x135f   : > { %7971 = shalt.err (!%p7968_p13)
}
0x1360   : > { %s8105_s3 = smov 128   ;;  %s9968_s6 = smov 8  }
0x1361   : > { %7001 = dma.vmem_to_hbm [thread:$0]  (%p9967_p1), %s9837_s22, 256, %s9835_s1, %s5865_s12, %s8105_s3, %s8105_s3, %s9968_s6  }
0x1362 PF: > { %s5893_s26 = sand.u32 1, %s8030_s15   ;;  %p9969_p4 = scmp.ne.s32.totalorder %s9933_s23, 0 }
0x1363   : > { %p9970_p0 = scmp.ge.s32.totalorder %s8042_s0, 2  ;;  %s5894_s9 = scalar_lea.sflag [#allocation4], %s5893_s26 }
0x1365   : > { %p7057_p2 = pnand %p9970_p0, %p9969_p4 }
0x1367   : > { %p7058_p3 = pneg %p7057_p2 }
0x1369   : > { %8025 = dma.done.wait (%p7058_p3), %s5894_s9, 256  }
0x136a   : > { %8027 = vsyncadd (%p7058_p3), %s5894_s9, 4294967040  ;;  %p82_p5 = scmp.ge.s32.totalorder %s8425_s11, 4   ;;  %s9971_s15 = smov %s8034_s16 }
0x136b   : > { %s9972_s16 = smov %s8038_s18  ;;  %s9973_s18 = smov %s8436_s13 }
0x136c   : > { %s9974_s0 = smov %s8425_s11  ;;  %84 = sbr.rel (!%p82_p5) target bundleno = 73 (0x49), region = 282 }
0x1371   :  { %5899 = vsyncpa [#allocation3], 1 }
0x1372   :  { %5901 = vsyncpa [#allocation3 + $0x1], 1 }
0x1373   :  { %5902 = vsyncpa [#allocation6], 1 }
0x1374   :  { %5903 = vsyncpa [#allocation9], 1 }
0x1375   :  { %5904 = vsyncpa [#allocation12], 1 }
0x1376   :  { %5905 = vsyncpa [#allocation15], 1 }
0x1377   :  { %5906 = vsyncpa [#allocation18], 1 }
0x1378   :  { %5907 = vsyncpa [#allocation21], 1 }
0x1379   :  { %5908 = vsyncpa [#allocation24], 1 }
0x137a   :  { %5909 = vsyncpa [#allocation27], 1 }
0x137b   :  { %5910 = vsyncpa [#allocation4], 1 }
0x137c   :  { %5912 = vsyncpa [#allocation4 + $0x1], 1 }

</bundles_post_ra>
